<compile_context>
chip_gen: v5e
topology: v5e:2x2
jax: 0.10.0
libtpu: 0.0.40
codegen_flags: <defaults>
</compile_context>

<pallas_src>
import math
import numpy as np
import jax
import jax.numpy as jnp
from jax.experimental import pallas as pl
from jax.experimental.pallas import tpu as pltpu

LANE = 128
_EPS = 1e-5

# (parity, collapsed 2-tap index) -> original 3x3 taps that fall on it once the
# nearest-2x upsample is folded into the convolution.
_COLLAPSE = {(0, 0): (0,), (0, 1): (1, 2), (1, 0): (0, 1), (1, 1): (2,)}


def _round_up(v, m):
    return (v + m - 1) // m * m


def _pick_tile(h, target=8):
    t = min(h, target)
    while h % t:
        t -= 1
    return t


# ----------------------------- Pallas kernels ------------------------------

def _conv1_up_kernel(xc_ref, inv1_ref, w1c_ref, b1_ref, o_ref):
    """Fused BN1(apply) + ReLU + nearest-2x upsample + conv3x3 + bias.

    xc_ref  : (1, H+2, W+2, Cin_p)   spatially padded, mean-centred input (f32)
    inv1_ref: (1, Cin_p)             rsqrt(var1 + eps)
    w1c_ref : (8, 2*Cin_p, Cout_p)   collapsed sub-pixel weights (bf16),
                                     index = (py*2 + px)*2 + a
    b1_ref  : (1, Cout_p)
    o_ref   : (TY, 2, W+2, 2*Cout_p) phased, column-padded conv1 output:
              o[y, py, x+1, px*Cout_p + c] = conv1(up(relu(bn(x))))[2y+py, 2x+px, c]
    """
    TY = o_ref.shape[0]
    W = o_ref.shape[2] - 2
    Cout_p = o_ref.shape[3] // 2
    Cin_p = xc_ref.shape[3]

    y0 = pl.program_id(1) * TY
    slab = xc_ref[0, pl.ds(y0, TY + 2), :, :]                 # (TY+2, W+2, Cin_p)
    act = jnp.maximum(slab * inv1_ref[...], 0.0).astype(jnp.bfloat16)

    zcol = jnp.zeros((TY, 1, Cout_p), jnp.float32)
    for py in range(2):
        for px in range(2):
            acc = jnp.zeros((TY * W, Cout_p), jnp.float32)
            for a in range(2):
                rows = act[py + a:py + a + TY]                # (TY, W+2, Cin_p)
                patch = jnp.concatenate(
                    [rows[:, px:px + W, :], rows[:, px + 1:px + 1 + W, :]],
                    axis=-1).reshape(TY * W, 2 * Cin_p)
                acc = acc + jnp.dot(patch, w1c_ref[(py * 2 + px) * 2 + a],
                                    preferred_element_type=jnp.float32)
            res = (acc + b1_ref[...]).reshape(TY, W, Cout_p)
            o_ref[:, py, :, px * Cout_p:(px + 1) * Cout_p] = jnp.concatenate(
                [zcol, res, zcol], axis=1)


def _conv2_bypass_kernel(h1_ref, xc_ref, m2_ref, inv2_ref, w2_ref, wb_ref,
                         bias_ref, o_ref):
    """Fused BN2(apply) + ReLU + conv3x3 + bypass 1x1 conv + folded biases.

    h1_ref  : (H, 2, W+2, 2*Cout_p)  phased, column-padded conv1 output (f32)
    xc_ref  : (1, H+2, W+2, Cin_p)   padded mean-centred raw input (bypass)
    m2_ref  : (1, 2*Cout_p)          BN2 mean (tiled over the column phase)
    inv2_ref: (1, 2*Cout_p)          BN2 rsqrt(var + eps)
    w2_ref  : (3, 3*Cout_p, Cout_p)  conv2 weights, dx folded into K (bf16)
    wb_ref  : (Cin_p, Cout_p)        bypass 1x1 weights (bf16)
    bias_ref: (1, Cout_p)            b2 + bb + mean1 @ wb
    o_ref   : (TY, 2, W, 2*Cout_p)   phased final output
    """
    TY = o_ref.shape[0]
    W = o_ref.shape[2]
    Cout_p = o_ref.shape[3] // 2
    Cin_p = xc_ref.shape[3]
    H = h1_ref.shape[0]

    rt = pl.program_id(1)
    y0 = rt * TY

    def bn_relu(v):
        return jnp.maximum((v - m2_ref[...]) * inv2_ref[...], 0.0)

    # Row halo handled in-kernel: clamped reads + validity mask (no jnp.pad of
    # the big full-resolution tensor in XLA).
    mid = bn_relu(h1_ref[pl.ds(y0, TY)])                       # (TY, 2, W+2, 2C)
    top = bn_relu(h1_ref[jnp.maximum(y0 - 1, 0)]) * \
        jnp.where(rt > 0, 1.0, 0.0)
    bot = bn_relu(h1_ref[jnp.minimum(y0 + TY, H - 1)]) * \
        jnp.where(rt < pl.num_programs(1) - 1, 1.0, 0.0)
    slab = jnp.concatenate([top[None], mid, bot[None]], axis=0)  # (TY+2,2,W+2,2C)

    # Zero the spatial pad columns (they are zero pre-BN, not post-BN).
    col = jax.lax.broadcasted_iota(jnp.int32, (W + 2, 1), 0)
    colmask = jnp.where((col == 0) | (col == W + 1), 0.0, 1.0)
    slab = (slab * colmask[None, None]).astype(jnp.bfloat16)

    # Bypass: conv1x1 commutes with nearest upsampling -> apply at low res.
    xb = xc_ref[0, pl.ds(y0 + 1, TY), 1:W + 1, :].astype(jnp.bfloat16)
    byp = jnp.dot(xb.reshape(TY * W, Cin_p), wb_ref[...],
                  preferred_element_type=jnp.float32)
    base = byp + bias_ref[...]

    for py in range(2):
        for px in range(2):
            acc = base
            for dy in range(3):
                oy, pf = divmod(py + dy - 1, 2)
                rows = slab[oy + 1:oy + 1 + TY, pf]            # (TY, W+2, 2C)
                taps = []
                for dx in range(3):
                    ox, qf = divmod(px + dx - 1, 2)
                    taps.append(rows[:, ox + 1:ox + 1 + W,
                                     qf * Cout_p:(qf + 1) * Cout_p])
                patch = jnp.concatenate(taps, axis=-1).reshape(TY * W,
                                                               3 * Cout_p)
                acc = acc + jnp.dot(patch, w2_ref[dy],
                                    preferred_element_type=jnp.float32)
            o_ref[:, py, :, px * Cout_p:(px + 1) * Cout_p] = acc.reshape(
                TY, W, Cout_p)


# ------------------------------ Pallas wrappers -----------------------------

def conv1_upsample_pallas(xc_pad, inv1, w1c, b1, *, H, W, TY):
    N = xc_pad.shape[0]
    Cin_p = xc_pad.shape[-1]
    Cout_p = b1.shape[-1]
    RT = H // TY
    return pl.pallas_call(
        _conv1_up_kernel,
        out_shape=jax.ShapeDtypeStruct((N * H, 2, W + 2, 2 * Cout_p),
                                       jnp.float32),
        grid=(N, RT),
        in_specs=[
            pl.BlockSpec((1, H + 2, W + 2, Cin_p), lambda n, rt: (n, 0, 0, 0)),
            pl.BlockSpec((1, Cin_p), lambda n, rt: (0, 0)),
            pl.BlockSpec((8, 2 * Cin_p, Cout_p), lambda n, rt: (0, 0, 0)),
            pl.BlockSpec((1, Cout_p), lambda n, rt: (0, 0)),
        ],
        out_specs=pl.BlockSpec((TY, 2, W + 2, 2 * Cout_p),
                               lambda n, rt: (n * RT + rt, 0, 0, 0)),
        compiler_params=pltpu.CompilerParams(
            dimension_semantics=("parallel", "parallel"),
            vmem_limit_bytes=64 * 1024 * 1024),
    )(xc_pad, inv1, w1c, b1)


def conv2_bypass_pallas(h1p, xc_pad, m2b, inv2b, w2r, wb, bias2, *, H, W, TY):
    N = xc_pad.shape[0]
    Cin_p = xc_pad.shape[-1]
    Cout_p = bias2.shape[-1]
    RT = H // TY
    return pl.pallas_call(
        _conv2_bypass_kernel,
        out_shape=jax.ShapeDtypeStruct((N * H, 2, W, 2 * Cout_p), jnp.float32),
        grid=(N, RT),
        in_specs=[
            pl.BlockSpec((H, 2, W + 2, 2 * Cout_p), lambda n, rt: (n, 0, 0, 0)),
            pl.BlockSpec((1, H + 2, W + 2, Cin_p), lambda n, rt: (n, 0, 0, 0)),
            pl.BlockSpec((1, 2 * Cout_p), lambda n, rt: (0, 0)),
            pl.BlockSpec((1, 2 * Cout_p), lambda n, rt: (0, 0)),
            pl.BlockSpec((3, 3 * Cout_p, Cout_p), lambda n, rt: (0, 0, 0)),
            pl.BlockSpec((Cin_p, Cout_p), lambda n, rt: (0, 0)),
            pl.BlockSpec((1, Cout_p), lambda n, rt: (0, 0)),
        ],
        out_specs=pl.BlockSpec((TY, 2, W, 2 * Cout_p),
                               lambda n, rt: (n * RT + rt, 0, 0, 0)),
        compiler_params=pltpu.CompilerParams(
            dimension_semantics=("parallel", "parallel"),
            vmem_limit_bytes=64 * 1024 * 1024),
    )(h1p, xc_pad, m2b, inv2b, w2r, wb, bias2)


# --------------------------------- forward ----------------------------------

def resblock_generator_forward(x_nchw, params, eps=_EPS):
    """ResBlockGenerator.forward:  (N, Cin, H, W) -> (N, Cout, 2H, 2W)."""
    N, Cin, H, W = x_nchw.shape
    w1, w2, wb = params["w1_oihw"], params["w2_oihw"], params["wb_oihw"]
    b1, b2, bb = params["b1_v"], params["b2_v"], params["bb_v"]
    Cout = w1.shape[0]
    Cin_p = _round_up(Cin, LANE)
    Cout_p = _round_up(Cout, LANE)
    TY = _pick_tile(H)

    # --- BN1 statistics + centring (cheap, low-res, done once in JAX) -------
    # TODO(synk): BatchNorm running-stat buffer updates (training side effect)
    # are not emulated; forward values match training-mode normalization.
    x = jnp.transpose(x_nchw, (0, 2, 3, 1)).astype(jnp.float32)      # NHWC
    m1 = jnp.mean(x, axis=(0, 1, 2))
    v1 = jnp.mean(jnp.square(x - m1), axis=(0, 1, 2))
    inv1 = jax.lax.rsqrt(v1 + eps)
    xc_pad = jnp.pad(x - m1, ((0, 0), (1, 1), (1, 1), (0, Cin_p - Cin)))
    inv1_p = jnp.pad(inv1, (0, Cin_p - Cin)).reshape(1, Cin_p)

    # --- conv1 weights with the nearest-2x upsample folded in ---------------
    w1_hwio = jnp.pad(jnp.transpose(w1, (2, 3, 1, 0)),
                      ((0, 0), (0, 0), (0, Cin_p - Cin), (0, Cout_p - Cout)))
    blocks = []
    for py in range(2):
        for px in range(2):
            for a in range(2):
                wdy = sum(w1_hwio[dy] for dy in _COLLAPSE[(py, a)])
                per_b = [sum(wdy[dx] for dx in _COLLAPSE[(px, b)])
                         for b in range(2)]
                blocks.append(jnp.stack(per_b, 0).reshape(2 * Cin_p, Cout_p))
    w1c = jnp.stack(blocks, 0).astype(jnp.bfloat16)        # (8, 2*Cin_p, Cout_p)
    b1_p = jnp.pad(b1, (0, Cout_p - Cout)).reshape(1, Cout_p).astype(jnp.float32)

    h1p = conv1_upsample_pallas(xc_pad, inv1_p, w1c, b1_p, H=H, W=W, TY=TY)

    # --- BN2 statistics (interior columns only; pad columns excluded) -------
    h1i = h1p[:, :, 1:W + 1, :].reshape(N * H, 2, W, 2, Cout_p)
    m2 = jnp.mean(h1i, axis=(0, 1, 2, 3))
    v2 = jnp.mean(jnp.square(h1i - m2), axis=(0, 1, 2, 3))
    inv2 = jax.lax.rsqrt(v2 + eps)
    m2b = jnp.tile(m2, 2).reshape(1, 2 * Cout_p)
    inv2b = jnp.tile(inv2, 2).reshape(1, 2 * Cout_p)

    # --- conv2 / bypass weights & folded bias --------------------------------
    w2_hwio = jnp.pad(jnp.transpose(w2, (2, 3, 1, 0)),
                      ((0, 0), (0, 0), (0, Cout_p - Cout), (0, Cout_p - Cout)))
    w2r = w2_hwio.reshape(3, 3 * Cout_p, Cout_p).astype(jnp.bfloat16)
    wb_io = jnp.transpose(wb[:, :, 0, 0], (1, 0))                    # (Cin, Cout)
    wb_p = jnp.pad(wb_io, ((0, Cin_p - Cin),
                           (0, Cout_p - Cout))).astype(jnp.bfloat16)
    bias2 = b2 + bb + m1 @ wb_io
    bias2_p = jnp.pad(bias2, (0, Cout_p - Cout)).reshape(
        1, Cout_p).astype(jnp.float32)

    out_ph = conv2_bypass_pallas(h1p, xc_pad, m2b, inv2b, w2r, wb_p, bias2_p,
                                 H=H, W=W, TY=TY)

    # Phased layout (N*H, 2, W, 2*Cout_p) is bit-identical to interleaved NHWC.
    out = out_ph.reshape(N, 2 * H, 2 * W, Cout_p)[..., :Cout]
    return jnp.transpose(out, (0, 3, 1, 2))                          # NCHW


# -------------------------- deterministic params ----------------------------

def make_params(key, in_channels, out_channels):
    k1, k2, k3, kb1, kb2, kb3 = jax.random.split(key, 6)

    def xavier(k, cout, cin, kh, kw, gain):
        fan_in, fan_out = cin * kh * kw, cout * kh * kw
        bound = gain * math.sqrt(6.0 / (fan_in + fan_out))
        return jax.random.uniform(k, (cout, cin, kh, kw), jnp.float32,
                                  -bound, bound)

    def bias(k, cout, fan_in):
        bnd = 1.0 / math.sqrt(fan_in)
        return jax.random.uniform(k, (cout,), jnp.float32, -bnd, bnd)

    return {
        "w1_oihw": xavier(k1, out_channels, in_channels, 3, 3, math.sqrt(2.0)),
        "w2_oihw": xavier(k2, out_channels, out_channels, 3, 3, math.sqrt(2.0)),
        "wb_oihw": xavier(k3, out_channels, in_channels, 1, 1, 1.0),
        "b1_v": bias(kb1, out_channels, in_channels * 9),
        "b2_v": bias(kb2, out_channels, out_channels * 9),
        "bb_v": bias(kb3, out_channels, in_channels * 1),
    }


# ------------------------------ pure-JAX reference ---------------------------

def _conv_ref_nchw(x, w_oihw, b, pad):
    y = jax.lax.conv_general_dilated(
        x, w_oihw, window_strides=(1, 1), padding=[(pad, pad), (pad, pad)],
        dimension_numbers=("NCHW", "OIHW", "NCHW"))
    return y + b[None, :, None, None]


def _bn_train_nchw(x, eps=_EPS):
    mean = jnp.mean(x, axis=(0, 2, 3), keepdims=True)
    var = jnp.mean(jnp.square(x - mean), axis=(0, 2, 3), keepdims=True)
    return (x - mean) * jax.lax.rsqrt(var + eps)


def _upsample2_nchw(x):
    return jnp.repeat(jnp.repeat(x, 2, axis=2), 2, axis=3)


def resblock_reference(x, p):
    h = jax.nn.relu(_bn_train_nchw(x))
    h = _upsample2_nchw(h)
    h = _conv_ref_nchw(h, p["w1_oihw"], p["b1_v"], pad=1)
    h = jax.nn.relu(_bn_train_nchw(h))
    h = _conv_ref_nchw(h, p["w2_oihw"], p["b2_v"], pad=1)
    byp = _conv_ref_nchw(_upsample2_nchw(x), p["wb_oihw"], p["bb_v"], pad=0)
    return h + byp


# ----------------------------------- main ------------------------------------

if __name__ == "__main__":
    key = jax.random.PRNGKey(0)
    kx, kp = jax.random.split(key)

    N, Cin, Cout, H, W = 2, 4, 8, 16, 16
    x = jax.random.normal(kx, (N, Cin, H, W), jnp.float32)   # NCHW like PyTorch
    params = make_params(kp, Cin, Cout)

    fwd = jax.jit(resblock_generator_forward)
    out = jax.block_until_ready(fwd(x, params))
    assert out.shape == (N, Cout, 2 * H, 2 * W), out.shape

    ref = jax.block_until_ready(resblock_reference(x, params))
    # bf16 MXU operands with f32 accumulation -> slightly looser tolerance.
    np.testing.assert_allclose(np.asarray(out), np.asarray(ref),
                               rtol=2e-2, atol=2e-2)

    print("KERNEL_OK")
</pallas_src>

<mosaic_0001>
module attributes {stable_mosaic.version = 11 : i64} {
  func.func @_conv1_up_kernel(%arg0: i32, %arg1: i32, %arg2: memref<1x18x18x128xf32, #tpu.memory_space<vmem>>, %arg3: memref<1x128xf32, #tpu.memory_space<vmem>>, %arg4: memref<8x256x128xbf16, #tpu.memory_space<vmem>>, %arg5: memref<1x128xf32, #tpu.memory_space<vmem>>, %arg6: memref<8x2x18x256xf32, #tpu.memory_space<vmem>>) attributes {dimension_semantics = [#tpu.dimension_semantics<parallel>, #tpu.dimension_semantics<parallel>], iteration_bounds = array<i64: 2, 2>, scalar_prefetch = 0 : i64, scratch_operands = 0 : i64, tpu.core_type = #tpu.core_type<tc>, window_params = [{transform_indices = @transform_0, window_bounds = array<i64: 1, 18, 18, 128>}, {pipeline_mode = #tpu.pipeline_mode<synchronous>, transform_indices = @transform_1, window_bounds = array<i64: 1, 128>}, {pipeline_mode = #tpu.pipeline_mode<synchronous>, transform_indices = @transform_2, window_bounds = array<i64: 8, 256, 128>}, {pipeline_mode = #tpu.pipeline_mode<synchronous>, transform_indices = @transform_3, window_bounds = array<i64: 1, 128>}, {transform_indices = @transform_4, window_bounds = array<i64: 8, 2, 18, 256>}]} {
    %c8_i32 = arith.constant 8 : i32
    %0 = arith.muli %arg1, %c8_i32 : i32
    %c0 = arith.constant 0 : index
    %1 = arith.index_cast %0 : i32 to index
    %c0_0 = arith.constant 0 : index
    %c0_1 = arith.constant 0 : index
    %2 = vector.load %arg2[%c0, %1, %c0_0, %c0_1] : memref<1x18x18x128xf32, #tpu.memory_space<vmem>>, vector<1x10x18x128xf32>
    %3 = vector.shape_cast %2 : vector<1x10x18x128xf32> to vector<10x18x128xf32>
    %c0_2 = arith.constant 0 : index
    %c0_3 = arith.constant 0 : index
    %4 = vector.load %arg3[%c0_2, %c0_3] : memref<1x128xf32, #tpu.memory_space<vmem>>, vector<1x128xf32>
    %5 = vector.shape_cast %4 : vector<1x128xf32> to vector<1x1x128xf32>
    %6 = vector.broadcast %5 : vector<1x1x128xf32> to vector<10x18x128xf32>
    %7 = arith.mulf %3, %6 : vector<10x18x128xf32>
    %cst = arith.constant 0.000000e+00 : f32
    %8 = vector.broadcast %cst : f32 to vector<10x18x128xf32>
    %9 = arith.maximumf %7, %8 : vector<10x18x128xf32>
    %10 = arith.truncf %9 : vector<10x18x128xf32> to vector<10x18x128xbf16>
    %cst_4 = arith.constant 0.000000e+00 : f32
    %11 = vector.broadcast %cst_4 : f32 to vector<8x1x128xf32>
    %cst_5 = arith.constant 0.000000e+00 : f32
    %12 = vector.broadcast %cst_5 : f32 to vector<128x128xf32>
    %13 = vector.extract_strided_slice %10 {offsets = [0, 0, 0], sizes = [8, 18, 128], strides = [1, 1, 1]} : vector<10x18x128xbf16> to vector<8x18x128xbf16>
    %14 = vector.extract_strided_slice %13 {offsets = [0, 0, 0], sizes = [8, 16, 128], strides = [1, 1, 1]} : vector<8x18x128xbf16> to vector<8x16x128xbf16>
    %15 = vector.extract_strided_slice %13 {offsets = [0, 1, 0], sizes = [8, 16, 128], strides = [1, 1, 1]} : vector<8x18x128xbf16> to vector<8x16x128xbf16>
    %16 = tpu.concatenate %14, %15 in 2 : vector<8x16x128xbf16>, vector<8x16x128xbf16> -> vector<8x16x256xbf16>
    %17 = vector.shape_cast %16 : vector<8x16x256xbf16> to vector<128x256xbf16>
    %c0_6 = arith.constant 0 : index
    %c0_7 = arith.constant 0 : index
    %c0_8 = arith.constant 0 : index
    %18 = vector.load %arg4[%c0_6, %c0_7, %c0_8] : memref<8x256x128xbf16, #tpu.memory_space<vmem>>, vector<1x256x128xbf16>
    %19 = vector.shape_cast %18 : vector<1x256x128xbf16> to vector<256x128xbf16>
    %cst_9 = arith.constant dense<0.000000e+00> : vector<128x128xf32>
    %20 = tpu.matmul %17, %19, %cst_9 {dimension_numbers = #tpu.dot_dimension_numbers<[1], [0], [0], [1], [0, 0, 1, 1], [], []>} : vector<128x256xbf16>, vector<256x128xbf16>, vector<128x128xf32> -> vector<128x128xf32>
    %21 = arith.addf %12, %20 : vector<128x128xf32>
    %22 = vector.extract_strided_slice %10 {offsets = [1, 0, 0], sizes = [8, 18, 128], strides = [1, 1, 1]} : vector<10x18x128xbf16> to vector<8x18x128xbf16>
    %23 = vector.extract_strided_slice %22 {offsets = [0, 0, 0], sizes = [8, 16, 128], strides = [1, 1, 1]} : vector<8x18x128xbf16> to vector<8x16x128xbf16>
    %24 = vector.extract_strided_slice %22 {offsets = [0, 1, 0], sizes = [8, 16, 128], strides = [1, 1, 1]} : vector<8x18x128xbf16> to vector<8x16x128xbf16>
    %25 = tpu.concatenate %23, %24 in 2 : vector<8x16x128xbf16>, vector<8x16x128xbf16> -> vector<8x16x256xbf16>
    %26 = vector.shape_cast %25 : vector<8x16x256xbf16> to vector<128x256xbf16>
    %c1 = arith.constant 1 : index
    %c0_10 = arith.constant 0 : index
    %c0_11 = arith.constant 0 : index
    %27 = vector.load %arg4[%c1, %c0_10, %c0_11] : memref<8x256x128xbf16, #tpu.memory_space<vmem>>, vector<1x256x128xbf16>
    %28 = vector.shape_cast %27 : vector<1x256x128xbf16> to vector<256x128xbf16>
    %cst_12 = arith.constant dense<0.000000e+00> : vector<128x128xf32>
    %29 = tpu.matmul %26, %28, %cst_12 {dimension_numbers = #tpu.dot_dimension_numbers<[1], [0], [0], [1], [0, 0, 1, 1], [], []>} : vector<128x256xbf16>, vector<256x128xbf16>, vector<128x128xf32> -> vector<128x128xf32>
    %30 = arith.addf %21, %29 : vector<128x128xf32>
    %c0_13 = arith.constant 0 : index
    %c0_14 = arith.constant 0 : index
    %31 = vector.load %arg5[%c0_13, %c0_14] : memref<1x128xf32, #tpu.memory_space<vmem>>, vector<1x128xf32>
    %32 = vector.broadcast %31 : vector<1x128xf32> to vector<128x128xf32>
    %33 = arith.addf %30, %32 : vector<128x128xf32>
    %34 = vector.shape_cast %33 : vector<128x128xf32> to vector<8x16x128xf32>
    %35 = tpu.concatenate %11, %34, %11 in 1 : vector<8x1x128xf32>, vector<8x16x128xf32>, vector<8x1x128xf32> -> vector<8x18x128xf32>
    %c0_15 = arith.constant 0 : index
    %c0_16 = arith.constant 0 : index
    %c0_17 = arith.constant 0 : index
    %c0_18 = arith.constant 0 : index
    %36 = vector.load %arg6[%c0_15, %c0_16, %c0_17, %c0_18] : memref<8x2x18x256xf32, #tpu.memory_space<vmem>>, vector<8x1x18x128xf32>
    %37 = vector.shape_cast %36 : vector<8x1x18x128xf32> to vector<8x18x128xf32>
    %38 = vector.shape_cast %35 : vector<8x18x128xf32> to vector<8x1x18x128xf32>
    tpu.vector_store %arg6[%c0_15, %c0_16, %c0_17, %c0_18], %38 {strides = array<i32>} : memref<8x2x18x256xf32, #tpu.memory_space<vmem>>, vector<8x1x18x128xf32>,
    %cst_19 = arith.constant 0.000000e+00 : f32
    %39 = vector.broadcast %cst_19 : f32 to vector<128x128xf32>
    %40 = vector.extract_strided_slice %10 {offsets = [0, 0, 0], sizes = [8, 18, 128], strides = [1, 1, 1]} : vector<10x18x128xbf16> to vector<8x18x128xbf16>
    %41 = vector.extract_strided_slice %40 {offsets = [0, 1, 0], sizes = [8, 16, 128], strides = [1, 1, 1]} : vector<8x18x128xbf16> to vector<8x16x128xbf16>
    %42 = vector.extract_strided_slice %40 {offsets = [0, 2, 0], sizes = [8, 16, 128], strides = [1, 1, 1]} : vector<8x18x128xbf16> to vector<8x16x128xbf16>
    %43 = tpu.concatenate %41, %42 in 2 : vector<8x16x128xbf16>, vector<8x16x128xbf16> -> vector<8x16x256xbf16>
    %44 = vector.shape_cast %43 : vector<8x16x256xbf16> to vector<128x256xbf16>
    %c2 = arith.constant 2 : index
    %c0_20 = arith.constant 0 : index
    %c0_21 = arith.constant 0 : index
    %45 = vector.load %arg4[%c2, %c0_20, %c0_21] : memref<8x256x128xbf16, #tpu.memory_space<vmem>>, vector<1x256x128xbf16>
    %46 = vector.shape_cast %45 : vector<1x256x128xbf16> to vector<256x128xbf16>
    %cst_22 = arith.constant dense<0.000000e+00> : vector<128x128xf32>
    %47 = tpu.matmul %44, %46, %cst_22 {dimension_numbers = #tpu.dot_dimension_numbers<[1], [0], [0], [1], [0, 0, 1, 1], [], []>} : vector<128x256xbf16>, vector<256x128xbf16>, vector<128x128xf32> -> vector<128x128xf32>
    %48 = arith.addf %39, %47 : vector<128x128xf32>
    %49 = vector.extract_strided_slice %10 {offsets = [1, 0, 0], sizes = [8, 18, 128], strides = [1, 1, 1]} : vector<10x18x128xbf16> to vector<8x18x128xbf16>
    %50 = vector.extract_strided_slice %49 {offsets = [0, 1, 0], sizes = [8, 16, 128], strides = [1, 1, 1]} : vector<8x18x128xbf16> to vector<8x16x128xbf16>
    %51 = vector.extract_strided_slice %49 {offsets = [0, 2, 0], sizes = [8, 16, 128], strides = [1, 1, 1]} : vector<8x18x128xbf16> to vector<8x16x128xbf16>
    %52 = tpu.concatenate %50, %51 in 2 : vector<8x16x128xbf16>, vector<8x16x128xbf16> -> vector<8x16x256xbf16>
    %53 = vector.shape_cast %52 : vector<8x16x256xbf16> to vector<128x256xbf16>
    %c3 = arith.constant 3 : index
    %c0_23 = arith.constant 0 : index
    %c0_24 = arith.constant 0 : index
    %54 = vector.load %arg4[%c3, %c0_23, %c0_24] : memref<8x256x128xbf16, #tpu.memory_space<vmem>>, vector<1x256x128xbf16>
    %55 = vector.shape_cast %54 : vector<1x256x128xbf16> to vector<256x128xbf16>
    %cst_25 = arith.constant dense<0.000000e+00> : vector<128x128xf32>
    %56 = tpu.matmul %53, %55, %cst_25 {dimension_numbers = #tpu.dot_dimension_numbers<[1], [0], [0], [1], [0, 0, 1, 1], [], []>} : vector<128x256xbf16>, vector<256x128xbf16>, vector<128x128xf32> -> vector<128x128xf32>
    %57 = arith.addf %48, %56 : vector<128x128xf32>
    %c0_26 = arith.constant 0 : index
    %c0_27 = arith.constant 0 : index
    %58 = vector.load %arg5[%c0_26, %c0_27] : memref<1x128xf32, #tpu.memory_space<vmem>>, vector<1x128xf32>
    %59 = vector.broadcast %58 : vector<1x128xf32> to vector<128x128xf32>
    %60 = arith.addf %57, %59 : vector<128x128xf32>
    %61 = vector.shape_cast %60 : vector<128x128xf32> to vector<8x16x128xf32>
    %62 = tpu.concatenate %11, %61, %11 in 1 : vector<8x1x128xf32>, vector<8x16x128xf32>, vector<8x1x128xf32> -> vector<8x18x128xf32>
    %c0_28 = arith.constant 0 : index
    %c0_29 = arith.constant 0 : index
    %c0_30 = arith.constant 0 : index
    %c128 = arith.constant 128 : index
    %63 = vector.load %arg6[%c0_28, %c0_29, %c0_30, %c128] : memref<8x2x18x256xf32, #tpu.memory_space<vmem>>, vector<8x1x18x128xf32>
    %64 = vector.shape_cast %63 : vector<8x1x18x128xf32> to vector<8x18x128xf32>
    %65 = vector.shape_cast %62 : vector<8x18x128xf32> to vector<8x1x18x128xf32>
    tpu.vector_store %arg6[%c0_28, %c0_29, %c0_30, %c128], %65 {strides = array<i32>} : memref<8x2x18x256xf32, #tpu.memory_space<vmem>>, vector<8x1x18x128xf32>,
    %cst_31 = arith.constant 0.000000e+00 : f32
    %66 = vector.broadcast %cst_31 : f32 to vector<128x128xf32>
    %67 = vector.extract_strided_slice %10 {offsets = [1, 0, 0], sizes = [8, 18, 128], strides = [1, 1, 1]} : vector<10x18x128xbf16> to vector<8x18x128xbf16>
    %68 = vector.extract_strided_slice %67 {offsets = [0, 0, 0], sizes = [8, 16, 128], strides = [1, 1, 1]} : vector<8x18x128xbf16> to vector<8x16x128xbf16>
    %69 = vector.extract_strided_slice %67 {offsets = [0, 1, 0], sizes = [8, 16, 128], strides = [1, 1, 1]} : vector<8x18x128xbf16> to vector<8x16x128xbf16>
    %70 = tpu.concatenate %68, %69 in 2 : vector<8x16x128xbf16>, vector<8x16x128xbf16> -> vector<8x16x256xbf16>
    %71 = vector.shape_cast %70 : vector<8x16x256xbf16> to vector<128x256xbf16>
    %c4 = arith.constant 4 : index
    %c0_32 = arith.constant 0 : index
    %c0_33 = arith.constant 0 : index
    %72 = vector.load %arg4[%c4, %c0_32, %c0_33] : memref<8x256x128xbf16, #tpu.memory_space<vmem>>, vector<1x256x128xbf16>
    %73 = vector.shape_cast %72 : vector<1x256x128xbf16> to vector<256x128xbf16>
    %cst_34 = arith.constant dense<0.000000e+00> : vector<128x128xf32>
    %74 = tpu.matmul %71, %73, %cst_34 {dimension_numbers = #tpu.dot_dimension_numbers<[1], [0], [0], [1], [0, 0, 1, 1], [], []>} : vector<128x256xbf16>, vector<256x128xbf16>, vector<128x128xf32> -> vector<128x128xf32>
    %75 = arith.addf %66, %74 : vector<128x128xf32>
    %76 = vector.extract_strided_slice %10 {offsets = [2, 0, 0], sizes = [8, 18, 128], strides = [1, 1, 1]} : vector<10x18x128xbf16> to vector<8x18x128xbf16>
    %77 = vector.extract_strided_slice %76 {offsets = [0, 0, 0], sizes = [8, 16, 128], strides = [1, 1, 1]} : vector<8x18x128xbf16> to vector<8x16x128xbf16>
    %78 = vector.extract_strided_slice %76 {offsets = [0, 1, 0], sizes = [8, 16, 128], strides = [1, 1, 1]} : vector<8x18x128xbf16> to vector<8x16x128xbf16>
    %79 = tpu.concatenate %77, %78 in 2 : vector<8x16x128xbf16>, vector<8x16x128xbf16> -> vector<8x16x256xbf16>
    %80 = vector.shape_cast %79 : vector<8x16x256xbf16> to vector<128x256xbf16>
    %c5 = arith.constant 5 : index
    %c0_35 = arith.constant 0 : index
    %c0_36 = arith.constant 0 : index
    %81 = vector.load %arg4[%c5, %c0_35, %c0_36] : memref<8x256x128xbf16, #tpu.memory_space<vmem>>, vector<1x256x128xbf16>
    %82 = vector.shape_cast %81 : vector<1x256x128xbf16> to vector<256x128xbf16>
    %cst_37 = arith.constant dense<0.000000e+00> : vector<128x128xf32>
    %83 = tpu.matmul %80, %82, %cst_37 {dimension_numbers = #tpu.dot_dimension_numbers<[1], [0], [0], [1], [0, 0, 1, 1], [], []>} : vector<128x256xbf16>, vector<256x128xbf16>, vector<128x128xf32> -> vector<128x128xf32>
    %84 = arith.addf %75, %83 : vector<128x128xf32>
    %c0_38 = arith.constant 0 : index
    %c0_39 = arith.constant 0 : index
    %85 = vector.load %arg5[%c0_38, %c0_39] : memref<1x128xf32, #tpu.memory_space<vmem>>, vector<1x128xf32>
    %86 = vector.broadcast %85 : vector<1x128xf32> to vector<128x128xf32>
    %87 = arith.addf %84, %86 : vector<128x128xf32>
    %88 = vector.shape_cast %87 : vector<128x128xf32> to vector<8x16x128xf32>
    %89 = tpu.concatenate %11, %88, %11 in 1 : vector<8x1x128xf32>, vector<8x16x128xf32>, vector<8x1x128xf32> -> vector<8x18x128xf32>
    %c0_40 = arith.constant 0 : index
    %c1_41 = arith.constant 1 : index
    %c0_42 = arith.constant 0 : index
    %c0_43 = arith.constant 0 : index
    %90 = vector.load %arg6[%c0_40, %c1_41, %c0_42, %c0_43] : memref<8x2x18x256xf32, #tpu.memory_space<vmem>>, vector<8x1x18x128xf32>
    %91 = vector.shape_cast %90 : vector<8x1x18x128xf32> to vector<8x18x128xf32>
    %92 = vector.shape_cast %89 : vector<8x18x128xf32> to vector<8x1x18x128xf32>
    tpu.vector_store %arg6[%c0_40, %c1_41, %c0_42, %c0_43], %92 {strides = array<i32>} : memref<8x2x18x256xf32, #tpu.memory_space<vmem>>, vector<8x1x18x128xf32>,
    %cst_44 = arith.constant 0.000000e+00 : f32
    %93 = vector.broadcast %cst_44 : f32 to vector<128x128xf32>
    %94 = vector.extract_strided_slice %10 {offsets = [1, 0, 0], sizes = [8, 18, 128], strides = [1, 1, 1]} : vector<10x18x128xbf16> to vector<8x18x128xbf16>
    %95 = vector.extract_strided_slice %94 {offsets = [0, 1, 0], sizes = [8, 16, 128], strides = [1, 1, 1]} : vector<8x18x128xbf16> to vector<8x16x128xbf16>
    %96 = vector.extract_strided_slice %94 {offsets = [0, 2, 0], sizes = [8, 16, 128], strides = [1, 1, 1]} : vector<8x18x128xbf16> to vector<8x16x128xbf16>
    %97 = tpu.concatenate %95, %96 in 2 : vector<8x16x128xbf16>, vector<8x16x128xbf16> -> vector<8x16x256xbf16>
    %98 = vector.shape_cast %97 : vector<8x16x256xbf16> to vector<128x256xbf16>
    %c6 = arith.constant 6 : index
    %c0_45 = arith.constant 0 : index
    %c0_46 = arith.constant 0 : index
    %99 = vector.load %arg4[%c6, %c0_45, %c0_46] : memref<8x256x128xbf16, #tpu.memory_space<vmem>>, vector<1x256x128xbf16>
    %100 = vector.shape_cast %99 : vector<1x256x128xbf16> to vector<256x128xbf16>
    %cst_47 = arith.constant dense<0.000000e+00> : vector<128x128xf32>
    %101 = tpu.matmul %98, %100, %cst_47 {dimension_numbers = #tpu.dot_dimension_numbers<[1], [0], [0], [1], [0, 0, 1, 1], [], []>} : vector<128x256xbf16>, vector<256x128xbf16>, vector<128x128xf32> -> vector<128x128xf32>
    %102 = arith.addf %93, %101 : vector<128x128xf32>
    %103 = vector.extract_strided_slice %10 {offsets = [2, 0, 0], sizes = [8, 18, 128], strides = [1, 1, 1]} : vector<10x18x128xbf16> to vector<8x18x128xbf16>
    %104 = vector.extract_strided_slice %103 {offsets = [0, 1, 0], sizes = [8, 16, 128], strides = [1, 1, 1]} : vector<8x18x128xbf16> to vector<8x16x128xbf16>
    %105 = vector.extract_strided_slice %103 {offsets = [0, 2, 0], sizes = [8, 16, 128], strides = [1, 1, 1]} : vector<8x18x128xbf16> to vector<8x16x128xbf16>
    %106 = tpu.concatenate %104, %105 in 2 : vector<8x16x128xbf16>, vector<8x16x128xbf16> -> vector<8x16x256xbf16>
    %107 = vector.shape_cast %106 : vector<8x16x256xbf16> to vector<128x256xbf16>
    %c7 = arith.constant 7 : index
    %c0_48 = arith.constant 0 : index
    %c0_49 = arith.constant 0 : index
    %108 = vector.load %arg4[%c7, %c0_48, %c0_49] : memref<8x256x128xbf16, #tpu.memory_space<vmem>>, vector<1x256x128xbf16>
    %109 = vector.shape_cast %108 : vector<1x256x128xbf16> to vector<256x128xbf16>
    %cst_50 = arith.constant dense<0.000000e+00> : vector<128x128xf32>
    %110 = tpu.matmul %107, %109, %cst_50 {dimension_numbers = #tpu.dot_dimension_numbers<[1], [0], [0], [1], [0, 0, 1, 1], [], []>} : vector<128x256xbf16>, vector<256x128xbf16>, vector<128x128xf32> -> vector<128x128xf32>
    %111 = arith.addf %102, %110 : vector<128x128xf32>
    %c0_51 = arith.constant 0 : index
    %c0_52 = arith.constant 0 : index
    %112 = vector.load %arg5[%c0_51, %c0_52] : memref<1x128xf32, #tpu.memory_space<vmem>>, vector<1x128xf32>
    %113 = vector.broadcast %112 : vector<1x128xf32> to vector<128x128xf32>
    %114 = arith.addf %111, %113 : vector<128x128xf32>
    %115 = vector.shape_cast %114 : vector<128x128xf32> to vector<8x16x128xf32>
    %116 = tpu.concatenate %11, %115, %11 in 1 : vector<8x1x128xf32>, vector<8x16x128xf32>, vector<8x1x128xf32> -> vector<8x18x128xf32>
    %c0_53 = arith.constant 0 : index
    %c1_54 = arith.constant 1 : index
    %c0_55 = arith.constant 0 : index
    %c128_56 = arith.constant 128 : index
    %117 = vector.load %arg6[%c0_53, %c1_54, %c0_55, %c128_56] : memref<8x2x18x256xf32, #tpu.memory_space<vmem>>, vector<8x1x18x128xf32>
    %118 = vector.shape_cast %117 : vector<8x1x18x128xf32> to vector<8x18x128xf32>
    %119 = vector.shape_cast %116 : vector<8x18x128xf32> to vector<8x1x18x128xf32>
    tpu.vector_store %arg6[%c0_53, %c1_54, %c0_55, %c128_56], %119 {strides = array<i32>} : memref<8x2x18x256xf32, #tpu.memory_space<vmem>>, vector<8x1x18x128xf32>,
    return
  }
  func.func @transform_0(%arg0: i32, %arg1: i32) -> (i32, i32, i32, i32) {
    %c0_i32 = arith.constant 0 : i32
    %c0_i32_0 = arith.constant 0 : i32
    %c0_i32_1 = arith.constant 0 : i32
    %c0_i32_2 = arith.constant 0 : i32
    return %arg0, %c0_i32, %c0_i32_0, %c0_i32_1 : i32, i32, i32, i32
  }
  func.func @transform_1(%arg0: i32, %arg1: i32) -> (i32, i32) {
    %c0_i32 = arith.constant 0 : i32
    %c0_i32_0 = arith.constant 0 : i32
    %c0_i32_1 = arith.constant 0 : i32
    return %c0_i32, %c0_i32_0 : i32, i32
  }
  func.func @transform_2(%arg0: i32, %arg1: i32) -> (i32, i32, i32) {
    %c0_i32 = arith.constant 0 : i32
    %c0_i32_0 = arith.constant 0 : i32
    %c0_i32_1 = arith.constant 0 : i32
    %c0_i32_2 = arith.constant 0 : i32
    return %c0_i32, %c0_i32_0, %c0_i32_1 : i32, i32, i32
  }
  func.func @transform_3(%arg0: i32, %arg1: i32) -> (i32, i32) {
    %c0_i32 = arith.constant 0 : i32
    %c0_i32_0 = arith.constant 0 : i32
    %c0_i32_1 = arith.constant 0 : i32
    return %c0_i32, %c0_i32_0 : i32, i32
  }
  func.func @transform_4(%arg0: i32, %arg1: i32) -> (i32, i32, i32, i32) {
    %c2_i32 = arith.constant 2 : i32
    %0 = arith.muli %arg0, %c2_i32 : i32
    %1 = arith.addi %0, %arg1 : i32
    %c0_i32 = arith.constant 0 : i32
    %c0_i32_0 = arith.constant 0 : i32
    %c0_i32_1 = arith.constant 0 : i32
    %c0_i32_2 = arith.constant 0 : i32
    return %1, %c0_i32, %c0_i32_0, %c0_i32_1 : i32, i32, i32, i32
  }
}

module attributes {stable_mosaic.version = 11 : i64} {
  func.func @_conv2_bypass_kernel(%arg0: i32, %arg1: i32, %arg2: memref<16x2x18x256xf32, #tpu.memory_space<vmem>>, %arg3: memref<1x18x18x128xf32, #tpu.memory_space<vmem>>, %arg4: memref<1x256xf32, #tpu.memory_space<vmem>>, %arg5: memref<1x256xf32, #tpu.memory_space<vmem>>, %arg6: memref<3x384x128xbf16, #tpu.memory_space<vmem>>, %arg7: memref<128x128xbf16, #tpu.memory_space<vmem>>, %arg8: memref<1x128xf32, #tpu.memory_space<vmem>>, %arg9: memref<8x2x16x256xf32, #tpu.memory_space<vmem>>) attributes {dimension_semantics = [#tpu.dimension_semantics<parallel>, #tpu.dimension_semantics<parallel>], iteration_bounds = array<i64: 2, 2>, scalar_prefetch = 0 : i64, scratch_operands = 0 : i64, tpu.core_type = #tpu.core_type<tc>, window_params = [{transform_indices = @transform_0, window_bounds = array<i64: 16, 2, 18, 256>}, {transform_indices = @transform_1, window_bounds = array<i64: 1, 18, 18, 128>}, {pipeline_mode = #tpu.pipeline_mode<synchronous>, transform_indices = @transform_2, window_bounds = array<i64: 1, 256>}, {pipeline_mode = #tpu.pipeline_mode<synchronous>, transform_indices = @transform_3, window_bounds = array<i64: 1, 256>}, {pipeline_mode = #tpu.pipeline_mode<synchronous>, transform_indices = @transform_4, window_bounds = array<i64: 3, 384, 128>}, {pipeline_mode = #tpu.pipeline_mode<synchronous>, transform_indices = @transform_5, window_bounds = array<i64: 128, 128>}, {pipeline_mode = #tpu.pipeline_mode<synchronous>, transform_indices = @transform_6, window_bounds = array<i64: 1, 128>}, {transform_indices = @transform_7, window_bounds = array<i64: 8, 2, 16, 256>}]} {
    %c8_i32 = arith.constant 8 : i32
    %0 = arith.muli %arg1, %c8_i32 : i32
    %1 = arith.index_cast %0 : i32 to index
    %c0 = arith.constant 0 : index
    %c0_0 = arith.constant 0 : index
    %c0_1 = arith.constant 0 : index
    %2 = vector.load %arg2[%1, %c0, %c0_0, %c0_1] : memref<16x2x18x256xf32, #tpu.memory_space<vmem>>, vector<8x2x18x256xf32>
    %c0_2 = arith.constant 0 : index
    %c0_3 = arith.constant 0 : index
    %3 = vector.load %arg4[%c0_2, %c0_3] : memref<1x256xf32, #tpu.memory_space<vmem>>, vector<1x256xf32>
    %4 = vector.shape_cast %3 : vector<1x256xf32> to vector<1x1x1x256xf32>
    %5 = vector.broadcast %4 : vector<1x1x1x256xf32> to vector<8x2x18x256xf32>
    %6 = arith.subf %2, %5 : vector<8x2x18x256xf32>
    %c0_4 = arith.constant 0 : index
    %c0_5 = arith.constant 0 : index
    %7 = vector.load %arg5[%c0_4, %c0_5] : memref<1x256xf32, #tpu.memory_space<vmem>>, vector<1x256xf32>
    %8 = vector.shape_cast %7 : vector<1x256xf32> to vector<1x1x1x256xf32>
    %9 = vector.broadcast %8 : vector<1x1x1x256xf32> to vector<8x2x18x256xf32>
    %10 = arith.mulf %6, %9 : vector<8x2x18x256xf32>
    %cst = arith.constant 0.000000e+00 : f32
    %11 = vector.broadcast %cst : f32 to vector<8x2x18x256xf32>
    %12 = arith.maximumf %10, %11 : vector<8x2x18x256xf32>
    %c1_i32 = arith.constant 1 : i32
    %13 = arith.subi %0, %c1_i32 : i32
    %c0_i32 = arith.constant 0 : i32
    %14 = arith.maxsi %13, %c0_i32 : i32
    %15 = arith.index_cast %14 : i32 to index
    %c0_6 = arith.constant 0 : index
    %c0_7 = arith.constant 0 : index
    %c0_8 = arith.constant 0 : index
    %16 = vector.load %arg2[%15, %c0_6, %c0_7, %c0_8] : memref<16x2x18x256xf32, #tpu.memory_space<vmem>>, vector<1x2x18x256xf32>
    %17 = vector.shape_cast %16 : vector<1x2x18x256xf32> to vector<2x18x256xf32>
    %c0_9 = arith.constant 0 : index
    %c0_10 = arith.constant 0 : index
    %18 = vector.load %arg4[%c0_9, %c0_10] : memref<1x256xf32, #tpu.memory_space<vmem>>, vector<1x256xf32>
    %19 = vector.shape_cast %18 : vector<1x256xf32> to vector<1x1x256xf32>
    %20 = vector.broadcast %19 : vector<1x1x256xf32> to vector<2x18x256xf32>
    %21 = arith.subf %17, %20 : vector<2x18x256xf32>
    %c0_11 = arith.constant 0 : index
    %c0_12 = arith.constant 0 : index
    %22 = vector.load %arg5[%c0_11, %c0_12] : memref<1x256xf32, #tpu.memory_space<vmem>>, vector<1x256xf32>
    %23 = vector.shape_cast %22 : vector<1x256xf32> to vector<1x1x256xf32>
    %24 = vector.broadcast %23 : vector<1x1x256xf32> to vector<2x18x256xf32>
    %25 = arith.mulf %21, %24 : vector<2x18x256xf32>
    %cst_13 = arith.constant 0.000000e+00 : f32
    %26 = vector.broadcast %cst_13 : f32 to vector<2x18x256xf32>
    %27 = arith.maximumf %25, %26 : vector<2x18x256xf32>
    %c0_i32_14 = arith.constant 0 : i32
    %28 = arith.cmpi sgt, %arg1, %c0_i32_14 : i32
    %cst_15 = arith.constant 1.000000e+00 : f32
    %cst_16 = arith.constant 0.000000e+00 : f32
    %29 = arith.select %28, %cst_15, %cst_16 : f32
    %30 = vector.broadcast %29 : f32 to vector<2x18x256xf32>
    %31 = arith.mulf %27, %30 : vector<2x18x256xf32>
    %c8_i32_17 = arith.constant 8 : i32
    %32 = arith.addi %0, %c8_i32_17 : i32
    %c15_i32 = arith.constant 15 : i32
    %33 = arith.minsi %32, %c15_i32 : i32
    %34 = arith.index_cast %33 : i32 to index
    %c0_18 = arith.constant 0 : index
    %c0_19 = arith.constant 0 : index
    %c0_20 = arith.constant 0 : index
    %35 = vector.load %arg2[%34, %c0_18, %c0_19, %c0_20] : memref<16x2x18x256xf32, #tpu.memory_space<vmem>>, vector<1x2x18x256xf32>
    %36 = vector.shape_cast %35 : vector<1x2x18x256xf32> to vector<2x18x256xf32>
    %c0_21 = arith.constant 0 : index
    %c0_22 = arith.constant 0 : index
    %37 = vector.load %arg4[%c0_21, %c0_22] : memref<1x256xf32, #tpu.memory_space<vmem>>, vector<1x256xf32>
    %38 = vector.shape_cast %37 : vector<1x256xf32> to vector<1x1x256xf32>
    %39 = vector.broadcast %38 : vector<1x1x256xf32> to vector<2x18x256xf32>
    %40 = arith.subf %36, %39 : vector<2x18x256xf32>
    %c0_23 = arith.constant 0 : index
    %c0_24 = arith.constant 0 : index
    %41 = vector.load %arg5[%c0_23, %c0_24] : memref<1x256xf32, #tpu.memory_space<vmem>>, vector<1x256xf32>
    %42 = vector.shape_cast %41 : vector<1x256xf32> to vector<1x1x256xf32>
    %43 = vector.broadcast %42 : vector<1x1x256xf32> to vector<2x18x256xf32>
    %44 = arith.mulf %40, %43 : vector<2x18x256xf32>
    %cst_25 = arith.constant 0.000000e+00 : f32
    %45 = vector.broadcast %cst_25 : f32 to vector<2x18x256xf32>
    %46 = arith.maximumf %44, %45 : vector<2x18x256xf32>
    %c1_i32_26 = arith.constant 1 : i32
    %47 = arith.cmpi slt, %arg1, %c1_i32_26 : i32
    %cst_27 = arith.constant 1.000000e+00 : f32
    %cst_28 = arith.constant 0.000000e+00 : f32
    %48 = arith.select %47, %cst_27, %cst_28 : f32
    %49 = vector.broadcast %48 : f32 to vector<2x18x256xf32>
    %50 = arith.mulf %46, %49 : vector<2x18x256xf32>
    %51 = vector.shape_cast %31 : vector<2x18x256xf32> to vector<1x2x18x256xf32>
    %52 = vector.shape_cast %50 : vector<2x18x256xf32> to vector<1x2x18x256xf32>
    %53 = tpu.concatenate %51, %12, %52 in 0 : vector<1x2x18x256xf32>, vector<8x2x18x256xf32>, vector<1x2x18x256xf32> -> vector<10x2x18x256xf32>
    %54 = tpu.iota {dimensions = array<i32: 0>} : vector<18x1xi32>
    %c0_i32_29 = arith.constant 0 : i32
    %55 = vector.broadcast %c0_i32_29 : i32 to vector<18x1xi32>
    %56 = arith.cmpi eq, %54, %55 : vector<18x1xi32>
    %c17_i32 = arith.constant 17 : i32
    %57 = vector.broadcast %c17_i32 : i32 to vector<18x1xi32>
    %58 = arith.cmpi eq, %54, %57 : vector<18x1xi32>
    %59 = arith.ori %56, %58 : vector<18x1xi1>
    %cst_30 = arith.constant 0.000000e+00 : f32
    %cst_31 = arith.constant 1.000000e+00 : f32
    %60 = vector.broadcast %cst_30 : f32 to vector<18x1xf32>
    %61 = vector.broadcast %cst_31 : f32 to vector<18x1xf32>
    %62 = arith.select %59, %60, %61 : vector<18x1xi1>, vector<18x1xf32>
    %63 = vector.shape_cast %62 : vector<18x1xf32> to vector<1x1x18x1xf32>
    %64 = vector.broadcast %63 : vector<1x1x18x1xf32> to vector<10x2x18x256xf32>
    %65 = arith.mulf %53, %64 : vector<10x2x18x256xf32>
    %66 = arith.truncf %65 : vector<10x2x18x256xf32> to vector<10x2x18x256xbf16>
    %c1_i32_32 = arith.constant 1 : i32
    %67 = arith.addi %0, %c1_i32_32 : i32
    %c0_33 = arith.constant 0 : index
    %68 = arith.index_cast %67 : i32 to index
    %c1 = arith.constant 1 : index
    %c0_34 = arith.constant 0 : index
    %69 = vector.load %arg3[%c0_33, %68, %c1, %c0_34] : memref<1x18x18x128xf32, #tpu.memory_space<vmem>>, vector<1x8x16x128xf32>
    %70 = vector.shape_cast %69 : vector<1x8x16x128xf32> to vector<8x16x128xf32>
    %71 = arith.truncf %70 : vector<8x16x128xf32> to vector<8x16x128xbf16>
    %72 = vector.shape_cast %71 : vector<8x16x128xbf16> to vector<128x128xbf16>
    %c0_35 = arith.constant 0 : index
    %c0_36 = arith.constant 0 : index
    %73 = vector.load %arg7[%c0_35, %c0_36] : memref<128x128xbf16, #tpu.memory_space<vmem>>, vector<128x128xbf16>
    %cst_37 = arith.constant dense<0.000000e+00> : vector<128x128xf32>
    %74 = tpu.matmul %72, %73, %cst_37 {dimension_numbers = #tpu.dot_dimension_numbers<[1], [0], [0], [1], [0, 0, 1, 1], [], []>} : vector<128x128xbf16>, vector<128x128xbf16>, vector<128x128xf32> -> vector<128x128xf32>
    %c0_38 = arith.constant 0 : index
    %c0_39 = arith.constant 0 : index
    %75 = vector.load %arg8[%c0_38, %c0_39] : memref<1x128xf32, #tpu.memory_space<vmem>>, vector<1x128xf32>
    %76 = vector.broadcast %75 : vector<1x128xf32> to vector<128x128xf32>
    %77 = arith.addf %74, %76 : vector<128x128xf32>
    %78 = vector.extract_strided_slice %66 {offsets = [0, 1, 0, 0], sizes = [8, 1, 18, 256], strides = [1, 1, 1, 1]} : vector<10x2x18x256xbf16> to vector<8x1x18x256xbf16>
    %79 = vector.shape_cast %78 : vector<8x1x18x256xbf16> to vector<8x18x256xbf16>
    %80 = vector.extract_strided_slice %79 {offsets = [0, 0, 128], sizes = [8, 16, 128], strides = [1, 1, 1]} : vector<8x18x256xbf16> to vector<8x16x128xbf16>
    %81 = vector.extract_strided_slice %79 {offsets = [0, 1, 0], sizes = [8, 16, 128], strides = [1, 1, 1]} : vector<8x18x256xbf16> to vector<8x16x128xbf16>
    %82 = vector.extract_strided_slice %79 {offsets = [0, 1, 128], sizes = [8, 16, 128], strides = [1, 1, 1]} : vector<8x18x256xbf16> to vector<8x16x128xbf16>
    %83 = tpu.concatenate %80, %81, %82 in 2 : vector<8x16x128xbf16>, vector<8x16x128xbf16>, vector<8x16x128xbf16> -> vector<8x16x384xbf16>
    %84 = vector.shape_cast %83 : vector<8x16x384xbf16> to vector<128x384xbf16>
    %c0_40 = arith.constant 0 : index
    %c0_41 = arith.constant 0 : index
    %c0_42 = arith.constant 0 : index
    %85 = vector.load %arg6[%c0_40, %c0_41, %c0_42] : memref<3x384x128xbf16, #tpu.memory_space<vmem>>, vector<1x384x128xbf16>
    %86 = vector.shape_cast %85 : vector<1x384x128xbf16> to vector<384x128xbf16>
    %cst_43 = arith.constant dense<0.000000e+00> : vector<128x128xf32>
    %87 = tpu.matmul %84, %86, %cst_43 {dimension_numbers = #tpu.dot_dimension_numbers<[1], [0], [0], [1], [0, 0, 1, 1], [], []>} : vector<128x384xbf16>, vector<384x128xbf16>, vector<128x128xf32> -> vector<128x128xf32>
    %88 = arith.addf %77, %87 : vector<128x128xf32>
    %89 = vector.extract_strided_slice %66 {offsets = [1, 0, 0, 0], sizes = [8, 1, 18, 256], strides = [1, 1, 1, 1]} : vector<10x2x18x256xbf16> to vector<8x1x18x256xbf16>
    %90 = vector.shape_cast %89 : vector<8x1x18x256xbf16> to vector<8x18x256xbf16>
    %91 = vector.extract_strided_slice %90 {offsets = [0, 0, 128], sizes = [8, 16, 128], strides = [1, 1, 1]} : vector<8x18x256xbf16> to vector<8x16x128xbf16>
    %92 = vector.extract_strided_slice %90 {offsets = [0, 1, 0], sizes = [8, 16, 128], strides = [1, 1, 1]} : vector<8x18x256xbf16> to vector<8x16x128xbf16>
    %93 = vector.extract_strided_slice %90 {offsets = [0, 1, 128], sizes = [8, 16, 128], strides = [1, 1, 1]} : vector<8x18x256xbf16> to vector<8x16x128xbf16>
    %94 = tpu.concatenate %91, %92, %93 in 2 : vector<8x16x128xbf16>, vector<8x16x128xbf16>, vector<8x16x128xbf16> -> vector<8x16x384xbf16>
    %95 = vector.shape_cast %94 : vector<8x16x384xbf16> to vector<128x384xbf16>
    %c1_44 = arith.constant 1 : index
    %c0_45 = arith.constant 0 : index
    %c0_46 = arith.constant 0 : index
    %96 = vector.load %arg6[%c1_44, %c0_45, %c0_46] : memref<3x384x128xbf16, #tpu.memory_space<vmem>>, vector<1x384x128xbf16>
    %97 = vector.shape_cast %96 : vector<1x384x128xbf16> to vector<384x128xbf16>
    %cst_47 = arith.constant dense<0.000000e+00> : vector<128x128xf32>
    %98 = tpu.matmul %95, %97, %cst_47 {dimension_numbers = #tpu.dot_dimension_numbers<[1], [0], [0], [1], [0, 0, 1, 1], [], []>} : vector<128x384xbf16>, vector<384x128xbf16>, vector<128x128xf32> -> vector<128x128xf32>
    %99 = arith.addf %88, %98 : vector<128x128xf32>
    %100 = vector.extract_strided_slice %66 {offsets = [1, 1, 0, 0], sizes = [8, 1, 18, 256], strides = [1, 1, 1, 1]} : vector<10x2x18x256xbf16> to vector<8x1x18x256xbf16>
    %101 = vector.shape_cast %100 : vector<8x1x18x256xbf16> to vector<8x18x256xbf16>
    %102 = vector.extract_strided_slice %101 {offsets = [0, 0, 128], sizes = [8, 16, 128], strides = [1, 1, 1]} : vector<8x18x256xbf16> to vector<8x16x128xbf16>
    %103 = vector.extract_strided_slice %101 {offsets = [0, 1, 0], sizes = [8, 16, 128], strides = [1, 1, 1]} : vector<8x18x256xbf16> to vector<8x16x128xbf16>
    %104 = vector.extract_strided_slice %101 {offsets = [0, 1, 128], sizes = [8, 16, 128], strides = [1, 1, 1]} : vector<8x18x256xbf16> to vector<8x16x128xbf16>
    %105 = tpu.concatenate %102, %103, %104 in 2 : vector<8x16x128xbf16>, vector<8x16x128xbf16>, vector<8x16x128xbf16> -> vector<8x16x384xbf16>
    %106 = vector.shape_cast %105 : vector<8x16x384xbf16> to vector<128x384xbf16>
    %c2 = arith.constant 2 : index
    %c0_48 = arith.constant 0 : index
    %c0_49 = arith.constant 0 : index
    %107 = vector.load %arg6[%c2, %c0_48, %c0_49] : memref<3x384x128xbf16, #tpu.memory_space<vmem>>, vector<1x384x128xbf16>
    %108 = vector.shape_cast %107 : vector<1x384x128xbf16> to vector<384x128xbf16>
    %cst_50 = arith.constant dense<0.000000e+00> : vector<128x128xf32>
    %109 = tpu.matmul %106, %108, %cst_50 {dimension_numbers = #tpu.dot_dimension_numbers<[1], [0], [0], [1], [0, 0, 1, 1], [], []>} : vector<128x384xbf16>, vector<384x128xbf16>, vector<128x128xf32> -> vector<128x128xf32>
    %110 = arith.addf %99, %109 : vector<128x128xf32>
    %111 = vector.shape_cast %110 : vector<128x128xf32> to vector<8x16x128xf32>
    %c0_51 = arith.constant 0 : index
    %c0_52 = arith.constant 0 : index
    %c0_53 = arith.constant 0 : index
    %c0_54 = arith.constant 0 : index
    %112 = vector.load %arg9[%c0_51, %c0_52, %c0_53, %c0_54] : memref<8x2x16x256xf32, #tpu.memory_space<vmem>>, vector<8x1x16x128xf32>
    %113 = vector.shape_cast %112 : vector<8x1x16x128xf32> to vector<8x16x128xf32>
    %114 = vector.shape_cast %111 : vector<8x16x128xf32> to vector<8x1x16x128xf32>
    tpu.vector_store %arg9[%c0_51, %c0_52, %c0_53, %c0_54], %114 {strides = array<i32>} : memref<8x2x16x256xf32, #tpu.memory_space<vmem>>, vector<8x1x16x128xf32>,
    %115 = vector.extract_strided_slice %66 {offsets = [0, 1, 0, 0], sizes = [8, 1, 18, 256], strides = [1, 1, 1, 1]} : vector<10x2x18x256xbf16> to vector<8x1x18x256xbf16>
    %116 = vector.shape_cast %115 : vector<8x1x18x256xbf16> to vector<8x18x256xbf16>
    %117 = vector.extract_strided_slice %116 {offsets = [0, 1, 0], sizes = [8, 16, 128], strides = [1, 1, 1]} : vector<8x18x256xbf16> to vector<8x16x128xbf16>
    %118 = vector.extract_strided_slice %116 {offsets = [0, 1, 128], sizes = [8, 16, 128], strides = [1, 1, 1]} : vector<8x18x256xbf16> to vector<8x16x128xbf16>
    %119 = vector.extract_strided_slice %116 {offsets = [0, 2, 0], sizes = [8, 16, 128], strides = [1, 1, 1]} : vector<8x18x256xbf16> to vector<8x16x128xbf16>
    %120 = tpu.concatenate %117, %118, %119 in 2 : vector<8x16x128xbf16>, vector<8x16x128xbf16>, vector<8x16x128xbf16> -> vector<8x16x384xbf16>
    %121 = vector.shape_cast %120 : vector<8x16x384xbf16> to vector<128x384xbf16>
    %c0_55 = arith.constant 0 : index
    %c0_56 = arith.constant 0 : index
    %c0_57 = arith.constant 0 : index
    %122 = vector.load %arg6[%c0_55, %c0_56, %c0_57] : memref<3x384x128xbf16, #tpu.memory_space<vmem>>, vector<1x384x128xbf16>
    %123 = vector.shape_cast %122 : vector<1x384x128xbf16> to vector<384x128xbf16>
    %cst_58 = arith.constant dense<0.000000e+00> : vector<128x128xf32>
    %124 = tpu.matmul %121, %123, %cst_58 {dimension_numbers = #tpu.dot_dimension_numbers<[1], [0], [0], [1], [0, 0, 1, 1], [], []>} : vector<128x384xbf16>, vector<384x128xbf16>, vector<128x128xf32> -> vector<128x128xf32>
    %125 = arith.addf %77, %124 : vector<128x128xf32>
    %126 = vector.extract_strided_slice %66 {offsets = [1, 0, 0, 0], sizes = [8, 1, 18, 256], strides = [1, 1, 1, 1]} : vector<10x2x18x256xbf16> to vector<8x1x18x256xbf16>
    %127 = vector.shape_cast %126 : vector<8x1x18x256xbf16> to vector<8x18x256xbf16>
    %128 = vector.extract_strided_slice %127 {offsets = [0, 1, 0], sizes = [8, 16, 128], strides = [1, 1, 1]} : vector<8x18x256xbf16> to vector<8x16x128xbf16>
    %129 = vector.extract_strided_slice %127 {offsets = [0, 1, 128], sizes = [8, 16, 128], strides = [1, 1, 1]} : vector<8x18x256xbf16> to vector<8x16x128xbf16>
    %130 = vector.extract_strided_slice %127 {offsets = [0, 2, 0], sizes = [8, 16, 128], strides = [1, 1, 1]} : vector<8x18x256xbf16> to vector<8x16x128xbf16>
    %131 = tpu.concatenate %128, %129, %130 in 2 : vector<8x16x128xbf16>, vector<8x16x128xbf16>, vector<8x16x128xbf16> -> vector<8x16x384xbf16>
    %132 = vector.shape_cast %131 : vector<8x16x384xbf16> to vector<128x384xbf16>
    %c1_59 = arith.constant 1 : index
    %c0_60 = arith.constant 0 : index
    %c0_61 = arith.constant 0 : index
    %133 = vector.load %arg6[%c1_59, %c0_60, %c0_61] : memref<3x384x128xbf16, #tpu.memory_space<vmem>>, vector<1x384x128xbf16>
    %134 = vector.shape_cast %133 : vector<1x384x128xbf16> to vector<384x128xbf16>
    %cst_62 = arith.constant dense<0.000000e+00> : vector<128x128xf32>
    %135 = tpu.matmul %132, %134, %cst_62 {dimension_numbers = #tpu.dot_dimension_numbers<[1], [0], [0], [1], [0, 0, 1, 1], [], []>} : vector<128x384xbf16>, vector<384x128xbf16>, vector<128x128xf32> -> vector<128x128xf32>
    %136 = arith.addf %125, %135 : vector<128x128xf32>
    %137 = vector.extract_strided_slice %66 {offsets = [1, 1, 0, 0], sizes = [8, 1, 18, 256], strides = [1, 1, 1, 1]} : vector<10x2x18x256xbf16> to vector<8x1x18x256xbf16>
    %138 = vector.shape_cast %137 : vector<8x1x18x256xbf16> to vector<8x18x256xbf16>
    %139 = vector.extract_strided_slice %138 {offsets = [0, 1, 0], sizes = [8, 16, 128], strides = [1, 1, 1]} : vector<8x18x256xbf16> to vector<8x16x128xbf16>
    %140 = vector.extract_strided_slice %138 {offsets = [0, 1, 128], sizes = [8, 16, 128], strides = [1, 1, 1]} : vector<8x18x256xbf16> to vector<8x16x128xbf16>
    %141 = vector.extract_strided_slice %138 {offsets = [0, 2, 0], sizes = [8, 16, 128], strides = [1, 1, 1]} : vector<8x18x256xbf16> to vector<8x16x128xbf16>
    %142 = tpu.concatenate %139, %140, %141 in 2 : vector<8x16x128xbf16>, vector<8x16x128xbf16>, vector<8x16x128xbf16> -> vector<8x16x384xbf16>
    %143 = vector.shape_cast %142 : vector<8x16x384xbf16> to vector<128x384xbf16>
    %c2_63 = arith.constant 2 : index
    %c0_64 = arith.constant 0 : index
    %c0_65 = arith.constant 0 : index
    %144 = vector.load %arg6[%c2_63, %c0_64, %c0_65] : memref<3x384x128xbf16, #tpu.memory_space<vmem>>, vector<1x384x128xbf16>
    %145 = vector.shape_cast %144 : vector<1x384x128xbf16> to vector<384x128xbf16>
    %cst_66 = arith.constant dense<0.000000e+00> : vector<128x128xf32>
    %146 = tpu.matmul %143, %145, %cst_66 {dimension_numbers = #tpu.dot_dimension_numbers<[1], [0], [0], [1], [0, 0, 1, 1], [], []>} : vector<128x384xbf16>, vector<384x128xbf16>, vector<128x128xf32> -> vector<128x128xf32>
    %147 = arith.addf %136, %146 : vector<128x128xf32>
    %148 = vector.shape_cast %147 : vector<128x128xf32> to vector<8x16x128xf32>
    %c0_67 = arith.constant 0 : index
    %c0_68 = arith.constant 0 : index
    %c0_69 = arith.constant 0 : index
    %c128 = arith.constant 128 : index
    %149 = vector.load %arg9[%c0_67, %c0_68, %c0_69, %c128] : memref<8x2x16x256xf32, #tpu.memory_space<vmem>>, vector<8x1x16x128xf32>
    %150 = vector.shape_cast %149 : vector<8x1x16x128xf32> to vector<8x16x128xf32>
    %151 = vector.shape_cast %148 : vector<8x16x128xf32> to vector<8x1x16x128xf32>
    tpu.vector_store %arg9[%c0_67, %c0_68, %c0_69, %c128], %151 {strides = array<i32>} : memref<8x2x16x256xf32, #tpu.memory_space<vmem>>, vector<8x1x16x128xf32>,
    %152 = vector.extract_strided_slice %66 {offsets = [1, 0, 0, 0], sizes = [8, 1, 18, 256], strides = [1, 1, 1, 1]} : vector<10x2x18x256xbf16> to vector<8x1x18x256xbf16>
    %153 = vector.shape_cast %152 : vector<8x1x18x256xbf16> to vector<8x18x256xbf16>
    %154 = vector.extract_strided_slice %153 {offsets = [0, 0, 128], sizes = [8, 16, 128], strides = [1, 1, 1]} : vector<8x18x256xbf16> to vector<8x16x128xbf16>
    %155 = vector.extract_strided_slice %153 {offsets = [0, 1, 0], sizes = [8, 16, 128], strides = [1, 1, 1]} : vector<8x18x256xbf16> to vector<8x16x128xbf16>
    %156 = vector.extract_strided_slice %153 {offsets = [0, 1, 128], sizes = [8, 16, 128], strides = [1, 1, 1]} : vector<8x18x256xbf16> to vector<8x16x128xbf16>
    %157 = tpu.concatenate %154, %155, %156 in 2 : vector<8x16x128xbf16>, vector<8x16x128xbf16>, vector<8x16x128xbf16> -> vector<8x16x384xbf16>
    %158 = vector.shape_cast %157 : vector<8x16x384xbf16> to vector<128x384xbf16>
    %c0_70 = arith.constant 0 : index
    %c0_71 = arith.constant 0 : index
    %c0_72 = arith.constant 0 : index
    %159 = vector.load %arg6[%c0_70, %c0_71, %c0_72] : memref<3x384x128xbf16, #tpu.memory_space<vmem>>, vector<1x384x128xbf16>
    %160 = vector.shape_cast %159 : vector<1x384x128xbf16> to vector<384x128xbf16>
    %cst_73 = arith.constant dense<0.000000e+00> : vector<128x128xf32>
    %161 = tpu.matmul %158, %160, %cst_73 {dimension_numbers = #tpu.dot_dimension_numbers<[1], [0], [0], [1], [0, 0, 1, 1], [], []>} : vector<128x384xbf16>, vector<384x128xbf16>, vector<128x128xf32> -> vector<128x128xf32>
    %162 = arith.addf %77, %161 : vector<128x128xf32>
    %163 = vector.extract_strided_slice %66 {offsets = [1, 1, 0, 0], sizes = [8, 1, 18, 256], strides = [1, 1, 1, 1]} : vector<10x2x18x256xbf16> to vector<8x1x18x256xbf16>
    %164 = vector.shape_cast %163 : vector<8x1x18x256xbf16> to vector<8x18x256xbf16>
    %165 = vector.extract_strided_slice %164 {offsets = [0, 0, 128], sizes = [8, 16, 128], strides = [1, 1, 1]} : vector<8x18x256xbf16> to vector<8x16x128xbf16>
    %166 = vector.extract_strided_slice %164 {offsets = [0, 1, 0], sizes = [8, 16, 128], strides = [1, 1, 1]} : vector<8x18x256xbf16> to vector<8x16x128xbf16>
    %167 = vector.extract_strided_slice %164 {offsets = [0, 1, 128], sizes = [8, 16, 128], strides = [1, 1, 1]} : vector<8x18x256xbf16> to vector<8x16x128xbf16>
    %168 = tpu.concatenate %165, %166, %167 in 2 : vector<8x16x128xbf16>, vector<8x16x128xbf16>, vector<8x16x128xbf16> -> vector<8x16x384xbf16>
    %169 = vector.shape_cast %168 : vector<8x16x384xbf16> to vector<128x384xbf16>
    %c1_74 = arith.constant 1 : index
    %c0_75 = arith.constant 0 : index
    %c0_76 = arith.constant 0 : index
    %170 = vector.load %arg6[%c1_74, %c0_75, %c0_76] : memref<3x384x128xbf16, #tpu.memory_space<vmem>>, vector<1x384x128xbf16>
    %171 = vector.shape_cast %170 : vector<1x384x128xbf16> to vector<384x128xbf16>
    %cst_77 = arith.constant dense<0.000000e+00> : vector<128x128xf32>
    %172 = tpu.matmul %169, %171, %cst_77 {dimension_numbers = #tpu.dot_dimension_numbers<[1], [0], [0], [1], [0, 0, 1, 1], [], []>} : vector<128x384xbf16>, vector<384x128xbf16>, vector<128x128xf32> -> vector<128x128xf32>
    %173 = arith.addf %162, %172 : vector<128x128xf32>
    %174 = vector.extract_strided_slice %66 {offsets = [2, 0, 0, 0], sizes = [8, 1, 18, 256], strides = [1, 1, 1, 1]} : vector<10x2x18x256xbf16> to vector<8x1x18x256xbf16>
    %175 = vector.shape_cast %174 : vector<8x1x18x256xbf16> to vector<8x18x256xbf16>
    %176 = vector.extract_strided_slice %175 {offsets = [0, 0, 128], sizes = [8, 16, 128], strides = [1, 1, 1]} : vector<8x18x256xbf16> to vector<8x16x128xbf16>
    %177 = vector.extract_strided_slice %175 {offsets = [0, 1, 0], sizes = [8, 16, 128], strides = [1, 1, 1]} : vector<8x18x256xbf16> to vector<8x16x128xbf16>
    %178 = vector.extract_strided_slice %175 {offsets = [0, 1, 128], sizes = [8, 16, 128], strides = [1, 1, 1]} : vector<8x18x256xbf16> to vector<8x16x128xbf16>
    %179 = tpu.concatenate %176, %177, %178 in 2 : vector<8x16x128xbf16>, vector<8x16x128xbf16>, vector<8x16x128xbf16> -> vector<8x16x384xbf16>
    %180 = vector.shape_cast %179 : vector<8x16x384xbf16> to vector<128x384xbf16>
    %c2_78 = arith.constant 2 : index
    %c0_79 = arith.constant 0 : index
    %c0_80 = arith.constant 0 : index
    %181 = vector.load %arg6[%c2_78, %c0_79, %c0_80] : memref<3x384x128xbf16, #tpu.memory_space<vmem>>, vector<1x384x128xbf16>
    %182 = vector.shape_cast %181 : vector<1x384x128xbf16> to vector<384x128xbf16>
    %cst_81 = arith.constant dense<0.000000e+00> : vector<128x128xf32>
    %183 = tpu.matmul %180, %182, %cst_81 {dimension_numbers = #tpu.dot_dimension_numbers<[1], [0], [0], [1], [0, 0, 1, 1], [], []>} : vector<128x384xbf16>, vector<384x128xbf16>, vector<128x128xf32> -> vector<128x128xf32>
    %184 = arith.addf %173, %183 : vector<128x128xf32>
    %185 = vector.shape_cast %184 : vector<128x128xf32> to vector<8x16x128xf32>
    %c0_82 = arith.constant 0 : index
    %c1_83 = arith.constant 1 : index
    %c0_84 = arith.constant 0 : index
    %c0_85 = arith.constant 0 : index
    %186 = vector.load %arg9[%c0_82, %c1_83, %c0_84, %c0_85] : memref<8x2x16x256xf32, #tpu.memory_space<vmem>>, vector<8x1x16x128xf32>
    %187 = vector.shape_cast %186 : vector<8x1x16x128xf32> to vector<8x16x128xf32>
    %188 = vector.shape_cast %185 : vector<8x16x128xf32> to vector<8x1x16x128xf32>
    tpu.vector_store %arg9[%c0_82, %c1_83, %c0_84, %c0_85], %188 {strides = array<i32>} : memref<8x2x16x256xf32, #tpu.memory_space<vmem>>, vector<8x1x16x128xf32>,
    %189 = vector.extract_strided_slice %66 {offsets = [1, 0, 0, 0], sizes = [8, 1, 18, 256], strides = [1, 1, 1, 1]} : vector<10x2x18x256xbf16> to vector<8x1x18x256xbf16>
    %190 = vector.shape_cast %189 : vector<8x1x18x256xbf16> to vector<8x18x256xbf16>
    %191 = vector.extract_strided_slice %190 {offsets = [0, 1, 0], sizes = [8, 16, 128], strides = [1, 1, 1]} : vector<8x18x256xbf16> to vector<8x16x128xbf16>
    %192 = vector.extract_strided_slice %190 {offsets = [0, 1, 128], sizes = [8, 16, 128], strides = [1, 1, 1]} : vector<8x18x256xbf16> to vector<8x16x128xbf16>
    %193 = vector.extract_strided_slice %190 {offsets = [0, 2, 0], sizes = [8, 16, 128], strides = [1, 1, 1]} : vector<8x18x256xbf16> to vector<8x16x128xbf16>
    %194 = tpu.concatenate %191, %192, %193 in 2 : vector<8x16x128xbf16>, vector<8x16x128xbf16>, vector<8x16x128xbf16> -> vector<8x16x384xbf16>
    %195 = vector.shape_cast %194 : vector<8x16x384xbf16> to vector<128x384xbf16>
    %c0_86 = arith.constant 0 : index
    %c0_87 = arith.constant 0 : index
    %c0_88 = arith.constant 0 : index
    %196 = vector.load %arg6[%c0_86, %c0_87, %c0_88] : memref<3x384x128xbf16, #tpu.memory_space<vmem>>, vector<1x384x128xbf16>
    %197 = vector.shape_cast %196 : vector<1x384x128xbf16> to vector<384x128xbf16>
    %cst_89 = arith.constant dense<0.000000e+00> : vector<128x128xf32>
    %198 = tpu.matmul %195, %197, %cst_89 {dimension_numbers = #tpu.dot_dimension_numbers<[1], [0], [0], [1], [0, 0, 1, 1], [], []>} : vector<128x384xbf16>, vector<384x128xbf16>, vector<128x128xf32> -> vector<128x128xf32>
    %199 = arith.addf %77, %198 : vector<128x128xf32>
    %200 = vector.extract_strided_slice %66 {offsets = [1, 1, 0, 0], sizes = [8, 1, 18, 256], strides = [1, 1, 1, 1]} : vector<10x2x18x256xbf16> to vector<8x1x18x256xbf16>
    %201 = vector.shape_cast %200 : vector<8x1x18x256xbf16> to vector<8x18x256xbf16>
    %202 = vector.extract_strided_slice %201 {offsets = [0, 1, 0], sizes = [8, 16, 128], strides = [1, 1, 1]} : vector<8x18x256xbf16> to vector<8x16x128xbf16>
    %203 = vector.extract_strided_slice %201 {offsets = [0, 1, 128], sizes = [8, 16, 128], strides = [1, 1, 1]} : vector<8x18x256xbf16> to vector<8x16x128xbf16>
    %204 = vector.extract_strided_slice %201 {offsets = [0, 2, 0], sizes = [8, 16, 128], strides = [1, 1, 1]} : vector<8x18x256xbf16> to vector<8x16x128xbf16>
    %205 = tpu.concatenate %202, %203, %204 in 2 : vector<8x16x128xbf16>, vector<8x16x128xbf16>, vector<8x16x128xbf16> -> vector<8x16x384xbf16>
    %206 = vector.shape_cast %205 : vector<8x16x384xbf16> to vector<128x384xbf16>
    %c1_90 = arith.constant 1 : index
    %c0_91 = arith.constant 0 : index
    %c0_92 = arith.constant 0 : index
    %207 = vector.load %arg6[%c1_90, %c0_91, %c0_92] : memref<3x384x128xbf16, #tpu.memory_space<vmem>>, vector<1x384x128xbf16>
    %208 = vector.shape_cast %207 : vector<1x384x128xbf16> to vector<384x128xbf16>
    %cst_93 = arith.constant dense<0.000000e+00> : vector<128x128xf32>
    %209 = tpu.matmul %206, %208, %cst_93 {dimension_numbers = #tpu.dot_dimension_numbers<[1], [0], [0], [1], [0, 0, 1, 1], [], []>} : vector<128x384xbf16>, vector<384x128xbf16>, vector<128x128xf32> -> vector<128x128xf32>
    %210 = arith.addf %199, %209 : vector<128x128xf32>
    %211 = vector.extract_strided_slice %66 {offsets = [2, 0, 0, 0], sizes = [8, 1, 18, 256], strides = [1, 1, 1, 1]} : vector<10x2x18x256xbf16> to vector<8x1x18x256xbf16>
    %212 = vector.shape_cast %211 : vector<8x1x18x256xbf16> to vector<8x18x256xbf16>
    %213 = vector.extract_strided_slice %212 {offsets = [0, 1, 0], sizes = [8, 16, 128], strides = [1, 1, 1]} : vector<8x18x256xbf16> to vector<8x16x128xbf16>
    %214 = vector.extract_strided_slice %212 {offsets = [0, 1, 128], sizes = [8, 16, 128], strides = [1, 1, 1]} : vector<8x18x256xbf16> to vector<8x16x128xbf16>
    %215 = vector.extract_strided_slice %212 {offsets = [0, 2, 0], sizes = [8, 16, 128], strides = [1, 1, 1]} : vector<8x18x256xbf16> to vector<8x16x128xbf16>
    %216 = tpu.concatenate %213, %214, %215 in 2 : vector<8x16x128xbf16>, vector<8x16x128xbf16>, vector<8x16x128xbf16> -> vector<8x16x384xbf16>
    %217 = vector.shape_cast %216 : vector<8x16x384xbf16> to vector<128x384xbf16>
    %c2_94 = arith.constant 2 : index
    %c0_95 = arith.constant 0 : index
    %c0_96 = arith.constant 0 : index
    %218 = vector.load %arg6[%c2_94, %c0_95, %c0_96] : memref<3x384x128xbf16, #tpu.memory_space<vmem>>, vector<1x384x128xbf16>
    %219 = vector.shape_cast %218 : vector<1x384x128xbf16> to vector<384x128xbf16>
    %cst_97 = arith.constant dense<0.000000e+00> : vector<128x128xf32>
    %220 = tpu.matmul %217, %219, %cst_97 {dimension_numbers = #tpu.dot_dimension_numbers<[1], [0], [0], [1], [0, 0, 1, 1], [], []>} : vector<128x384xbf16>, vector<384x128xbf16>, vector<128x128xf32> -> vector<128x128xf32>
    %221 = arith.addf %210, %220 : vector<128x128xf32>
    %222 = vector.shape_cast %221 : vector<128x128xf32> to vector<8x16x128xf32>
    %c0_98 = arith.constant 0 : index
    %c1_99 = arith.constant 1 : index
    %c0_100 = arith.constant 0 : index
    %c128_101 = arith.constant 128 : index
    %223 = vector.load %arg9[%c0_98, %c1_99, %c0_100, %c128_101] : memref<8x2x16x256xf32, #tpu.memory_space<vmem>>, vector<8x1x16x128xf32>
    %224 = vector.shape_cast %223 : vector<8x1x16x128xf32> to vector<8x16x128xf32>
    %225 = vector.shape_cast %222 : vector<8x16x128xf32> to vector<8x1x16x128xf32>
    tpu.vector_store %arg9[%c0_98, %c1_99, %c0_100, %c128_101], %225 {strides = array<i32>} : memref<8x2x16x256xf32, #tpu.memory_space<vmem>>, vector<8x1x16x128xf32>,
    return
  }
  func.func @transform_0(%arg0: i32, %arg1: i32) -> (i32, i32, i32, i32) {
    %c0_i32 = arith.constant 0 : i32
    %c0_i32_0 = arith.constant 0 : i32
    %c0_i32_1 = arith.constant 0 : i32
    %c0_i32_2 = arith.constant 0 : i32
    return %arg0, %c0_i32, %c0_i32_0, %c0_i32_1 : i32, i32, i32, i32
  }
  func.func @transform_1(%arg0: i32, %arg1: i32) -> (i32, i32, i32, i32) {
    %c0_i32 = arith.constant 0 : i32
    %c0_i32_0 = arith.constant 0 : i32
    %c0_i32_1 = arith.constant 0 : i32
    %c0_i32_2 = arith.constant 0 : i32
    return %arg0, %c0_i32, %c0_i32_0, %c0_i32_1 : i32, i32, i32, i32
  }
  func.func @transform_2(%arg0: i32, %arg1: i32) -> (i32, i32) {
    %c0_i32 = arith.constant 0 : i32
    %c0_i32_0 = arith.constant 0 : i32
    %c0_i32_1 = arith.constant 0 : i32
    return %c0_i32, %c0_i32_0 : i32, i32
  }
  func.func @transform_3(%arg0: i32, %arg1: i32) -> (i32, i32) {
    %c0_i32 = arith.constant 0 : i32
    %c0_i32_0 = arith.constant 0 : i32
    %c0_i32_1 = arith.constant 0 : i32
    return %c0_i32, %c0_i32_0 : i32, i32
  }
  func.func @transform_4(%arg0: i32, %arg1: i32) -> (i32, i32, i32) {
    %c0_i32 = arith.constant 0 : i32
    %c0_i32_0 = arith.constant 0 : i32
    %c0_i32_1 = arith.constant 0 : i32
    %c0_i32_2 = arith.constant 0 : i32
    return %c0_i32, %c0_i32_0, %c0_i32_1 : i32, i32, i32
  }
  func.func @transform_5(%arg0: i32, %arg1: i32) -> (i32, i32) {
    %c0_i32 = arith.constant 0 : i32
    %c0_i32_0 = arith.constant 0 : i32
    %c0_i32_1 = arith.constant 0 : i32
    return %c0_i32, %c0_i32_0 : i32, i32
  }
  func.func @transform_6(%arg0: i32, %arg1: i32) -> (i32, i32) {
    %c0_i32 = arith.constant 0 : i32
    %c0_i32_0 = arith.constant 0 : i32
    %c0_i32_1 = arith.constant 0 : i32
    return %c0_i32, %c0_i32_0 : i32, i32
  }
  func.func @transform_7(%arg0: i32, %arg1: i32) -> (i32, i32, i32, i32) {
    %c2_i32 = arith.constant 2 : i32
    %0 = arith.muli %arg0, %c2_i32 : i32
    %1 = arith.addi %0, %arg1 : i32
    %c0_i32 = arith.constant 0 : i32
    %c0_i32_0 = arith.constant 0 : i32
    %c0_i32_1 = arith.constant 0 : i32
    %c0_i32_2 = arith.constant 0 : i32
    return %1, %c0_i32, %c0_i32_0, %c0_i32_1 : i32, i32, i32, i32
  }
}

</mosaic_0001>

<bundles_post_ra>
// kernel: tile.18
= control target key start
LH: loop header
LB: loop body
LE: loop exit
PB: predicated region body
PF: predicated region fallthrough
CT: control target
= control target key end

     0   :  { %s22_s0 = inlined_call_operand.vmem [shape: f32[128], index: 0, kind: input, shape index: {}]   ;;  %s23_s1 = inlined_call_operand.vmem [shape: f32[2,128], index: 1, kind: output, shape index: {}]  }
   0x1   :  { %v4_v0 = vld [vmem:[%s22_s0] ss:$0 sm:$0xff] }
   0x2   :  { %5 = vst [vmem:[%s23_s1] sm:$0x3] %v4_v0 }

// kernel: resblock_generator_forward.2
= control target key start
LH: loop header
LB: loop body
LE: loop exit
PB: predicated region body
PF: predicated region fallthrough
CT: control target
= control target key end

     0   :  { %s4152_s15 = smov 0   ;;  %s4154_s16 = smov 0   ;;  %s5213_s0 = inlined_call_operand.vmem [shape: f32[2,18,18,128], index: 0, kind: input, shape index: {}]   ;;  %s5214_s1 = inlined_call_operand.vmem [shape: f32[1,128], index: 1, kind: input, shape index: {}]   ;;  %s5215_s2 = inlined_call_operand.vmem [shape: bf16[8,256,128], index: 2, kind: input, shape index: {}]   ;;  %s5216_s3 = inlined_call_operand.vmem [shape: f32[1,128], index: 3, kind: input, shape index: {}]   ;;  %s5217_s4 = inlined_call_operand.vmem [shape: f32[32,2,18,256], index: 4, kind: output, shape index: {}]  }
   0x1   :  { %s4156_s17 = smov 0   ;;  %s4158_s18 = smov 0  }
   0x2   :  { %s4160_s19 = smov 0  }
   0x3 LB: > { %s23_s20 = sadd.s32 1, %s4117_s17  ;;  %s26_s21 = sadd.s32 1, %s4121_s18  ;;  %s4125_s19 = sphi %s4160_s19, %s14_s19   ;;  %s4121_s18 = sphi %s4158_s18, %s5221_s18   ;;  %s4117_s17 = sphi %s4156_s17, %s5220_s17   ;;  %s4113_s16 = sphi %s4154_s16, %s5219_s16   ;;  %s4109_s15 = sphi %s4152_s15, %s5218_s15  }
   0x4   : > { %p24_p0 = scmp.ge.s32.totalorder %s23_s20, 2  ;;  %p3118_p1 = scmp.ge.s32.totalorder %s4125_s19, 1 }
   0x5   : > { %p178_p2 = scmp.lt.s32.totalorder %s4125_s19, 5 }
   0x6   : > { %s5223_s20 = smov (%p24_p0, %s23_s20), 0  ;;  %s5225_s21 = smov (!%p24_p0, %s26_s21), %s4121_s18 }
   0x7   : > { %p179_p3 = pnand %p3118_p1, %p178_p2  ;;  %p28_p4 = scmp.ge.s32.totalorder %s5225_s21, 2 }
   0x8   : > { %p207_p5 = scmp.lt.s32.totalorder (!%p179_p3), %s4113_s16, 1  ;;  %s3124_s13 = smul.u32 (!%p179_p3), 192, %s4109_s15 }
   0x9   : > { %s5227_s21 = smov (%p28_p4, %s5225_s21), 0  ;;  %182 = sbr.rel (%p179_p3) target bundleno = 695 (0x2b7), region = 36 }
   0xe   : > { %v3934_v0 = vld [vmem:[%s5215_s2 + $0xb8] sm:$0xff]  ;;  %v3933_v4 = vld [vmem:[%s5215_s2 + $0xb0] sm:$0xff]  ;;  %s208_s8 = scalar_select %p207_p5, %s4113_s16, 1  ;;  %v3932_v8 = vld [vmem:[%s5215_s2 + $0xa8] sm:$0xff]  ;;  %vm422_vm0 = vsmask.f32 7424 }
   0xf   : > { %v3942_v1 = vld [vmem:[%s5215_s2 + $0xf8] sm:$0xff]  ;;  %710 = vmatpush.bf16.msra.mxu0 %v3934_v0  ;;  %v3941_v5 = vld [vmem:[%s5215_s2 + $0xf0] sm:$0xff]  ;;  %v3940_v9 = vld [vmem:[%s5215_s2 + $0xe8] sm:$0xff]  ;;  %vm1038_vm1 = vcmask 1040384  }
  0x10   : > { %v3918_v2 = vld [vmem:[%s5215_s2 + $0x38] sm:$0xff]  ;;  %759 = vmatpush.bf16.msra.mxu1 %v3942_v1  ;;  %v3917_v6 = vld [vmem:[%s5215_s2 + $0x30] sm:$0xff]  ;;  %s4039_s14 = smul.u32 432, %s208_s8  ;;  %v3916_v10 = vld [vmem:[%s5215_s2 + $0x28] sm:$0xff] }
  0x11   : > { %v3926_v3 = vld [vmem:[%s5215_s2 + $0x78] sm:$0xff]  ;;  %904 = vmatpush.bf16.msra.mxu2 %v3918_v2  ;;  %v3925_v7 = vld [vmem:[%s5215_s2 + $0x70] sm:$0xff]  ;;  %v3924_v11 = vld [vmem:[%s5215_s2 + $0x68] sm:$0xff] }
  0x12   : > { %953 = vmatpush.bf16.msra.mxu3 %v3926_v3  ;;  %s211_s28 = scalar_lea.vmem %s5213_s0, %s4039_s14  ;;  %v3931_v12 = vld [vmem:[%s5215_s2 + $0xa0] sm:$0xff]  ;;  %v3930_v22 = vld [vmem:[%s5215_s2 + $0x98] sm:$0xff]  ;;  %v3929_v47 = vld [vmem:[%s5215_s2 + $0x90] sm:$0xff] }
  0x13   : > { %711 = vmatpush.bf16.msra.mxu0 %v3933_v4  ;;  %s4228_s7 = scalar_lea.vmem %s211_s28, %s3124_s13  ;;  %v3939_v13 = vld [vmem:[%s5215_s2 + $0xe0] sm:$0xff]  ;;  %v3938_v28 = vld [vmem:[%s5215_s2 + $0xd8] sm:$0xff]  ;;  %v3937_v48 = vld [vmem:[%s5215_s2 + $0xd0] sm:$0xff]  ;;  %s3120_s13 = sshll.u32 %s4113_s16, 1 }
  0x14   : > { %760 = vmatpush.bf16.msra.mxu1 %v3941_v5  ;;  %v3915_v14 = vld [vmem:[%s5215_s2 + $0x20] sm:$0xff]  ;;  %v229_v16 = vld [vmem:[%s4228_s7 + $0x18] sm:$0xff]  ;;  %v231_v19 = vld [vmem:[%s4228_s7 + $0x28] sm:$0x3]  ;;  %s213_s26 = sadd.s32 %s4109_s15, %s3120_s13 }
  0x15   : > { %905 = vmatpush.bf16.msra.mxu2 %v3917_v6  ;;  %v3923_v15 = vld [vmem:[%s5215_s2 + $0x60] sm:$0xff]  ;;  %v227_v21 = vld [vmem:[%s4228_s7 + $0x8] sm:$0xff]  ;;  %v228_v27 = vld [vmem:[%s4228_s7 + $0x10] sm:$0x3]  ;;  %s3121_s27 = sshll.u32 %s213_s26, 3 }
  0x16   : > { %954 = vmatpush.bf16.msra.mxu3 %v3925_v7  ;;  %v230_v17 = vld [vmem:[%s4228_s7 + $0x20] sm:$0xff]  ;;  %v3914_v29 = vld [vmem:[%s5215_s2 + $0x18] sm:$0xff]  ;;  %v232_v32 = vld [vmem:[%s4228_s7 + $0x30] sm:$0xff]  ;;  %p215_p6 = scmp.lt.s32.totalorder %s3121_s27, 31 }
  0x17   : > { %712 = vmatpush.bf16.msra.mxu0 %v3932_v8  ;;  %v4247_v18 = vld [vmem:[%s5214_s1] ss:$0 sm:$0xff]  ;;  %v3922_v33 = vld [vmem:[%s5215_s2 + $0x58] sm:$0xff]  ;;  %v3913_v54 = vld [vmem:[%s5215_s2 + $0x10] sm:$0xff] }
  0x18   : > { %761 = vmatpush.bf16.msra.mxu1 %v3940_v9  ;;  %v226_v20 = vld [vmem:[%s4228_s7] sm:$0xff]  ;;  %v263_v23 = vmul.f32 %v4247_v18, %v229_v16  ;;  %v264_v24 = vmul.f32 %v4247_v18, %v230_v17  ;;  %v265_v25 = vmul.f32 %v4247_v18, %v231_v19  ;;  %v261_v30 = vmul.f32 %v4247_v18, %v227_v21  ;;  %v233_v38 = vld [vmem:[%s4228_s7 + $0x38] sm:$0xff]  ;;  %v3921_v55 = vld [vmem:[%s5215_s2 + $0x50] sm:$0xff]  ;;  %s5229_s27 = smov (!%p215_p6, %s3121_s27), 31 }
  0x19   : > { %906 = vmatpush.bf16.msra.mxu2 %v3916_v10  ;;  %v260_v26 = vmul.f32 %v4247_v18, %v226_v20  ;;  %v262_v31 = vmul.f32 %v4247_v18, %v228_v27  ;;  %v266_v41 = vmul.f32 %v4247_v18, %v232_v32  ;;  %v267_v42 = vmul.f32 %v4247_v18, %v233_v38  ;;  %v234_v53 = vld [vmem:[%s4228_s7 + $0x40] sm:$0x3]  ;;  %v3928_v3 = vld [vmem:[%s5215_s2 + $0x88] sm:$0xff]  ;;  %v3950_v32 = vld [vmem:[%s5215_s2 + $0x138] sm:$0xff]  ;;  %s4040_s6 = smul.u32 96, %s5229_s27 }
  0x1a   : > { %955 = vmatpush.bf16.msra.mxu3 %v3924_v11  ;;  %v293_v34 = vmax.f32 %v263_v23, 0.0  ;;  %v294_v35 = vmax.f32 %v264_v24, 0.0  ;;  %v295_v36 = vmax.f32 %v265_v25, 0.0  ;;  %v291_v39 = vmax.f32 %v261_v30, 0.0  ;;  %v3936_v4 = vld [vmem:[%s5215_s2 + $0xc8] sm:$0xff]  ;;  %v3927_v20 = vld [vmem:[%s5215_s2 + $0x80] sm:$0xff] }
  0x1b   : > { %713 = vmatpush.bf16.msra.mxu0 %v3931_v12  ;;  %v290_v37 = vmax.f32 %v260_v26, 0.0  ;;  %v292_v40 = vmax.f32 %v262_v31, 0.0  ;;  %v296_v51 = vmax.f32 %v266_v41, 0.0  ;;  %v297_v52 = vmax.f32 %v267_v42, 0.0  ;;  %v3912_v7 = vld [vmem:[%s5215_s2 + $0x8] sm:$0xff]  ;;  %v3935_v21 = vld [vmem:[%s5215_s2 + $0xc0] sm:$0xff]  ;;  %s4619_s13 = scalar_lea.vmem %s5217_s4, %s4040_s6 }
  0x1c   : > { %762 = vmatpush.bf16.msra.mxu1 %v3939_v13  ;;  %v323_v43 = vpack.c.bf16 %v293_v34, %v293_v34  ;;  %v324_v44 = vpack.c.bf16 %v294_v35, %v294_v35  ;;  %v325_v45 = vpack.c.bf16 %v295_v36, %v295_v36  ;;  %v321_v49 = vpack.c.bf16 %v291_v39, %v291_v39  ;;  %v3920_v8 = vld [vmem:[%s5215_s2 + $0x48] sm:$0xff]  ;;  %v3919_v26 = vld [vmem:[%s5215_s2 + $0x40] sm:$0xff]  ;;  %v236_v30 = vld [vmem:[%s4228_s7 + $0x50] sm:$0xff] }
  0x1d   : > { %907 = vmatpush.bf16.msra.mxu2 %v3915_v14  ;;  %v320_v46 = vpack.c.bf16 %v290_v37, %v290_v37  ;;  %v322_v50 = vpack.c.bf16 %v292_v40, %v292_v40  ;;  %v326_v62 = vpack.c.bf16 %v296_v51, %v296_v51  ;;  %v327_v1 = vpack.c.bf16 %v297_v52, %v297_v52  ;;  %v3966_v40 = vld [vmem:[%s5215_s2 + $0x1b8] sm:$0xff]  ;;  %v3973_v51 = vld [vmem:[%s5215_s2 + $0x1f0] sm:$0xff]  ;;  %v3948_v52 = vld [vmem:[%s5215_s2 + $0x128] sm:$0xff] }
  0x1e   : > { %956 = vmatpush.bf16.msra.mxu3 %v3923_v15  ;;  %v368_v56 = vunpack.c.l.b16 %v323_v43  ;;  %v369_v57 = vunpack.c.l.b16 %v324_v44  ;;  %v407_v58 = vunpack.c.l.b16 %v325_v45  ;;  %v367_v60 = vunpack.c.l.b16 %v321_v49  ;;  %v3974_v41 = vld [vmem:[%s5215_s2 + $0x1f8] sm:$0xff]  ;;  %v3949_v43 = vld [vmem:[%s5215_s2 + $0x130] sm:$0xff] }
  0x1f   : > { %714 = vmatpush.bf16.msra.mxu0 %v3930_v22  ;;  %v366_v59 = vunpack.c.l.b16 %v320_v46  ;;  %v406_v61 = vunpack.c.l.b16 %v322_v50  ;;  %v268_v2 = vmul.f32 %v4247_v18, %v234_v53  ;;  %v370_v17 = vunpack.c.l.b16 %v326_v62  ;;  %v3911_v22 = vld [vmem:[%s5215_s2] sm:$0xff]  ;;  %v237_v42 = vld [vmem:[%s4228_s7 + $0x58] sm:$0x3]  ;;  %v3957_v44 = vld [vmem:[%s5215_s2 + $0x170] sm:$0xff] }
  0x20   : > { %763 = vmatpush.bf16.msra.mxu1 %v3938_v28  ;;  %v4288_v63 = vpack.c.b16 %v369_v57, %v368_v56  ;;  %v4290_v0 = vpack.c.b16 %v407_v58, %v407_v58  ;;  %v371_v19 = vunpack.c.l.b16 %v327_v1  ;;  %v270_v38 = vmul.f32 %v4247_v18, %v236_v30  ;;  %v3965_v50 = vld [vmem:[%s5215_s2 + $0x1b0] sm:$0xff]  ;;  %v3956_v53 = vld [vmem:[%s5215_s2 + $0x168] sm:$0xff] }
  0x21   : > { %908 = vmatpush.bf16.msra.mxu2 %v3914_v29  ;;  %v382_v5 = vpack.c.b16 %v367_v60, %v366_v59  ;;  %v4299_v6 = vpack.c.b16 %v406_v61, %v406_v61  ;;  %v298_v12 = vmax.f32 %v268_v2, 0.0  ;;  %v235_v29 = vld [vmem:[%s4228_s7 + $0x48] sm:$0xff]  ;;  %v271_v49 = vmul.f32 %v4247_v18, %v237_v42 }
  0x22   : > { %957 = vmatpush.bf16.msra.mxu3 %v3922_v33  ;;  %v436_v9 = vshrl.u32 %v4288_v63, 16  ;;  %v438_v10 = vshll.u32 %v4288_v63, 16  ;;  %v443_v11 = vshll.u32 %v4290_v0, 16  ;;  %v3958_v33 = vld [vmem:[%s5215_s2 + $0x178] sm:$0xff]  ;;  %v4331_v34 = vpack.c.b16 %v371_v19, %v370_v17  ;;  %v3964_v60 = vld [vmem:[%s5215_s2 + $0x1a8] sm:$0xff] }
  0x23   : > { %715 = vmatpush.bf16.msra.mxu0 %v3929_v47  ;;  %v424_v13 = vshrl.u32 %v382_v5, 16  ;;  %v426_v14 = vshll.u32 %v382_v5, 16  ;;  %v431_v15 = vshll.u32 %v4299_v6, 16  ;;  %v328_v25 = vpack.c.bf16 %v298_v12, %v298_v12  ;;  %v3972_v61 = vld [vmem:[%s5215_s2 + $0x1e8] sm:$0xff] }
  0x24   : > { %764 = vmatpush.bf16.msra.mxu1 %v3937_v48  ;;  %v440_v16 = vrot.slane %v438_v10, 1  ;;  %v445_v23 = vrot.slane %v443_v11, 1  ;;  %v269_v37 = vmul.f32 %v4247_v18, %v235_v29  ;;  %v450_v45 = vshll.u32 %v4331_v34, 16 }
  0x25   : > { %909 = vmatpush.bf16.msra.mxu2 %v3913_v54  ;;  %v428_v24 = vrot.slane %v426_v14, 1  ;;  %v433_v28 = vrot.slane %v431_v15, 1  ;;  %v408_v36 = vunpack.c.l.b16 %v328_v25  ;;  %v300_v48 = vmax.f32 %v270_v38, 0.0  ;;  %v242_v38 = vld [vmem:[%s4228_s7 + $0x80] sm:$0xff] }
  0x26   : > { %958 = vmatpush.bf16.msra.mxu3 %v3921_v55  ;;  %v441_v27 = vor.u32 %v440_v16, %v436_v9  ;;  %v299_v47 = vmax.f32 %v269_v37, 0.0  ;;  %v448_v54 = vshrl.u32 %v4331_v34, 16  ;;  %v452_v55 = vrot.slane %v450_v45, 1  ;;  %v241_v37 = vld [vmem:[%s4228_s7 + $0x78] sm:$0xff]  ;;  %v243_v45 = vld [vmem:[%s4228_s7 + $0x88] sm:$0x3] }
  0x27   : > { %716 = vmatpush.bf16.msra.mxu0 %v3928_v3  ;;  %v429_v31 = vor.u32 %v428_v24, %v424_v13  ;;  %v4358_v46 = vpack.c.b16 %v408_v36, %v408_v36  ;;  %v330_v58 = vpack.c.bf16 %v300_v48, %v300_v48  ;;  %v301_v59 = vmax.f32 %v271_v49, 0.0  ;;  %v240_v13 = vld [vmem:[%s4228_s7 + $0x70] sm:$0x3] }
  0x28   : > { %765 = vmatpush.bf16.msra.mxu1 %v3936_v4  ;;  %v4334_v35 = vsel %vm422_vm0, %v441_v27, %v445_v23  ;;  %v329_v57 = vpack.c.bf16 %v299_v47, %v299_v47  ;;  %v453_v62 = vor.u32 %v452_v55, %v448_v54  ;;  %v274_v19 = vmul.f32 %v4247_v18, %v240_v13  ;;  %v3971_v23 = vld [vmem:[%s5215_s2 + $0x1e0] sm:$0xff]  ;;  %v3962_v54 = vld [vmem:[%s5215_s2 + $0x198] sm:$0xff] }
  0x29   : > { %910 = vmatpush.bf16.msra.mxu2 %v3912_v7  ;;  %v4339_v39 = vsel %vm422_vm0, %v429_v31, %v433_v28  ;;  %v455_v56 = vshll.u32 %v4358_v46, 16  ;;  %v373_v3 = vunpack.c.l.b16 %v330_v58  ;;  %v331_v4 = vpack.c.bf16 %v301_v59, %v301_v59  ;;  %v239_v7 = vld [vmem:[%s4228_s7 + $0x68] sm:$0xff]  ;;  %v3970_v55 = vld [vmem:[%s5215_s2 + $0x1d8] sm:$0xff] }
  0x2a   : > { %959 = vmatpush.bf16.msra.mxu3 %v3920_v8  ;;  %v372_v2 = vunpack.c.l.b16 %v329_v57  ;;  %v273_v12 = vmul.f32 %v4247_v18, %v239_v7  ;;  %v304_v29 = vmax.f32 %v274_v19, 0.0  ;;  %v245_v7 = vld [vmem:[%s4228_s7 + $0x98] sm:$0xff] }
  0x2b   : > { %717 = vmatpush.bf16.msra.mxu0 %v3927_v20  ;;  %v457_v1 = vrot.slane %v455_v56, 1  ;;  %v409_v11 = vunpack.c.l.b16 %v331_v4  ;;  %v3947_v20 = vld [vmem:[%s5215_s2 + $0x120] sm:$0xff] }
  0x2c   : > { %766 = vmatpush.bf16.msra.mxu1 %v3935_v21  ;;  %v4387_v10 = vpack.c.b16 %v373_v3, %v372_v2  ;;  %v303_v17 = vmax.f32 %v273_v12, 0.0  ;;  %v3955_v21 = vld [vmem:[%s5215_s2 + $0x160] sm:$0xff]  ;;  %v334_v36 = vpack.c.bf16 %v304_v29, %v304_v29 }
  0x2d   : > { %911 = vmatpush.bf16.msra.mxu2 %v3911_v22  ;;  %v4385_v9 = vsel %vm422_vm0, %v453_v62, %v457_v1  ;;  %v4395_v15 = vpack.c.b16 %v409_v11, %v409_v11  ;;  %v3963_v22 = vld [vmem:[%s5215_s2 + $0x1a0] sm:$0xff] }
  0x2e   : > { %960 = vmatpush.bf16.msra.mxu3 %v3919_v26  ;;  %718 = vmatmul.bf16.vlgmr.msra.gmra.mxu0 %v4288_v63  ;;  %v462_v16 = vshll.u32 %v4387_v10, 16  ;;  %v460_v24 = vshrl.u32 %v4387_v10, 16  ;;  %v333_v28 = vpack.c.bf16 %v303_v17, %v303_v17 }
  0x2f   : > { %767 = vmatmul.bf16.vlgmr.msra.gmra.mxu1 %v4334_v35  ;;  %1424 = vmatpush.bf16.msrb.mxu0 %v3966_v40  ;;  %v467_v27 = vshll.u32 %v4395_v15, 16  ;;  %v275_v40 = vmul.f32 %v4247_v18, %v241_v37 }
  0x30   : > { %912 = vmatmul.bf16.vlgmr.msra.gmra.mxu2 %v382_v5  ;;  %1473 = vmatpush.bf16.msrb.mxu1 %v3974_v41  ;;  %v238_v5 = vld [vmem:[%s4228_s7 + $0x60] sm:$0xff]  ;;  %v464_v26 = vrot.slane %v462_v16, 1  ;;  %v276_v41 = vmul.f32 %v4247_v18, %v242_v38 }
  0x31   : > { %1618 = vmatpush.bf16.msrb.mxu2 %v3950_v32  ;;  %961 = vmatmul.bf16.vlgmr.msra.gmra.mxu3 %v4339_v39  ;;  %v272_v8 = vmul.f32 %v4247_v18, %v238_v5  ;;  %v469_v32 = vrot.slane %v467_v27, 1  ;;  %v305_v47 = vmax.f32 %v275_v40, 0.0  ;;  %v244_v5 = vld [vmem:[%s4228_s7 + $0x90] sm:$0xff]  ;;  %v246_v16 = vld [vmem:[%s4228_s7 + $0xa0] sm:$0x3] }
  0x32   : > { %1667 = vmatpush.bf16.msrb.mxu3 %v3958_v33  ;;  %v465_v31 = vor.u32 %v464_v26, %v460_v24  ;;  %v375_v33 = vunpack.c.l.b16 %v333_v28  ;;  %v306_v48 = vmax.f32 %v276_v41, 0.0  ;;  %v278_v13 = vmul.f32 %v4247_v18, %v244_v5  ;;  %v3953_v24 = vld [vmem:[%s5215_s2 + $0x150] sm:$0xff]  ;;  %v247_v41 = vld [vmem:[%s4228_s7 + $0xa8] sm:$0xff] }
  0x33   : > { %1425 = vmatpush.bf16.msrb.mxu0 %v3965_v50  ;;  %v302_v14 = vmax.f32 %v272_v8, 0.0  ;;  %v335_v56 = vpack.c.bf16 %v305_v47, %v305_v47  ;;  %v3969_v26 = vld [vmem:[%s5215_s2 + $0x1d0] sm:$0xff] }
  0x34   : > { %1474 = vmatpush.bf16.msrb.mxu1 %v3973_v51  ;;  %v4418_v42 = vsel %vm422_vm0, %v465_v31, %v469_v32  ;;  %v277_v51 = vmul.f32 %v4247_v18, %v243_v45  ;;  %v336_v57 = vpack.c.bf16 %v306_v48, %v306_v48  ;;  %v281_v45 = vmul.f32 %v4247_v18, %v247_v41 }
  0x35   : > { %1619 = vmatpush.bf16.msrb.mxu2 %v3949_v43  ;;  %v332_v25 = vpack.c.bf16 %v302_v14, %v302_v14  ;;  %v376_v62 = vunpack.c.l.b16 %v335_v56  ;;  %v279_v14 = vmul.f32 %v4247_v18, %v245_v7 }
  0x36   : > { %1668 = vmatpush.bf16.msrb.mxu3 %v3957_v44  ;;  %v410_v44 = vunpack.c.l.b16 %v334_v36  ;;  %v377_v1 = vunpack.c.l.b16 %v336_v57 }
  0x37   : > { %1426 = vmatpush.bf16.msrb.mxu0 %v3964_v60  ;;  %v374_v30 = vunpack.c.l.b16 %v332_v25  ;;  %v3961_v25 = vld [vmem:[%s5215_s2 + $0x190] sm:$0xff] }
  0x38   : > { %1475 = vmatpush.bf16.msrb.mxu1 %v3972_v61  ;;  %v4427_v49 = vpack.c.b16 %v410_v44, %v410_v44  ;;  %v307_v61 = vmax.f32 %v277_v51, 0.0  ;;  %v4447_v8 = vpack.c.b16 %v377_v1, %v376_v62  ;;  %v248_v44 = vld [vmem:[%s4228_s7 + $0xb0] sm:$0xff] }
  0x39   : > { %1620 = vmatpush.bf16.msrb.mxu2 %v3948_v52  ;;  %v4420_v43 = vpack.c.b16 %v375_v33, %v374_v30  ;;  %v3946_v52 = vld [vmem:[%s5215_s2 + $0x118] sm:$0xff]  ;;  %v282_v47 = vmul.f32 %v4247_v18, %v248_v44 }
  0x3a   : > { %1669 = vmatpush.bf16.msrb.mxu3 %v3956_v53  ;;  %v3954_v53 = vld [vmem:[%s5215_s2 + $0x158] sm:$0xff]  ;;  %v479_v60 = vshll.u32 %v4427_v49, 16  ;;  %v337_v4 = vpack.c.bf16 %v307_v61, %v307_v61  ;;  %v486_v17 = vshll.u32 %v4447_v8, 16  ;;  %v484_v27 = vshrl.u32 %v4447_v8, 16  ;;  %v3968_v61 = vld [vmem:[%s5215_s2 + $0x1c8] sm:$0xff] }
  0x3b   : > { %1427 = vmatpush.bf16.msrb.mxu0 %v3963_v22  ;;  %v474_v50 = vshll.u32 %v4420_v43, 16  ;;  %v472_v58 = vshrl.u32 %v4420_v43, 16  ;;  %v280_v22 = vmul.f32 %v4247_v18, %v246_v16 }
  0x3c   : > { %1476 = vmatpush.bf16.msrb.mxu1 %v3971_v23  ;;  %v481_v3 = vrot.slane %v479_v60, 1  ;;  %v411_v12 = vunpack.c.l.b16 %v337_v4  ;;  %v3945_v23 = vld [vmem:[%s5215_s2 + $0x110] sm:$0xff]  ;;  %v488_v28 = vrot.slane %v486_v17, 1  ;;  %v3960_v60 = vld [vmem:[%s5215_s2 + $0x188] sm:$0xff]  ;;  %v250_v17 = vld [vmem:[%s4228_s7 + $0xc0] sm:$0xff] }
  0x3d   : > { %1621 = vmatpush.bf16.msrb.mxu2 %v3947_v20  ;;  %v476_v59 = vrot.slane %v474_v50, 1  ;;  %v308_v20 = vmax.f32 %v278_v13, 0.0  ;;  %v310_v32 = vmax.f32 %v280_v22, 0.0 }
  0x3e   : > { %723 = vmatmul.bf16.gmra.mxu0 %v4331_v34  ;;  %1670 = vmatpush.bf16.msrb.mxu3 %v3955_v21  ;;  %v4460_v19 = vpack.c.b16 %v411_v12, %v411_v12  ;;  %v309_v21 = vmax.f32 %v279_v14, 0.0  ;;  %v489_v33 = vor.u32 %v488_v28, %v484_v27 }
  0x3f   : > { %772 = vmatmul.bf16.gmra.mxu1 %v4385_v9  ;;  %1428 = vmatpush.bf16.msrb.mxu0 %v3962_v54  ;;  %v477_v2 = vor.u32 %v476_v59, %v472_v58  ;;  %v338_v30 = vpack.c.bf16 %v308_v20, %v308_v20  ;;  %v340_v40 = vpack.c.bf16 %v310_v32, %v310_v32  ;;  %v312_v54 = vmax.f32 %v282_v47, 0.0  ;;  %v3944_v58 = vld [vmem:[%s5215_s2 + $0x108] sm:$0xff]  ;;  %v3943_v32 = vld [vmem:[%s5215_s2 + $0x100] sm:$0xff] }
  0x40   : > { %917 = vmatmul.bf16.gmra.mxu2 %v4288_v63  ;;  %1477 = vmatpush.bf16.msrb.mxu1 %v3970_v55  ;;  %v491_v29 = vshll.u32 %v4460_v19, 16  ;;  %v339_v31 = vpack.c.bf16 %v309_v21, %v309_v21  ;;  %v3952_v59 = vld [vmem:[%s5215_s2 + $0x148] sm:$0xff] }
  0x41   : > { %966 = vmatmul.bf16.gmra.mxu3 %v4334_v35  ;;  %1622 = vmatpush.bf16.msrb.mxu2 %v3946_v52  ;;  %v4450_v11 = vsel %vm422_vm0, %v477_v2, %v481_v3  ;;  %v378_v37 = vunpack.c.l.b16 %v338_v30  ;;  %v412_v51 = vunpack.c.l.b16 %v340_v40  ;;  %v249_v52 = vld [vmem:[%s4228_s7 + $0xb8] sm:$0x3]  ;;  %v342_v1 = vpack.c.bf16 %v312_v54, %v312_v54  ;;  %v251_v20 = vld [vmem:[%s4228_s7 + $0xc8] sm:$0xff] }
  0x42   : > { %1671 = vmatpush.bf16.msrb.mxu3 %v3954_v53  ;;  %v493_v36 = vrot.slane %v491_v29, 1  ;;  %v379_v38 = vunpack.c.l.b16 %v339_v31  ;;  %v311_v53 = vmax.f32 %v281_v45, 0.0  ;;  %v283_v57 = vmul.f32 %v4247_v18, %v249_v52 }
  0x43   : > { %1429 = vmatpush.bf16.msrb.mxu0 %v3961_v25  ;;  %v4491_v55 = vpack.c.b16 %v412_v51, %v412_v51  ;;  %v381_v12 = vunpack.c.l.b16 %v342_v1  ;;  %v285_v25 = vmul.f32 %v4247_v18, %v251_v20  ;;  %v1127_v20 = vshrl.u32 %v4299_v6, 16 }
  0x44   : > { %1478 = vmatpush.bf16.msrb.mxu1 %v3969_v26  ;;  %v4482_v48 = vsel %vm422_vm0, %v489_v33, %v493_v36  ;;  %v4484_v50 = vpack.c.b16 %v379_v38, %v378_v37  ;;  %v341_v62 = vpack.c.bf16 %v311_v53, %v311_v53  ;;  %v313_v5 = vmax.f32 %v283_v57, 0.0  ;;  %v252_v26 = vld [vmem:[%s4228_s7 + $0xd0] sm:$0x3]  ;;  %v3951_v33 = vld [vmem:[%s5215_s2 + $0x140] sm:$0xff] }
  0x45   : > { %1623 = vmatpush.bf16.msrb.mxu2 %v3945_v23  ;;  %v503_v4 = vshll.u32 %v4491_v55, 16  ;;  %v315_v30 = vmax.f32 %v285_v25, 0.0  ;;  %v286_v31 = vmul.f32 %v4247_v18, %v252_v26  ;;  %v3959_v36 = vld [vmem:[%s5215_s2 + $0x180] sm:$0xff]  ;;  %v1144_v26 = vshrl.u32 %v4339_v39, 16 }
  0x46   : > { %1672 = vmatpush.bf16.msrb.mxu3 %v3953_v24  ;;  %v498_v56 = vshll.u32 %v4484_v50, 16  ;;  %v496_v2 = vshrl.u32 %v4484_v50, 16  ;;  %v380_v7 = vunpack.c.l.b16 %v341_v62  ;;  %v343_v16 = vpack.c.bf16 %v313_v5, %v313_v5  ;;  %v3967_v37 = vld [vmem:[%s5215_s2 + $0x1c0] sm:$0xff]  ;;  %v3990_v62 = vld [vmem:[%s5215_s2 + $0x278] sm:$0xff] }
  0x47   : > { %1430 = vmatpush.bf16.msrb.mxu0 %v3960_v60  ;;  %v505_v14 = vrot.slane %v503_v4, 1  ;;  %v284_v24 = vmul.f32 %v4247_v18, %v250_v17  ;;  %v345_v44 = vpack.c.bf16 %v315_v30, %v315_v30  ;;  %v316_v45 = vmax.f32 %v286_v31, 0.0  ;;  %v3989_v30 = vld [vmem:[%s5215_s2 + $0x270] sm:$0xff] }
  0x48   : > { %1479 = vmatpush.bf16.msrb.mxu1 %v3968_v61  ;;  %v500_v3 = vrot.slane %v498_v56, 1  ;;  %v4511_v21 = vpack.c.b16 %v381_v12, %v380_v7  ;;  %v413_v23 = vunpack.c.l.b16 %v343_v16  ;;  %v3982_v61 = vld [vmem:[%s5215_s2 + $0x238] sm:$0xff]  ;;  %v1158_v16 = vshll.u32 %v4334_v35, 16 }
  0x49   : > { %1624 = vmatpush.bf16.msrb.mxu2 %v3944_v58  ;;  %v314_v29 = vmax.f32 %v284_v24, 0.0  ;;  %v562_v53 = vunpack.c.l.b16 %v345_v44  ;;  %v346_v54 = vpack.c.bf16 %v316_v45, %v316_v45  ;;  %v3998_v12 = vld [vmem:[%s5215_s2 + $0x2b8] sm:$0xff]  ;;  %v1146_v17 = vshll.u32 %v4339_v39, 16 }
  0x4a   : > { %1673 = vmatpush.bf16.msrb.mxu3 %v3952_v59  ;;  %v501_v13 = vor.u32 %v500_v3, %v496_v2  ;;  %v510_v27 = vshll.u32 %v4511_v21, 16  ;;  %v4524_v28 = vpack.c.b16 %v413_v23, %v413_v23  ;;  %v508_v18 = vshrl.u32 %v4511_v21, 16 }
  0x4b   : > { %1431 = vmatpush.bf16.msrb.mxu0 %v3959_v36  ;;  %v344_v41 = vpack.c.bf16 %v314_v29, %v314_v29  ;;  %v566_v58 = vunpack.c.l.b16 %v346_v54  ;;  %v1156_v23 = vshrl.u32 %v4334_v35, 16  ;;  %v1160_v24 = vrot.slane %v1158_v16, 1  ;;  %v4606_v54 = vld [vmem:[%s5216_s3] ss:$0 sm:$0xff] }
  0x4c   : > { %v4514_v22 = vsel %vm422_vm0, %v501_v13, %v505_v14  ;;  %v512_v38 = vrot.slane %v510_v27, 1  ;;  %1480 = vmatpush.bf16.msrb.mxu1 %v3967_v37  ;;  %v515_v40 = vshll.u32 %v4524_v28, 16  ;;  %v4006_v13 = vld [vmem:[%s5215_s2 + $0x2f8] sm:$0xff]  ;;  %v1129_v14 = vshrl.u32 %v4290_v0, 16  ;;  %v3981_v0 = vld [vmem:[%s5215_s2 + $0x230] sm:$0xff] }
  0x4d   : > { %1625 = vmatpush.bf16.msrb.mxu2 %v3943_v32  ;;  %v561_v52 = vunpack.c.l.b16 %v344_v41  ;;  %v4550_v59 = vpack.c.b16 %v566_v58, %v566_v58  ;;  %v1148_v27 = vrot.slane %v1146_v17, 1  ;;  %v1151_v29 = vshll.u32 %v1127_v20, 16  ;;  %v4005_v41 = vld [vmem:[%s5215_s2 + $0x2f0] sm:$0xff] }
  0x4e   : > { %728 = vmatmul.bf16.gmra.mxu0 %v4387_v10  ;;  %1674 = vmatpush.bf16.msrb.mxu3 %v3951_v33  ;;  %v513_v47 = vor.u32 %v512_v38, %v508_v18  ;;  %v517_v51 = vrot.slane %v515_v40, 1  ;;  %v1163_v25 = vshll.u32 %v1129_v14, 16  ;;  %v1161_v6 = vor.u32 %v1160_v24, %v1156_v23  ;;  %v3997_v40 = vld [vmem:[%s5215_s2 + $0x2b0] sm:$0xff] }
  0x4f   : > { %777 = vmatmul.bf16.gmra.mxu1 %v4418_v42  ;;  %v4544_v57 = vpack.c.b16 %v562_v53, %v561_v52  ;;  %v576_v3 = vshll.u32 %v4550_v59, 16  ;;  %2024 = vmatpush.bf16.msra.mxu0 %v3998_v12  ;;  %v1149_v32 = vor.u32 %v1148_v27, %v1144_v26  ;;  %v1153_v33 = vrot.slane %v1151_v29, 1  ;;  %v3996_v26 = vld [vmem:[%s5215_s2 + $0x2a8] sm:$0xff] }
  0x50   : > { %922 = vmatmul.bf16.gmra.mxu2 %v4331_v34  ;;  %v4542_v56 = vsel %vm422_vm0, %v513_v47, %v517_v51  ;;  %2073 = vmatpush.bf16.msra.mxu1 %v4006_v13  ;;  %v1165_v31 = vrot.slane %v1163_v25, 1  ;;  %v1131_v45 = vshrl.u32 %v4358_v46, 16  ;;  %v1170_v47 = vshll.u32 %v4385_v9, 16  ;;  %v4004_v27 = vld [vmem:[%s5215_s2 + $0x2e8] sm:$0xff] }
  0x51   : > { %971 = vmatmul.bf16.gmra.mxu3 %v4385_v9  ;;  %v571_v60 = vshll.u32 %v4544_v57, 16  ;;  %2218 = vmatpush.bf16.msra.mxu2 %v3982_v61  ;;  %v569_v1 = vshrl.u32 %v4544_v57, 16  ;;  %v578_v5 = vrot.slane %v576_v3, 1  ;;  %v1154_v38 = vsel %vm422_vm0, %v1149_v32, %v1153_v33 }
  0x52   : > { %2267 = vmatpush.bf16.msra.mxu3 %v3990_v62  ;;  %v4589_v18 = vsel %vm422_vm0, %v1161_v6, %v1165_v31  ;;  %v1172_v61 = vrot.slane %v1170_v47, 1  ;;  %v1175_v62 = vshll.u32 %v1131_v45, 16  ;;  %v1133_v31 = vshrl.u32 %v4395_v15, 16  ;;  %v3979_v15 = vld [vmem:[%s5215_s2 + $0x220] sm:$0xff] }
  0x53   : > { %v573_v2 = vrot.slane %v571_v60, 1  ;;  %2025 = vmatpush.bf16.msra.mxu0 %v3997_v40 }
  0x54   : > { %2074 = vmatpush.bf16.msra.mxu1 %v4005_v41 }
  0x55   : > { %v574_v4 = vor.u32 %v573_v2, %v569_v1  ;;  %2219 = vmatpush.bf16.msra.mxu2 %v3981_v0  ;;  %v3980_v1 = vld [vmem:[%s5215_s2 + $0x228] sm:$0xff]  ;;  %v1182_v0 = vshll.u32 %v4418_v42, 16 }
  0x56   : > { %2268 = vmatpush.bf16.msra.mxu3 %v3989_v30  ;;  %v3988_v2 = vld [vmem:[%s5215_s2 + $0x268] sm:$0xff] }
  0x57   : > { %v4562_v7 = vsel %vm422_vm0, %v574_v4, %v578_v5  ;;  %v1177_v5 = vrot.slane %v1175_v62, 1  ;;  %2026 = vmatpush.bf16.msra.mxu0 %v3996_v26 }
  0x58   : > { %2075 = vmatpush.bf16.msra.mxu1 %v4004_v27 }
  0x59   : > { %2220 = vmatpush.bf16.msra.mxu2 %v3980_v1 }
  0x5a   : > { %2269 = vmatpush.bf16.msra.mxu3 %v3988_v2 }
  0x5d   : > { %2221 = vmatpush.bf16.msra.mxu2 %v3979_v15 }
  0x5e   : > { %733 = vmatmul.bf16.gmra.mxu0 %v4420_v43 }
  0x5f   : > { %782 = vmatmul.bf16.gmra.mxu1 %v4450_v11 }
  0x60   : > { %927 = vmatmul.bf16.gmra.mxu2 %v4387_v10 }
  0x61   : > { %976 = vmatmul.bf16.gmra.mxu3 %v4418_v42 }
  0x6e   : > { %738 = vmatmul.bf16.gmra.mxu0 %v4447_v8 }
  0x6f   : > { %787 = vmatmul.bf16.gmra.mxu1 %v4482_v48 }
  0x70   : > { %932 = vmatmul.bf16.gmra.mxu2 %v4420_v43 }
  0x71   : > { %981 = vmatmul.bf16.gmra.mxu3 %v4450_v11 }
  0x7e   : > { %743 = vmatmul.bf16.gmra.mxu0 %v4484_v50 }
  0x7f   : > { %792 = vmatmul.bf16.gmra.mxu1 %v4514_v22 }
  0x80   : > { %937 = vmatmul.bf16.gmra.mxu2 %v4447_v8 }
  0x81   : > { %986 = vmatmul.bf16.gmra.mxu3 %v4482_v48 }
  0x8e   : > { %748 = vmatmul.bf16.gmra.mxu0 %v4511_v21 }
  0x8f   : > { %797 = vmatmul.bf16.gmra.mxu1 %v4542_v56 }
  0x90   : > { %942 = vmatmul.bf16.gmra.mxu2 %v4484_v50 }
  0x91   : > { %991 = vmatmul.bf16.gmra.mxu3 %v4514_v22 }
  0x9e   : > { %753 = vmatmul.bf16.gmra.mxu0 %v4544_v57 }
  0x9f   : > { %802 = vmatmul.bf16.gmra.mxu1 %v4562_v7 }
  0xa0   : > { %947 = vmatmul.bf16.gmra.mxu2 %v4511_v21 }
  0xa1   : > { %996 = vmatmul.bf16.gmra.mxu3 %v4542_v56 }
  0xab   : > { %v719_v36 = vpop.f32.mrf.mxu0 }
  0xac   : > { %v768_v37 = vpop.f32.mrf.mxu1 }
  0xad   : > { %v769_v44 = vadd.f32 %v768_v37, %v719_v36  ;;  %v1180_v37 = vshrl.u32 %v4418_v42, 16 }
  0xae   : > { %1432 = vmatmul.bf16.vlgmr.msrb.gmra.mxu0 %v4334_v35 }
  0xaf   : > { %1481 = vmatmul.bf16.vlgmr.msrb.gmra.mxu1 %v4589_v18 }
  0xb0   : > { %1626 = vmatmul.bf16.vlgmr.msrb.gmra.mxu2 %v4339_v39  ;;  %v1168_v39 = vshrl.u32 %v4385_v9, 16 }
  0xb1   : > { %1675 = vmatmul.bf16.vlgmr.msrb.gmra.mxu3 %v1154_v38  ;;  %v1184_v38 = vrot.slane %v1182_v0, 1  ;;  %v1192_v0 = vshrl.u32 %v4450_v11, 16 }
  0xb2   : > { %v1173_v4 = vor.u32 %v1172_v61, %v1168_v39 }
  0xb3   : > { %v913_v51 = vpop.f32.mrf.mxu2  ;;  %v721_v58 = vpop.f32.mrf.mxu0 }
  0xb4   : > { %v962_v52 = vpop.f32.mrf.mxu3  ;;  %v914_v53 = vadd.f32 %v913_v51, %v769_v44  ;;  %v770_v60 = vpop.f32.mrf.mxu1  ;;  %v4623_v25 = vsel %vm422_vm0, %v1173_v4, %v1177_v5  ;;  %v1187_v51 = vshll.u32 %v1133_v31, 16 }
  0xb5   : > { %v771_v13 = vadd.f32 %v770_v60, %v721_v58  ;;  %v1185_v60 = vor.u32 %v1184_v38, %v1180_v37 }
  0xb6   : > { %v963_v46 = vadd.f32 %v962_v52, %v914_v53  ;;  %v3987_v53 = vld [vmem:[%s5215_s2 + $0x260] sm:$0xff]  ;;  %v1189_v39 = vrot.slane %v1187_v51, 1 }
  0xb7   : > { %2270 = vmatpush.bf16.msra.mxu3 %v3987_v53 }
  0xb8   : > { %v1006_v3 = vadd.f32 %v4606_v54, %v963_v46 }
  0xba   : > { %v1039_v12 = vrot.slane %v1006_v3, 7 }
  0xbb   : > { %v915_v14 = vpop.f32.mrf.mxu2  ;;  %v724_v23 = vpop.f32.mrf.mxu0 }
  0xbc   : > { %v964_v16 = vpop.f32.mrf.mxu3  ;;  %v1087_v17 = vsel %vm1038_vm1, 0.0, %v1039_v12  ;;  %v916_v20 = vadd.f32 %v915_v14, %v771_v13  ;;  %v773_v24 = vpop.f32.mrf.mxu1  ;;  %v3995_v13 = vld [vmem:[%s5215_s2 + $0x2a0] sm:$0xff] }
  0xbd   : > { %1103 = vst [vmem:[%s4619_s13] sm:$0xff] %v1087_v17  ;;  %v774_v6 = vadd.f32 %v773_v24, %v724_v23  ;;  %v4003_v14 = vld [vmem:[%s5215_s2 + $0x2e0] sm:$0xff]  ;;  %v1194_v17 = vshll.u32 %v4450_v11, 16  ;;  %v1135_v24 = vshrl.u32 %v4427_v49, 16  ;;  %2027 = vmatpush.bf16.msra.mxu0 %v3995_v13  ;;  %v3978_v49 = vld [vmem:[%s5215_s2 + $0x218] sm:$0xff] }
  0xbe   : > { %v965_v29 = vadd.f32 %v964_v16, %v916_v20  ;;  %1437 = vmatmul.bf16.gmra.mxu0 %v4385_v9  ;;  %2076 = vmatpush.bf16.msra.mxu1 %v4003_v14 }
  0xbf   : > { %1486 = vmatmul.bf16.gmra.mxu1 %v4623_v25  ;;  %v1199_v37 = vshll.u32 %v1135_v24, 16  ;;  %2222 = vmatpush.bf16.msra.mxu2 %v3978_v49 }
  0xc0   : > { %v1007_v30 = vadd.f32 %v4606_v54, %v965_v29  ;;  %1631 = vmatmul.bf16.gmra.mxu2 %v4334_v35 }
  0xc1   : > { %1680 = vmatmul.bf16.gmra.mxu3 %v4589_v18 }
  0xc2   : > { %v1040_v32 = vrot.slane %v1007_v30, 7  ;;  %v1196_v30 = vrot.slane %v1194_v17, 1  ;;  %v1204_v17 = vshrl.u32 %v4482_v48, 16 }
  0xc3   : > { %v918_v33 = vpop.f32.mrf.mxu2  ;;  %v726_v45 = vpop.f32.mrf.mxu0 }
  0xc4   : > { %v967_v36 = vpop.f32.mrf.mxu3  ;;  %v1041_v40 = vsel %vm1038_vm1, %v1039_v12, %v1040_v32  ;;  %v1095_v41 = vsel %vm1038_vm1, %v1040_v32, 0.0  ;;  %v919_v44 = vadd.f32 %v918_v33, %v774_v6  ;;  %v775_v47 = vpop.f32.mrf.mxu1  ;;  %v4653_v12 = vsel %vm422_vm0, %v1185_v60, %v1189_v39 }
  0xc5   : > { %1104 = vst [vmem:[%s4619_s13 + $0x10] sm:$0xff] %v1041_v40  ;;  %v776_v62 = vadd.f32 %v775_v47, %v726_v45  ;;  %v3986_v40 = vld [vmem:[%s5215_s2 + $0x258] sm:$0xff]  ;;  %v1201_v45 = vrot.slane %v1199_v37, 1 }
  0xc6   : > { %1105 = vst [vmem:[%s4619_s13 + $0x20] sm:$0x3] %v1095_v41  ;;  %v968_v52 = vadd.f32 %v967_v36, %v919_v44  ;;  %v1197_v44 = vor.u32 %v1196_v30, %v1192_v0  ;;  %2271 = vmatpush.bf16.msra.mxu3 %v3986_v40 }
  0xc8   : > { %v1008_v58 = vadd.f32 %v4606_v54, %v968_v52 }
  0xca   : > { %v1042_v61 = vrot.slane %v1008_v58, 7 }
  0xcb   : > { %v920_v46 = vpop.f32.mrf.mxu2  ;;  %v729_v4 = vpop.f32.mrf.mxu0 }
  0xcc   : > { %v969_v1 = vpop.f32.mrf.mxu3  ;;  %v1088_v2 = vsel %vm1038_vm1, 0.0, %v1042_v61  ;;  %v921_v3 = vadd.f32 %v920_v46, %v776_v62  ;;  %v778_v5 = vpop.f32.mrf.mxu1  ;;  %v3994_v62 = vld [vmem:[%s5215_s2 + $0x298] sm:$0xff] }
  0xcd   : > { %1106 = vst [vmem:[%s4619_s13 + $0x60] sm:$0xff] %v1088_v2  ;;  %v779_v23 = vadd.f32 %v778_v5, %v729_v4  ;;  %v4002_v46 = vld [vmem:[%s5215_s2 + $0x2d8] sm:$0xff]  ;;  %v1206_v2 = vshll.u32 %v4482_v48, 16  ;;  %v1137_v5 = vshrl.u32 %v4460_v19, 16  ;;  %2028 = vmatpush.bf16.msra.mxu0 %v3994_v62  ;;  %v3977_v19 = vld [vmem:[%s5215_s2 + $0x210] sm:$0xff] }
  0xce   : > { %v970_v16 = vadd.f32 %v969_v1, %v921_v3  ;;  %1442 = vmatmul.bf16.gmra.mxu0 %v4418_v42  ;;  %2077 = vmatpush.bf16.msra.mxu1 %v4002_v46 }
  0xcf   : > { %1491 = vmatmul.bf16.gmra.mxu1 %v4653_v12  ;;  %v1211_v0 = vshll.u32 %v1137_v5, 16  ;;  %2223 = vmatpush.bf16.msra.mxu2 %v3977_v19 }
  0xd0   : > { %v1009_v20 = vadd.f32 %v4606_v54, %v970_v16  ;;  %1636 = vmatmul.bf16.gmra.mxu2 %v4385_v9 }
  0xd1   : > { %1685 = vmatmul.bf16.gmra.mxu3 %v4623_v25 }
  0xd2   : > { %v1043_v26 = vrot.slane %v1009_v20, 7  ;;  %v1208_v20 = vrot.slane %v1206_v2, 1  ;;  %v1216_v2 = vshrl.u32 %v4514_v22, 16 }
  0xd3   : > { %v923_v27 = vpop.f32.mrf.mxu2  ;;  %v731_v33 = vpop.f32.mrf.mxu0 }
  0xd4   : > { %v972_v29 = vpop.f32.mrf.mxu3  ;;  %v1044_v6 = vsel %vm1038_vm1, %v1042_v61, %v1043_v26  ;;  %v1096_v31 = vsel %vm1038_vm1, %v1043_v26, 0.0  ;;  %v924_v32 = vadd.f32 %v923_v27, %v779_v23  ;;  %v780_v36 = vpop.f32.mrf.mxu1  ;;  %v4683_v61 = vsel %vm422_vm0, %v1197_v44, %v1201_v45 }
  0xd5   : > { %1107 = vst [vmem:[%s4619_s13 + $0x70] sm:$0xff] %v1044_v6  ;;  %v781_v51 = vadd.f32 %v780_v36, %v731_v33  ;;  %v3985_v6 = vld [vmem:[%s5215_s2 + $0x250] sm:$0xff]  ;;  %v1213_v33 = vrot.slane %v1211_v0, 1 }
  0xd6   : > { %1108 = vst [vmem:[%s4619_s13 + $0x80] sm:$0x3] %v1096_v31  ;;  %v973_v38 = vadd.f32 %v972_v29, %v924_v32  ;;  %v1209_v32 = vor.u32 %v1208_v20, %v1204_v17  ;;  %2272 = vmatpush.bf16.msra.mxu3 %v3985_v6 }
  0xd8   : > { %v1010_v41 = vadd.f32 %v4606_v54, %v973_v38 }
  0xda   : > { %v1045_v47 = vrot.slane %v1010_v41, 7 }
  0xdb   : > { %v925_v52 = vpop.f32.mrf.mxu2  ;;  %v734_v60 = vpop.f32.mrf.mxu0 }
  0xdc   : > { %v974_v15 = vpop.f32.mrf.mxu3  ;;  %v1089_v53 = vsel %vm1038_vm1, 0.0, %v1045_v47  ;;  %v926_v58 = vadd.f32 %v925_v52, %v781_v51  ;;  %v783_v39 = vpop.f32.mrf.mxu1  ;;  %v3993_v51 = vld [vmem:[%s5215_s2 + $0x290] sm:$0xff] }
  0xdd   : > { %1109 = vst [vmem:[%s4619_s13 + $0xc0] sm:$0xff] %v1089_v53  ;;  %v784_v4 = vadd.f32 %v783_v39, %v734_v60  ;;  %v4001_v52 = vld [vmem:[%s5215_s2 + $0x2d0] sm:$0xff]  ;;  %v1218_v53 = vshll.u32 %v4514_v22, 16  ;;  %v1139_v39 = vshrl.u32 %v4491_v55, 16  ;;  %2029 = vmatpush.bf16.msra.mxu0 %v3993_v51  ;;  %v3976_v55 = vld [vmem:[%s5215_s2 + $0x208] sm:$0xff] }
  0xde   : > { %v975_v1 = vadd.f32 %v974_v15, %v926_v58  ;;  %1447 = vmatmul.bf16.gmra.mxu0 %v4450_v11  ;;  %2078 = vmatpush.bf16.msra.mxu1 %v4001_v52 }
  0xdf   : > { %1496 = vmatmul.bf16.gmra.mxu1 %v4683_v61  ;;  %v1223_v17 = vshll.u32 %v1139_v39, 16  ;;  %2224 = vmatpush.bf16.msra.mxu2 %v3976_v55 }
  0xe0   : > { %v1011_v3 = vadd.f32 %v4606_v54, %v975_v1  ;;  %1641 = vmatmul.bf16.gmra.mxu2 %v4418_v42 }
  0xe1   : > { %1690 = vmatmul.bf16.gmra.mxu3 %v4653_v12 }
  0xe2   : > { %v1046_v13 = vrot.slane %v1011_v3, 7  ;;  %v1220_v3 = vrot.slane %v1218_v53, 1  ;;  %v1228_v53 = vshrl.u32 %v4542_v56, 16 }
  0xe3   : > { %v928_v14 = vpop.f32.mrf.mxu2  ;;  %v736_v27 = vpop.f32.mrf.mxu0 }
  0xe4   : > { %v977_v16 = vpop.f32.mrf.mxu3  ;;  %v1047_v23 = vsel %vm1038_vm1, %v1045_v47, %v1046_v13  ;;  %v1097_v24 = vsel %vm1038_vm1, %v1046_v13, 0.0  ;;  %v929_v26 = vadd.f32 %v928_v14, %v784_v4  ;;  %v785_v29 = vpop.f32.mrf.mxu1  ;;  %v4713_v47 = vsel %vm422_vm0, %v1209_v32, %v1213_v33 }
  0xe5   : > { %1110 = vst [vmem:[%s4619_s13 + $0xd0] sm:$0xff] %v1047_v23  ;;  %v786_v37 = vadd.f32 %v785_v29, %v736_v27  ;;  %v3984_v23 = vld [vmem:[%s5215_s2 + $0x248] sm:$0xff]  ;;  %v1225_v27 = vrot.slane %v1223_v17, 1 }
  0xe6   : > { %1111 = vst [vmem:[%s4619_s13 + $0xe0] sm:$0x3] %v1097_v24  ;;  %v978_v30 = vadd.f32 %v977_v16, %v929_v26  ;;  %v1221_v26 = vor.u32 %v1220_v3, %v1216_v2  ;;  %2273 = vmatpush.bf16.msra.mxu3 %v3984_v23 }
  0xe8   : > { %v1012_v31 = vadd.f32 %v4606_v54, %v978_v30 }
  0xea   : > { %v1048_v36 = vrot.slane %v1012_v31, 7 }
  0xeb   : > { %v930_v38 = vpop.f32.mrf.mxu2  ;;  %v739_v44 = vpop.f32.mrf.mxu0 }
  0xec   : > { %v979_v49 = vpop.f32.mrf.mxu3  ;;  %v1090_v40 = vsel %vm1038_vm1, 0.0, %v1048_v36  ;;  %v931_v41 = vadd.f32 %v930_v38, %v786_v37  ;;  %v788_v45 = vpop.f32.mrf.mxu1  ;;  %v3992_v37 = vld [vmem:[%s5215_s2 + $0x288] sm:$0xff] }
  0xed   : > { %1112 = vst [vmem:[%s4619_s13 + $0x120] sm:$0xff] %v1090_v40  ;;  %v789_v60 = vadd.f32 %v788_v45, %v739_v44  ;;  %v4000_v38 = vld [vmem:[%s5215_s2 + $0x2c8] sm:$0xff]  ;;  %v1230_v40 = vshll.u32 %v4542_v56, 16  ;;  %v1141_v45 = vshrl.u32 %v4524_v28, 16  ;;  %2030 = vmatpush.bf16.msra.mxu0 %v3992_v37  ;;  %v3975_v28 = vld [vmem:[%s5215_s2 + $0x200] sm:$0xff] }
  0xee   : > { %v980_v15 = vadd.f32 %v979_v49, %v931_v41  ;;  %1452 = vmatmul.bf16.gmra.mxu0 %v4482_v48  ;;  %2079 = vmatpush.bf16.msra.mxu1 %v4000_v38 }
  0xef   : > { %1501 = vmatmul.bf16.gmra.mxu1 %v4713_v47  ;;  %v1235_v2 = vshll.u32 %v1141_v45, 16  ;;  %2225 = vmatpush.bf16.msra.mxu2 %v3975_v28 }
  0xf0   : > { %v1013_v58 = vadd.f32 %v4606_v54, %v980_v15  ;;  %1646 = vmatmul.bf16.gmra.mxu2 %v4450_v11 }
  0xf1   : > { %1695 = vmatmul.bf16.gmra.mxu3 %v4683_v61 }
  0xf2   : > { %v1049_v62 = vrot.slane %v1013_v58, 7  ;;  %v1232_v58 = vrot.slane %v1230_v40, 1  ;;  %v1283_v40 = vshrl.u32 %v4562_v7, 16 }
  0xf3   : > { %v933_v46 = vpop.f32.mrf.mxu2  ;;  %v741_v14 = vpop.f32.mrf.mxu0 }
  0xf4   : > { %v982_v1 = vpop.f32.mrf.mxu3  ;;  %v1050_v4 = vsel %vm1038_vm1, %v1048_v36, %v1049_v62  ;;  %v1098_v5 = vsel %vm1038_vm1, %v1049_v62, 0.0  ;;  %v934_v13 = vadd.f32 %v933_v46, %v789_v60  ;;  %v790_v16 = vpop.f32.mrf.mxu1  ;;  %v4743_v36 = vsel %vm422_vm0, %v1221_v26, %v1225_v27 }
  0xf5   : > { %1113 = vst [vmem:[%s4619_s13 + $0x130] sm:$0xff] %v1050_v4  ;;  %v791_v0 = vadd.f32 %v790_v16, %v741_v14  ;;  %v3983_v4 = vld [vmem:[%s5215_s2 + $0x240] sm:$0xff]  ;;  %v1237_v14 = vrot.slane %v1235_v2, 1 }
  0xf6   : > { %1114 = vst [vmem:[%s4619_s13 + $0x140] sm:$0x3] %v1098_v5  ;;  %v983_v20 = vadd.f32 %v982_v1, %v934_v13  ;;  %v1233_v13 = vor.u32 %v1232_v58, %v1228_v53  ;;  %2274 = vmatpush.bf16.msra.mxu3 %v3983_v4 }
  0xf8   : > { %v1014_v24 = vadd.f32 %v4606_v54, %v983_v20 }
  0xfa   : > { %v1051_v29 = vrot.slane %v1014_v24, 7 }
  0xfb   : > { %v935_v30 = vpop.f32.mrf.mxu2  ;;  %v744_v32 = vpop.f32.mrf.mxu0 }
  0xfc   : > { %v984_v19 = vpop.f32.mrf.mxu3  ;;  %v1091_v6 = vsel %vm1038_vm1, 0.0, %v1051_v29  ;;  %v936_v31 = vadd.f32 %v935_v30, %v791_v0  ;;  %v793_v33 = vpop.f32.mrf.mxu1  ;;  %v3991_v0 = vld [vmem:[%s5215_s2 + $0x280] sm:$0xff] }
  0xfd   : > { %1115 = vst [vmem:[%s4619_s13 + $0x180] sm:$0xff] %v1091_v6  ;;  %v794_v44 = vadd.f32 %v793_v33, %v744_v32  ;;  %v3999_v30 = vld [vmem:[%s5215_s2 + $0x2c0] sm:$0xff]  ;;  %2031 = vmatpush.bf16.msra.mxu0 %v3991_v0  ;;  %v1285_v6 = vshll.u32 %v4562_v7, 16  ;;  %v1280_v33 = vshrl.u32 %v4550_v59, 16  ;;  %v4014_v59 = vld [vmem:[%s5215_s2 + $0x338] sm:$0xff] }
  0xfe   : > { %v985_v49 = vadd.f32 %v984_v19, %v936_v31  ;;  %1457 = vmatmul.bf16.gmra.mxu0 %v4514_v22  ;;  %2080 = vmatpush.bf16.msra.mxu1 %v3999_v30 }
  0xff   : > { %1506 = vmatmul.bf16.gmra.mxu1 %v4743_v36  ;;  %v1290_v53 = vshll.u32 %v1280_v33, 16  ;;  %2812 = vmatpush.bf16.msrb.mxu2 %v4014_v59  ;;  %v4037_v59 = vld [vmem:[%s5215_s2 + $0x3f0] sm:$0xff] }
 0x100   : > { %v1015_v41 = vadd.f32 %v4606_v54, %v985_v49  ;;  %1651 = vmatmul.bf16.gmra.mxu2 %v4482_v48 }
 0x101   : > { %1700 = vmatmul.bf16.gmra.mxu3 %v4713_v47 }
 0x102   : > { %v1052_v51 = vrot.slane %v1015_v41, 7  ;;  %v1287_v41 = vrot.slane %v1285_v6, 1 }
 0x103   : > { %v938_v52 = vpop.f32.mrf.mxu2  ;;  %v746_v46 = vpop.f32.mrf.mxu0 }
 0x104   : > { %v987_v15 = vpop.f32.mrf.mxu3  ;;  %v1053_v60 = vsel %vm1038_vm1, %v1051_v29, %v1052_v51  ;;  %v1099_v39 = vsel %vm1038_vm1, %v1052_v51, 0.0  ;;  %v939_v62 = vadd.f32 %v938_v52, %v794_v44  ;;  %v795_v1 = vpop.f32.mrf.mxu1  ;;  %v4773_v29 = vsel %vm422_vm0, %v1233_v13, %v1237_v14 }
 0x105   : > { %1116 = vst [vmem:[%s4619_s13 + $0x190] sm:$0xff] %v1053_v60  ;;  %v796_v17 = vadd.f32 %v795_v1, %v746_v46  ;;  %v4022_v60 = vld [vmem:[%s5215_s2 + $0x378] sm:$0xff]  ;;  %v1292_v46 = vrot.slane %v1290_v53, 1 }
 0x106   : > { %1117 = vst [vmem:[%s4619_s13 + $0x1a0] sm:$0x3] %v1099_v39  ;;  %v988_v3 = vadd.f32 %v987_v15, %v939_v62  ;;  %v1288_v62 = vor.u32 %v1287_v41, %v1283_v40  ;;  %2861 = vmatpush.bf16.msrb.mxu3 %v4022_v60 }
 0x108   : > { %v1016_v5 = vadd.f32 %v4606_v54, %v988_v3 }
 0x10a   : > { %v1054_v16 = vrot.slane %v1016_v5, 7 }
 0x10b   : > { %v940_v20 = vpop.f32.mrf.mxu2  ;;  %v749_v26 = vpop.f32.mrf.mxu0 }
 0x10c   : > { %v989_v55 = vpop.f32.mrf.mxu3  ;;  %v1092_v23 = vsel %vm1038_vm1, 0.0, %v1054_v16  ;;  %v941_v24 = vadd.f32 %v940_v20, %v796_v17  ;;  %v798_v27 = vpop.f32.mrf.mxu1  ;;  %v4030_v17 = vld [vmem:[%s5215_s2 + $0x3b8] sm:$0xff] }
 0x10d   : > { %1118 = vst [vmem:[%s4619_s13 + $0x1e0] sm:$0xff] %v1092_v23  ;;  %v799_v32 = vadd.f32 %v798_v27, %v749_v26  ;;  %v4038_v20 = vld [vmem:[%s5215_s2 + $0x3f8] sm:$0xff]  ;;  %2618 = vmatpush.bf16.msrb.mxu0 %v4030_v17  ;;  %v4020_v17 = vld [vmem:[%s5215_s2 + $0x368] sm:$0xff] }
 0x10e   : > { %v990_v19 = vadd.f32 %v989_v55, %v941_v24  ;;  %1462 = vmatmul.bf16.gmra.mxu0 %v4542_v56  ;;  %2667 = vmatpush.bf16.msrb.mxu1 %v4038_v20 }
 0x10f   : > { %1511 = vmatmul.bf16.gmra.mxu1 %v4773_v29 }
 0x110   : > { %v1017_v31 = vadd.f32 %v4606_v54, %v990_v19  ;;  %1656 = vmatmul.bf16.gmra.mxu2 %v4514_v22 }
 0x111   : > { %1705 = vmatmul.bf16.gmra.mxu3 %v4743_v36 }
 0x112   : > { %v1055_v37 = vrot.slane %v1017_v31, 7  ;;  %2668 = vmatpush.bf16.msrb.mxu1 %v4037_v59 }
 0x113   : > { %v943_v38 = vpop.f32.mrf.mxu2  ;;  %v751_v52 = vpop.f32.mrf.mxu0 }
 0x114   : > { %v992_v49 = vpop.f32.mrf.mxu3  ;;  %v1056_v44 = vsel %vm1038_vm1, %v1054_v16, %v1055_v37  ;;  %v1100_v45 = vsel %vm1038_vm1, %v1055_v37, 0.0  ;;  %v944_v51 = vadd.f32 %v943_v38, %v799_v32  ;;  %v800_v15 = vpop.f32.mrf.mxu1  ;;  %v4803_v16 = vsel %vm422_vm0, %v1288_v62, %v1292_v46  ;;  %v4013_v37 = vld [vmem:[%s5215_s2 + $0x330] sm:$0xff] }
 0x115   : > { %1119 = vst [vmem:[%s4619_s13 + $0x1f0] sm:$0xff] %v1056_v44  ;;  %v801_v2 = vadd.f32 %v800_v15, %v751_v52  ;;  %v4021_v38 = vld [vmem:[%s5215_s2 + $0x370] sm:$0xff]  ;;  %2813 = vmatpush.bf16.msrb.mxu2 %v4013_v37 }
 0x116   : > { %1120 = vst [vmem:[%s4619_s13 + $0x200] sm:$0x3] %v1100_v45  ;;  %v993_v58 = vadd.f32 %v992_v49, %v944_v51  ;;  %2862 = vmatpush.bf16.msrb.mxu3 %v4021_v38 }
 0x118   : > { %v1018_v39 = vadd.f32 %v4606_v54, %v993_v58  ;;  %v4029_v58 = vld [vmem:[%s5215_s2 + $0x3b0] sm:$0xff] }
 0x119   : > { %2619 = vmatpush.bf16.msrb.mxu0 %v4029_v58 }
 0x11a   : > { %v1057_v1 = vrot.slane %v1018_v39, 7  ;;  %2863 = vmatpush.bf16.msrb.mxu3 %v4020_v17 }
 0x11b   : > { %v945_v3 = vpop.f32.mrf.mxu2  ;;  %v754_v13 = vpop.f32.mrf.mxu0 }
 0x11c   : > { %v994_v28 = vpop.f32.mrf.mxu3  ;;  %v1093_v4 = vsel %vm1038_vm1, 0.0, %v1057_v1  ;;  %v946_v5 = vadd.f32 %v945_v3, %v801_v2  ;;  %v803_v14 = vpop.f32.mrf.mxu1 }
 0x11d   : > { %1121 = vst [vmem:[%s4619_s13 + $0x240] sm:$0xff] %v1093_v4  ;;  %v804_v24 = vadd.f32 %v803_v14, %v754_v13  ;;  %v4012_v14 = vld [vmem:[%s5215_s2 + $0x328] sm:$0xff] }
 0x11e   : > { %v995_v55 = vadd.f32 %v994_v28, %v946_v5  ;;  %1467 = vmatmul.bf16.gmra.mxu0 %v4562_v7  ;;  %2814 = vmatpush.bf16.msrb.mxu2 %v4012_v14 }
 0x11f   : > { %1516 = vmatmul.bf16.gmra.mxu1 %v4803_v16 }
 0x120   : > { %v1019_v23 = vadd.f32 %v4606_v54, %v995_v55  ;;  %1661 = vmatmul.bf16.gmra.mxu2 %v4542_v56 }
 0x121   : > { %1710 = vmatmul.bf16.gmra.mxu3 %v4773_v29 }
 0x122   : > { %v1058_v26 = vrot.slane %v1019_v23, 7 }
 0x123   : > { %v948_v27 = vpop.f32.mrf.mxu2  ;;  %v756_v31 = vpop.f32.mrf.mxu0 }
 0x124   : > { %v997_v0 = vpop.f32.mrf.mxu3  ;;  %v1059_v30 = vsel %vm1038_vm1, %v1057_v1, %v1058_v26  ;;  %v1101_v19 = vsel %vm1038_vm1, %v1058_v26, 0.0  ;;  %v949_v6 = vadd.f32 %v948_v27, %v804_v24  ;;  %v805_v32 = vpop.f32.mrf.mxu1 }
 0x125   : > { %1122 = vst [vmem:[%s4619_s13 + $0x250] sm:$0xff] %v1059_v30  ;;  %v806_v41 = vadd.f32 %v805_v32, %v756_v31  ;;  %v4036_v31 = vld [vmem:[%s5215_s2 + $0x3e8] sm:$0xff] }
 0x126   : > { %1123 = vst [vmem:[%s4619_s13 + $0x260] sm:$0x3] %v1101_v19  ;;  %v998_v33 = vadd.f32 %v997_v0, %v949_v6  ;;  %v4028_v6 = vld [vmem:[%s5215_s2 + $0x3a8] sm:$0xff]  ;;  %2669 = vmatpush.bf16.msrb.mxu1 %v4036_v31 }
 0x127   : > { %2620 = vmatpush.bf16.msrb.mxu0 %v4028_v6 }
 0x128   : > { %v1020_v49 = vadd.f32 %v4606_v54, %v998_v33 }
 0x12a   : > { %v1060_v40 = vrot.slane %v1020_v49, 7 }
 0x12b   : > { %v950_v44 = vpop.f32.mrf.mxu2  ;;  %v1433_v15 = vpop.f32.mrf.mxu0 }
 0x12c   : > { %v999_v45 = vpop.f32.mrf.mxu3  ;;  %v1094_v51 = vsel %vm1038_vm1, 0.0, %v1060_v40  ;;  %v951_v52 = vadd.f32 %v950_v44, %v806_v41  ;;  %v1482_v53 = vpop.f32.mrf.mxu1 }
 0x12d   : > { %1124 = vst [vmem:[%s4619_s13 + $0x2a0] sm:$0xff] %v1094_v51  ;;  %v1483_v62 = vadd.f32 %v1482_v53, %v1433_v15  ;;  %v4019_v53 = vld [vmem:[%s5215_s2 + $0x360] sm:$0xff] }
 0x12e   : > { %v1000_v60 = vadd.f32 %v999_v45, %v951_v52  ;;  %2032 = vmatmul.bf16.vlgmr.msra.gmra.mxu0 %v4331_v34  ;;  %2864 = vmatpush.bf16.msrb.mxu3 %v4019_v53 }
 0x12f   : > { %2081 = vmatmul.bf16.vlgmr.msra.gmra.mxu1 %v4385_v9 }
 0x130   : > { %v1021_v39 = vadd.f32 %v4606_v54, %v1000_v60  ;;  %2226 = vmatmul.bf16.vlgmr.msra.gmra.mxu2 %v4288_v63  ;;  %v4846_v54 = vld [vmem:[%s5216_s3] ss:$0 sm:$0xff] }
 0x131   : > { %2275 = vmatmul.bf16.vlgmr.msra.gmra.mxu3 %v4334_v35 }
 0x132   : > { %v1061_v46 = vrot.slane %v1021_v39, 7 }
 0x133   : > { %v1627_v1 = vpop.f32.mrf.mxu2  ;;  %v1435_v5 = vpop.f32.mrf.mxu0 }
 0x134   : > { %v1676_v2 = vpop.f32.mrf.mxu3  ;;  %v1062_v3 = vsel %vm1038_vm1, %v1060_v40, %v1061_v46  ;;  %v1102_v28 = vsel %vm1038_vm1, %v1061_v46, 0.0  ;;  %v1628_v4 = vadd.f32 %v1627_v1, %v1483_v62  ;;  %v1484_v13 = vpop.f32.mrf.mxu1 }
 0x135   : > { %1125 = vst [vmem:[%s4619_s13 + $0x2b0] sm:$0xff] %v1062_v3  ;;  %v1485_v23 = vadd.f32 %v1484_v13, %v1435_v5 }
 0x136   : > { %1126 = vst [vmem:[%s4619_s13 + $0x2c0] sm:$0x3] %v1102_v28  ;;  %v1677_v63 = vadd.f32 %v1676_v2, %v1628_v4  ;;  %v4027_v28 = vld [vmem:[%s5215_s2 + $0x3a0] sm:$0xff] }
 0x137   : > { %v4035_v4 = vld [vmem:[%s5215_s2 + $0x3e0] sm:$0xff]  ;;  %2621 = vmatpush.bf16.msrb.mxu0 %v4027_v28 }
 0x138   : > { %v1720_v20 = vadd.f32 %v4846_v54, %v1677_v63  ;;  %2670 = vmatpush.bf16.msrb.mxu1 %v4035_v4 }
 0x13a   : > { %v1752_v55 = vrot.slane %v1720_v20, 7 }
 0x13b   : > { %v1629_v24 = vpop.f32.mrf.mxu2  ;;  %v1438_v30 = vpop.f32.mrf.mxu0 }
 0x13c   : > { %v1678_v26 = vpop.f32.mrf.mxu3  ;;  %v1800_v27 = vsel %vm1038_vm1, 0.0, %v1752_v55  ;;  %v1630_v0 = vadd.f32 %v1629_v24, %v1485_v23  ;;  %v1487_v19 = vpop.f32.mrf.mxu1 }
 0x13d   : > { %1816 = vst [vmem:[%s4619_s13 + $0x8] sm:$0xff] %v1800_v27  ;;  %v1488_v37 = vadd.f32 %v1487_v19, %v1438_v30  ;;  %v4018_v30 = vld [vmem:[%s5215_s2 + $0x358] sm:$0xff] }
 0x13e   : > { %v1679_v32 = vadd.f32 %v1678_v26, %v1630_v0  ;;  %2037 = vmatmul.bf16.gmra.mxu0 %v4387_v10  ;;  %2865 = vmatpush.bf16.msrb.mxu3 %v4018_v30 }
 0x13f   : > { %2086 = vmatmul.bf16.gmra.mxu1 %v4418_v42 }
 0x140   : > { %v1721_v33 = vadd.f32 %v4846_v54, %v1679_v32  ;;  %2231 = vmatmul.bf16.gmra.mxu2 %v4331_v34  ;;  %v4011_v34 = vld [vmem:[%s5215_s2 + $0x320] sm:$0xff] }
 0x141   : > { %2280 = vmatmul.bf16.gmra.mxu3 %v4385_v9  ;;  %2815 = vmatpush.bf16.msrb.mxu2 %v4011_v34 }
 0x142   : > { %v1753_v38 = vrot.slane %v1721_v33, 7 }
 0x143   : > { %v1632_v49 = vpop.f32.mrf.mxu2  ;;  %v1440_v51 = vpop.f32.mrf.mxu0 }
 0x144   : > { %v1681_v40 = vpop.f32.mrf.mxu3  ;;  %v1754_v41 = vsel %vm1038_vm1, %v1752_v55, %v1753_v38  ;;  %v1808_v44 = vsel %vm1038_vm1, %v1753_v38, 0.0  ;;  %v1633_v45 = vadd.f32 %v1632_v49, %v1488_v37  ;;  %v1489_v52 = vpop.f32.mrf.mxu1 }
 0x145   : > { %1817 = vst [vmem:[%s4619_s13 + $0x18] sm:$0xff] %v1754_v41  ;;  %v1490_v60 = vadd.f32 %v1489_v52, %v1440_v51  ;;  %v4026_v41 = vld [vmem:[%s5215_s2 + $0x398] sm:$0xff] }
 0x146   : > { %1818 = vst [vmem:[%s4619_s13 + $0x28] sm:$0x3] %v1808_v44  ;;  %v1682_v15 = vadd.f32 %v1681_v40, %v1633_v45  ;;  %v4034_v44 = vld [vmem:[%s5215_s2 + $0x3d8] sm:$0xff]  ;;  %2622 = vmatpush.bf16.msrb.mxu0 %v4026_v41 }
 0x147   : > { %2671 = vmatpush.bf16.msrb.mxu1 %v4034_v44 }
 0x148   : > { %v1722_v58 = vadd.f32 %v4846_v54, %v1682_v15 }
 0x14a   : > { %v1755_v59 = vrot.slane %v1722_v58, 7 }
 0x14b   : > { %v1634_v39 = vpop.f32.mrf.mxu2  ;;  %v1443_v2 = vpop.f32.mrf.mxu0 }
 0x14c   : > { %v1683_v62 = vpop.f32.mrf.mxu3  ;;  %v1801_v46 = vsel %vm1038_vm1, 0.0, %v1755_v59  ;;  %v1635_v1 = vadd.f32 %v1634_v39, %v1490_v60  ;;  %v1492_v3 = vpop.f32.mrf.mxu1 }
 0x14d   : > { %1819 = vst [vmem:[%s4619_s13 + $0x68] sm:$0xff] %v1801_v46  ;;  %v1493_v63 = vadd.f32 %v1492_v3, %v1443_v2 }
 0x14e   : > { %v1684_v5 = vadd.f32 %v1683_v62, %v1635_v1  ;;  %2042 = vmatmul.bf16.gmra.mxu0 %v4420_v43  ;;  %v4017_v1 = vld [vmem:[%s5215_s2 + $0x350] sm:$0xff] }
 0x14f   : > { %2091 = vmatmul.bf16.gmra.mxu1 %v4450_v11  ;;  %2866 = vmatpush.bf16.msrb.mxu3 %v4017_v1 }
 0x150   : > { %v1723_v13 = vadd.f32 %v4846_v54, %v1684_v5  ;;  %2236 = vmatmul.bf16.gmra.mxu2 %v4387_v10  ;;  %v4010_v10 = vld [vmem:[%s5215_s2 + $0x318] sm:$0xff] }
 0x151   : > { %2285 = vmatmul.bf16.gmra.mxu3 %v4418_v42  ;;  %2816 = vmatpush.bf16.msrb.mxu2 %v4010_v10 }
 0x152   : > { %v1756_v14 = vrot.slane %v1723_v13, 7 }
 0x153   : > { %v1637_v17 = vpop.f32.mrf.mxu2  ;;  %v1445_v26 = vpop.f32.mrf.mxu0 }
 0x154   : > { %v1686_v20 = vpop.f32.mrf.mxu3  ;;  %v1757_v55 = vsel %vm1038_vm1, %v1755_v59, %v1756_v14  ;;  %v1809_v23 = vsel %vm1038_vm1, %v1756_v14, 0.0  ;;  %v1638_v24 = vadd.f32 %v1637_v17, %v1493_v63  ;;  %v1494_v27 = vpop.f32.mrf.mxu1 }
 0x155   : > { %1820 = vst [vmem:[%s4619_s13 + $0x78] sm:$0xff] %v1757_v55  ;;  %v1495_v31 = vadd.f32 %v1494_v27, %v1445_v26  ;;  %v4033_v55 = vld [vmem:[%s5215_s2 + $0x3d0] sm:$0xff] }
 0x156   : > { %1821 = vst [vmem:[%s4619_s13 + $0x88] sm:$0x3] %v1809_v23  ;;  %v1687_v0 = vadd.f32 %v1686_v20, %v1638_v24  ;;  %v4025_v20 = vld [vmem:[%s5215_s2 + $0x390] sm:$0xff]  ;;  %2672 = vmatpush.bf16.msrb.mxu1 %v4033_v55 }
 0x157   : > { %2623 = vmatpush.bf16.msrb.mxu0 %v4025_v20 }
 0x158   : > { %v1724_v19 = vadd.f32 %v4846_v54, %v1687_v0 }
 0x15a   : > { %v1758_v6 = vrot.slane %v1724_v19, 7 }
 0x15b   : > { %v1639_v32 = vpop.f32.mrf.mxu2  ;;  %v1448_v49 = vpop.f32.mrf.mxu0 }
 0x15c   : > { %v1688_v33 = vpop.f32.mrf.mxu3  ;;  %v1802_v37 = vsel %vm1038_vm1, 0.0, %v1758_v6  ;;  %v1640_v38 = vadd.f32 %v1639_v32, %v1495_v31  ;;  %v1497_v40 = vpop.f32.mrf.mxu1 }
 0x15d   : > { %1822 = vst [vmem:[%s4619_s13 + $0xc8] sm:$0xff] %v1802_v37  ;;  %v1498_v52 = vadd.f32 %v1497_v40, %v1448_v49  ;;  %v4016_v37 = vld [vmem:[%s5215_s2 + $0x348] sm:$0xff]  ;;  %v253_v49 = vld [vmem:[%s4228_s7 + $0xd8] sm:$0xff]  ;;  %v254_v40 = vld [vmem:[%s4228_s7 + $0xe0] sm:$0xff] }
 0x15e   : > { %v1689_v45 = vadd.f32 %v1688_v33, %v1640_v38  ;;  %2047 = vmatmul.bf16.gmra.mxu0 %v4447_v8  ;;  %2867 = vmatpush.bf16.msrb.mxu3 %v4016_v37 }
 0x15f   : > { %2096 = vmatmul.bf16.gmra.mxu1 %v4482_v48 }
 0x160   : > { %v1725_v51 = vadd.f32 %v4846_v54, %v1689_v45  ;;  %2241 = vmatmul.bf16.gmra.mxu2 %v4420_v43  ;;  %v4009_v43 = vld [vmem:[%s5215_s2 + $0x310] sm:$0xff] }
 0x161   : > { %2290 = vmatmul.bf16.gmra.mxu3 %v4450_v11  ;;  %2817 = vmatpush.bf16.msrb.mxu2 %v4009_v43 }
 0x162   : > { %v1759_v15 = vrot.slane %v1725_v51, 7 }
 0x163   : > { %v1642_v34 = vpop.f32.mrf.mxu2  ;;  %v1450_v39 = vpop.f32.mrf.mxu0 }
 0x164   : > { %v1691_v53 = vpop.f32.mrf.mxu3  ;;  %v1760_v58 = vsel %vm1038_vm1, %v1758_v6, %v1759_v15  ;;  %v1810_v59 = vsel %vm1038_vm1, %v1759_v15, 0.0  ;;  %v1643_v60 = vadd.f32 %v1642_v34, %v1498_v52  ;;  %v1499_v62 = vpop.f32.mrf.mxu1  ;;  %v4086_v52 = vld [vmem:[%s5214_s1] ss:$0 sm:$0xff] }
 0x165   : > { %1823 = vst [vmem:[%s4619_s13 + $0xd8] sm:$0xff] %v1760_v58  ;;  %v1500_v28 = vadd.f32 %v1499_v62, %v1450_v39  ;;  %v287_v15 = vmul.f32 %v4086_v52, %v253_v49  ;;  %v288_v34 = vmul.f32 %v4086_v52, %v254_v40  ;;  %v4024_v39 = vld [vmem:[%s5215_s2 + $0x388] sm:$0xff] }
 0x166   : > { %1824 = vst [vmem:[%s4619_s13 + $0xe8] sm:$0x3] %v1810_v59  ;;  %v1692_v46 = vadd.f32 %v1691_v53, %v1643_v60  ;;  %v4032_v62 = vld [vmem:[%s5215_s2 + $0x3c8] sm:$0xff]  ;;  %2624 = vmatpush.bf16.msrb.mxu0 %v4024_v39 }
 0x167   : > { %v317_v1 = vmax.f32 %v287_v15, 0.0  ;;  %2673 = vmatpush.bf16.msrb.mxu1 %v4032_v62 }
 0x168   : > { %v1726_v2 = vadd.f32 %v4846_v54, %v1692_v46  ;;  %v255_v46 = vld [vmem:[%s4228_s7 + $0xe8] sm:$0x3] }
 0x16a   : > { %v1761_v3 = vrot.slane %v1726_v2, 7  ;;  %v318_v2 = vmax.f32 %v288_v34, 0.0 }
 0x16b   : > { %v1644_v4 = vpop.f32.mrf.mxu2  ;;  %v1453_v14 = vpop.f32.mrf.mxu0 }
 0x16c   : > { %v1693_v5 = vpop.f32.mrf.mxu3  ;;  %v1803_v13 = vsel %vm1038_vm1, 0.0, %v1761_v3  ;;  %v1645_v63 = vadd.f32 %v1644_v4, %v1500_v28  ;;  %v1502_v17 = vpop.f32.mrf.mxu1  ;;  %v289_v4 = vmul.f32 %v4086_v52, %v255_v46  ;;  %v4031_v52 = vld [vmem:[%s5215_s2 + $0x3c0] sm:$0xff] }
 0x16d   : > { %1825 = vst [vmem:[%s4619_s13 + $0x128] sm:$0xff] %v1803_v13  ;;  %v1503_v26 = vadd.f32 %v1502_v17, %v1453_v14  ;;  %v347_v14 = vpack.c.bf16 %v317_v1, %v317_v1  ;;  %v348_v17 = vpack.c.bf16 %v318_v2, %v318_v2  ;;  %2674 = vmatpush.bf16.msrb.mxu1 %v4031_v52 }
 0x16e   : > { %v1694_v23 = vadd.f32 %v1693_v5, %v1645_v63  ;;  %2052 = vmatmul.bf16.gmra.mxu0 %v4484_v50 }
 0x16f   : > { %2101 = vmatmul.bf16.gmra.mxu1 %v4514_v22 }
 0x170   : > { %v1727_v24 = vadd.f32 %v4846_v54, %v1694_v23  ;;  %2246 = vmatmul.bf16.gmra.mxu2 %v4447_v8  ;;  %v4008_v8 = vld [vmem:[%s5215_s2 + $0x308] sm:$0xff] }
 0x171   : > { %2295 = vmatmul.bf16.gmra.mxu3 %v4482_v48  ;;  %2818 = vmatpush.bf16.msrb.mxu2 %v4008_v8 }
 0x172   : > { %v1762_v27 = vrot.slane %v1727_v24, 7 }
 0x173   : > { %v1647_v0 = vpop.f32.mrf.mxu2  ;;  %v1455_v31 = vpop.f32.mrf.mxu0 }
 0x174   : > { %v1696_v10 = vpop.f32.mrf.mxu3  ;;  %v1763_v30 = vsel %vm1038_vm1, %v1761_v3, %v1762_v27  ;;  %v1811_v19 = vsel %vm1038_vm1, %v1762_v27, 0.0  ;;  %v1648_v6 = vadd.f32 %v1647_v0, %v1503_v26  ;;  %v1504_v32 = vpop.f32.mrf.mxu1  ;;  %v4007_v0 = vld [vmem:[%s5215_s2 + $0x300] sm:$0xff] }
 0x175   : > { %1826 = vst [vmem:[%s4619_s13 + $0x138] sm:$0xff] %v1763_v30  ;;  %v1505_v44 = vadd.f32 %v1504_v32, %v1455_v31  ;;  %v1875_v30 = vunpack.c.l.b16 %v347_v14  ;;  %2819 = vmatpush.bf16.msrb.mxu2 %v4007_v0 }
 0x176   : > { %1827 = vst [vmem:[%s4619_s13 + $0x148] sm:$0x3] %v1811_v19  ;;  %v1697_v33 = vadd.f32 %v1696_v10, %v1648_v6  ;;  %v4015_v10 = vld [vmem:[%s5215_s2 + $0x340] sm:$0xff]  ;;  %v1876_v19 = vunpack.c.l.b16 %v348_v17 }
 0x177   : > { %2868 = vmatpush.bf16.msrb.mxu3 %v4015_v10 }
 0x178   : > { %v1728_v38 = vadd.f32 %v4846_v54, %v1697_v33 }
 0x17a   : > { %v1764_v41 = vrot.slane %v1728_v38, 7  ;;  %v1877_v38 = vpack.c.b16 %v1876_v19, %v1875_v30 }
 0x17b   : > { %v1649_v45 = vpop.f32.mrf.mxu2  ;;  %v1458_v59 = vpop.f32.mrf.mxu0 }
 0x17c   : > { %v1698_v51 = vpop.f32.mrf.mxu3  ;;  %v1804_v53 = vsel %vm1038_vm1, 0.0, %v1764_v41  ;;  %v1650_v58 = vadd.f32 %v1649_v45, %v1505_v44  ;;  %v1507_v60 = vpop.f32.mrf.mxu1  ;;  %v1885_v34 = vshll.u32 %v1877_v38, 16  ;;  %v1883_v46 = vshrl.u32 %v1877_v38, 16 }
 0x17d   : > { %1828 = vst [vmem:[%s4619_s13 + $0x188] sm:$0xff] %v1804_v53  ;;  %v1508_v28 = vadd.f32 %v1507_v60, %v1458_v59 }
 0x17e   : > { %v1699_v43 = vadd.f32 %v1698_v51, %v1650_v58  ;;  %2057 = vmatmul.bf16.gmra.mxu0 %v4511_v21  ;;  %v4023_v51 = vld [vmem:[%s5215_s2 + $0x380] sm:$0xff] }
 0x17f   : > { %2106 = vmatmul.bf16.gmra.mxu1 %v4542_v56  ;;  %2625 = vmatpush.bf16.msrb.mxu0 %v4023_v51 }
 0x180   : > { %v1729_v3 = vadd.f32 %v4846_v54, %v1699_v43  ;;  %2251 = vmatmul.bf16.gmra.mxu2 %v4484_v50  ;;  %v319_v50 = vmax.f32 %v289_v4, 0.0  ;;  %v1887_v43 = vrot.slane %v1885_v34, 1 }
 0x181   : > { %2300 = vmatmul.bf16.gmra.mxu3 %v4514_v22 }
 0x182   : > { %v1765_v5 = vrot.slane %v1729_v3, 7  ;;  %v349_v31 = vpack.c.bf16 %v319_v50, %v319_v50 }
 0x183   : > { %v1652_v13 = vpop.f32.mrf.mxu2  ;;  %v1460_v24 = vpop.f32.mrf.mxu0 }
 0x184   : > { %v1701_v63 = vpop.f32.mrf.mxu3  ;;  %v1766_v20 = vsel %vm1038_vm1, %v1764_v41, %v1765_v5  ;;  %v1812_v55 = vsel %vm1038_vm1, %v1765_v5, 0.0  ;;  %v1653_v23 = vadd.f32 %v1652_v13, %v1508_v28  ;;  %v1509_v26 = vpop.f32.mrf.mxu1  ;;  %v1880_v45 = vunpack.c.l.b16 %v349_v31 }
 0x185   : > { %1829 = vst [vmem:[%s4619_s13 + $0x198] sm:$0xff] %v1766_v20  ;;  %v1510_v33 = vadd.f32 %v1509_v26, %v1460_v24 }
 0x186   : > { %1830 = vst [vmem:[%s4619_s13 + $0x1a8] sm:$0x3] %v1812_v55  ;;  %v1702_v27 = vadd.f32 %v1701_v63, %v1653_v23  ;;  %v4996_v59 = vpack.c.b16 %v1880_v45, %v1880_v45  ;;  %v1888_v63 = vor.u32 %v1887_v43, %v1883_v46 }
 0x188   : > { %v1730_v6 = vadd.f32 %v4846_v54, %v1702_v27  ;;  %v1890_v5 = vshll.u32 %v4996_v59, 16 }
 0x18a   : > { %v1767_v32 = vrot.slane %v1730_v6, 7  ;;  %v1892_v14 = vrot.slane %v1890_v5, 1 }
 0x18b   : > { %v1654_v8 = vpop.f32.mrf.mxu2  ;;  %v1463_v41 = vpop.f32.mrf.mxu0 }
 0x18c   : > { %v1703_v37 = vpop.f32.mrf.mxu3  ;;  %v1805_v49 = vsel %vm1038_vm1, 0.0, %v1767_v32  ;;  %v1655_v40 = vadd.f32 %v1654_v8, %v1510_v33  ;;  %v1512_v44 = vpop.f32.mrf.mxu1  ;;  %v5006_v0 = vsel %vm422_vm0, %v1888_v63, %v1892_v14 }
 0x18d   : > { %1831 = vst [vmem:[%s4619_s13 + $0x1e8] sm:$0xff] %v1805_v49  ;;  %v1513_v58 = vadd.f32 %v1512_v44, %v1463_v41 }
 0x18e   : > { %v1704_v15 = vadd.f32 %v1703_v37, %v1655_v40  ;;  %2062 = vmatmul.bf16.gmra.mxu0 %v4544_v57 }
 0x18f   : > { %2111 = vmatmul.bf16.gmra.mxu1 %v4562_v7 }
 0x190   : > { %v1731_v53 = vadd.f32 %v4846_v54, %v1704_v15  ;;  %2256 = vmatmul.bf16.gmra.mxu2 %v4511_v21 }
 0x191   : > { %2305 = vmatmul.bf16.gmra.mxu3 %v4542_v56 }
 0x192   : > { %v1768_v60 = vrot.slane %v1731_v53, 7 }
 0x193   : > { %v1657_v39 = vpop.f32.mrf.mxu2  ;;  %v1465_v28 = vpop.f32.mrf.mxu0 }
 0x194   : > { %v1706_v62 = vpop.f32.mrf.mxu3  ;;  %v1769_v1 = vsel %vm1038_vm1, %v1767_v32, %v1768_v60  ;;  %v1813_v2 = vsel %vm1038_vm1, %v1768_v60, 0.0  ;;  %v1658_v3 = vadd.f32 %v1657_v39, %v1513_v58  ;;  %v1514_v4 = vpop.f32.mrf.mxu1 }
 0x195   : > { %1832 = vst [vmem:[%s4619_s13 + $0x1f8] sm:$0xff] %v1769_v1  ;;  %v1515_v20 = vadd.f32 %v1514_v4, %v1465_v28  ;;  %v5030_v28 = vld [vmem:[%s5216_s3] ss:$0 sm:$0xff] }
 0x196   : > { %1833 = vst [vmem:[%s4619_s13 + $0x208] sm:$0x3] %v1813_v2  ;;  %v1707_v21 = vadd.f32 %v1706_v62, %v1658_v3 }
 0x198   : > { %v1732_v13 = vadd.f32 %v4846_v54, %v1707_v21 }
 0x19a   : > { %v1770_v17 = vrot.slane %v1732_v13, 7 }
 0x19b   : > { %v1659_v55 = vpop.f32.mrf.mxu2  ;;  %v1468_v50 = vpop.f32.mrf.mxu0 }
 0x19c   : > { %v1708_v23 = vpop.f32.mrf.mxu3  ;;  %v1806_v24 = vsel %vm1038_vm1, 0.0, %v1770_v17  ;;  %v1660_v26 = vadd.f32 %v1659_v55, %v1515_v20  ;;  %v1517_v27 = vpop.f32.mrf.mxu1 }
 0x19d   : > { %1834 = vst [vmem:[%s4619_s13 + $0x248] sm:$0xff] %v1806_v24  ;;  %v1518_v19 = vadd.f32 %v1517_v27, %v1468_v50 }
 0x19e   : > { %v1709_v10 = vadd.f32 %v1708_v23, %v1660_v26  ;;  %2067 = vmatmul.bf16.gmra.mxu0 %v1877_v38 }
 0x19f   : > { %2116 = vmatmul.bf16.gmra.mxu1 %v5006_v0 }
 0x1a0   : > { %v1733_v30 = vadd.f32 %v4846_v54, %v1709_v10  ;;  %2261 = vmatmul.bf16.gmra.mxu2 %v4544_v57 }
 0x1a1   : > { %2310 = vmatmul.bf16.gmra.mxu3 %v4562_v7 }
 0x1a2   : > { %v1771_v6 = vrot.slane %v1733_v30, 7 }
 0x1a3   : > { %v1662_v31 = vpop.f32.mrf.mxu2  ;;  %v1470_v49 = vpop.f32.mrf.mxu0 }
 0x1a4   : > { %v1711_v32 = vpop.f32.mrf.mxu3  ;;  %v1772_v33 = vsel %vm1038_vm1, %v1770_v17, %v1771_v6  ;;  %v1814_v8 = vsel %vm1038_vm1, %v1771_v6, 0.0  ;;  %v1663_v37 = vadd.f32 %v1662_v31, %v1518_v19  ;;  %v1519_v38 = vpop.f32.mrf.mxu1 }
 0x1a5   : > { %1835 = vst [vmem:[%s4619_s13 + $0x258] sm:$0xff] %v1772_v33  ;;  %v1520_v57 = vadd.f32 %v1519_v38, %v1470_v49 }
 0x1a6   : > { %1836 = vst [vmem:[%s4619_s13 + $0x268] sm:$0x3] %v1814_v8  ;;  %v1712_v40 = vadd.f32 %v1711_v32, %v1663_v37 }
 0x1a8   : > { %v1734_v41 = vadd.f32 %v4846_v54, %v1712_v40 }
 0x1aa   : > { %v1773_v44 = vrot.slane %v1734_v41, 7 }
 0x1ab   : > { %v1664_v45 = vpop.f32.mrf.mxu2  ;;  %v2033_v34 = vpop.f32.mrf.mxu0 }
 0x1ac   : > { %v1713_v51 = vpop.f32.mrf.mxu3  ;;  %v1807_v52 = vsel %vm1038_vm1, 0.0, %v1773_v44  ;;  %v1665_v15 = vadd.f32 %v1664_v45, %v1520_v57  ;;  %v2082_v53 = vpop.f32.mrf.mxu1 }
 0x1ad   : > { %1837 = vst [vmem:[%s4619_s13 + $0x2a8] sm:$0xff] %v1807_v52  ;;  %v2083_v39 = vadd.f32 %v2082_v53, %v2033_v34 }
 0x1ae   : > { %v1714_v58 = vadd.f32 %v1713_v51, %v1665_v15  ;;  %2626 = vmatmul.bf16.vlgmr.msrb.gmra.mxu0 %v4385_v9 }
 0x1af   : > { %2675 = vmatmul.bf16.vlgmr.msrb.gmra.mxu1 %v4623_v25 }
 0x1b0   : > { %v1735_v60 = vadd.f32 %v4846_v54, %v1714_v58  ;;  %2820 = vmatmul.bf16.vlgmr.msrb.gmra.mxu2 %v4334_v35 }
 0x1b1   : > { %2869 = vmatmul.bf16.vlgmr.msrb.gmra.mxu3 %v4589_v18 }
 0x1b2   : > { %v1774_v62 = vrot.slane %v1735_v60, 7 }
 0x1b3   : > { %v2227_v46 = vpop.f32.mrf.mxu2  ;;  %v2035_v54 = vpop.f32.mrf.mxu0 }
 0x1b4   : > { %v2276_v43 = vpop.f32.mrf.mxu3  ;;  %v1775_v1 = vsel %vm1038_vm1, %v1773_v44, %v1774_v62  ;;  %v1815_v2 = vsel %vm1038_vm1, %v1774_v62, 0.0  ;;  %v2228_v3 = vadd.f32 %v2227_v46, %v2083_v39  ;;  %v2084_v4 = vpop.f32.mrf.mxu1 }
 0x1b5   : > { %1838 = vst [vmem:[%s4619_s13 + $0x2b8] sm:$0xff] %v1775_v1  ;;  %v2085_v21 = vadd.f32 %v2084_v4, %v2035_v54 }
 0x1b6   : > { %1839 = vst [vmem:[%s4619_s13 + $0x2c8] sm:$0x3] %v1815_v2  ;;  %v2277_v35 = vadd.f32 %v2276_v43, %v2228_v3 }
 0x1b8   : > { %v2320_v18 = vadd.f32 %v5030_v28, %v2277_v35 }
 0x1ba   : > { %v2352_v5 = vrot.slane %v2320_v18, 7 }
 0x1bb   : > { %v2229_v13 = vpop.f32.mrf.mxu2  ;;  %v2038_v20 = vpop.f32.mrf.mxu0 }
 0x1bc   : > { %v2278_v63 = vpop.f32.mrf.mxu3  ;;  %v2400_v14 = vsel %vm1038_vm1, 0.0, %v2352_v5  ;;  %v2230_v17 = vadd.f32 %v2229_v13, %v2085_v21  ;;  %v2087_v55 = vpop.f32.mrf.mxu1 }
 0x1bd   : > { %3669 = vst [vmem:[%s4619_s13 + $0x30] sm:$0xff] %v2400_v14  ;;  %v2088_v26 = vadd.f32 %v2087_v55, %v2038_v20 }
 0x1be   : > { %v2279_v23 = vadd.f32 %v2278_v63, %v2230_v17  ;;  %2631 = vmatmul.bf16.gmra.mxu0 %v4418_v42 }
 0x1bf   : > { %2680 = vmatmul.bf16.gmra.mxu1 %v4653_v12 }
 0x1c0   : > { %v2321_v24 = vadd.f32 %v5030_v28, %v2279_v23  ;;  %2825 = vmatmul.bf16.gmra.mxu2 %v4385_v9 }
 0x1c1   : > { %2874 = vmatmul.bf16.gmra.mxu3 %v4623_v25 }
 0x1c2   : > { %v2353_v50 = vrot.slane %v2321_v24, 7 }
 0x1c3   : > { %v2232_v27 = vpop.f32.mrf.mxu2  ;;  %v2040_v31 = vpop.f32.mrf.mxu0 }
 0x1c4   : > { %v2281_v10 = vpop.f32.mrf.mxu3  ;;  %v2354_v30 = vsel %vm1038_vm1, %v2352_v5, %v2353_v50  ;;  %v2408_v19 = vsel %vm1038_vm1, %v2353_v50, 0.0  ;;  %v2233_v6 = vadd.f32 %v2232_v27, %v2088_v26  ;;  %v2089_v32 = vpop.f32.mrf.mxu1 }
 0x1c5   : > { %3670 = vst [vmem:[%s4619_s13 + $0x40] sm:$0xff] %v2354_v30  ;;  %v2090_v9 = vadd.f32 %v2089_v32, %v2040_v31 }
 0x1c6   : > { %3671 = vst [vmem:[%s4619_s13 + $0x50] sm:$0x3] %v2408_v19  ;;  %v2282_v33 = vadd.f32 %v2281_v10, %v2233_v6 }
 0x1c8   : > { %v2322_v8 = vadd.f32 %v5030_v28, %v2282_v33 }
 0x1ca   : > { %v2355_v37 = vrot.slane %v2322_v8, 7 }
 0x1cb   : > { %v2234_v49 = vpop.f32.mrf.mxu2  ;;  %v2043_v41 = vpop.f32.mrf.mxu0 }
 0x1cc   : > { %v2283_v25 = vpop.f32.mrf.mxu3  ;;  %v2401_v38 = vsel %vm1038_vm1, 0.0, %v2355_v37  ;;  %v2235_v40 = vadd.f32 %v2234_v49, %v2090_v9  ;;  %v2092_v44 = vpop.f32.mrf.mxu1 }
 0x1cd   : > { %3672 = vst [vmem:[%s4619_s13 + $0x90] sm:$0xff] %v2401_v38  ;;  %v2093_v51 = vadd.f32 %v2092_v44, %v2043_v41 }
 0x1ce   : > { %v2284_v57 = vadd.f32 %v2283_v25, %v2235_v40  ;;  %2636 = vmatmul.bf16.gmra.mxu0 %v4450_v11 }
 0x1cf   : > { %2685 = vmatmul.bf16.gmra.mxu1 %v4683_v61 }
 0x1d0   : > { %v2323_v45 = vadd.f32 %v5030_v28, %v2284_v57  ;;  %2830 = vmatmul.bf16.gmra.mxu2 %v4418_v42 }
 0x1d1   : > { %2879 = vmatmul.bf16.gmra.mxu3 %v4653_v12 }
 0x1d2   : > { %v2356_v52 = vrot.slane %v2323_v45, 7 }
 0x1d3   : > { %v2237_v15 = vpop.f32.mrf.mxu2  ;;  %v2045_v39 = vpop.f32.mrf.mxu0 }
 0x1d4   : > { %v2286_v34 = vpop.f32.mrf.mxu3  ;;  %v2357_v53 = vsel %vm1038_vm1, %v2355_v37, %v2356_v52  ;;  %v2409_v58 = vsel %vm1038_vm1, %v2356_v52, 0.0  ;;  %v2238_v60 = vadd.f32 %v2237_v15, %v2093_v51  ;;  %v2094_v62 = vpop.f32.mrf.mxu1 }
 0x1d5   : > { %3673 = vst [vmem:[%s4619_s13 + $0xa0] sm:$0xff] %v2357_v53  ;;  %v2095_v42 = vadd.f32 %v2094_v62, %v2045_v39 }
 0x1d6   : > { %3674 = vst [vmem:[%s4619_s13 + $0xb0] sm:$0x3] %v2409_v58  ;;  %v2287_v46 = vadd.f32 %v2286_v34, %v2238_v60 }
 0x1d8   : > { %v2324_v43 = vadd.f32 %v5030_v28, %v2287_v46 }
 0x1da   : > { %v2358_v1 = vrot.slane %v2324_v43, 7 }
 0x1db   : > { %v2239_v2 = vpop.f32.mrf.mxu2  ;;  %v2048_v4 = vpop.f32.mrf.mxu0 }
 0x1dc   : > { %v2288_v12 = vpop.f32.mrf.mxu3  ;;  %v2402_v3 = vsel %vm1038_vm1, 0.0, %v2358_v1  ;;  %v2240_v54 = vadd.f32 %v2239_v2, %v2095_v42  ;;  %v2097_v35 = vpop.f32.mrf.mxu1 }
 0x1dd   : > { %3675 = vst [vmem:[%s4619_s13 + $0xf0] sm:$0xff] %v2402_v3  ;;  %v2098_v21 = vadd.f32 %v2097_v35, %v2048_v4 }
 0x1de   : > { %v2289_v18 = vadd.f32 %v2288_v12, %v2240_v54  ;;  %2641 = vmatmul.bf16.gmra.mxu0 %v4482_v48 }
 0x1df   : > { %2690 = vmatmul.bf16.gmra.mxu1 %v4713_v47 }
 0x1e0   : > { %v2325_v5 = vadd.f32 %v5030_v28, %v2289_v18  ;;  %2835 = vmatmul.bf16.gmra.mxu2 %v4450_v11 }
 0x1e1   : > { %2884 = vmatmul.bf16.gmra.mxu3 %v4683_v61 }
 0x1e2   : > { %v2359_v13 = vrot.slane %v2325_v5, 7 }
 0x1e3   : > { %v2242_v63 = vpop.f32.mrf.mxu2  ;;  %v2050_v23 = vpop.f32.mrf.mxu0 }
 0x1e4   : > { %v2291_v14 = vpop.f32.mrf.mxu3  ;;  %v2360_v17 = vsel %vm1038_vm1, %v2358_v1, %v2359_v13  ;;  %v2410_v20 = vsel %vm1038_vm1, %v2359_v13, 0.0  ;;  %v2243_v55 = vadd.f32 %v2242_v63, %v2098_v21  ;;  %v2099_v24 = vpop.f32.mrf.mxu1 }
 0x1e5   : > { %3676 = vst [vmem:[%s4619_s13 + $0x100] sm:$0xff] %v2360_v17  ;;  %v2100_v11 = vadd.f32 %v2099_v24, %v2050_v23  ;;  %v2474_v24 = vshrl.u32 %v4996_v59, 16 }
 0x1e6   : > { %3677 = vst [vmem:[%s4619_s13 + $0x110] sm:$0x3] %v2410_v20  ;;  %v2292_v26 = vadd.f32 %v2291_v14, %v2243_v55  ;;  %v2479_v20 = vshll.u32 %v5006_v0, 16 }
 0x1e8   : > { %v2326_v50 = vadd.f32 %v5030_v28, %v2292_v26 }
 0x1ea   : > { %v2361_v27 = vrot.slane %v2326_v50, 7  ;;  %v2477_v50 = vshrl.u32 %v5006_v0, 16 }
 0x1eb   : > { %v2244_v10 = vpop.f32.mrf.mxu2  ;;  %v2053_v6 = vpop.f32.mrf.mxu0 }
 0x1ec   : > { %v2293_v61 = vpop.f32.mrf.mxu3  ;;  %v2403_v30 = vsel %vm1038_vm1, 0.0, %v2361_v27  ;;  %v2245_v19 = vadd.f32 %v2244_v10, %v2100_v11  ;;  %v2102_v31 = vpop.f32.mrf.mxu1 }
 0x1ed   : > { %3678 = vst [vmem:[%s4619_s13 + $0x150] sm:$0xff] %v2403_v30  ;;  %v2103_v8 = vadd.f32 %v2102_v31, %v2053_v6 }
 0x1ee   : > { %v2294_v32 = vadd.f32 %v2293_v61, %v2245_v19  ;;  %2646 = vmatmul.bf16.gmra.mxu0 %v4514_v22 }
 0x1ef   : > { %2695 = vmatmul.bf16.gmra.mxu1 %v4743_v36 }
 0x1f0   : > { %v2327_v33 = vadd.f32 %v5030_v28, %v2294_v32  ;;  %2840 = vmatmul.bf16.gmra.mxu2 %v4482_v48  ;;  %v2484_v32 = vshll.u32 %v2474_v24, 16 }
 0x1f1   : > { %2889 = vmatmul.bf16.gmra.mxu3 %v4713_v47 }
 0x1f2   : > { %v2362_v37 = vrot.slane %v2327_v33, 7  ;;  %v2486_v33 = vrot.slane %v2484_v32, 1 }
 0x1f3   : > { %v2247_v9 = vpop.f32.mrf.mxu2  ;;  %v2055_v41 = vpop.f32.mrf.mxu0 }
 0x1f4   : > { %v2296_v49 = vpop.f32.mrf.mxu3  ;;  %v2363_v25 = vsel %vm1038_vm1, %v2361_v27, %v2362_v37  ;;  %v2411_v38 = vsel %vm1038_vm1, %v2362_v37, 0.0  ;;  %v2248_v40 = vadd.f32 %v2247_v9, %v2103_v8  ;;  %v2104_v44 = vpop.f32.mrf.mxu1  ;;  %v2481_v27 = vrot.slane %v2479_v20, 1 }
 0x1f5   : > { %3679 = vst [vmem:[%s4619_s13 + $0x160] sm:$0xff] %v2363_v25  ;;  %v2105_v48 = vadd.f32 %v2104_v44, %v2055_v41 }
 0x1f6   : > { %3680 = vst [vmem:[%s4619_s13 + $0x170] sm:$0x3] %v2411_v38  ;;  %v2297_v57 = vadd.f32 %v2296_v49, %v2248_v40  ;;  %v2482_v59 = vor.u32 %v2481_v27, %v2477_v50 }
 0x1f8   : > { %v2328_v45 = vadd.f32 %v5030_v28, %v2297_v57  ;;  %v2487_v44 = vsel %vm422_vm0, %v2482_v59, %v2486_v33 }
 0x1fa   : > { %v2364_v51 = vrot.slane %v2328_v45, 7 }
 0x1fb   : > { %v2249_v52 = vpop.f32.mrf.mxu2  ;;  %v2058_v53 = vpop.f32.mrf.mxu0 }
 0x1fc   : > { %v2298_v47 = vpop.f32.mrf.mxu3  ;;  %v2404_v15 = vsel %vm1038_vm1, 0.0, %v2364_v51  ;;  %v2250_v34 = vadd.f32 %v2249_v52, %v2105_v48  ;;  %v2107_v58 = vpop.f32.mrf.mxu1 }
 0x1fd   : > { %3681 = vst [vmem:[%s4619_s13 + $0x1b0] sm:$0xff] %v2404_v15  ;;  %v2108_v62 = vadd.f32 %v2107_v58, %v2058_v53 }
 0x1fe   : > { %v2299_v60 = vadd.f32 %v2298_v47, %v2250_v34  ;;  %2651 = vmatmul.bf16.gmra.mxu0 %v4542_v56 }
 0x1ff   : > { %2700 = vmatmul.bf16.gmra.mxu1 %v4773_v29 }
 0x200   : > { %v2329_v39 = vadd.f32 %v5030_v28, %v2299_v60  ;;  %2845 = vmatmul.bf16.gmra.mxu2 %v4514_v22 }
 0x201   : > { %2894 = vmatmul.bf16.gmra.mxu3 %v4743_v36 }
 0x202   : > { %v2365_v46 = vrot.slane %v2329_v39, 7 }
 0x203   : > { %v2252_v43 = vpop.f32.mrf.mxu2  ;;  %v2060_v3 = vpop.f32.mrf.mxu0 }
 0x204   : > { %v2301_v1 = vpop.f32.mrf.mxu3  ;;  %v2366_v42 = vsel %vm1038_vm1, %v2364_v51, %v2365_v46  ;;  %v2412_v2 = vsel %vm1038_vm1, %v2365_v46, 0.0  ;;  %v2253_v12 = vadd.f32 %v2252_v43, %v2108_v62  ;;  %v2109_v54 = vpop.f32.mrf.mxu1 }
 0x205   : > { %3682 = vst [vmem:[%s4619_s13 + $0x1c0] sm:$0xff] %v2366_v42  ;;  %v2110_v22 = vadd.f32 %v2109_v54, %v2060_v3 }
 0x206   : > { %3683 = vst [vmem:[%s4619_s13 + $0x1d0] sm:$0x3] %v2412_v2  ;;  %v2302_v4 = vadd.f32 %v2301_v1, %v2253_v12 }
 0x208   : > { %v2330_v35 = vadd.f32 %v5030_v28, %v2302_v4 }
 0x20a   : > { %v2367_v18 = vrot.slane %v2330_v35, 7 }
 0x20b   : > { %v2254_v5 = vpop.f32.mrf.mxu2  ;;  %v2063_v63 = vpop.f32.mrf.mxu0 }
 0x20c   : > { %v2303_v36 = vpop.f32.mrf.mxu3  ;;  %v2405_v21 = vsel %vm1038_vm1, 0.0, %v2367_v18  ;;  %v2255_v13 = vadd.f32 %v2254_v5, %v2110_v22  ;;  %v2112_v14 = vpop.f32.mrf.mxu1 }
 0x20d   : > { %3684 = vst [vmem:[%s4619_s13 + $0x210] sm:$0xff] %v2405_v21  ;;  %v2113_v23 = vadd.f32 %v2112_v14, %v2063_v63  ;;  %v5130_v21 = vld [vmem:[%s5216_s3] ss:$0 sm:$0xff] }
 0x20e   : > { %v2304_v17 = vadd.f32 %v2303_v36, %v2255_v13  ;;  %2656 = vmatmul.bf16.gmra.mxu0 %v4562_v7 }
 0x20f   : > { %2705 = vmatmul.bf16.gmra.mxu1 %v4803_v16 }
 0x210   : > { %v2331_v55 = vadd.f32 %v5030_v28, %v2304_v17  ;;  %2850 = vmatmul.bf16.gmra.mxu2 %v4542_v56 }
 0x211   : > { %2899 = vmatmul.bf16.gmra.mxu3 %v4773_v29 }
 0x212   : > { %v2368_v26 = vrot.slane %v2331_v55, 7 }
 0x213   : > { %v2257_v11 = vpop.f32.mrf.mxu2  ;;  %v2065_v6 = vpop.f32.mrf.mxu0 }
 0x214   : > { %v2306_v10 = vpop.f32.mrf.mxu3  ;;  %v2369_v61 = vsel %vm1038_vm1, %v2367_v18, %v2368_v26  ;;  %v2413_v30 = vsel %vm1038_vm1, %v2368_v26, 0.0  ;;  %v2258_v19 = vadd.f32 %v2257_v11, %v2113_v23  ;;  %v2114_v31 = vpop.f32.mrf.mxu1 }
 0x215   : > { %3685 = vst [vmem:[%s4619_s13 + $0x220] sm:$0xff] %v2369_v61  ;;  %v2115_v37 = vadd.f32 %v2114_v31, %v2065_v6 }
 0x216   : > { %3686 = vst [vmem:[%s4619_s13 + $0x230] sm:$0x3] %v2413_v30  ;;  %v2307_v56 = vadd.f32 %v2306_v10, %v2258_v19 }
 0x218   : > { %v2332_v29 = vadd.f32 %v5030_v28, %v2307_v56 }
 0x21a   : > { %v2370_v8 = vrot.slane %v2332_v29, 7 }
 0x21b   : > { %v2259_v9 = vpop.f32.mrf.mxu2  ;;  %v2068_v40 = vpop.f32.mrf.mxu0 }
 0x21c   : > { %v2308_v49 = vpop.f32.mrf.mxu3  ;;  %v2406_v25 = vsel %vm1038_vm1, 0.0, %v2370_v8  ;;  %v2260_v38 = vadd.f32 %v2259_v9, %v2115_v37  ;;  %v2117_v41 = vpop.f32.mrf.mxu1 }
 0x21d   : > { %3687 = vst [vmem:[%s4619_s13 + $0x270] sm:$0xff] %v2406_v25  ;;  %v2118_v51 = vadd.f32 %v2117_v41, %v2068_v40 }
 0x21e   : > { %v2309_v57 = vadd.f32 %v2308_v49, %v2260_v38  ;;  %2661 = vmatmul.bf16.gmra.mxu0 %v5006_v0 }
 0x21f   : > { %2710 = vmatmul.bf16.gmra.mxu1 %v2487_v44 }
 0x220   : > { %v2333_v45 = vadd.f32 %v5030_v28, %v2309_v57  ;;  %2855 = vmatmul.bf16.gmra.mxu2 %v4562_v7 }
 0x221   : > { %2904 = vmatmul.bf16.gmra.mxu3 %v4803_v16 }
 0x222   : > { %v2371_v48 = vrot.slane %v2333_v45, 7 }
 0x223   : > { %v2262_v52 = vpop.f32.mrf.mxu2  ;;  %v2070_v58 = vpop.f32.mrf.mxu0 }
 0x224   : > { %v2311_v47 = vpop.f32.mrf.mxu3  ;;  %v2372_v15 = vsel %vm1038_vm1, %v2370_v8, %v2371_v48  ;;  %v2414_v34 = vsel %vm1038_vm1, %v2371_v48, 0.0  ;;  %v2263_v53 = vadd.f32 %v2262_v52, %v2118_v51  ;;  %v2119_v60 = vpop.f32.mrf.mxu1 }
 0x225   : > { %3688 = vst [vmem:[%s4619_s13 + $0x280] sm:$0xff] %v2372_v15  ;;  %v2120_v7 = vadd.f32 %v2119_v60, %v2070_v58 }
 0x226   : > { %3689 = vst [vmem:[%s4619_s13 + $0x290] sm:$0x3] %v2414_v34  ;;  %v2312_v0 = vadd.f32 %v2311_v47, %v2263_v53 }
 0x228   : > { %v2334_v39 = vadd.f32 %v5030_v28, %v2312_v0 }
 0x22a   : > { %v2373_v62 = vrot.slane %v2334_v39, 7 }
 0x22b   : > { %v2264_v46 = vpop.f32.mrf.mxu2  ;;  %v2627_v42 = vpop.f32.mrf.mxu0 }
 0x22c   : > { %v2313_v16 = vpop.f32.mrf.mxu3  ;;  %v2407_v43 = vsel %vm1038_vm1, 0.0, %v2373_v62  ;;  %v2265_v1 = vadd.f32 %v2264_v46, %v2120_v7  ;;  %v2676_v2 = vpop.f32.mrf.mxu1 }
 0x22d   : > { %3690 = vst [vmem:[%s4619_s13 + $0x2d0] sm:$0xff] %v2407_v43  ;;  %v2677_v54 = vadd.f32 %v2676_v2, %v2627_v42 }
 0x22e   : > { %v2314_v12 = vadd.f32 %v2313_v16, %v2265_v1 }
 0x230   : > { %v2335_v3 = vadd.f32 %v5030_v28, %v2314_v12 }
 0x232   : > { %v2374_v4 = vrot.slane %v2335_v3, 7 }
 0x233   : > { %v2821_v35 = vpop.f32.mrf.mxu2  ;;  %v2629_v13 = vpop.f32.mrf.mxu0 }
 0x234   : > { %v2870_v18 = vpop.f32.mrf.mxu3  ;;  %v2375_v22 = vsel %vm1038_vm1, %v2373_v62, %v2374_v4  ;;  %v2415_v5 = vsel %vm1038_vm1, %v2374_v4, 0.0  ;;  %v2822_v36 = vadd.f32 %v2821_v35, %v2677_v54  ;;  %v2678_v63 = vpop.f32.mrf.mxu1 }
 0x235   : > { %3691 = vst [vmem:[%s4619_s13 + $0x2e0] sm:$0xff] %v2375_v22  ;;  %v2679_v20 = vadd.f32 %v2678_v63, %v2629_v13 }
 0x236   : > { %3692 = vst [vmem:[%s4619_s13 + $0x2f0] sm:$0x3] %v2415_v5  ;;  %v2871_v28 = vadd.f32 %v2870_v18, %v2822_v36 }
 0x238   : > { %v2914_v14 = vadd.f32 %v5130_v21, %v2871_v28 }
 0x23a   : > { %v2946_v17 = vrot.slane %v2914_v14, 7 }
 0x23b   : > { %v2823_v55 = vpop.f32.mrf.mxu2  ;;  %v2632_v50 = vpop.f32.mrf.mxu0 }
 0x23c   : > { %v2872_v23 = vpop.f32.mrf.mxu3  ;;  %v2994_v24 = vsel %vm1038_vm1, 0.0, %v2946_v17  ;;  %v2824_v26 = vadd.f32 %v2823_v55, %v2679_v20  ;;  %v2681_v27 = vpop.f32.mrf.mxu1 }
 0x23d   : > { %3885 = vst [vmem:[%s4619_s13 + $0x38] sm:$0xff] %v2994_v24  ;;  %v2682_v61 = vadd.f32 %v2681_v27, %v2632_v50 }
 0x23e   : > { %v2873_v11 = vadd.f32 %v2872_v23, %v2824_v26 }
 0x240   : > { %v2915_v10 = vadd.f32 %v5130_v21, %v2873_v11 }
 0x242   : > { %v2947_v30 = vrot.slane %v2915_v10, 7 }
 0x243   : > { %v2826_v19 = vpop.f32.mrf.mxu2  ;;  %v2634_v29 = vpop.f32.mrf.mxu0 }
 0x244   : > { %v2875_v6 = vpop.f32.mrf.mxu3  ;;  %v2948_v31 = vsel %vm1038_vm1, %v2946_v17, %v2947_v30  ;;  %v3002_v32 = vsel %vm1038_vm1, %v2947_v30, 0.0  ;;  %v2827_v56 = vadd.f32 %v2826_v19, %v2682_v61  ;;  %v2683_v59 = vpop.f32.mrf.mxu1 }
 0x245   : > { %3886 = vst [vmem:[%s4619_s13 + $0x48] sm:$0xff] %v2948_v31  ;;  %v2684_v9 = vadd.f32 %v2683_v59, %v2634_v29 }
 0x246   : > { %3887 = vst [vmem:[%s4619_s13 + $0x58] sm:$0x3] %v3002_v32  ;;  %v2876_v33 = vadd.f32 %v2875_v6, %v2827_v56 }
 0x248   : > { %v2916_v8 = vadd.f32 %v5130_v21, %v2876_v33 }
 0x24a   : > { %v2949_v37 = vrot.slane %v2916_v8, 7 }
 0x24b   : > { %v2828_v49 = vpop.f32.mrf.mxu2  ;;  %v2637_v41 = vpop.f32.mrf.mxu0 }
 0x24c   : > { %v2877_v25 = vpop.f32.mrf.mxu3  ;;  %v2995_v38 = vsel %vm1038_vm1, 0.0, %v2949_v37  ;;  %v2829_v40 = vadd.f32 %v2828_v49, %v2684_v9  ;;  %v2686_v44 = vpop.f32.mrf.mxu1 }
 0x24d   : > { %3888 = vst [vmem:[%s4619_s13 + $0x98] sm:$0xff] %v2995_v38  ;;  %v2687_v51 = vadd.f32 %v2686_v44, %v2637_v41 }
 0x24e   : > { %v2878_v57 = vadd.f32 %v2877_v25, %v2829_v40 }
 0x250   : > { %v2917_v45 = vadd.f32 %v5130_v21, %v2878_v57 }
 0x252   : > { %v2950_v48 = vrot.slane %v2917_v45, 7 }
 0x253   : > { %v2831_v52 = vpop.f32.mrf.mxu2  ;;  %v2639_v58 = vpop.f32.mrf.mxu0 }
 0x254   : > { %v2880_v47 = vpop.f32.mrf.mxu3  ;;  %v2951_v15 = vsel %vm1038_vm1, %v2949_v37, %v2950_v48  ;;  %v3003_v34 = vsel %vm1038_vm1, %v2950_v48, 0.0  ;;  %v2832_v53 = vadd.f32 %v2831_v52, %v2687_v51  ;;  %v2688_v60 = vpop.f32.mrf.mxu1 }
 0x255   : > { %3889 = vst [vmem:[%s4619_s13 + $0xa8] sm:$0xff] %v2951_v15  ;;  %v2689_v7 = vadd.f32 %v2688_v60, %v2639_v58 }
 0x256   : > { %3890 = vst [vmem:[%s4619_s13 + $0xb8] sm:$0x3] %v3003_v34  ;;  %v2881_v0 = vadd.f32 %v2880_v47, %v2832_v53 }
 0x258   : > { %v2918_v39 = vadd.f32 %v5130_v21, %v2881_v0 }
 0x25a   : > { %v2952_v62 = vrot.slane %v2918_v39, 7 }
 0x25b   : > { %v2833_v46 = vpop.f32.mrf.mxu2  ;;  %v2642_v42 = vpop.f32.mrf.mxu0 }
 0x25c   : > { %v2882_v16 = vpop.f32.mrf.mxu3  ;;  %v2996_v43 = vsel %vm1038_vm1, 0.0, %v2952_v62  ;;  %v2834_v1 = vadd.f32 %v2833_v46, %v2689_v7  ;;  %v2691_v2 = vpop.f32.mrf.mxu1 }
 0x25d   : > { %3891 = vst [vmem:[%s4619_s13 + $0xf8] sm:$0xff] %v2996_v43  ;;  %v2692_v54 = vadd.f32 %v2691_v2, %v2642_v42 }
 0x25e   : > { %v2883_v12 = vadd.f32 %v2882_v16, %v2834_v1 }
 0x260   : > { %v2919_v3 = vadd.f32 %v5130_v21, %v2883_v12 }
 0x262   : > { %v2953_v4 = vrot.slane %v2919_v3, 7 }
 0x263   : > { %v2836_v35 = vpop.f32.mrf.mxu2  ;;  %v2644_v13 = vpop.f32.mrf.mxu0 }
 0x264   : > { %v2885_v18 = vpop.f32.mrf.mxu3  ;;  %v2954_v22 = vsel %vm1038_vm1, %v2952_v62, %v2953_v4  ;;  %v3004_v5 = vsel %vm1038_vm1, %v2953_v4, 0.0  ;;  %v2837_v36 = vadd.f32 %v2836_v35, %v2692_v54  ;;  %v2693_v63 = vpop.f32.mrf.mxu1 }
 0x265   : > { %3892 = vst [vmem:[%s4619_s13 + $0x108] sm:$0xff] %v2954_v22  ;;  %v2694_v20 = vadd.f32 %v2693_v63, %v2644_v13 }
 0x266   : > { %3893 = vst [vmem:[%s4619_s13 + $0x118] sm:$0x3] %v3004_v5  ;;  %v2886_v28 = vadd.f32 %v2885_v18, %v2837_v36 }
 0x268   : > { %v2920_v14 = vadd.f32 %v5130_v21, %v2886_v28 }
 0x26a   : > { %v2955_v17 = vrot.slane %v2920_v14, 7 }
 0x26b   : > { %v2838_v55 = vpop.f32.mrf.mxu2  ;;  %v2647_v50 = vpop.f32.mrf.mxu0 }
 0x26c   : > { %v2887_v23 = vpop.f32.mrf.mxu3  ;;  %v2997_v24 = vsel %vm1038_vm1, 0.0, %v2955_v17  ;;  %v2839_v26 = vadd.f32 %v2838_v55, %v2694_v20  ;;  %v2696_v27 = vpop.f32.mrf.mxu1 }
 0x26d   : > { %3894 = vst [vmem:[%s4619_s13 + $0x158] sm:$0xff] %v2997_v24  ;;  %v2697_v61 = vadd.f32 %v2696_v27, %v2647_v50 }
 0x26e   : > { %v2888_v11 = vadd.f32 %v2887_v23, %v2839_v26 }
 0x270   : > { %v2921_v10 = vadd.f32 %v5130_v21, %v2888_v11 }
 0x272   : > { %v2956_v30 = vrot.slane %v2921_v10, 7 }
 0x273   : > { %v2841_v19 = vpop.f32.mrf.mxu2  ;;  %v2649_v29 = vpop.f32.mrf.mxu0 }
 0x274   : > { %v2890_v6 = vpop.f32.mrf.mxu3  ;;  %v2957_v31 = vsel %vm1038_vm1, %v2955_v17, %v2956_v30  ;;  %v3005_v32 = vsel %vm1038_vm1, %v2956_v30, 0.0  ;;  %v2842_v56 = vadd.f32 %v2841_v19, %v2697_v61  ;;  %v2698_v59 = vpop.f32.mrf.mxu1 }
 0x275   : > { %3895 = vst [vmem:[%s4619_s13 + $0x168] sm:$0xff] %v2957_v31  ;;  %v2699_v9 = vadd.f32 %v2698_v59, %v2649_v29 }
 0x276   : > { %3896 = vst [vmem:[%s4619_s13 + $0x178] sm:$0x3] %v3005_v32  ;;  %v2891_v33 = vadd.f32 %v2890_v6, %v2842_v56 }
 0x278   : > { %v2922_v8 = vadd.f32 %v5130_v21, %v2891_v33 }
 0x27a   : > { %v2958_v37 = vrot.slane %v2922_v8, 7 }
 0x27b   : > { %v2843_v49 = vpop.f32.mrf.mxu2  ;;  %v2652_v41 = vpop.f32.mrf.mxu0 }
 0x27c   : > { %v2892_v25 = vpop.f32.mrf.mxu3  ;;  %v2998_v38 = vsel %vm1038_vm1, 0.0, %v2958_v37  ;;  %v2844_v40 = vadd.f32 %v2843_v49, %v2699_v9  ;;  %v2701_v44 = vpop.f32.mrf.mxu1 }
 0x27d   : > { %3897 = vst [vmem:[%s4619_s13 + $0x1b8] sm:$0xff] %v2998_v38  ;;  %v2702_v51 = vadd.f32 %v2701_v44, %v2652_v41 }
 0x27e   : > { %v2893_v57 = vadd.f32 %v2892_v25, %v2844_v40 }
 0x280   : > { %v2923_v45 = vadd.f32 %v5130_v21, %v2893_v57 }
 0x282   : > { %v2959_v48 = vrot.slane %v2923_v45, 7 }
 0x283   : > { %v2846_v52 = vpop.f32.mrf.mxu2  ;;  %v2654_v58 = vpop.f32.mrf.mxu0 }
 0x284   : > { %v2895_v47 = vpop.f32.mrf.mxu3  ;;  %v2960_v15 = vsel %vm1038_vm1, %v2958_v37, %v2959_v48  ;;  %v3006_v34 = vsel %vm1038_vm1, %v2959_v48, 0.0  ;;  %v2847_v53 = vadd.f32 %v2846_v52, %v2702_v51  ;;  %v2703_v60 = vpop.f32.mrf.mxu1 }
 0x285   : > { %3898 = vst [vmem:[%s4619_s13 + $0x1c8] sm:$0xff] %v2960_v15  ;;  %v2704_v7 = vadd.f32 %v2703_v60, %v2654_v58 }
 0x286   : > { %3899 = vst [vmem:[%s4619_s13 + $0x1d8] sm:$0x3] %v3006_v34  ;;  %v2896_v0 = vadd.f32 %v2895_v47, %v2847_v53 }
 0x288   : > { %v2924_v39 = vadd.f32 %v5130_v21, %v2896_v0 }
 0x28a   : > { %v2961_v62 = vrot.slane %v2924_v39, 7 }
 0x28b   : > { %v2848_v46 = vpop.f32.mrf.mxu2  ;;  %v2657_v42 = vpop.f32.mrf.mxu0 }
 0x28c   : > { %v2897_v16 = vpop.f32.mrf.mxu3  ;;  %v2999_v43 = vsel %vm1038_vm1, 0.0, %v2961_v62  ;;  %v2849_v1 = vadd.f32 %v2848_v46, %v2704_v7  ;;  %v2706_v2 = vpop.f32.mrf.mxu1 }
 0x28d   : > { %3900 = vst [vmem:[%s4619_s13 + $0x218] sm:$0xff] %v2999_v43  ;;  %v2707_v54 = vadd.f32 %v2706_v2, %v2657_v42 }
 0x28e   : > { %v2898_v12 = vadd.f32 %v2897_v16, %v2849_v1 }
 0x290   : > { %v2925_v3 = vadd.f32 %v5130_v21, %v2898_v12 }
 0x292   : > { %v2962_v4 = vrot.slane %v2925_v3, 7 }
 0x293   : > { %v2851_v35 = vpop.f32.mrf.mxu2  ;;  %v2659_v13 = vpop.f32.mrf.mxu0 }
 0x294   : > { %v2900_v18 = vpop.f32.mrf.mxu3  ;;  %v2963_v22 = vsel %vm1038_vm1, %v2961_v62, %v2962_v4  ;;  %v3007_v5 = vsel %vm1038_vm1, %v2962_v4, 0.0  ;;  %v2852_v36 = vadd.f32 %v2851_v35, %v2707_v54  ;;  %v2708_v63 = vpop.f32.mrf.mxu1 }
 0x295   : > { %3901 = vst [vmem:[%s4619_s13 + $0x228] sm:$0xff] %v2963_v22  ;;  %v2709_v20 = vadd.f32 %v2708_v63, %v2659_v13 }
 0x296   : > { %3902 = vst [vmem:[%s4619_s13 + $0x238] sm:$0x3] %v3007_v5  ;;  %v2901_v28 = vadd.f32 %v2900_v18, %v2852_v36 }
 0x298   : > { %v2926_v14 = vadd.f32 %v5130_v21, %v2901_v28 }
 0x29a   : > { %v2964_v17 = vrot.slane %v2926_v14, 7 }
 0x29b   : > { %v2853_v55 = vpop.f32.mrf.mxu2  ;;  %v2662_v50 = vpop.f32.mrf.mxu0 }
 0x29c   : > { %v2902_v23 = vpop.f32.mrf.mxu3  ;;  %v3000_v24 = vsel %vm1038_vm1, 0.0, %v2964_v17  ;;  %v2854_v26 = vadd.f32 %v2853_v55, %v2709_v20  ;;  %v2711_v27 = vpop.f32.mrf.mxu1 }
 0x29d   : > { %3903 = vst [vmem:[%s4619_s13 + $0x278] sm:$0xff] %v3000_v24  ;;  %v2712_v61 = vadd.f32 %v2711_v27, %v2662_v50 }
 0x29e   : > { %v2903_v11 = vadd.f32 %v2902_v23, %v2854_v26 }
 0x2a0   : > { %v2927_v10 = vadd.f32 %v5130_v21, %v2903_v11 }
 0x2a2   : > { %v2965_v30 = vrot.slane %v2927_v10, 7 }
 0x2a3   : > { %v2856_v19 = vpop.f32.mrf.mxu2  ;;  %v2664_v59 = vpop.f32.mrf.mxu0 }
 0x2a4   : > { %v2905_v6 = vpop.f32.mrf.mxu3  ;;  %v2966_v31 = vsel %vm1038_vm1, %v2964_v17, %v2965_v30  ;;  %v3008_v32 = vsel %vm1038_vm1, %v2965_v30, 0.0  ;;  %v2857_v56 = vadd.f32 %v2856_v19, %v2712_v61  ;;  %v2713_v33 = vpop.f32.mrf.mxu1 }
 0x2a5   : > { %3904 = vst [vmem:[%s4619_s13 + $0x288] sm:$0xff] %v2966_v31  ;;  %v2714_v9 = vadd.f32 %v2713_v33, %v2664_v59 }
 0x2a6   : > { %3905 = vst [vmem:[%s4619_s13 + $0x298] sm:$0x3] %v3008_v32  ;;  %v2906_v29 = vadd.f32 %v2905_v6, %v2857_v56 }
 0x2a8   : > { %v2928_v8 = vadd.f32 %v5130_v21, %v2906_v29 }
 0x2aa   : > { %v2967_v37 = vrot.slane %v2928_v8, 7 }
 0x2ab   : > { %v2858_v49 = vpop.f32.mrf.mxu2 }
 0x2ac   : > { %v3001_v25 = vsel %vm1038_vm1, 0.0, %v2967_v37  ;;  %v2859_v38 = vadd.f32 %v2858_v49, %v2714_v9  ;;  %v2907_v40 = vpop.f32.mrf.mxu3 }
 0x2ad   : > { %3906 = vst [vmem:[%s4619_s13 + $0x2d8] sm:$0xff] %v3001_v25 }
 0x2ae   : > { %v2908_v41 = vadd.f32 %v2907_v40, %v2859_v38 }
 0x2b0   : > { %v2929_v44 = vadd.f32 %v5130_v21, %v2908_v41 }
 0x2b2   : > { %v2968_v57 = vrot.slane %v2929_v44, 7 }
 0x2b4   : > { %v2969_v45 = vsel %vm1038_vm1, %v2967_v37, %v2968_v57  ;;  %v3009_v51 = vsel %vm1038_vm1, %v2968_v57, 0.0 }
 0x2b5   : > { %3907 = vst [vmem:[%s4619_s13 + $0x2e8] sm:$0xff] %v2969_v45 }
 0x2b6   : > { %3908 = vst [vmem:[%s4619_s13 + $0x2f8] sm:$0x3] %v3009_v51 }
 0x2b7 PF: > { %s14_s19 = sadd.s32 1, %s4125_s19   ;;  %s5218_s15 = smov %s4117_s17 }
 0x2b8   : > { %p11_p7 = scmp.ge.s32.totalorder %s14_s19, 6   ;;  %s5219_s16 = smov %s4121_s18 }
 0x2b9   : > { %s5220_s17 = smov %s5223_s20  ;;  %s5221_s18 = smov %s5227_s21 }
 0x2ba   :  { %13 = sbr.rel (!%p11_p7) target bundleno = 3 (0x3), region = 75 }

// kernel: resblock_generator_forward.3
= control target key start
LH: loop header
LB: loop body
LE: loop exit
PB: predicated region body
PF: predicated region fallthrough
CT: control target
= control target key end

     0   :  { %s8691_s24 = smov 0   ;;  %s8693_s25 = smov 0   ;;  %s11680_s0 = inlined_call_operand.vmem [shape: f32[32,2,18,256], index: 0, kind: input, shape index: {}]   ;;  %s11681_s1 = inlined_call_operand.vmem [shape: f32[2,18,18,128], index: 1, kind: input, shape index: {}]   ;;  %s11682_s2 = inlined_call_operand.vmem [shape: f32[1,256], index: 2, kind: input, shape index: {}]   ;;  %s11683_s3 = inlined_call_operand.vmem [shape: f32[1,256], index: 3, kind: input, shape index: {}]   ;;  %s11684_s4 = inlined_call_operand.vmem [shape: bf16[3,384,128], index: 4, kind: input, shape index: {}]   ;;  %s11685_s5 = inlined_call_operand.vmem [shape: bf16[128,128], index: 5, kind: input, shape index: {}]   ;;  %s11686_s6 = inlined_call_operand.vmem [shape: f32[1,128], index: 6, kind: input, shape index: {}]   ;;  %s11687_s7 = inlined_call_operand.vmem [shape: f32[32,2,16,256], index: 7, kind: output, shape index: {}]  }
   0x1   :  { %s8695_s26 = smov 0   ;;  %s8697_s27 = smov 0  }
   0x2   :  { %s8699_s28 = smov 0  }
   0x3 LB: > { %s26_s29 = sadd.s32 1, %s8640_s26  ;;  %s29_s30 = sadd.s32 1, %s8644_s27  ;;  %s8648_s28 = sphi %s8699_s28, %s17_s28   ;;  %s8644_s27 = sphi %s8697_s27, %s12173_s27   ;;  %s8640_s26 = sphi %s8695_s26, %s12172_s26   ;;  %s8636_s25 = sphi %s8693_s25, %s12171_s25   ;;  %s8632_s24 = sphi %s8691_s24, %s12170_s24  }
   0x4   : > { %p27_p0 = scmp.ge.s32.totalorder %s26_s29, 2  ;;  %p6607_p1 = scmp.ge.s32.totalorder %s8648_s28, 1 }
   0x5   : > { %p265_p2 = scmp.lt.s32.totalorder %s8648_s28, 5 }
   0x6   : > { %s12175_s29 = smov (%p27_p0, %s26_s29), 0  ;;  %s12177_s30 = smov (!%p27_p0, %s29_s30), %s8644_s27 }
   0x7   : > { %p266_p3 = pnand %p6607_p1, %p265_p2  ;;  %p31_p4 = scmp.ge.s32.totalorder %s12177_s30, 2 }
   0x9   : > { %s12179_s30 = smov (%p31_p4, %s12177_s30), 0  ;;  %269 = sbr.rel (%p266_p3) target bundleno = 1362 (0x552), region = 48 }
   0xe   : > { %v8252_v0 = vld [vmem:[%s11685_s5 + $0x38] sm:$0xff]  ;;  %p313_p5 = scmp.lt.s32.totalorder %s8636_s25, 1  ;;  %s6608_s10 = sshll.u32 %s8636_s25, 4  ;;  %v8251_v1 = vld [vmem:[%s11685_s5 + $0x30] sm:$0xff]  ;;  %v8250_v2 = vld [vmem:[%s11685_s5 + $0x28] sm:$0xff]  ;;  %v807_v41 = vlaneseq }
   0xf   : > { %s6615_s11 = sshll.u32 %s8632_s24, 3  ;;  %1136 = vmatpush.bf16.msra.mxu0 %v8252_v0  ;;  %8541 = vmatpush.bf16.msra.mxu1 %v8252_v0  ;;  %s6622_s15 = smul.u32 192, %s8632_s24  ;;  %v8249_v12 = vld [vmem:[%s11685_s5 + $0x20] sm:$0xff]  ;;  %v8248_v22 = vld [vmem:[%s11685_s5 + $0x18] sm:$0xff]  ;;  %v8247_v30 = vld [vmem:[%s11685_s5 + $0x10] sm:$0xff] }
  0x10   : > { %s314_s14 = scalar_select %p313_p5, %s8636_s25, 1  ;;  %8542 = vmatpush.bf16.msra.mxu2 %v8252_v0  ;;  %8543 = vmatpush.bf16.msra.mxu3 %v8252_v0  ;;  %v429_v29 = vld [vmem:[%s11682_s2] sm:$0x3]  ;;  %v8246_v62 = vld [vmem:[%s11685_s5 + $0x8] sm:$0xff]  ;;  %vm1281_vm2 = vsmask.f32 7424 }
  0x11   : > { %p307_p6 = scmp.lt.s32.totalorder %s6608_s10, 31  ;;  %s6618_s17 = sadd.s32 4294967295, %s6615_s11  ;;  %v531_v34 = vld [vmem:[%s11683_s3] sm:$0x3]  ;;  %v8830_v45 = vperm.slane %v429_v29, 0  ;;  %v8839_v51 = vperm.slane %v429_v29, 1 }
  0x12   : > { %s8566_s16 = smul.u32 432, %s314_s14  ;;  %p730_p7 = scmp.gt.s32.totalorder %s6618_s17, 0  ;;  %v8841_v52 = vperm.slane %v531_v34, 0  ;;  %v8847_v54 = vperm.slane %v531_v34, 1 }
  0x13   : > { %s12181_s10 = smov (!%p307_p6, %s6608_s10), 31  ;;  %1137 = vmatpush.bf16.msra.mxu0 %v8251_v1  ;;  %8544 = vmatpush.bf16.msra.mxu1 %v8251_v1  ;;  %p759_p8 = scmp.gt.s32.totalorder %s8632_s24, 0  ;;  %11873 = vst [vmem:[#allocation2_spill] sm:$0xff] %v8830_v45 }
  0x14   : > { %s317_s22 = scalar_lea.vmem %s11681_s1, %s8566_s16  ;;  %8545 = vmatpush.bf16.msra.mxu2 %v8251_v1  ;;  %8546 = vmatpush.bf16.msra.mxu3 %v8251_v1  ;;  %s8565_s8 = smul.u32 96, %s12181_s10  ;;  %11874 = vst [vmem:[#allocation3_spill] sm:$0xff] %v8839_v51  ;;  %v808_v1 = vshrl.u32 %v807_v41, 7 }
  0x15   : > { %s8746_s23 = scalar_lea.vmem %s317_s22, %s6622_s15  ;;  %s12183_s17 = smov (!%p730_p7, %s6618_s17), 0  ;;  %11875 = vst [vmem:[#allocation4_spill] sm:$0xff] %v8841_v52 }
  0x16   : > { %v6623_v3 = vld [vmem:[%s8746_s23 + $0x19] sm:$0xff]  ;;  %v6624_v4 = vld [vmem:[%s8746_s23 + $0x21] sm:$0xff]  ;;  %v6627_v5 = vld [vmem:[%s8746_s23 + $0x49] sm:$0xff]  ;;  %s8243_s10 = smul.u32 96, %s12183_s17  ;;  %s8766_s15 = scalar_lea.vmem %s11680_s0, %s8565_s8  ;;  %11876 = vst [vmem:[#allocation5_spill] sm:$0xff] %v8847_v54  ;;  %vm811_vm0 = vcmp.eq.s32.totalorder %v808_v1, 0 }
  0x17   : > { %v1004_v6 = vpack.c.bf16 %v6623_v3, %v6623_v3  ;;  %v1005_v7 = vpack.c.bf16 %v6624_v4, %v6624_v4  ;;  %v6628_v8 = vld [vmem:[%s8746_s23 + $0x51] sm:$0xff]  ;;  %v1008_v9 = vpack.c.bf16 %v6627_v5, %v6627_v5  ;;  %v6631_v10 = vld [vmem:[%s8746_s23 + $0x79] sm:$0xff]  ;;  %v6632_v11 = vld [vmem:[%s8746_s23 + $0x81] sm:$0xff]  ;;  %1138 = vmatpush.bf16.msra.mxu0 %v8250_v2  ;;  %8547 = vmatpush.bf16.msra.mxu1 %v8250_v2  ;;  %s8242_s12 = smul.u32 768, %s8632_s24  ;;  %s6611_s21 = sshll.u32 %s8636_s25, 1 }
  0x18   : > { %v1009_v13 = vpack.c.bf16 %v6628_v8, %v6628_v8  ;;  %v1012_v14 = vpack.c.bf16 %v6631_v10, %v6631_v10  ;;  %v1013_v15 = vpack.c.bf16 %v6632_v11, %v6632_v11  ;;  %v6635_v16 = vld [vmem:[%s8746_s23 + $0xa9] sm:$0xff]  ;;  %v6636_v17 = vld [vmem:[%s8746_s23 + $0xb1] sm:$0xff]  ;;  %8548 = vmatpush.bf16.msra.mxu2 %v8250_v2  ;;  %8549 = vmatpush.bf16.msra.mxu3 %v8250_v2  ;;  %s8787_s18 = scalar_lea.vmem %s8766_s15, %s8243_s10  ;;  %v8790_v28 = vld [vmem:[%s8746_s23 + $0x39] sm:$0xff]  ;;  %s319_s25 = sadd.s32 %s8632_s24, %s6611_s21 }
  0x19   : > { %v8768_v18 = vunpack.c.l.b16 %v1004_v6  ;;  %v8770_v19 = vunpack.c.l.b16 %v1005_v7  ;;  %v1016_v20 = vpack.c.bf16 %v6635_v16, %v6635_v16  ;;  %v1017_v21 = vpack.c.bf16 %v6636_v17, %v6636_v17  ;;  %v8784_v27 = vld [vmem:[%s8746_s23 + $0x31] sm:$0xff]  ;;  %v8802_v32 = vld [vmem:[%s8746_s23 + $0x61] sm:$0xff]  ;;  %v8805_v33 = vld [vmem:[%s8746_s23 + $0x69] sm:$0xff]  ;;  %s760_s10 = scalar_select %p759_p8, 1.0, 0.0 }
  0x1a   : > { %v8775_v23 = vunpack.c.l.b16 %v1008_v9  ;;  %v8777_v24 = vunpack.c.l.b16 %v1009_v13  ;;  %v8779_v25 = vunpack.c.l.b16 %v1012_v14  ;;  %v8781_v26 = vunpack.c.l.b16 %v1013_v15  ;;  %v8817_v38 = vld [vmem:[%s8746_s23 + $0x91] sm:$0xff]  ;;  %v8820_v39 = vld [vmem:[%s8746_s23 + $0x99] sm:$0xff]  ;;  %v738_v48 = vld [vmem:[%s8787_s18 + $0x48] sm:$0xff]  ;;  %s8862_s16 = scalar_lea.vmem %s8766_s15, %s8242_s12  ;;  %s6612_s22 = sshll.u32 %s319_s25, 3 }
  0x1b   : > { %1139 = vmatpush.bf16.msra.mxu0 %v8249_v12  ;;  %8550 = vmatpush.bf16.msra.mxu1 %v8249_v12  ;;  %v1072_v31 = vpack.c.b16 %v8770_v19, %v8768_v18  ;;  %v8810_v35 = vunpack.c.l.b16 %v1016_v20  ;;  %v8812_v36 = vunpack.c.l.b16 %v1017_v21  ;;  %v1006_v37 = vpack.c.bf16 %v8784_v27, %v8784_v27  ;;  %v735_v40 = vld [vmem:[%s8787_s18 + $0x30] sm:$0xff]  ;;  %v736_v46 = vld [vmem:[%s8787_s18 + $0x38] sm:$0xff]  ;;  %v737_v47 = vld [vmem:[%s8787_s18 + $0x40] sm:$0xff]  ;;  %p321_p9 = scmp.lt.s32.totalorder %s6612_s22, 31  ;;  %s768_s9 = sadd.s32 8, %s6615_s11 }
  0x1c   : > { %8551 = vmatpush.bf16.msra.mxu2 %v8249_v12  ;;  %8552 = vmatpush.bf16.msra.mxu3 %v8249_v12  ;;  %v1074_v42 = vpack.c.b16 %v8777_v24, %v8775_v23  ;;  %v1076_v43 = vpack.c.b16 %v8781_v26, %v8779_v25  ;;  %v1007_v44 = vpack.c.bf16 %v8790_v28, %v8790_v28  ;;  %v739_v57 = vld [vmem:[%s8787_s18 + $0x50] sm:$0x3]  ;;  %v740_v2 = vld [vmem:[%s8787_s18 + $0x58] sm:$0x3]  ;;  %v761_v5 = vstv %s760_s10  ;;  %v333_v15 = vld [vmem:[%s8862_s16] sm:$0xff]  ;;  %p769_p10 = scmp.lt.s32.totalorder %s768_s9, 15 }
  0x1d   : > { %v1010_v49 = vpack.c.bf16 %v8802_v32, %v8802_v32  ;;  %v1011_v50 = vpack.c.bf16 %v8805_v33, %v8805_v33  ;;  %v1014_v53 = vpack.c.bf16 %v8817_v38, %v8817_v38  ;;  %v741_v55 = vsub.f32 %v735_v40, %v8830_v45  ;;  %v334_v16 = vld [vmem:[%s8862_s16 + $0x8] sm:$0xff]  ;;  %v8245_v17 = vld [vmem:[%s11685_s5] sm:$0xff]  ;;  %v335_v29 = vld [vmem:[%s8862_s16 + $0x10] sm:$0xff]  ;;  %s12185_s22 = smov (!%p321_p9, %s6612_s22), 31  ;;  %p798_p11 = scmp.lt.s32.totalorder %s8632_s24, 1 }
  0x1e   : > { %v743_v56 = vsub.f32 %v737_v47, %v8830_v45  ;;  %v1078_v58 = vpack.c.b16 %v8812_v36, %v8810_v35  ;;  %v1015_v59 = vpack.c.bf16 %v8820_v39, %v8820_v39  ;;  %v742_v60 = vsub.f32 %v736_v46, %v8839_v51  ;;  %v336_v41 = vld [vmem:[%s8862_s16 + $0x18] sm:$0xff]  ;;  %v8891_v47 = vld [vmem:[%s8746_s23 + $0xc1] sm:$0xff]  ;;  %v8259_v18 = vld [vmem:[%s11684_s4 + $0x30] sm:$0xff]  ;;  %s8241_s17 = sshll.u32 %s12185_s22, 6  ;;  %s12187_s9 = smov (!%p769_p10, %s768_s9), 15 }
  0x1f   : > { %1140 = vmatpush.bf16.msra.mxu0 %v8248_v22  ;;  %8553 = vmatpush.bf16.msra.mxu1 %v8248_v22  ;;  %v744_v61 = vsub.f32 %v738_v48, %v8839_v51  ;;  %v747_v63 = vmul.f32 %v741_v55, %v8841_v52  ;;  %v745_v6 = vsub.f32 %v739_v57, %v8830_v45  ;;  %v810_v9 = vadd.s32 16, %v808_v1  ;;  %v8268_v46 = vld [vmem:[%s11684_s4 + $0x78] sm:$0xff]  ;;  %v8283_v25 = vld [vmem:[%s11684_s4 + $0xf0] sm:$0xff]  ;;  %v8266_v26 = vld [vmem:[%s11684_s4 + $0x68] sm:$0xff]  ;;  %s10407_s20 = scalar_lea.vmem %s11687_s7, %s8241_s17  ;;  %s8244_s14 = smul.u32 96, %s12187_s9 }
  0x20   : > { %8554 = vmatpush.bf16.msra.mxu2 %v8248_v22  ;;  %8555 = vmatpush.bf16.msra.mxu3 %v8248_v22  ;;  %v749_v0 = vmul.f32 %v743_v56, %v8841_v52  ;;  %v748_v3 = vmul.f32 %v742_v60, %v8847_v54  ;;  %v8650_v12 = vmov 1.0   ;;  %v746_v14 = vsub.f32 %v740_v2, %v8839_v51  ;;  %v6638_v60 = vld [vmem:[%s8746_s23 + $0xc9] sm:$0xff]  ;;  %s799_s23 = scalar_select %p798_p11, 1.0, 0.0 }
  0x21   : > { %v750_v4 = vmul.f32 %v744_v61, %v8847_v54  ;;  %v753_v7 = vmax.f32 %v747_v63, 0.0  ;;  %v8870_v13 = vsel %vm811_vm0, 0.0, %v8650_v12  ;;  %v8878_v20 = vunpack.c.l.b16 %v1006_v37  ;;  %v8276_v37 = vld [vmem:[%s11684_s4 + $0xb8] sm:$0xff]  ;;  %s773_s25 = scalar_lea.vmem %s8766_s15, %s8244_s14 }
  0x22   : > { %v755_v8 = vmax.f32 %v749_v0, 0.0  ;;  %v754_v10 = vmax.f32 %v748_v3, 0.0  ;;  %11877 = vst [vmem:[#allocation6_spill] sm:$0xff] %v8870_v13  ;;  %v751_v27 = vmul.f32 %v745_v6, %v8841_v52  ;;  %vm816_vm1 = vcmp.eq.s32.totalorder %v810_v9, 17  ;;  %v8260_v6 = vld [vmem:[%s11684_s4 + $0x38] sm:$0xff] }
  0x23   : > { %1141 = vmatpush.bf16.msra.mxu0 %v8247_v30  ;;  %8556 = vmatpush.bf16.msra.mxu1 %v8247_v30  ;;  %v756_v11 = vmax.f32 %v750_v4, 0.0  ;;  %v762_v21 = vmul.f32 %v761_v5, %v753_v7  ;;  %v752_v40 = vmul.f32 %v746_v14, %v8847_v54  ;;  %v435_v56 = vsub.f32 %v333_v15, %v8830_v45  ;;  %v8284_v7 = vld [vmem:[%s11684_s4 + $0xf8] sm:$0xff]  ;;  %v8275_v14 = vld [vmem:[%s11684_s4 + $0xb0] sm:$0xff] }
  0x24   : > { %8557 = vmatpush.bf16.msra.mxu2 %v8247_v30  ;;  %8558 = vmatpush.bf16.msra.mxu3 %v8247_v30  ;;  %v764_v22 = vmul.f32 %v761_v5, %v755_v8  ;;  %v763_v30 = vmul.f32 %v761_v5, %v754_v10  ;;  %v757_v55 = vmax.f32 %v751_v27, 0.0  ;;  %v436_v57 = vsub.f32 %v334_v16, %v8839_v51  ;;  %v8274_v27 = vld [vmem:[%s11684_s4 + $0xa8] sm:$0xff] }
  0x25   : > { %v765_v34 = vmul.f32 %v761_v5, %v756_v11  ;;  %v823_v48 = vmul.f32 %v8870_v13, %v762_v21  ;;  %v758_v63 = vmax.f32 %v752_v40, 0.0  ;;  %v437_v0 = vsub.f32 %v335_v29, %v8830_v45  ;;  %v340_v29 = vld [vmem:[%s8862_s16 + $0x38] sm:$0xff] }
  0x26   : > { %v824_v61 = vmul.f32 %v8870_v13, %v763_v30  ;;  %v8900_v1 = vsel %vm816_vm1, 0.0, %v8650_v12  ;;  %v766_v2 = vmul.f32 %v761_v5, %v757_v55  ;;  %v438_v3 = vsub.f32 %v336_v41, %v8839_v51  ;;  %v8267_v12 = vld [vmem:[%s11684_s4 + $0x70] sm:$0xff]  ;;  %v341_v30 = vld [vmem:[%s8862_s16 + $0x40] sm:$0xff] }
  0x27   : > { %1142 = vmatpush.bf16.msra.mxu0 %v8246_v62  ;;  %8559 = vmatpush.bf16.msra.mxu1 %v8246_v62  ;;  %11878 = vst [vmem:[#allocation7_spill] sm:$0xff] %v8900_v1  ;;  %v537_v4 = vmul.f32 %v8841_v52, %v435_v56  ;;  %v8913_v8 = vunpack.c.l.b16 %v1007_v44  ;;  %v1018_v9 = vpack.c.bf16 %v8891_v47, %v8891_v47  ;;  %v8952_v35 = vunpack.c.l.b16 %v1010_v49 }
  0x28   : > { %8560 = vmatpush.bf16.msra.mxu2 %v8246_v62  ;;  %8561 = vmatpush.bf16.msra.mxu3 %v8246_v62  ;;  %v932_v62 = vpack.c.bf16 %v765_v34, %v764_v22  ;;  %v931_v10 = vpack.c.bf16 %v824_v61, %v823_v48  ;;  %v767_v11 = vmul.f32 %v761_v5, %v758_v63  ;;  %v8957_v36 = vunpack.c.l.b16 %v1011_v50  ;;  %v342_v48 = vld [vmem:[%s8862_s16 + $0x48] sm:$0xff] }
  0x29   : > { %v1019_v15 = vpack.c.bf16 %v6638_v60, %v6638_v60  ;;  %v538_v28 = vmul.f32 %v8847_v54, %v436_v57  ;;  %v539_v44 = vmul.f32 %v8841_v52, %v437_v0  ;;  %v540_v22 = vmul.f32 %v8847_v54, %v438_v3  ;;  %v8265_v57 = vld [vmem:[%s11684_s4 + $0x60] sm:$0xff] }
  0x2a   : > { %v1202_v16 = vunpack.c.h.b16 %v932_v62  ;;  %v1201_v5 = vunpack.c.h.b16 %v931_v10  ;;  %v828_v21 = vmul.f32 %v8900_v1, %v767_v11  ;;  %v1241_v19 = vunpack.c.l.b16 %v931_v10  ;;  %v8273_v60 = vld [vmem:[%s11684_s4 + $0xa0] sm:$0xff]  ;;  %v344_v11 = vld [vmem:[%s8862_s16 + $0x58] sm:$0x3] }
  0x2b   : > { %1143 = vmatpush.bf16.msra.mxu0 %v8245_v17  ;;  %8562 = vmatpush.bf16.msra.mxu1 %v8245_v17  ;;  %v1242_v23 = vunpack.c.l.b16 %v932_v62  ;;  %v633_v24 = vmax.f32 %v537_v4, 0.0  ;;  %v8966_v32 = vunpack.c.l.b16 %v1014_v53  ;;  %v8971_v33 = vunpack.c.l.b16 %v1015_v59  ;;  %v8258_v59 = vld [vmem:[%s11684_s4 + $0x28] sm:$0xff] }
  0x2c   : > { %8563 = vmatpush.bf16.msra.mxu2 %v8245_v17  ;;  %8564 = vmatpush.bf16.msra.mxu3 %v8245_v17  ;;  %v827_v17 = vmul.f32 %v8900_v1, %v766_v2  ;;  %v8977_v34 = vunpack.c.l.b16 %v1018_v9  ;;  %v8979_v40 = vunpack.c.l.b16 %v1019_v15  ;;  %v8981_v41 = vpack.c.b16 %v1202_v16, %v1201_v5  ;;  %v8264_v5 = vld [vmem:[%s11684_s4 + $0x58] sm:$0xff] }
  0x2d   : > { %v829_v49 = vmul.f32 %v8870_v13, %v633_v24  ;;  %v8983_v53 = vpack.c.b16 %v1242_v23, %v1241_v19  ;;  %v442_v55 = vsub.f32 %v340_v29, %v8839_v51  ;;  %v443_v56 = vsub.f32 %v341_v30, %v8830_v45 }
  0x2e   : > { %1144 = vmatmul.bf16.vlgmr.msra.gmra.mxu0 %v1072_v31  ;;  %1154 = vmatmul.bf16.vlgmr.msra.gmra.mxu1 %v1074_v42  ;;  %v634_v31 = vmax.f32 %v538_v28, 0.0  ;;  %v635_v42 = vmax.f32 %v539_v44, 0.0  ;;  %v933_v38 = vpack.c.bf16 %v828_v21, %v827_v17  ;;  %v1073_v61 = vpack.c.b16 %v8913_v8, %v8878_v20  ;;  %v8272_v17 = vld [vmem:[%s11684_s4 + $0x98] sm:$0xff] }
  0x2f   : > { %1164 = vmatmul.bf16.vlgmr.msra.gmra.mxu2 %v1076_v43  ;;  %1174 = vmatmul.bf16.vlgmr.msra.gmra.mxu3 %v1078_v58  ;;  %v636_v43 = vmax.f32 %v540_v22, 0.0  ;;  %v339_v58 = vld [vmem:[%s8862_s16 + $0x30] sm:$0xff]  ;;  %v1075_v62 = vpack.c.b16 %v8957_v36, %v8952_v35  ;;  %v1077_v63 = vpack.c.b16 %v8971_v33, %v8966_v32  ;;  %v1079_v2 = vpack.c.b16 %v8979_v40, %v8977_v34  ;;  %v8256_v32 = vld [vmem:[%s11684_s4 + $0x18] sm:$0xff] }
  0x30   : > { %1747 = vmatpush.bf16.msrb.mxu2 %v8268_v46  ;;  %1796 = vmatpush.bf16.msrb.mxu3 %v8276_v37  ;;  %v830_v50 = vmul.f32 %v8870_v13, %v634_v31  ;;  %v441_v39 = vsub.f32 %v339_v58, %v8830_v45  ;;  %v8282_v37 = vld [vmem:[%s11684_s4 + $0xe8] sm:$0xff]  ;;  %v1405_v3 = vshll.u32 %v8981_v41, 16  ;;  %v1243_v4 = vunpack.c.l.b16 %v933_v38  ;;  %v8280_v33 = vld [vmem:[%s11684_s4 + $0xd8] sm:$0xff]  ;;  %v8263_v34 = vld [vmem:[%s11684_s4 + $0x50] sm:$0xff] }
  0x31   : > { %1698 = vmatpush.bf16.msrb.mxu1 %v8260_v6  ;;  %2374 = vmatpush.bf16.msrb.mxu0 %v8284_v7  ;;  %v8994_v47 = vpack.c.bf16 %v636_v43, %v635_v42  ;;  %v343_v7 = vld [vmem:[%s8862_s16 + $0x50] sm:$0x3]  ;;  %v1285_v9 = vshll.u32 %v8983_v53, 16  ;;  %v1386_v20 = vunpack.c.h.b16 %v933_v38  ;;  %v444_v8 = vsub.f32 %v342_v48, %v8839_v51  ;;  %v346_v58 = vld [vmem:[%s8862_s16 + $0x68] sm:$0xff] }
  0x32   : > { %v8985_v46 = vpack.c.bf16 %v830_v50, %v829_v49  ;;  %v543_v10 = vmul.f32 %v8841_v52, %v441_v39  ;;  %v1283_v15 = vshrl.u32 %v8983_v53, 16  ;;  %v544_v28 = vmul.f32 %v8847_v54, %v442_v55  ;;  %v8271_v40 = vld [vmem:[%s11684_s4 + $0x90] sm:$0xff] }
  0x33   : > { %v1918_v6 = vunpack.c.l.b16 %v8994_v47  ;;  %v545_v44 = vmul.f32 %v8841_v52, %v443_v56  ;;  %v1403_v21 = vshrl.u32 %v8981_v41, 16  ;;  %v546_v22 = vmul.f32 %v8847_v54, %v444_v8  ;;  %v351_v53 = vld [vmem:[%s8862_s16 + $0x90] sm:$0xff] }
  0x34   : > { %1748 = vmatpush.bf16.msrb.mxu2 %v8267_v12  ;;  %1797 = vmatpush.bf16.msrb.mxu3 %v8275_v14  ;;  %v1917_v0 = vunpack.c.l.b16 %v8985_v46  ;;  %v8257_v12 = vld [vmem:[%s11684_s4 + $0x20] sm:$0xff]  ;;  %v445_v19 = vsub.f32 %v343_v7, %v8830_v45  ;;  %v9041_v23 = vpack.c.b16 %v1243_v4, %v1243_v4  ;;  %v640_v24 = vmax.f32 %v544_v28, 0.0  ;;  %v8262_v7 = vld [vmem:[%s11684_s4 + $0x48] sm:$0xff] }
  0x35   : > { %1699 = vmatpush.bf16.msrb.mxu1 %v8259_v18  ;;  %2375 = vmatpush.bf16.msrb.mxu0 %v8283_v25  ;;  %v8281_v14 = vld [vmem:[%s11684_s4 + $0xe0] sm:$0xff]  ;;  %v639_v18 = vmax.f32 %v543_v10, 0.0  ;;  %v641_v31 = vmax.f32 %v545_v44, 0.0  ;;  %v446_v25 = vsub.f32 %v344_v11, %v8839_v51  ;;  %v1287_v35 = vrot.slane %v1285_v9, 1  ;;  %v8270_v9 = vld [vmem:[%s11684_s4 + $0x88] sm:$0xff] }
  0x36   : > { %v9028_v16 = vpack.c.b16 %v1918_v6, %v1917_v0  ;;  %v9045_v36 = vpack.c.b16 %v1386_v20, %v1386_v20  ;;  %v1407_v42 = vrot.slane %v1405_v3, 1  ;;  %v642_v43 = vmax.f32 %v546_v22, 0.0 }
  0x37   : > { %v1877_v49 = vunpack.c.h.b16 %v8985_v46  ;;  %v835_v50 = vmul.f32 %v8870_v13, %v639_v18  ;;  %v836_v29 = vmul.f32 %v8870_v13, %v640_v24  ;;  %v547_v30 = vmul.f32 %v8841_v52, %v445_v19  ;;  %v8278_v24 = vld [vmem:[%s11684_s4 + $0xc8] sm:$0xff] }
  0x38   : > { %1749 = vmatpush.bf16.msrb.mxu2 %v8266_v26  ;;  %1798 = vmatpush.bf16.msrb.mxu3 %v8274_v27  ;;  %v345_v26 = vld [vmem:[%s8862_s16 + $0x60] sm:$0xff]  ;;  %v347_v27 = vld [vmem:[%s8862_s16 + $0x70] sm:$0xff]  ;;  %v1878_v38 = vunpack.c.h.b16 %v8994_v47  ;;  %v938_v39 = vpack.c.bf16 %v642_v43, %v641_v31  ;;  %v548_v46 = vmul.f32 %v8847_v54, %v446_v25  ;;  %v448_v56 = vsub.f32 %v346_v58, %v8839_v51 }
  0x39   : > { %1700 = vmatpush.bf16.msrb.mxu1 %v8258_v59  ;;  %2376 = vmatpush.bf16.msrb.mxu0 %v8282_v37  ;;  %v348_v59 = vld [vmem:[%s8862_s16 + $0x78] sm:$0xff]  ;;  %v447_v37 = vsub.f32 %v345_v26, %v8830_v45  ;;  %v937_v48 = vpack.c.bf16 %v836_v29, %v835_v50  ;;  %v643_v55 = vmax.f32 %v547_v30, 0.0  ;;  %v1410_v20 = vshll.u32 %v9045_v36, 16 }
  0x3a   : > { %v1204_v0 = vunpack.c.h.b16 %v938_v39  ;;  %v1245_v47 = vunpack.c.l.b16 %v938_v39  ;;  %v644_v3 = vmax.f32 %v548_v46, 0.0  ;;  %v550_v11 = vmul.f32 %v8847_v54, %v448_v56  ;;  %v8308_v50 = vld [vmem:[%s11684_s4 + $0x1b8] sm:$0xff]  ;;  %v354_v39 = vld [vmem:[%s8862_s16 + $0xa8] sm:$0xff] }
  0x3b   : > { %v1203_v4 = vunpack.c.h.b16 %v937_v48  ;;  %v1244_v6 = vunpack.c.l.b16 %v937_v48  ;;  %v549_v10 = vmul.f32 %v8841_v52, %v447_v37  ;;  %v1408_v31 = vor.u32 %v1407_v42, %v1403_v21  ;;  %v8269_v21 = vld [vmem:[%s11684_s4 + $0x80] sm:$0xff] }
  0x3c   : > { %1750 = vmatpush.bf16.msrb.mxu2 %v8265_v57  ;;  %1799 = vmatpush.bf16.msrb.mxu3 %v8273_v60  ;;  %v449_v57 = vsub.f32 %v347_v27, %v8830_v45  ;;  %v1290_v60 = vshll.u32 %v9041_v23, 16  ;;  %v840_v8 = vmul.f32 %v8900_v1, %v644_v3  ;;  %v646_v19 = vmax.f32 %v550_v11, 0.0  ;;  %v8253_v37 = vld [vmem:[%s11684_s4] sm:$0xff] }
  0x3d   : > { %1701 = vmatpush.bf16.msrb.mxu1 %v8257_v12  ;;  %2377 = vmatpush.bf16.msrb.mxu0 %v8281_v14  ;;  %v9090_v12 = vpack.c.b16 %v1204_v0, %v1203_v4  ;;  %v9092_v14 = vpack.c.b16 %v1245_v47, %v1244_v6  ;;  %v645_v18 = vmax.f32 %v549_v10, 0.0  ;;  %v9106_v25 = vpack.c.b16 %v1878_v38, %v1877_v49  ;;  %v8300_v49 = vld [vmem:[%s11684_s4 + $0x178] sm:$0xff]  ;;  %v353_v38 = vld [vmem:[%s8862_s16 + $0xa0] sm:$0xff] }
  0x3e   : > { %1149 = vmatmul.bf16.gmra.mxu0 %v1073_v61  ;;  %1159 = vmatmul.bf16.gmra.mxu1 %v1075_v62  ;;  %v8255_v61 = vld [vmem:[%s11684_s4 + $0x10] sm:$0xff]  ;;  %v551_v28 = vmul.f32 %v8841_v52, %v449_v57  ;;  %v842_v30 = vmul.f32 %v8870_v13, %v646_v19  ;;  %v453_v46 = vsub.f32 %v351_v53, %v8830_v45  ;;  %v8277_v48 = vld [vmem:[%s11684_s4 + $0xc0] sm:$0xff]  ;;  %v8292_v0 = vld [vmem:[%s11684_s4 + $0x138] sm:$0xff] }
  0x3f   : > { %1169 = vmatmul.bf16.gmra.mxu2 %v1077_v63  ;;  %1179 = vmatmul.bf16.gmra.mxu3 %v1079_v2  ;;  %v8279_v62 = vld [vmem:[%s11684_s4 + $0xd0] sm:$0xff]  ;;  %v839_v63 = vmul.f32 %v8900_v1, %v643_v55  ;;  %v450_v2 = vsub.f32 %v348_v59, %v8839_v51  ;;  %11879 = vst [vmem:[#allocation8_spill] sm:$0xff] %v9090_v12  ;;  %v1297_v26 = vshll.u32 %v9092_v14, 16  ;;  %v1417_v36 = vshll.u32 %v9090_v12, 16  ;;  %v8316_v47 = vld [vmem:[%s11684_s4 + $0x1f8] sm:$0xff]  ;;  %v357_v19 = vld [vmem:[%s8862_s16 + $0xc0] sm:$0xff] }
  0x40   : > { %1751 = vmatpush.bf16.msrb.mxu2 %v8264_v5  ;;  %1800 = vmatpush.bf16.msrb.mxu3 %v8272_v17  ;;  %v8254_v5 = vld [vmem:[%s11684_s4 + $0x8] sm:$0xff]  ;;  %v1288_v17 = vor.u32 %v1287_v35, %v1283_v15  ;;  %11880 = vst [vmem:[#allocation9_spill] sm:$0xff] %v9106_v25  ;;  %v352_v15 = vld [vmem:[%s8862_s16 + $0x98] sm:$0xff]  ;;  %v8261_v35 = vld [vmem:[%s11684_s4 + $0x40] sm:$0xff]  ;;  %v647_v58 = vmax.f32 %v551_v28, 0.0  ;;  %v841_v29 = vmul.f32 %v8870_v13, %v645_v18  ;;  %v1415_v57 = vshrl.u32 %v9090_v12, 16 }
  0x41   : > { %1702 = vmatpush.bf16.msrb.mxu1 %v8256_v32  ;;  %2378 = vmatpush.bf16.msrb.mxu0 %v8280_v33  ;;  %v552_v44 = vmul.f32 %v8847_v54, %v450_v2  ;;  %v939_v22 = vpack.c.bf16 %v840_v8, %v839_v63  ;;  %v1292_v32 = vrot.slane %v1290_v60, 1  ;;  %v1412_v33 = vrot.slane %v1410_v20, 1  ;;  %v8299_v2 = vld [vmem:[%s11684_s4 + $0x170] sm:$0xff]  ;;  %v356_v18 = vld [vmem:[%s8862_s16 + $0xb8] sm:$0x3] }
  0x42   : > { %v454_v59 = vsub.f32 %v352_v15, %v8839_v51  ;;  %v1299_v56 = vrot.slane %v1297_v26, 1  ;;  %v940_v60 = vpack.c.bf16 %v842_v30, %v841_v29  ;;  %v456_v20 = vsub.f32 %v354_v39, %v8839_v51  ;;  %v355_v28 = vld [vmem:[%s8862_s16 + $0xb0] sm:$0x3]  ;;  %v8306_v39 = vld [vmem:[%s11684_s4 + $0x1a8] sm:$0xff] }
  0x43   : > { %v1246_v42 = vunpack.c.l.b16 %v939_v22  ;;  %v1387_v43 = vunpack.c.h.b16 %v939_v22  ;;  %v648_v27 = vmax.f32 %v552_v44, 0.0  ;;  %v9155_v8 = vsel %vm1281_vm2, %v1288_v17, %v1292_v32  ;;  %v8291_v26 = vld [vmem:[%s11684_s4 + $0x130] sm:$0xff] }
  0x44   : > { %1752 = vmatpush.bf16.msrb.mxu2 %v8263_v34  ;;  %1801 = vmatpush.bf16.msrb.mxu3 %v8271_v40  ;;  %v1295_v34 = vshrl.u32 %v9092_v14, 16  ;;  %v1879_v6 = vunpack.c.h.b16 %v940_v60  ;;  %v1920_v63 = vunpack.c.l.b16 %v940_v60  ;;  %v9158_v10 = vsel %vm1281_vm2, %v1408_v31, %v1412_v33 }
  0x45   : > { %1703 = vmatpush.bf16.msrb.mxu1 %v8255_v61  ;;  %2379 = vmatpush.bf16.msrb.mxu0 %v8279_v62  ;;  %v941_v40 = vpack.c.bf16 %v648_v27, %v647_v58  ;;  %v9137_v55 = vpack.c.b16 %v1246_v42, %v1246_v42  ;;  %v1395_v3 = vpack.c.b16 %v1387_v43, %v1387_v43  ;;  %v1419_v61 = vrot.slane %v1417_v36, 1  ;;  %v8315_v36 = vld [vmem:[%s11684_s4 + $0x1f0] sm:$0xff] }
  0x46   : > { %v555_v11 = vmul.f32 %v8841_v52, %v453_v46  ;;  %v556_v14 = vmul.f32 %v8847_v54, %v454_v59  ;;  %v9163_v44 = vor.u32 %v1299_v56, %v1295_v34  ;;  %v558_v53 = vmul.f32 %v8847_v54, %v456_v20  ;;  %v359_v27 = vld [vmem:[%s8862_s16 + $0xd0] sm:$0xff]  ;;  %v8290_v56 = vld [vmem:[%s11684_s4 + $0x128] sm:$0xff] }
  0x47   : > { %11881 = vst [vmem:[#allocation10_spill] sm:$0xff] %v9137_v55  ;;  %v1880_v62 = vunpack.c.h.b16 %v941_v40  ;;  %v1921_v4 = vunpack.c.l.b16 %v941_v40  ;;  %v1422_v31 = vshll.u32 %v1395_v3, 16  ;;  %v457_v58 = vsub.f32 %v355_v28, %v8830_v45 }
  0x48   : > { %1753 = vmatpush.bf16.msrb.mxu2 %v8262_v7  ;;  %1802 = vmatpush.bf16.msrb.mxu3 %v8270_v9  ;;  %v8307_v7 = vld [vmem:[%s11684_s4 + $0x1b0] sm:$0xff]  ;;  %v455_v9 = vsub.f32 %v353_v38, %v8830_v45  ;;  %v651_v15 = vmax.f32 %v555_v11, 0.0  ;;  %v652_v42 = vmax.f32 %v556_v14, 0.0  ;;  %v654_v32 = vmax.f32 %v558_v53, 0.0  ;;  %v8298_v38 = vld [vmem:[%s11684_s4 + $0x168] sm:$0xff] }
  0x49   : > { %1704 = vmatpush.bf16.msrb.mxu1 %v8254_v5  ;;  %2380 = vmatpush.bf16.msrb.mxu0 %v8278_v24  ;;  %v1302_v5 = vshll.u32 %v9137_v55, 16  ;;  %v9166_v22 = vpack.c.b16 %v1921_v4, %v1920_v63  ;;  %v9171_v24 = vor.u32 %v1419_v61, %v1415_v57  ;;  %v459_v29 = vsub.f32 %v357_v19, %v8830_v45  ;;  %v8314_v57 = vld [vmem:[%s11684_s4 + $0x1e8] sm:$0xff] }
  0x4a   : > { %v557_v17 = vmul.f32 %v8841_v52, %v455_v9  ;;  %v847_v33 = vmul.f32 %v8870_v13, %v651_v15  ;;  %v848_v34 = vmul.f32 %v8870_v13, %v652_v42  ;;  %v559_v40 = vmul.f32 %v8841_v52, %v457_v58  ;;  %v363_v15 = vld [vmem:[%s8862_s16 + $0xf0] sm:$0xff]  ;;  %v365_v42 = vld [vmem:[%s8862_s16 + $0x100] sm:$0xff] }
  0x4b   : > { %v1304_v30 = vrot.slane %v1302_v5, 1  ;;  %v1424_v46 = vrot.slane %v1422_v31, 1  ;;  %v561_v3 = vmul.f32 %v8841_v52, %v459_v29 }
  0x4c   : > { %1754 = vmatpush.bf16.msrb.mxu2 %v8261_v35  ;;  %1803 = vmatpush.bf16.msrb.mxu3 %v8269_v21  ;;  %v358_v35 = vld [vmem:[%s8862_s16 + $0xc8] sm:$0xff]  ;;  %v9181_v21 = vpack.c.b16 %v1880_v62, %v1879_v6  ;;  %v653_v43 = vmax.f32 %v557_v17, 0.0  ;;  %v943_v60 = vpack.c.bf16 %v848_v34, %v847_v33  ;;  %v465_v34 = vsub.f32 %v363_v15, %v8830_v45 }
  0x4d   : > { %1705 = vmatpush.bf16.msrb.mxu1 %v8253_v37  ;;  %2381 = vmatpush.bf16.msrb.mxu0 %v8277_v48  ;;  %v461_v48 = vsub.f32 %v359_v27, %v8830_v45  ;;  %v657_v14 = vmax.f32 %v561_v3, 0.0  ;;  %v9219_v5 = vsel %vm1281_vm2, %v9163_v44, %v1304_v30  ;;  %v366_v30 = vld [vmem:[%s8862_s16 + $0x108] sm:$0xff] }
  0x4e   : > { %11882 = vst [vmem:[#allocation11_spill] sm:$0xff] %v9181_v21  ;;  %v944_v59 = vpack.c.bf16 %v654_v32, %v653_v43  ;;  %v1205_v63 = vunpack.c.h.b16 %v943_v60  ;;  %v9230_v43 = vsel %vm1281_vm2, %v9171_v24, %v1424_v46  ;;  %v468_v3 = vsub.f32 %v366_v30, %v8839_v51 }
  0x4f   : > { %1755 = vmatmul.bf16.vlgmr.msrb.gmra.mxu2 %v9155_v8  ;;  %1804 = vmatmul.bf16.vlgmr.msrb.gmra.mxu3 %v9158_v10  ;;  %v563_v9 = vmul.f32 %v8841_v52, %v461_v48  ;;  %11883 = vst [vmem:[#allocation12_spill] sm:$0xff] %v9219_v5 }
  0x50   : > { %2472 = vmatpush.bf16.msra.mxu2 %v8300_v49  ;;  %2770 = vmatpush.bf16.msra.mxu3 %v8308_v50  ;;  %v458_v49 = vsub.f32 %v356_v18, %v8839_v51  ;;  %v360_v50 = vld [vmem:[%s8862_s16 + $0xd8] sm:$0xff]  ;;  %v1206_v61 = vunpack.c.h.b16 %v944_v59  ;;  %v1248_v62 = vunpack.c.l.b16 %v944_v59  ;;  %11885 = vst [vmem:[#allocation14_spill] sm:$0xff] %v9230_v43 }
  0x51   : > { %2423 = vmatpush.bf16.msra.mxu1 %v8292_v0  ;;  %2819 = vmatpush.bf16.msra.mxu0 %v8316_v47  ;;  %v655_v0 = vmax.f32 %v559_v40, 0.0  ;;  %v462_v47 = vsub.f32 %v360_v50, %v8839_v51  ;;  %v659_v19 = vmax.f32 %v563_v9, 0.0 }
  0x52   : > { %1706 = vmatmul.bf16.vlgmr.msrb.gmra.mxu1 %v8981_v41  ;;  %2382 = vmatmul.bf16.vlgmr.msrb.gmra.mxu0 %v9106_v25  ;;  %v460_v41 = vsub.f32 %v358_v35, %v8839_v51  ;;  %v560_v37 = vmul.f32 %v8847_v54, %v458_v49  ;;  %v9221_v17 = vpack.c.b16 %v1206_v61, %v1205_v63  ;;  %v364_v35 = vld [vmem:[%s8862_s16 + $0xf8] sm:$0xff] }
  0x53   : > { %v564_v11 = vmul.f32 %v8847_v54, %v462_v47  ;;  %v466_v40 = vsub.f32 %v364_v35, %v8839_v51  ;;  %v368_v63 = vld [vmem:[%s8862_s16 + $0x118] sm:$0x3] }
  0x54   : > { %2473 = vmatpush.bf16.msra.mxu2 %v8299_v2  ;;  %2771 = vmatpush.bf16.msra.mxu3 %v8307_v7  ;;  %v656_v4 = vmax.f32 %v560_v37, 0.0  ;;  %v562_v6 = vmul.f32 %v8847_v54, %v460_v41  ;;  %v1247_v2 = vunpack.c.l.b16 %v943_v60  ;;  %v851_v7 = vmul.f32 %v8900_v1, %v655_v0  ;;  %11884 = vst [vmem:[#allocation13_spill] sm:$0xff] %v9221_v17 }
  0x55   : > { %2424 = vmatpush.bf16.msra.mxu1 %v8291_v26  ;;  %2820 = vmatpush.bf16.msra.mxu0 %v8315_v36  ;;  %v660_v26 = vmax.f32 %v564_v11, 0.0  ;;  %v853_v36 = vmul.f32 %v8870_v13, %v657_v14  ;;  %v1429_v27 = vshll.u32 %v9221_v17, 16  ;;  %v467_v41 = vsub.f32 %v365_v42, %v8830_v45  ;;  %v370_v11 = vld [vmem:[%s8862_s16 + $0x128] sm:$0xff] }
  0x56   : > { %v852_v20 = vmul.f32 %v8900_v1, %v656_v4  ;;  %v658_v28 = vmax.f32 %v562_v6, 0.0  ;;  %v1269_v18 = vpack.c.b16 %v1248_v62, %v1247_v2  ;;  %v567_v62 = vmul.f32 %v8841_v52, %v465_v34 }
  0x57   : > { %v947_v50 = vpack.c.bf16 %v660_v26, %v659_v19  ;;  %v1431_v46 = vrot.slane %v1429_v27, 1  ;;  %v568_v4 = vmul.f32 %v8847_v54, %v466_v40  ;;  %v569_v6 = vmul.f32 %v8841_v52, %v467_v41  ;;  %v8297_v26 = vld [vmem:[%s11684_s4 + $0x160] sm:$0xff] }
  0x58   : > { %2474 = vmatpush.bf16.msra.mxu2 %v8298_v38  ;;  %2772 = vmatpush.bf16.msra.mxu3 %v8306_v39  ;;  %v945_v31 = vpack.c.bf16 %v852_v20, %v851_v7  ;;  %v854_v53 = vmul.f32 %v8870_v13, %v658_v28  ;;  %v1309_v44 = vshll.u32 %v1269_v18, 16  ;;  %v1307_v58 = vshrl.u32 %v1269_v18, 16  ;;  %v369_v20 = vld [vmem:[%s8862_s16 + $0x120] sm:$0xff] }
  0x59   : > { %2425 = vmatpush.bf16.msra.mxu1 %v8290_v56  ;;  %2821 = vmatpush.bf16.msra.mxu0 %v8314_v57  ;;  %v1427_v39 = vshrl.u32 %v9221_v17, 16  ;;  %v1882_v37 = vunpack.c.h.b16 %v947_v50  ;;  %v1924_v56 = vunpack.c.l.b16 %v947_v50  ;;  %v367_v57 = vld [vmem:[%s8862_s16 + $0x110] sm:$0x3]  ;;  %v570_v7 = vmul.f32 %v8847_v54, %v468_v3  ;;  %v8313_v27 = vld [vmem:[%s11684_s4 + $0x1e0] sm:$0xff] }
  0x5a   : > { %v1249_v32 = vunpack.c.l.b16 %v945_v31  ;;  %v1388_v33 = vunpack.c.h.b16 %v945_v31  ;;  %v946_v49 = vpack.c.bf16 %v854_v53, %v853_v36  ;;  %v1311_v29 = vrot.slane %v1309_v44, 1  ;;  %v371_v31 = vld [vmem:[%s8862_s16 + $0x130] sm:$0xff]  ;;  %v8305_v36 = vld [vmem:[%s11684_s4 + $0x1a0] sm:$0xff]  ;;  %v372_v44 = vld [vmem:[%s8862_s16 + $0x138] sm:$0xff] }
  0x5b   : > { %v1432_v2 = vor.u32 %v1431_v46, %v1427_v39  ;;  %v469_v9 = vsub.f32 %v367_v57, %v8830_v45  ;;  %v663_v28 = vmax.f32 %v567_v62, 0.0  ;;  %v664_v18 = vmax.f32 %v568_v4, 0.0 }
  0x5c   : > { %v9237_v38 = vpack.c.b16 %v1249_v32, %v1249_v32  ;;  %v1396_v24 = vpack.c.b16 %v1388_v33, %v1388_v33  ;;  %v1881_v59 = vunpack.c.h.b16 %v946_v49  ;;  %v1923_v48 = vunpack.c.l.b16 %v946_v49  ;;  %2475 = vmatpush.bf16.msra.mxu2 %v8297_v26  ;;  %2773 = vmatpush.bf16.msra.mxu3 %v8305_v36  ;;  %v375_v26 = vld [vmem:[%s8862_s16 + $0x150] sm:$0xff]  ;;  %v376_v36 = vld [vmem:[%s8862_s16 + $0x158] sm:$0xff] }
  0x5d   : > { %v1312_v60 = vor.u32 %v1311_v29, %v1307_v58  ;;  %v665_v19 = vmax.f32 %v569_v6, 0.0  ;;  %v666_v35 = vmax.f32 %v570_v7, 0.0  ;;  %v470_v42 = vsub.f32 %v368_v63, %v8839_v51  ;;  %v8289_v58 = vld [vmem:[%s11684_s4 + $0x120] sm:$0xff]  ;;  %2822 = vmatpush.bf16.msra.mxu0 %v8313_v27 }
  0x5e   : > { %11886 = vst [vmem:[#allocation15_spill] sm:$0xff] %v9237_v38  ;;  %v1314_v0 = vshll.u32 %v9237_v38, 16  ;;  %v1434_v47 = vshll.u32 %v1396_v24, 16  ;;  %v9243_v61 = vpack.c.b16 %v1924_v56, %v1923_v48  ;;  %v9257_v14 = vpack.c.b16 %v1882_v37, %v1881_v59  ;;  %2426 = vmatpush.bf16.msra.mxu1 %v8289_v58 }
  0x5f   : > { %1760 = vmatmul.bf16.gmra.mxu2 %v9219_v5  ;;  %1809 = vmatmul.bf16.gmra.mxu3 %v9230_v43  ;;  %v859_v32 = vmul.f32 %v8870_v13, %v663_v28  ;;  %v860_v33 = vmul.f32 %v8870_v13, %v664_v18  ;;  %v571_v49 = vmul.f32 %v8841_v52, %v469_v9 }
  0x60   : > { %11887 = vst [vmem:[#allocation16_spill] sm:$0xff] %v9257_v14  ;;  %v1316_v53 = vrot.slane %v1314_v0, 1  ;;  %v1436_v15 = vrot.slane %v1434_v47, 1  ;;  %v471_v50 = vsub.f32 %v369_v20, %v8830_v45  ;;  %v950_v29 = vpack.c.bf16 %v666_v35, %v665_v19 }
  0x61   : > { %v572_v30 = vmul.f32 %v8847_v54, %v470_v42  ;;  %v472_v34 = vsub.f32 %v370_v11, %v8839_v51  ;;  %v473_v40 = vsub.f32 %v371_v31, %v8830_v45  ;;  %v949_v41 = vpack.c.bf16 %v860_v33, %v859_v32 }
  0x62   : > { %1711 = vmatmul.bf16.gmra.mxu1 %v9090_v12  ;;  %2387 = vmatmul.bf16.gmra.mxu0 %v9181_v21  ;;  %v667_v24 = vmax.f32 %v571_v49, 0.0  ;;  %v474_v39 = vsub.f32 %v372_v44, %v8839_v51  ;;  %v573_v46 = vmul.f32 %v8841_v52, %v471_v50  ;;  %v1208_v59 = vunpack.c.h.b16 %v950_v29 }
  0x63   : > { %v1251_v37 = vunpack.c.l.b16 %v950_v29  ;;  %v668_v48 = vmax.f32 %v572_v30, 0.0  ;;  %v574_v56 = vmul.f32 %v8847_v54, %v472_v34  ;;  %v1207_v57 = vunpack.c.h.b16 %v949_v41  ;;  %v378_v29 = vld [vmem:[%s8862_s16 + $0x168] sm:$0xff] }
  0x64   : > { %v1250_v0 = vunpack.c.l.b16 %v949_v41  ;;  %v863_v47 = vmul.f32 %v8900_v1, %v667_v24  ;;  %v575_v3 = vmul.f32 %v8841_v52, %v473_v40  ;;  %v576_v4 = vmul.f32 %v8847_v54, %v474_v39 }
  0x65   : > { %v864_v62 = vmul.f32 %v8900_v1, %v668_v48  ;;  %v669_v6 = vmax.f32 %v573_v46, 0.0  ;;  %v670_v63 = vmax.f32 %v574_v56, 0.0  ;;  %v9289_v7 = vsel %vm1281_vm2, %v1312_v60, %v1316_v53  ;;  %v377_v53 = vld [vmem:[%s8862_s16 + $0x160] sm:$0xff] }
  0x66   : > { %v9291_v9 = vpack.c.b16 %v1208_v59, %v1207_v57  ;;  %v1271_v20 = vpack.c.b16 %v1251_v37, %v1250_v0  ;;  %v671_v11 = vmax.f32 %v575_v3, 0.0  ;;  %v672_v18 = vmax.f32 %v576_v4, 0.0  ;;  %v379_v0 = vld [vmem:[%s8862_s16 + $0x170] sm:$0x3]  ;;  %v8296_v4 = vld [vmem:[%s11684_s4 + $0x158] sm:$0xff] }
  0x67   : > { %v951_v28 = vpack.c.bf16 %v864_v62, %v863_v47  ;;  %v865_v19 = vmul.f32 %v8870_v13, %v669_v6  ;;  %v866_v31 = vmul.f32 %v8870_v13, %v670_v63  ;;  %v9298_v35 = vsel %vm1281_vm2, %v1432_v2, %v1436_v15  ;;  %v8304_v6 = vld [vmem:[%s11684_s4 + $0x198] sm:$0xff]  ;;  %2476 = vmatpush.bf16.msra.mxu2 %v8296_v4 }
  0x68   : > { %11888 = vst [vmem:[#allocation17_spill] sm:$0xff] %v9291_v9  ;;  %v1321_v42 = vshll.u32 %v1271_v20, 16  ;;  %v1319_v44 = vshrl.u32 %v1271_v20, 16  ;;  %v1441_v60 = vshll.u32 %v9291_v9, 16  ;;  %v953_v33 = vpack.c.bf16 %v672_v18, %v671_v11  ;;  %v8288_v63 = vld [vmem:[%s11684_s4 + $0x118] sm:$0xff]  ;;  %2774 = vmatpush.bf16.msra.mxu3 %v8304_v6 }
  0x69   : > { %11889 = vst [vmem:[#allocation18_spill] sm:$0xff] %v9298_v35  ;;  %v1252_v58 = vunpack.c.l.b16 %v951_v28  ;;  %v1389_v27 = vunpack.c.h.b16 %v951_v28  ;;  %v952_v32 = vpack.c.bf16 %v866_v31, %v865_v19  ;;  %v1439_v50 = vshrl.u32 %v9291_v9, 16  ;;  %v380_v19 = vld [vmem:[%s8862_s16 + $0x178] sm:$0x3]  ;;  %2427 = vmatpush.bf16.msra.mxu1 %v8288_v63 }
  0x6a   : > { %v1323_v49 = vrot.slane %v1321_v42, 1  ;;  %v477_v30 = vsub.f32 %v375_v26, %v8830_v45  ;;  %v478_v34 = vsub.f32 %v376_v36, %v8839_v51  ;;  %v1443_v40 = vrot.slane %v1441_v60, 1  ;;  %v8312_v31 = vld [vmem:[%s11684_s4 + $0x1d8] sm:$0xff]  ;;  %v381_v60 = vld [vmem:[%s8862_s16 + $0x180] sm:$0xff] }
  0x6b   : > { %v9306_v2 = vpack.c.b16 %v1252_v58, %v1252_v58  ;;  %v1397_v15 = vpack.c.b16 %v1389_v27, %v1389_v27  ;;  %v479_v41 = vsub.f32 %v377_v53, %v8830_v45  ;;  %v1883_v24 = vunpack.c.h.b16 %v952_v32  ;;  %v382_v53 = vld [vmem:[%s8862_s16 + $0x188] sm:$0xff]  ;;  %v383_v58 = vld [vmem:[%s8862_s16 + $0x190] sm:$0xff]  ;;  %2823 = vmatpush.bf16.msra.mxu0 %v8312_v31 }
  0x6c   : > { %v1884_v39 = vunpack.c.h.b16 %v953_v33  ;;  %v1926_v46 = vunpack.c.l.b16 %v952_v32  ;;  %v1927_v59 = vunpack.c.l.b16 %v953_v33  ;;  %v1324_v37 = vor.u32 %v1323_v49, %v1319_v44  ;;  %v387_v31 = vld [vmem:[%s8862_s16 + $0x1b0] sm:$0xff] }
  0x6d   : > { %11890 = vst [vmem:[#allocation19_spill] sm:$0xff] %v9306_v2  ;;  %v1326_v48 = vshll.u32 %v9306_v2, 16  ;;  %v1446_v56 = vshll.u32 %v1397_v15, 16  ;;  %v480_v57 = vsub.f32 %v378_v29, %v8839_v51  ;;  %v579_v3 = vmul.f32 %v8841_v52, %v477_v30 }
  0x6e   : > { %v9316_v47 = vpack.c.b16 %v1927_v59, %v1926_v46  ;;  %v580_v62 = vmul.f32 %v8847_v54, %v478_v34  ;;  %v1444_v11 = vor.u32 %v1443_v40, %v1439_v50  ;;  %v581_v28 = vmul.f32 %v8841_v52, %v479_v41  ;;  %v384_v50 = vld [vmem:[%s8862_s16 + $0x198] sm:$0xff] }
  0x6f   : > { %1765 = vmatmul.bf16.gmra.mxu2 %v9289_v7  ;;  %1814 = vmatmul.bf16.gmra.mxu3 %v9298_v35  ;;  %v1328_v20 = vrot.slane %v1326_v48, 1  ;;  %v582_v18 = vmul.f32 %v8847_v54, %v480_v57  ;;  %v9335_v26 = vpack.c.b16 %v1884_v39, %v1883_v24  ;;  %v675_v36 = vmax.f32 %v579_v3, 0.0  ;;  %v338_v35 = vld [vmem:[%s8862_s16 + $0x28] sm:$0x3] }
  0x70   : > { %v676_v42 = vmax.f32 %v580_v62, 0.0  ;;  %v481_v44 = vsub.f32 %v379_v0, %v8830_v45  ;;  %v1448_v32 = vrot.slane %v1446_v56, 1  ;;  %v677_v33 = vmax.f32 %v581_v28, 0.0 }
  0x71   : > { %11891 = vst [vmem:[#allocation20_spill] sm:$0xff] %v9335_v26  ;;  %v9342_v27 = vsel %vm1281_vm2, %v1324_v37, %v1328_v20  ;;  %v678_v49 = vmax.f32 %v582_v18, 0.0  ;;  %v871_v29 = vmul.f32 %v8870_v13, %v675_v36  ;;  %v482_v34 = vsub.f32 %v380_v19, %v8839_v51 }
  0x72   : > { %1716 = vmatmul.bf16.gmra.mxu1 %v9221_v17  ;;  %2392 = vmatmul.bf16.gmra.mxu0 %v9257_v14  ;;  %v872_v30 = vmul.f32 %v8870_v13, %v676_v42  ;;  %v583_v15 = vmul.f32 %v8841_v52, %v481_v44  ;;  %v483_v41 = vsub.f32 %v381_v60, %v8830_v45 }
  0x73   : > { %v956_v40 = vpack.c.bf16 %v678_v49, %v677_v33  ;;  %v484_v24 = vsub.f32 %v382_v53, %v8839_v51  ;;  %v485_v39 = vsub.f32 %v383_v58, %v8830_v45  ;;  %v584_v59 = vmul.f32 %v8847_v54, %v482_v34 }
  0x74   : > { %v955_v46 = vpack.c.bf16 %v872_v30, %v871_v29  ;;  %v679_v37 = vmax.f32 %v583_v15, 0.0  ;;  %v486_v48 = vsub.f32 %v384_v50, %v8839_v51  ;;  %v585_v0 = vmul.f32 %v8841_v52, %v483_v41  ;;  %v388_v50 = vld [vmem:[%s8862_s16 + $0x1b8] sm:$0xff]  ;;  %v389_v15 = vld [vmem:[%s8862_s16 + $0x1c0] sm:$0xff] }
  0x75   : > { %v1210_v56 = vunpack.c.h.b16 %v956_v40  ;;  %v1254_v57 = vunpack.c.l.b16 %v956_v40  ;;  %v586_v3 = vmul.f32 %v8847_v54, %v484_v24  ;;  %v680_v6 = vmax.f32 %v584_v59, 0.0 }
  0x76   : > { %v1209_v62 = vunpack.c.h.b16 %v955_v46  ;;  %v1253_v4 = vunpack.c.l.b16 %v955_v46  ;;  %v875_v63 = vmul.f32 %v8900_v1, %v679_v37  ;;  %v587_v20 = vmul.f32 %v8841_v52, %v485_v39  ;;  %v390_v37 = vld [vmem:[%s8862_s16 + $0x1c8] sm:$0xff] }
  0x77   : > { %v588_v28 = vmul.f32 %v8847_v54, %v486_v48  ;;  %v681_v18 = vmax.f32 %v585_v0, 0.0  ;;  %v682_v19 = vmax.f32 %v586_v3, 0.0  ;;  %v9361_v36 = vsel %vm1281_vm2, %v1444_v11, %v1448_v32 }
  0x78   : > { %11892 = vst [vmem:[#allocation21_spill] sm:$0xff] %v9361_v36  ;;  %v9363_v42 = vpack.c.b16 %v1210_v56, %v1209_v62  ;;  %v1273_v44 = vpack.c.b16 %v1254_v57, %v1253_v4  ;;  %v876_v60 = vmul.f32 %v8900_v1, %v680_v6  ;;  %v683_v53 = vmax.f32 %v587_v20, 0.0  ;;  %v391_v62 = vld [vmem:[%s8862_s16 + $0x1d0] sm:$0x3] }
  0x79   : > { %v684_v58 = vmax.f32 %v588_v28, 0.0  ;;  %v877_v33 = vmul.f32 %v8870_v13, %v681_v18  ;;  %v878_v49 = vmul.f32 %v8870_v13, %v682_v19  ;;  %v489_v11 = vsub.f32 %v387_v31, %v8830_v45  ;;  %v8295_v28 = vld [vmem:[%s11684_s4 + $0x150] sm:$0xff] }
  0x7a   : > { %11893 = vst [vmem:[#allocation22_spill] sm:$0xff] %v9363_v42  ;;  %v1333_v29 = vshll.u32 %v1273_v44, 16  ;;  %v957_v30 = vpack.c.bf16 %v876_v60, %v875_v63  ;;  %v1331_v34 = vshrl.u32 %v1273_v44, 16  ;;  %v1451_v32 = vshrl.u32 %v9363_v42, 16  ;;  %v8303_v18 = vld [vmem:[%s11684_s4 + $0x190] sm:$0xff]  ;;  %2477 = vmatpush.bf16.msra.mxu2 %v8295_v28 }
  0x7b   : > { %v1453_v40 = vshll.u32 %v9363_v42, 16  ;;  %v958_v41 = vpack.c.bf16 %v878_v49, %v877_v33  ;;  %v959_v24 = vpack.c.bf16 %v684_v58, %v683_v53  ;;  %v490_v48 = vsub.f32 %v388_v50, %v8839_v51  ;;  %v8287_v19 = vld [vmem:[%s11684_s4 + $0x110] sm:$0xff]  ;;  %2775 = vmatpush.bf16.msra.mxu3 %v8303_v18 }
  0x7c   : > { %v1255_v39 = vunpack.c.l.b16 %v957_v30  ;;  %v1335_v46 = vrot.slane %v1333_v29, 1  ;;  %v1390_v59 = vunpack.c.h.b16 %v957_v30  ;;  %v491_v3 = vsub.f32 %v389_v15, %v8830_v45  ;;  %v8311_v58 = vld [vmem:[%s11684_s4 + $0x1d0] sm:$0xff]  ;;  %v392_v30 = vld [vmem:[%s8862_s16 + $0x1d8] sm:$0x3]  ;;  %2428 = vmatpush.bf16.msra.mxu1 %v8287_v19 }
  0x7d   : > { %v1455_v56 = vrot.slane %v1453_v40, 1  ;;  %v1885_v57 = vunpack.c.h.b16 %v958_v41  ;;  %v1929_v0 = vunpack.c.l.b16 %v958_v41  ;;  %v1886_v63 = vunpack.c.h.b16 %v959_v24  ;;  %2824 = vmatpush.bf16.msra.mxu0 %v8311_v58 }
  0x7e   : > { %v9381_v4 = vpack.c.b16 %v1255_v39, %v1255_v39  ;;  %v1398_v6 = vpack.c.b16 %v1390_v59, %v1390_v59  ;;  %v1930_v20 = vunpack.c.l.b16 %v959_v24  ;;  %v1336_v31 = vor.u32 %v1335_v46, %v1331_v34  ;;  %v393_v46 = vld [vmem:[%s8862_s16 + $0x1e0] sm:$0xff]  ;;  %v394_v59 = vld [vmem:[%s8862_s16 + $0x1e8] sm:$0xff] }
  0x7f   : > { %1770 = vmatmul.bf16.gmra.mxu2 %v9342_v27  ;;  %1819 = vmatmul.bf16.gmra.mxu3 %v9361_v36  ;;  %v1456_v44 = vor.u32 %v1455_v56, %v1451_v32  ;;  %v492_v60 = vsub.f32 %v390_v37, %v8839_v51  ;;  %v591_v53 = vmul.f32 %v8841_v52, %v489_v11 }
  0x80   : > { %11894 = vst [vmem:[#allocation23_spill] sm:$0xff] %v9381_v4  ;;  %v1338_v33 = vshll.u32 %v9381_v4, 16  ;;  %v1458_v49 = vshll.u32 %v1398_v6, 16  ;;  %v9398_v50 = vpack.c.b16 %v1930_v20, %v1929_v0  ;;  %v592_v29 = vmul.f32 %v8847_v54, %v490_v48  ;;  %v396_v6 = vld [vmem:[%s8862_s16 + $0x1f8] sm:$0xff] }
  0x81   : > { %v593_v34 = vmul.f32 %v8841_v52, %v491_v3  ;;  %v594_v15 = vmul.f32 %v8847_v54, %v492_v60  ;;  %v687_v11 = vmax.f32 %v591_v53, 0.0  ;;  %v493_v32 = vsub.f32 %v391_v62, %v8830_v45  ;;  %v395_v3 = vld [vmem:[%s8862_s16 + $0x1f0] sm:$0xff] }
  0x82   : > { %1721 = vmatmul.bf16.gmra.mxu1 %v9291_v9  ;;  %2397 = vmatmul.bf16.gmra.mxu0 %v9335_v26  ;;  %v1340_v40 = vrot.slane %v1338_v33, 1  ;;  %v1460_v41 = vrot.slane %v1458_v49, 1  ;;  %v9405_v24 = vpack.c.b16 %v1886_v63, %v1885_v57  ;;  %v688_v39 = vmax.f32 %v592_v29, 0.0 }
  0x83   : > { %v689_v37 = vmax.f32 %v593_v34, 0.0  ;;  %v690_v48 = vmax.f32 %v594_v15, 0.0  ;;  %v883_v56 = vmul.f32 %v8870_v13, %v687_v11  ;;  %v494_v0 = vsub.f32 %v392_v30, %v8839_v51  ;;  %v399_v34 = vld [vmem:[%s8862_s16 + $0x210] sm:$0xff] }
  0x84   : > { %11895 = vst [vmem:[#allocation24_spill] sm:$0xff] %v9405_v24  ;;  %v9414_v20 = vsel %vm1281_vm2, %v1336_v31, %v1340_v40  ;;  %v9417_v62 = vsel %vm1281_vm2, %v1456_v44, %v1460_v41  ;;  %v884_v57 = vmul.f32 %v8870_v13, %v688_v39  ;;  %v595_v63 = vmul.f32 %v8841_v52, %v493_v32 }
  0x85   : > { %11896 = vst [vmem:[#allocation25_spill] sm:$0xff] %v9417_v62  ;;  %v962_v28 = vpack.c.bf16 %v690_v48, %v689_v37  ;;  %v596_v18 = vmul.f32 %v8847_v54, %v494_v0  ;;  %v495_v19 = vsub.f32 %v393_v46, %v8830_v45  ;;  %v496_v60 = vsub.f32 %v394_v59, %v8839_v51 }
  0x86   : > { %v961_v53 = vpack.c.bf16 %v884_v57, %v883_v56  ;;  %v691_v58 = vmax.f32 %v595_v63, 0.0  ;;  %v497_v31 = vsub.f32 %v395_v3, %v8830_v45  ;;  %v498_v33 = vsub.f32 %v396_v6, %v8839_v51 }
  0x87   : > { %v1212_v49 = vunpack.c.h.b16 %v962_v28  ;;  %v1257_v44 = vunpack.c.l.b16 %v962_v28  ;;  %v692_v29 = vmax.f32 %v596_v18, 0.0  ;;  %v597_v30 = vmul.f32 %v8841_v52, %v495_v19  ;;  %v400_v28 = vld [vmem:[%s8862_s16 + $0x218] sm:$0xff]  ;;  %v401_v18 = vld [vmem:[%s8862_s16 + $0x220] sm:$0xff] }
  0x88   : > { %v1211_v15 = vunpack.c.h.b16 %v961_v53  ;;  %v1256_v11 = vunpack.c.l.b16 %v961_v53  ;;  %v887_v32 = vmul.f32 %v8900_v1, %v691_v58  ;;  %v598_v40 = vmul.f32 %v8847_v54, %v496_v60 }
  0x89   : > { %v888_v41 = vmul.f32 %v8900_v1, %v692_v29  ;;  %v599_v39 = vmul.f32 %v8841_v52, %v497_v31  ;;  %v600_v46 = vmul.f32 %v8847_v54, %v498_v33  ;;  %v693_v59 = vmax.f32 %v597_v30, 0.0  ;;  %v402_v29 = vld [vmem:[%s8862_s16 + $0x228] sm:$0xff] }
  0x8a   : > { %v9433_v37 = vpack.c.b16 %v1212_v49, %v1211_v15  ;;  %v1275_v48 = vpack.c.b16 %v1257_v44, %v1256_v11  ;;  %v694_v56 = vmax.f32 %v598_v40, 0.0  ;;  %v501_v0 = vsub.f32 %v399_v34, %v8830_v45  ;;  %v8302_v40 = vld [vmem:[%s11684_s4 + $0x188] sm:$0xff] }
  0x8b   : > { %v963_v3 = vpack.c.bf16 %v888_v41, %v887_v32  ;;  %v695_v6 = vmax.f32 %v599_v39, 0.0  ;;  %v696_v57 = vmax.f32 %v600_v46, 0.0  ;;  %v889_v63 = vmul.f32 %v8870_v13, %v693_v59  ;;  %v8294_v32 = vld [vmem:[%s11684_s4 + $0x148] sm:$0xff]  ;;  %2776 = vmatpush.bf16.msra.mxu3 %v8302_v40 }
  0x8c   : > { %11897 = vst [vmem:[#allocation26_spill] sm:$0xff] %v9433_v37  ;;  %v1345_v19 = vshll.u32 %v1275_v48, 16  ;;  %v1343_v60 = vshrl.u32 %v1275_v48, 16  ;;  %v1463_v53 = vshrl.u32 %v9433_v37, 16  ;;  %v1465_v58 = vshll.u32 %v9433_v37, 16  ;;  %2478 = vmatpush.bf16.msra.mxu2 %v8294_v32 }
  0x8d   : > { %v1258_v31 = vunpack.c.l.b16 %v963_v3  ;;  %v1391_v33 = vunpack.c.h.b16 %v963_v3  ;;  %v890_v49 = vmul.f32 %v8870_v13, %v694_v56  ;;  %v965_v44 = vpack.c.bf16 %v696_v57, %v695_v6 }
  0x8e   : > { %v1347_v30 = vrot.slane %v1345_v19, 1  ;;  %v1467_v34 = vrot.slane %v1465_v58, 1  ;;  %v502_v15 = vsub.f32 %v400_v28, %v8839_v51  ;;  %v503_v11 = vsub.f32 %v401_v18, %v8830_v45 }
  0x8f   : > { %1775 = vmatmul.bf16.gmra.mxu2 %v9414_v20  ;;  %1824 = vmatmul.bf16.gmra.mxu3 %v9417_v62  ;;  %v9455_v41 = vpack.c.b16 %v1258_v31, %v1258_v31  ;;  %v1399_v39 = vpack.c.b16 %v1391_v33, %v1391_v33  ;;  %v964_v46 = vpack.c.bf16 %v890_v49, %v889_v63  ;;  %v1888_v59 = vunpack.c.h.b16 %v965_v44  ;;  %v403_v31 = vld [vmem:[%s8862_s16 + $0x230] sm:$0x3]  ;;  %v8286_v33 = vld [vmem:[%s11684_s4 + $0x108] sm:$0xff]  ;;  %v416_v62 = vld [vmem:[%s8862_s16 + $0x298] sm:$0x3] }
  0x90   : > { %v1348_v48 = vor.u32 %v1347_v30, %v1343_v60  ;;  %v1468_v56 = vor.u32 %v1467_v34, %v1463_v53  ;;  %v1933_v3 = vunpack.c.l.b16 %v965_v44  ;;  %v504_v6 = vsub.f32 %v402_v29, %v8839_v51  ;;  %v8310_v49 = vld [vmem:[%s11684_s4 + $0x1c8] sm:$0xff]  ;;  %v404_v30 = vld [vmem:[%s8862_s16 + $0x238] sm:$0x3]  ;;  %v405_v34 = vld [vmem:[%s8862_s16 + $0x240] sm:$0xff]  ;;  %2429 = vmatpush.bf16.msra.mxu1 %v8286_v33 }
  0x91   : > { %11898 = vst [vmem:[#allocation27_spill] sm:$0xff] %v9455_v41  ;;  %v1350_v57 = vshll.u32 %v9455_v41, 16  ;;  %v1470_v28 = vshll.u32 %v1399_v39, 16  ;;  %v1887_v18 = vunpack.c.h.b16 %v964_v46  ;;  %v1932_v19 = vunpack.c.l.b16 %v964_v46  ;;  %v406_v39 = vld [vmem:[%s8862_s16 + $0x248] sm:$0xff]  ;;  %v407_v46 = vld [vmem:[%s8862_s16 + $0x250] sm:$0xff]  ;;  %2825 = vmatpush.bf16.msra.mxu0 %v8310_v49 }
  0x92   : > { %1726 = vmatmul.bf16.gmra.mxu1 %v9363_v42  ;;  %2402 = vmatmul.bf16.gmra.mxu0 %v9405_v24  ;;  %v603_v58 = vmul.f32 %v8841_v52, %v501_v0  ;;  %v604_v63 = vmul.f32 %v8847_v54, %v502_v15  ;;  %v605_v60 = vmul.f32 %v8841_v52, %v503_v11 }
  0x93   : > { %v606_v53 = vmul.f32 %v8847_v54, %v504_v6  ;;  %v1352_v44 = vrot.slane %v1350_v57, 1  ;;  %v1472_v29 = vrot.slane %v1470_v28, 1  ;;  %v9470_v0 = vpack.c.b16 %v1933_v3, %v1932_v19 }
  0x94   : > { %v699_v15 = vmax.f32 %v603_v58, 0.0  ;;  %v700_v11 = vmax.f32 %v604_v63, 0.0  ;;  %v701_v32 = vmax.f32 %v605_v60, 0.0  ;;  %v9482_v57 = vpack.c.b16 %v1888_v59, %v1887_v18  ;;  %v408_v60 = vld [vmem:[%s8862_s16 + $0x258] sm:$0xff] }
  0x95   : > { %v702_v40 = vmax.f32 %v606_v53, 0.0  ;;  %v9477_v6 = vsel %vm1281_vm2, %v1348_v48, %v1352_v44  ;;  %v9480_v41 = vsel %vm1281_vm2, %v1468_v56, %v1472_v29  ;;  %v505_v3 = vsub.f32 %v403_v31, %v8830_v45 }
  0x96   : > { %11899 = vst [vmem:[#allocation28_spill] sm:$0xff] %v9477_v6  ;;  %v895_v28 = vmul.f32 %v8870_v13, %v699_v15  ;;  %v896_v19 = vmul.f32 %v8870_v13, %v700_v11  ;;  %v506_v63 = vsub.f32 %v404_v30, %v8839_v51  ;;  %v507_v48 = vsub.f32 %v405_v34, %v8830_v45 }
  0x97   : > { %11900 = vst [vmem:[#allocation29_spill] sm:$0xff] %v9480_v41  ;;  %v968_v58 = vpack.c.bf16 %v702_v40, %v701_v32  ;;  %v607_v53 = vmul.f32 %v8841_v52, %v505_v3  ;;  %v508_v33 = vsub.f32 %v406_v39, %v8839_v51  ;;  %v509_v56 = vsub.f32 %v407_v46, %v8830_v45 }
  0x98   : > { %11901 = vst [vmem:[#allocation30_spill] sm:$0xff] %v9482_v57  ;;  %v967_v59 = vpack.c.bf16 %v896_v19, %v895_v28  ;;  %v608_v49 = vmul.f32 %v8847_v54, %v506_v63  ;;  %v510_v29 = vsub.f32 %v408_v60, %v8839_v51  ;;  %v609_v30 = vmul.f32 %v8841_v52, %v507_v48  ;;  %v411_v19 = vld [vmem:[%s8862_s16 + $0x270] sm:$0xff] }
  0x99   : > { %v1214_v18 = vunpack.c.h.b16 %v968_v58  ;;  %v1260_v31 = vunpack.c.l.b16 %v968_v58  ;;  %v703_v44 = vmax.f32 %v607_v53, 0.0  ;;  %v610_v15 = vmul.f32 %v8847_v54, %v508_v33 }
  0x9a   : > { %v1213_v11 = vunpack.c.h.b16 %v967_v59  ;;  %v1259_v32 = vunpack.c.l.b16 %v967_v59  ;;  %v704_v34 = vmax.f32 %v608_v49, 0.0  ;;  %v611_v40 = vmul.f32 %v8841_v52, %v509_v56  ;;  %v412_v59 = vld [vmem:[%s8862_s16 + $0x278] sm:$0xff]  ;;  %v413_v49 = vld [vmem:[%s8862_s16 + $0x280] sm:$0xff] }
  0x9b   : > { %v899_v39 = vmul.f32 %v8900_v1, %v703_v44  ;;  %v612_v46 = vmul.f32 %v8847_v54, %v510_v29  ;;  %v705_v3 = vmax.f32 %v609_v30, 0.0  ;;  %v706_v28 = vmax.f32 %v610_v15, 0.0  ;;  %v8293_v29 = vld [vmem:[%s11684_s4 + $0x140] sm:$0xff] }
  0x9c   : > { %v9501_v58 = vpack.c.b16 %v1214_v18, %v1213_v11  ;;  %v1277_v63 = vpack.c.b16 %v1260_v31, %v1259_v32  ;;  %v900_v60 = vmul.f32 %v8900_v1, %v704_v34  ;;  %v707_v53 = vmax.f32 %v611_v40, 0.0  ;;  %v8301_v30 = vld [vmem:[%s11684_s4 + $0x180] sm:$0xff]  ;;  %2479 = vmatpush.bf16.msra.mxu2 %v8293_v29 }
  0x9d   : > { %v708_v48 = vmax.f32 %v612_v46, 0.0  ;;  %v901_v33 = vmul.f32 %v8870_v13, %v705_v3  ;;  %v902_v56 = vmul.f32 %v8870_v13, %v706_v28  ;;  %v513_v44 = vsub.f32 %v411_v19, %v8830_v45  ;;  %v414_v3 = vld [vmem:[%s8862_s16 + $0x288] sm:$0xff]  ;;  %2777 = vmatpush.bf16.msra.mxu3 %v8301_v30 }
  0x9e   : > { %11902 = vst [vmem:[#allocation31_spill] sm:$0xff] %v9501_v58  ;;  %v1357_v18 = vshll.u32 %v1277_v63, 16  ;;  %v969_v31 = vpack.c.bf16 %v900_v60, %v899_v39  ;;  %v1355_v15 = vshrl.u32 %v1277_v63, 16  ;;  %v1477_v11 = vshll.u32 %v9501_v58, 16 }
  0x9f   : > { %1780 = vmatmul.bf16.gmra.mxu2 %v9477_v6  ;;  %1829 = vmatmul.bf16.gmra.mxu3 %v9480_v41  ;;  %v970_v32 = vpack.c.bf16 %v902_v56, %v901_v33  ;;  %v971_v34 = vpack.c.bf16 %v708_v48, %v707_v53  ;;  %v514_v28 = vsub.f32 %v412_v59, %v8839_v51  ;;  %v1475_v19 = vshrl.u32 %v9501_v58, 16  ;;  %v415_v56 = vld [vmem:[%s8862_s16 + $0x290] sm:$0x3]  ;;  %v8309_v59 = vld [vmem:[%s11684_s4 + $0x1c0] sm:$0xff] }
  0xa0   : > { %v1261_v40 = vunpack.c.l.b16 %v969_v31  ;;  %v1359_v46 = vrot.slane %v1357_v18, 1  ;;  %v1392_v39 = vunpack.c.h.b16 %v969_v31  ;;  %v1479_v60 = vrot.slane %v1477_v11, 1  ;;  %v8285_v18 = vld [vmem:[%s11684_s4 + $0x100] sm:$0xff]  ;;  %2826 = vmatpush.bf16.msra.mxu0 %v8309_v59 }
  0xa1   : > { %v1935_v41 = vunpack.c.l.b16 %v970_v32  ;;  %v515_v4 = vsub.f32 %v413_v49, %v8830_v45  ;;  %v1889_v53 = vunpack.c.h.b16 %v970_v32  ;;  %v1936_v48 = vunpack.c.l.b16 %v971_v34  ;;  %2430 = vmatpush.bf16.msra.mxu1 %v8285_v18 }
  0xa2   : > { %1731 = vmatmul.bf16.gmra.mxu1 %v9433_v37  ;;  %2407 = vmatmul.bf16.gmra.mxu0 %v9482_v57  ;;  %v9524_v63 = vpack.c.b16 %v1261_v40, %v1261_v40  ;;  %v1400_v33 = vpack.c.b16 %v1392_v39, %v1392_v39  ;;  %v1360_v31 = vor.u32 %v1359_v46, %v1355_v15  ;;  %v1890_v29 = vunpack.c.h.b16 %v971_v34 }
  0xa3   : > { %v516_v30 = vsub.f32 %v414_v3, %v8839_v51  ;;  %v615_v49 = vmul.f32 %v8841_v52, %v513_v44  ;;  %v9536_v40 = vpack.c.b16 %v1936_v48, %v1935_v41  ;;  %v616_v39 = vmul.f32 %v8847_v54, %v514_v28  ;;  %v417_v41 = vld [vmem:[%s8862_s16 + $0x2a0] sm:$0xff]  ;;  %v418_v48 = vld [vmem:[%s8862_s16 + $0x2a8] sm:$0xff] }
  0xa4   : > { %11903 = vst [vmem:[#allocation32_spill] sm:$0xff] %v9524_v63  ;;  %v1362_v11 = vshll.u32 %v9524_v63, 16  ;;  %v1482_v32 = vshll.u32 %v1400_v33, 16  ;;  %v617_v2 = vmul.f32 %v8841_v52, %v515_v4  ;;  %v517_v44 = vsub.f32 %v415_v56, %v8830_v45  ;;  %v419_v56 = vld [vmem:[%s8862_s16 + $0x2b0] sm:$0xff] }
  0xa5   : > { %v618_v15 = vmul.f32 %v8847_v54, %v516_v30  ;;  %v711_v34 = vmax.f32 %v615_v49, 0.0  ;;  %v1480_v3 = vor.u32 %v1479_v60, %v1475_v19  ;;  %v712_v33 = vmax.f32 %v616_v39, 0.0 }
  0xa6   : > { %v1364_v46 = vrot.slane %v1362_v11, 1  ;;  %v1484_v63 = vrot.slane %v1482_v32, 1  ;;  %v713_v36 = vmax.f32 %v617_v2, 0.0  ;;  %v518_v59 = vsub.f32 %v416_v62, %v8839_v51  ;;  %v420_v2 = vld [vmem:[%s8862_s16 + $0x2b8] sm:$0xff] }
  0xa7   : > { %v714_v28 = vmax.f32 %v618_v15, 0.0  ;;  %v907_v18 = vmul.f32 %v8870_v13, %v711_v34  ;;  %v9547_v4 = vpack.c.b16 %v1890_v29, %v1889_v53  ;;  %v908_v30 = vmul.f32 %v8870_v13, %v712_v33 }
  0xa8   : > { %v619_v49 = vmul.f32 %v8841_v52, %v517_v44  ;;  %v620_v32 = vmul.f32 %v8847_v54, %v518_v59  ;;  %v519_v39 = vsub.f32 %v417_v41, %v8830_v45  ;;  %v520_v15 = vsub.f32 %v418_v48, %v8839_v51 }
  0xa9   : > { %11904 = vst [vmem:[#allocation33_spill] sm:$0xff] %v9547_v4  ;;  %v974_v60 = vpack.c.bf16 %v714_v28, %v713_v36  ;;  %v9561_v62 = vsel %vm1281_vm2, %v1360_v31, %v1364_v46  ;;  %v9564_v53 = vsel %vm1281_vm2, %v1480_v3, %v1484_v63  ;;  %v973_v29 = vpack.c.bf16 %v908_v30, %v907_v18  ;;  %v9572_v31 = vld [vmem:[%s11686_s6] ss:$0 sm:$0xff]  ;;  %v8332_v30 = vld [vmem:[%s11684_s4 + $0x38] sm:$0xff] }
  0xaa   : > { %11907 = vst [vmem:[#allocation36_spill] sm:$0xff] %v9561_v62  ;;  %v715_v34 = vmax.f32 %v619_v49, 0.0  ;;  %v716_v38 = vmax.f32 %v620_v32, 0.0  ;;  %v521_v36 = vsub.f32 %v419_v56, %v8830_v45  ;;  %v522_v41 = vsub.f32 %v420_v2, %v8839_v51  ;;  %v8340_v49 = vld [vmem:[%s11684_s4 + $0x78] sm:$0xff]  ;;  %3261 = vmatpush.bf16.msrb.mxu2 %v8332_v30  ;;  %v337_v30 = vld [vmem:[%s8862_s16 + $0x20] sm:$0x3] }
  0xab   : > { %v9552_v11 = vpop.f32.mrf.mxu0  ;;  %v9554_v19 = vpop.f32.mrf.mxu1  ;;  %11908 = vst [vmem:[#allocation37_spill] sm:$0xff] %v9564_v53  ;;  %v1216_v44 = vunpack.c.h.b16 %v974_v60  ;;  %v1263_v33 = vunpack.c.l.b16 %v974_v60  ;;  %v1215_v28 = vunpack.c.h.b16 %v973_v29  ;;  %v1262_v59 = vunpack.c.l.b16 %v973_v29  ;;  %3310 = vmatpush.bf16.msrb.mxu3 %v8340_v49 }
  0xac   : > { %11905 = vst [vmem:[#allocation34_spill] sm:$0xff] %v9552_v11  ;;  %v912_v63 = vmul.f32 %v8900_v1, %v716_v38  ;;  %v621_v46 = vmul.f32 %v8841_v52, %v519_v39  ;;  %v622_v3 = vmul.f32 %v8847_v54, %v520_v15  ;;  %v623_v56 = vmul.f32 %v8841_v52, %v521_v36 }
  0xad   : > { %11906 = vst [vmem:[#allocation35_spill] sm:$0xff] %v9554_v19  ;;  %v911_v19 = vmul.f32 %v8900_v1, %v715_v34  ;;  %v9581_v48 = vpack.c.b16 %v1216_v44, %v1215_v28  ;;  %v1279_v18 = vpack.c.b16 %v1263_v33, %v1262_v59  ;;  %v624_v60 = vmul.f32 %v8847_v54, %v522_v41 }
  0xae   : > { %v717_v29 = vmax.f32 %v621_v46, 0.0  ;;  %v718_v34 = vmax.f32 %v622_v3, 0.0 }
  0xaf   : > { %1785 = vmatmul.bf16.gmra.mxu2 %v9561_v62  ;;  %1834 = vmatmul.bf16.gmra.mxu3 %v9564_v53  ;;  %11909 = vst [vmem:[#allocation38_spill] sm:$0xff] %v9581_v48  ;;  %v975_v38 = vpack.c.bf16 %v912_v63, %v911_v19  ;;  %v1369_v39 = vshll.u32 %v1279_v18, 16  ;;  %v1489_v15 = vshll.u32 %v9581_v48, 16  ;;  %v1367_v41 = vshrl.u32 %v1279_v18, 16 }
  0xb0   : > { %v1487_v46 = vshrl.u32 %v9581_v48, 16  ;;  %v439_v18 = vsub.f32 %v337_v30, %v8830_v45 }
  0xb1   : > { %v1264_v28 = vunpack.c.l.b16 %v975_v38  ;;  %v1393_v59 = vunpack.c.h.b16 %v975_v38  ;;  %v1371_v63 = vrot.slane %v1369_v39, 1  ;;  %v1491_v3 = vrot.slane %v1489_v15, 1  ;;  %v8324_v39 = vld [vmem:[%s11684_s4 + $0x238] sm:$0xff] }
  0xb2   : > { %1736 = vmatmul.bf16.gmra.mxu1 %v9501_v58  ;;  %2412 = vmatmul.bf16.gmra.mxu0 %v9547_v4  ;;  %v1165_v32 = vpop.f32.mrf.mxu2  ;;  %v1175_v2 = vpop.f32.mrf.mxu3  ;;  %v541_v11 = vmul.f32 %v8841_v52, %v439_v18 }
  0xb3   : > { %v9593_v44 = vadd.f32 %v9572_v31, %v1165_v32  ;;  %v9596_v19 = vadd.f32 %v9572_v31, %v1175_v2  ;;  %v9598_v33 = vpop.f32.mrf.mxu0  ;;  %v9600_v36 = vpop.f32.mrf.mxu1  ;;  %v9604_v49 = vpack.c.b16 %v1264_v28, %v1264_v28  ;;  %v1401_v53 = vpack.c.b16 %v1393_v59, %v1393_v59  ;;  %2868 = vmatpush.bf16.msrb.mxu1 %v8324_v39 }
  0xb4   : > { %11912 = vst [vmem:[#allocation41_spill] sm:$0xff] %v9598_v33  ;;  %v719_v32 = vmax.f32 %v623_v56, 0.0  ;;  %v913_v2 = vmul.f32 %v8870_v13, %v717_v29  ;;  %v8348_v56 = vld [vmem:[%s11684_s4 + $0xb8] sm:$0xff]  ;;  %v1492_v15 = vor.u32 %v1491_v3, %v1487_v46  ;;  %v440_v29 = vsub.f32 %v338_v35, %v8839_v51  ;;  %v350_v46 = vld [vmem:[%s8862_s16 + $0x88] sm:$0x3] }
  0xb5   : > { %11910 = vst [vmem:[#allocation39_spill] sm:$0xff] %v9593_v44  ;;  %v720_v44 = vmax.f32 %v624_v60, 0.0  ;;  %v1494_v33 = vshll.u32 %v1401_v53, 16  ;;  %v1372_v60 = vor.u32 %v1371_v63, %v1367_v41  ;;  %3359 = vmatpush.bf16.msrb.mxu0 %v8348_v56  ;;  %v349_v63 = vld [vmem:[%s8862_s16 + $0x80] sm:$0x3]  ;;  %v637_v39 = vmax.f32 %v541_v11, 0.0 }
  0xb6   : > { %11911 = vst [vmem:[#allocation40_spill] sm:$0xff] %v9596_v19  ;;  %v914_v19 = vmul.f32 %v8870_v13, %v718_v34  ;;  %v542_v41 = vmul.f32 %v8847_v54, %v440_v29  ;;  %v451_v29 = vsub.f32 %v349_v63, %v8830_v45  ;;  %v2080_v11 = vshll.u32 %v9106_v25, 16 }
  0xb7   : > { %11913 = vst [vmem:[#allocation42_spill] sm:$0xff] %v9600_v36  ;;  %v1374_v36 = vshll.u32 %v9604_v49, 16  ;;  %v977_v38 = vpack.c.bf16 %v720_v44, %v719_v32  ;;  %v1496_v59 = vrot.slane %v1494_v33, 1 }
  0xb8   : > { %11914 = vst [vmem:[#allocation43_spill] sm:$0xff] %v9604_v49  ;;  %v976_v28 = vpack.c.bf16 %v914_v19, %v913_v2  ;;  %v638_v56 = vmax.f32 %v542_v41, 0.0  ;;  %v1958_v41 = vshrl.u32 %v9028_v16, 16 }
  0xb9   : > { %v1376_v34 = vrot.slane %v1374_v36, 1  ;;  %v1892_v53 = vunpack.c.h.b16 %v977_v38  ;;  %v1939_v44 = vunpack.c.l.b16 %v977_v38  ;;  %v9640_v18 = vsel %vm1281_vm2, %v1492_v15, %v1496_v59  ;;  %v8339_v59 = vld [vmem:[%s11684_s4 + $0x70] sm:$0xff] }
  0xba   : > { %v1167_v30 = vpop.f32.mrf.mxu2  ;;  %v1177_v32 = vpop.f32.mrf.mxu3  ;;  %v1891_v49 = vunpack.c.h.b16 %v976_v28  ;;  %v1938_v55 = vunpack.c.l.b16 %v976_v28  ;;  %11920 = vst [vmem:[#allocation49_spill] sm:$0xff] %v9640_v18  ;;  %v1960_v28 = vshll.u32 %v9028_v16, 16  ;;  %3311 = vmatpush.bf16.msrb.mxu3 %v8339_v59  ;;  %v2078_v16 = vshrl.u32 %v9106_v25, 16  ;;  %v362_v59 = vld [vmem:[%s8862_s16 + $0xe8] sm:$0x3] }
  0xbb   : > { %v9621_v19 = vadd.f32 %v9572_v31, %v1167_v30  ;;  %v9624_v35 = vadd.f32 %v9572_v31, %v1177_v32  ;;  %v9626_v33 = vpop.f32.mrf.mxu0  ;;  %v9628_v36 = vpop.f32.mrf.mxu1  ;;  %v9633_v3 = vsel %vm1281_vm2, %v1372_v60, %v1376_v34  ;;  %v452_v30 = vsub.f32 %v350_v46, %v8839_v51  ;;  %v8331_v34 = vld [vmem:[%s11684_s4 + $0x30] sm:$0xff] }
  0xbc   : > { %11917 = vst [vmem:[#allocation46_spill] sm:$0xff] %v9628_v36  ;;  %v9635_v2 = vpack.c.b16 %v1892_v53, %v1891_v49  ;;  %v9637_v38 = vpack.c.b16 %v1939_v44, %v1938_v55  ;;  %v833_v49 = vmul.f32 %v8900_v1, %v637_v39  ;;  %v834_v55 = vmul.f32 %v8900_v1, %v638_v56 }
  0xbd   : > { %11915 = vst [vmem:[#allocation44_spill] sm:$0xff] %v9621_v19  ;;  %v553_v60 = vmul.f32 %v8841_v52, %v451_v29  ;;  %v554_v15 = vmul.f32 %v8847_v54, %v452_v30  ;;  %v1962_v63 = vrot.slane %v1960_v28, 1  ;;  %3262 = vmatpush.bf16.msrb.mxu2 %v8331_v34  ;;  %v2082_v28 = vrot.slane %v2080_v11, 1  ;;  %v361_v34 = vld [vmem:[%s8862_s16 + $0xe0] sm:$0x3]  ;;  %v8347_v11 = vld [vmem:[%s11684_s4 + $0xb0] sm:$0xff] }
  0xbe   : > { %11916 = vst [vmem:[#allocation45_spill] sm:$0xff] %v9624_v35  ;;  %v936_v53 = vpack.c.bf16 %v834_v55, %v833_v49  ;;  %3360 = vmatpush.bf16.msrb.mxu0 %v8347_v11 }
  0xbf   : > { %11918 = vst [vmem:[#allocation47_spill] sm:$0xff] %v9633_v3  ;;  %1790 = vmatmul.bf16.gmra.mxu2 %v9633_v3  ;;  %1839 = vmatmul.bf16.gmra.mxu3 %v9640_v18  ;;  %v649_v46 = vmax.f32 %v553_v60, 0.0  ;;  %v650_v39 = vmax.f32 %v554_v15, 0.0  ;;  %v2083_v25 = vor.u32 %v2082_v28, %v2078_v16  ;;  %v1972_v28 = vshll.u32 %v9166_v22, 16 }
  0xc0   : > { %11919 = vst [vmem:[#allocation48_spill] sm:$0xff] %v9635_v2  ;;  %v1919_v55 = vunpack.c.l.b16 %v936_v53  ;;  %v2061_v35 = vunpack.c.h.b16 %v936_v53  ;;  %v463_v53 = vsub.f32 %v361_v34, %v8830_v45 }
  0xc1   : > { %v845_v60 = vmul.f32 %v8900_v1, %v649_v46  ;;  %v846_v15 = vmul.f32 %v8900_v1, %v650_v39  ;;  %v464_v46 = vsub.f32 %v362_v59, %v8839_v51  ;;  %v1963_v39 = vor.u32 %v1962_v63, %v1958_v41 }
  0xc2   : > { %1741 = vmatmul.bf16.gmra.mxu1 %v9581_v48  ;;  %2417 = vmatmul.bf16.gmra.mxu0 %v9635_v2  ;;  %v1170_v44 = vpop.f32.mrf.mxu2  ;;  %v1180_v32 = vpop.f32.mrf.mxu3  ;;  %v2069_v18 = vpack.c.b16 %v2061_v35, %v2061_v35 }
  0xc3   : > { %v9662_v56 = vadd.f32 %v9572_v31, %v1170_v44  ;;  %v9665_v29 = vadd.f32 %v9572_v31, %v1180_v32  ;;  %v9667_v30 = vpop.f32.mrf.mxu0  ;;  %v9669_v49 = vpop.f32.mrf.mxu1  ;;  %v9676_v44 = vpack.c.b16 %v1919_v55, %v1919_v55  ;;  %v942_v55 = vpack.c.bf16 %v846_v15, %v845_v60 }
  0xc4   : > { %11923 = vst [vmem:[#allocation52_spill] sm:$0xff] %v9667_v30  ;;  %v565_v30 = vmul.f32 %v8841_v52, %v463_v53  ;;  %v566_v34 = vmul.f32 %v8847_v54, %v464_v46  ;;  %v1974_v53 = vrot.slane %v1972_v28, 1  ;;  %v2090_v46 = vshrl.u32 %v9181_v21, 16  ;;  %v373_v28 = vld [vmem:[%s8862_s16 + $0x140] sm:$0x3] }
  0xc5   : > { %11921 = vst [vmem:[#allocation50_spill] sm:$0xff] %v9662_v56  ;;  %v1965_v32 = vshll.u32 %v9676_v44, 16  ;;  %v8323_v56 = vld [vmem:[%s11684_s4 + $0x230] sm:$0xff] }
  0xc6   : > { %11922 = vst [vmem:[#allocation51_spill] sm:$0xff] %v9665_v29  ;;  %v2085_v29 = vshll.u32 %v2069_v18, 16  ;;  %2869 = vmatpush.bf16.msrb.mxu1 %v8323_v56  ;;  %v1922_v56 = vunpack.c.l.b16 %v942_v55  ;;  %v661_v60 = vmax.f32 %v565_v30, 0.0  ;;  %v662_v15 = vmax.f32 %v566_v34, 0.0 }
  0xc7   : > { %11924 = vst [vmem:[#allocation53_spill] sm:$0xff] %v9669_v49  ;;  %v1967_v19 = vrot.slane %v1965_v32, 1  ;;  %v8338_v32 = vld [vmem:[%s11684_s4 + $0x68] sm:$0xff]  ;;  %v1970_v30 = vshrl.u32 %v9166_v22, 16 }
  0xc8   : > { %11925 = vst [vmem:[#allocation54_spill] sm:$0xff] %v9676_v44  ;;  %v2087_v35 = vrot.slane %v2085_v29, 1  ;;  %v2062_v29 = vunpack.c.h.b16 %v942_v55  ;;  %3312 = vmatpush.bf16.msrb.mxu3 %v8338_v32  ;;  %v858_v34 = vmul.f32 %v8900_v1, %v662_v15 }
  0xc9   : > { %v9696_v41 = vsel %vm1281_vm2, %v1963_v39, %v1967_v19 }
  0xca   : > { %v1172_v18 = vpop.f32.mrf.mxu2  ;;  %v1182_v44 = vpop.f32.mrf.mxu3  ;;  %11928 = vst [vmem:[#allocation57_spill] sm:$0xff] %v9696_v41  ;;  %v9699_v63 = vsel %vm1281_vm2, %v2083_v25, %v2087_v35  ;;  %v9709_v25 = vpack.c.b16 %v1922_v56, %v1922_v56  ;;  %v2070_v19 = vpack.c.b16 %v2062_v29, %v2062_v29 }
  0xcb   : > { %v9688_v49 = vadd.f32 %v9572_v31, %v1172_v18  ;;  %v9691_v36 = vadd.f32 %v9572_v31, %v1182_v44  ;;  %11929 = vst [vmem:[#allocation58_spill] sm:$0xff] %v9699_v63  ;;  %v2092_v31 = vshll.u32 %v9181_v21, 16  ;;  %v8330_v44 = vld [vmem:[%s11684_s4 + $0x28] sm:$0xff]  ;;  %v857_v18 = vmul.f32 %v8900_v1, %v661_v60 }
  0xcc   : > { %11930 = vst [vmem:[#allocation59_spill] sm:$0xff] %v9709_v25  ;;  %3263 = vmatpush.bf16.msrb.mxu2 %v8330_v44  ;;  %v1977_v29 = vshll.u32 %v9709_v25, 16  ;;  %v1975_v21 = vor.u32 %v1974_v53, %v1970_v30  ;;  %v385_v25 = vld [vmem:[%s8862_s16 + $0x1a0] sm:$0x3] }
  0xcd   : > { %11926 = vst [vmem:[#allocation55_spill] sm:$0xff] %v9688_v49  ;;  %v2094_v35 = vrot.slane %v2092_v31, 1  ;;  %v948_v32 = vpack.c.bf16 %v858_v34, %v857_v18  ;;  %v8346_v31 = vld [vmem:[%s11684_s4 + $0xa8] sm:$0xff] }
  0xce   : > { %11927 = vst [vmem:[#allocation56_spill] sm:$0xff] %v9691_v36  ;;  %v374_v36 = vld [vmem:[%s8862_s16 + $0x148] sm:$0x3]  ;;  %v1979_v60 = vrot.slane %v1977_v29, 1  ;;  %3361 = vmatpush.bf16.msrb.mxu0 %v8346_v31 }
  0xcf   : > { %v1707_v59 = vpop.f32.mrf.mxu1  ;;  %v9701_v16 = vpop.f32.mrf.mxu0  ;;  %2480 = vmatmul.bf16.vlgmr.msra.gmra.mxu2 %v9699_v63  ;;  %2778 = vmatmul.bf16.vlgmr.msra.gmra.mxu3 %v9090_v12  ;;  %v2097_v12 = vshll.u32 %v2070_v19, 16  ;;  %v2095_v44 = vor.u32 %v2094_v35, %v2090_v46  ;;  %v475_v19 = vsub.f32 %v373_v28, %v8830_v45  ;;  %v1925_v46 = vunpack.c.l.b16 %v948_v32 }
  0xd0   : > { %v9737_v18 = vsel %vm1281_vm2, %v1975_v21, %v1979_v60  ;;  %v2104_v21 = vshll.u32 %v9257_v14, 16  ;;  %v8329_v60 = vld [vmem:[%s11684_s4 + $0x20] sm:$0xff] }
  0xd1   : > { %v2099_v15 = vrot.slane %v2097_v12, 1  ;;  %11931 = vst [vmem:[#allocation60_spill] sm:$0xff] %v9737_v18  ;;  %v577_v12 = vmul.f32 %v8841_v52, %v475_v19  ;;  %3264 = vmatpush.bf16.msrb.mxu2 %v8329_v60 }
  0xd2   : > { %2431 = vmatmul.bf16.vlgmr.msra.gmra.mxu1 %v9696_v41  ;;  %2827 = vmatmul.bf16.vlgmr.msra.gmra.mxu0 %v9219_v5  ;;  %v1756_v11 = vpop.f32.mrf.mxu2  ;;  %v1805_v55 = vpop.f32.mrf.mxu3  ;;  %v386_v41 = vld [vmem:[%s8862_s16 + $0x1a8] sm:$0x3] }
  0xd3   : > { %v1757_v39 = vadd.f32 %v1756_v11, %v1707_v59  ;;  %v8322_v59 = vld [vmem:[%s11684_s4 + $0x228] sm:$0xff]  ;;  %v476_v11 = vsub.f32 %v374_v36, %v8839_v51  ;;  %v9740_v34 = vsel %vm1281_vm2, %v2095_v44, %v2099_v15  ;;  %v9754_v44 = vpack.c.b16 %v1925_v46, %v1925_v46  ;;  %v8337_v15 = vld [vmem:[%s11684_s4 + $0x60] sm:$0xff] }
  0xd4   : > { %2870 = vmatpush.bf16.msrb.mxu1 %v8322_v59  ;;  %11932 = vst [vmem:[#allocation61_spill] sm:$0xff] %v9740_v34  ;;  %v673_v59 = vmax.f32 %v577_v12, 0.0  ;;  %3313 = vmatpush.bf16.msrb.mxu3 %v8337_v15  ;;  %v2102_v46 = vshrl.u32 %v9257_v14, 16 }
  0xd5   : > { %v9722_v63 = vadd.f32 %v1805_v55, %v1757_v39  ;;  %v2063_v55 = vunpack.c.h.b16 %v948_v32  ;;  %v578_v29 = vmul.f32 %v8847_v54, %v476_v11  ;;  %11933 = vst [vmem:[#allocation62_spill] sm:$0xff] %v9754_v44  ;;  %v1982_v11 = vshrl.u32 %v9243_v61, 16 }
  0xd7   : > { %v1709_v56 = vpop.f32.mrf.mxu1  ;;  %v9724_v22 = vpop.f32.mrf.mxu0  ;;  %v2071_v32 = vpack.c.b16 %v2063_v55, %v2063_v55  ;;  %v674_v31 = vmax.f32 %v578_v29, 0.0  ;;  %v2106_v55 = vrot.slane %v2104_v21, 1  ;;  %v1989_v29 = vshll.u32 %v9754_v44, 16  ;;  %v8345_v21 = vld [vmem:[%s11684_s4 + $0xa0] sm:$0xff] }
  0xd8   : > { %3362 = vmatpush.bf16.msrb.mxu0 %v8345_v21  ;;  %v8328_v21 = vld [vmem:[%s11684_s4 + $0x18] sm:$0xff] }
  0xd9   : > { %v2107_v60 = vor.u32 %v2106_v55, %v2102_v46  ;;  %3265 = vmatpush.bf16.msrb.mxu2 %v8328_v21  ;;  %v8344_v21 = vld [vmem:[%s11684_s4 + $0x98] sm:$0xff] }
  0xda   : > { %v1758_v39 = vpop.f32.mrf.mxu2  ;;  %v1807_v53 = vpop.f32.mrf.mxu3 }
  0xdb   : > { %v1759_v30 = vadd.f32 %v1758_v39, %v1709_v56  ;;  %v1984_v56 = vshll.u32 %v9243_v61, 16 }
  0xdc   : > { %3363 = vmatpush.bf16.msrb.mxu0 %v8344_v21 }
  0xdd   : > { %v9744_v28 = vadd.f32 %v1807_v53, %v1759_v30  ;;  %v1986_v53 = vrot.slane %v1984_v56, 1  ;;  %v8321_v56 = vld [vmem:[%s11684_s4 + $0x220] sm:$0xff] }
  0xde   : > { %2871 = vmatpush.bf16.msrb.mxu1 %v8321_v56  ;;  %v2116_v56 = vshll.u32 %v9335_v26, 16 }
  0xdf   : > { %v1712_v35 = vpop.f32.mrf.mxu1  ;;  %v9746_v36 = vpop.f32.mrf.mxu0  ;;  %2485 = vmatmul.bf16.gmra.mxu2 %v9740_v34  ;;  %2783 = vmatmul.bf16.gmra.mxu3 %v9221_v17  ;;  %v2109_v17 = vshll.u32 %v2071_v32, 16  ;;  %v869_v34 = vmul.f32 %v8900_v1, %v673_v59  ;;  %v487_v32 = vsub.f32 %v385_v25, %v8830_v45  ;;  %v488_v59 = vsub.f32 %v386_v41, %v8839_v51 }
  0xe1   : > { %v2111_v15 = vrot.slane %v2109_v17, 1  ;;  %v590_v14 = vmul.f32 %v8847_v54, %v488_v59  ;;  %v1994_v59 = vshrl.u32 %v9316_v47, 16 }
  0xe2   : > { %2436 = vmatmul.bf16.gmra.mxu1 %v9737_v18  ;;  %2832 = vmatmul.bf16.gmra.mxu0 %v9289_v7  ;;  %v1761_v19 = vpop.f32.mrf.mxu2  ;;  %v1810_v30 = vpop.f32.mrf.mxu3  ;;  %v870_v18 = vmul.f32 %v8900_v1, %v674_v31  ;;  %v1991_v31 = vrot.slane %v1989_v29, 1 }
  0xe3   : > { %v1762_v39 = vadd.f32 %v1761_v19, %v1712_v35  ;;  %v1987_v35 = vor.u32 %v1986_v53, %v1982_v11  ;;  %v589_v53 = vmul.f32 %v8841_v52, %v487_v32  ;;  %v9787_v25 = vsel %vm1281_vm2, %v2107_v60, %v2111_v15  ;;  %v8336_v32 = vld [vmem:[%s11684_s4 + $0x58] sm:$0xff] }
  0xe4   : > { %v954_v19 = vpack.c.bf16 %v870_v18, %v869_v34  ;;  %11936 = vst [vmem:[#allocation65_spill] sm:$0xff] %v9787_v25  ;;  %v1996_v34 = vshll.u32 %v9316_v47, 16  ;;  %3314 = vmatpush.bf16.msrb.mxu3 %v8336_v32 }
  0xe5   : > { %v9769_v49 = vadd.f32 %v1810_v30, %v1762_v39  ;;  %v685_v55 = vmax.f32 %v589_v53, 0.0 }
  0xe6   : > { %v1928_v41 = vunpack.c.l.b16 %v954_v19  ;;  %v2064_v46 = vunpack.c.h.b16 %v954_v19  ;;  %v1998_v15 = vrot.slane %v1996_v34, 1 }
  0xe7   : > { %v1714_v12 = vpop.f32.mrf.mxu1  ;;  %v9771_v61 = vpop.f32.mrf.mxu0  ;;  %v881_v19 = vmul.f32 %v8900_v1, %v685_v55 }
  0xe8   : > { %11934 = vst [vmem:[#allocation63_spill] sm:$0xff] %v9771_v61  ;;  %v9784_v61 = vsel %vm1281_vm2, %v1987_v35, %v1991_v31  ;;  %v9798_v29 = vpack.c.b16 %v1928_v41, %v1928_v41  ;;  %v2072_v35 = vpack.c.b16 %v2064_v46, %v2064_v46  ;;  %v2114_v46 = vshrl.u32 %v9335_v26, 16 }
  0xe9   : > { %11935 = vst [vmem:[#allocation64_spill] sm:$0xff] %v9784_v61  ;;  %v1999_v32 = vor.u32 %v1998_v15, %v1994_v59 }
  0xea   : > { %v1763_v39 = vpop.f32.mrf.mxu2  ;;  %v1812_v30 = vpop.f32.mrf.mxu3  ;;  %11937 = vst [vmem:[#allocation66_spill] sm:$0xff] %v9798_v29  ;;  %v2001_v41 = vshll.u32 %v9798_v29, 16 }
  0xeb   : > { %v1764_v11 = vadd.f32 %v1763_v39, %v1714_v12  ;;  %v686_v12 = vmax.f32 %v590_v14, 0.0 }
  0xed   : > { %v9789_v17 = vadd.f32 %v1812_v30, %v1764_v11  ;;  %v882_v39 = vmul.f32 %v8900_v1, %v686_v12  ;;  %v397_v11 = vld [vmem:[%s8862_s16 + $0x200] sm:$0x3]  ;;  %v398_v30 = vld [vmem:[%s8862_s16 + $0x208] sm:$0x3]  ;;  %v8320_v12 = vld [vmem:[%s11684_s4 + $0x218] sm:$0xff] }
  0xee   : > { %v500_v34 = vsub.f32 %v398_v30, %v8839_v51  ;;  %2872 = vmatpush.bf16.msrb.mxu1 %v8320_v12  ;;  %v8335_v12 = vld [vmem:[%s11684_s4 + $0x50] sm:$0xff] }
  0xef   : > { %v1717_v44 = vpop.f32.mrf.mxu1  ;;  %v9791_v18 = vpop.f32.mrf.mxu0  ;;  %2490 = vmatmul.bf16.gmra.mxu2 %v9787_v25  ;;  %2788 = vmatmul.bf16.gmra.mxu3 %v9291_v9  ;;  %v2118_v9 = vrot.slane %v2116_v56, 1  ;;  %v2121_v25 = vshll.u32 %v2072_v35, 16  ;;  %v960_v55 = vpack.c.bf16 %v882_v39, %v881_v19  ;;  %v2003_v56 = vrot.slane %v2001_v41, 1 }
  0xf0   : > { %3315 = vmatpush.bf16.msrb.mxu3 %v8335_v12 }
  0xf1   : > { %v2119_v35 = vor.u32 %v2118_v9, %v2114_v46  ;;  %v1931_v30 = vunpack.c.l.b16 %v960_v55  ;;  %v9829_v29 = vsel %vm1281_vm2, %v1999_v32, %v2003_v56  ;;  %v2065_v59 = vunpack.c.h.b16 %v960_v55  ;;  %v8327_v55 = vld [vmem:[%s11684_s4 + $0x10] sm:$0xff] }
  0xf2   : > { %2441 = vmatmul.bf16.gmra.mxu1 %v9784_v61  ;;  %2837 = vmatmul.bf16.gmra.mxu0 %v9342_v27  ;;  %v1766_v14 = vpop.f32.mrf.mxu2  ;;  %v1815_v60 = vpop.f32.mrf.mxu3  ;;  %11939 = vst [vmem:[#allocation68_spill] sm:$0xff] %v9829_v29  ;;  %v2008_v46 = vshll.u32 %v9398_v50, 16  ;;  %v2006_v32 = vshrl.u32 %v9398_v50, 16 }
  0xf3   : > { %v1767_v31 = vadd.f32 %v1766_v14, %v1717_v44  ;;  %v499_v44 = vsub.f32 %v397_v11, %v8830_v45  ;;  %v2123_v14 = vrot.slane %v2121_v25, 1  ;;  %v602_v11 = vmul.f32 %v8847_v54, %v500_v34  ;;  %3266 = vmatpush.bf16.msrb.mxu2 %v8327_v55 }
  0xf4   : > { %v2128_v34 = vshll.u32 %v9405_v24, 16 }
  0xf5   : > { %v9814_v61 = vadd.f32 %v1815_v60, %v1767_v31  ;;  %v601_v60 = vmul.f32 %v8841_v52, %v499_v44  ;;  %v698_v41 = vmax.f32 %v602_v11, 0.0  ;;  %v2073_v44 = vpack.c.b16 %v2065_v59, %v2065_v59 }
  0xf7   : > { %v1719_v53 = vpop.f32.mrf.mxu1  ;;  %v9816_v47 = vpop.f32.mrf.mxu0  ;;  %v697_v15 = vmax.f32 %v601_v60, 0.0  ;;  %v2010_v60 = vrot.slane %v2008_v46, 1  ;;  %v2133_v59 = vshll.u32 %v2073_v44, 16 }
  0xf8   : > { %11938 = vst [vmem:[#allocation67_spill] sm:$0xff] %v9816_v47  ;;  %v9832_v47 = vsel %vm1281_vm2, %v2119_v35, %v2123_v14  ;;  %v894_v35 = vmul.f32 %v8900_v1, %v698_v41  ;;  %v8343_v41 = vld [vmem:[%s11684_s4 + $0x90] sm:$0xff] }
  0xf9   : > { %11940 = vst [vmem:[#allocation69_spill] sm:$0xff] %v9832_v47  ;;  %v893_v56 = vmul.f32 %v8900_v1, %v697_v15  ;;  %v2011_v44 = vor.u32 %v2010_v60, %v2006_v32  ;;  %3364 = vmatpush.bf16.msrb.mxu0 %v8343_v41  ;;  %v2020_v32 = vshll.u32 %v9470_v0, 16  ;;  %v2018_v41 = vshrl.u32 %v9470_v0, 16 }
  0xfa   : > { %v1768_v31 = vpop.f32.mrf.mxu2  ;;  %v1817_v39 = vpop.f32.mrf.mxu3 }
  0xfb   : > { %v1769_v19 = vadd.f32 %v1768_v31, %v1719_v53  ;;  %v9841_v53 = vpack.c.b16 %v1931_v30, %v1931_v30  ;;  %v2130_v30 = vrot.slane %v2128_v34, 1  ;;  %v966_v15 = vpack.c.bf16 %v894_v35, %v893_v56 }
  0xfd   : > { %v9834_v9 = vadd.f32 %v1817_v39, %v1769_v19  ;;  %11941 = vst [vmem:[#allocation70_spill] sm:$0xff] %v9841_v53  ;;  %v2013_v11 = vshll.u32 %v9841_v53, 16  ;;  %v2126_v19 = vshrl.u32 %v9405_v24, 16  ;;  %v1934_v56 = vunpack.c.l.b16 %v966_v15 }
  0xfe   : > { %v2066_v35 = vunpack.c.h.b16 %v966_v15 }
  0xff   : > { %v1722_v26 = vpop.f32.mrf.mxu1  ;;  %v9836_v25 = vpop.f32.mrf.mxu0  ;;  %2495 = vmatmul.bf16.gmra.mxu2 %v9832_v47  ;;  %2793 = vmatmul.bf16.gmra.mxu3 %v9363_v42  ;;  %v409_v42 = vld [vmem:[%s8862_s16 + $0x260] sm:$0x3]  ;;  %v410_v47 = vld [vmem:[%s8862_s16 + $0x268] sm:$0x3]  ;;  %v2015_v55 = vrot.slane %v2013_v11, 1  ;;  %v2131_v12 = vor.u32 %v2130_v30, %v2126_v19  ;;  %v9884_v19 = vpack.c.b16 %v1934_v56, %v1934_v56  ;;  %v2140_v30 = vshll.u32 %v9482_v57, 16 }
 0x100   : > { %v511_v46 = vsub.f32 %v409_v42, %v8830_v45  ;;  %v512_v34 = vsub.f32 %v410_v47, %v8839_v51 }
 0x101   : > { %v9874_v42 = vsel %vm1281_vm2, %v2011_v44, %v2015_v55  ;;  %11946 = vst [vmem:[#allocation75_spill] sm:$0xff] %v9884_v19  ;;  %v2138_v44 = vshrl.u32 %v9482_v57, 16  ;;  %v2142_v55 = vrot.slane %v2140_v30, 1 }
 0x102   : > { %2446 = vmatmul.bf16.gmra.mxu1 %v9829_v29  ;;  %2842 = vmatmul.bf16.gmra.mxu0 %v9414_v20  ;;  %v1771_v21 = vpop.f32.mrf.mxu2  ;;  %v1820_v31 = vpop.f32.mrf.mxu3  ;;  %v613_v53 = vmul.f32 %v8841_v52, %v511_v46  ;;  %11944 = vst [vmem:[#allocation73_spill] sm:$0xff] %v9874_v42  ;;  %v2022_v46 = vrot.slane %v2020_v32, 1  ;;  %v421_v32 = vld [vmem:[%s8862_s16 + $0x2c0] sm:$0x3] }
 0x103   : > { %v1772_v14 = vadd.f32 %v1771_v21, %v1722_v26  ;;  %v8319_v26 = vld [vmem:[%s11684_s4 + $0x210] sm:$0xff]  ;;  %v2135_v21 = vrot.slane %v2133_v59, 1 }
 0x104   : > { %2873 = vmatpush.bf16.msrb.mxu1 %v8319_v26  ;;  %v709_v59 = vmax.f32 %v613_v53, 0.0  ;;  %v8334_v26 = vld [vmem:[%s11684_s4 + $0x48] sm:$0xff] }
 0x105   : > { %v9859_v29 = vadd.f32 %v1820_v31, %v1772_v14  ;;  %v9877_v47 = vsel %vm1281_vm2, %v2131_v12, %v2135_v21  ;;  %3316 = vmatpush.bf16.msrb.mxu3 %v8334_v26  ;;  %v424_v21 = vld [vmem:[%s8862_s16 + $0x2d8] sm:$0xff]  ;;  %v426_v26 = vld [vmem:[%s8862_s16 + $0x2e8] sm:$0xff] }
 0x106   : > { %11945 = vst [vmem:[#allocation74_spill] sm:$0xff] %v9877_v47  ;;  %v905_v0 = vmul.f32 %v8900_v1, %v709_v59 }
 0x107   : > { %v1724_v39 = vpop.f32.mrf.mxu1  ;;  %11942 = vst [vmem:[#allocation71_spill] sm:$0xff] %v9859_v29  ;;  %v9861_v50 = vpop.f32.mrf.mxu0 }
 0x108   : > { %11943 = vst [vmem:[#allocation72_spill] sm:$0xff] %v9861_v50  ;;  %v614_v50 = vmul.f32 %v8847_v54, %v512_v34  ;;  %v423_v34 = vld [vmem:[%s8862_s16 + $0x2d0] sm:$0xff] }
 0x10a   : > { %v1773_v14 = vpop.f32.mrf.mxu2  ;;  %v1822_v24 = vpop.f32.mrf.mxu3  ;;  %v710_v15 = vmax.f32 %v614_v50, 0.0  ;;  %v2025_v50 = vshll.u32 %v9884_v19, 16 }
 0x10b   : > { %v1774_v31 = vadd.f32 %v1773_v14, %v1724_v39  ;;  %v2074_v39 = vpack.c.b16 %v2066_v35, %v2066_v35 }
 0x10c   : > { %v906_v35 = vmul.f32 %v8900_v1, %v710_v15  ;;  %v2027_v19 = vrot.slane %v2025_v50, 1 }
 0x10d   : > { %v9880_v60 = vadd.f32 %v1822_v24, %v1774_v31  ;;  %v8326_v24 = vld [vmem:[%s11684_s4 + $0x8] sm:$0xff]  ;;  %v2145_v12 = vshll.u32 %v2074_v39, 16 }
 0x10e   : > { %3267 = vmatpush.bf16.msrb.mxu2 %v8326_v24  ;;  %v422_v39 = vld [vmem:[%s8862_s16 + $0x2c8] sm:$0x3]  ;;  %v425_v24 = vld [vmem:[%s8862_s16 + $0x2e0] sm:$0xff]  ;;  %v972_v15 = vpack.c.bf16 %v906_v35, %v905_v0 }
 0x10f   : > { %v1727_v29 = vpop.f32.mrf.mxu1  ;;  %v9882_v11 = vpop.f32.mrf.mxu0  ;;  %2500 = vmatmul.bf16.gmra.mxu2 %v9877_v47  ;;  %2798 = vmatmul.bf16.gmra.mxu3 %v9433_v37  ;;  %v525_v37 = vsub.f32 %v423_v34, %v8830_v45  ;;  %v2143_v47 = vor.u32 %v2142_v55, %v2138_v44  ;;  %v2147_v59 = vrot.slane %v2145_v12, 1  ;;  %v8318_v34 = vld [vmem:[%s11684_s4 + $0x208] sm:$0xff] }
 0x110   : > { %2874 = vmatpush.bf16.msrb.mxu1 %v8318_v34 }
 0x111   : > { %v627_v50 = vmul.f32 %v8841_v52, %v525_v37  ;;  %v9934_v35 = vsel %vm1281_vm2, %v2143_v47, %v2147_v59  ;;  %v2032_v59 = vshll.u32 %v9536_v40, 16 }
 0x112   : > { %2451 = vmatmul.bf16.gmra.mxu1 %v9874_v42  ;;  %2847 = vmatmul.bf16.gmra.mxu0 %v9477_v6  ;;  %v1776_v53 = vpop.f32.mrf.mxu2  ;;  %v1825_v56 = vpop.f32.mrf.mxu3  ;;  %v427_v42 = vld [vmem:[%s8862_s16 + $0x2f0] sm:$0x3]  ;;  %v428_v6 = vld [vmem:[%s8862_s16 + $0x2f8] sm:$0x3]  ;;  %11949 = vst [vmem:[#allocation78_spill] sm:$0xff] %v9934_v35 }
 0x113   : > { %v1777_v14 = vadd.f32 %v1776_v53, %v1727_v29  ;;  %v526_v29 = vsub.f32 %v424_v21, %v8839_v51  ;;  %v2023_v53 = vor.u32 %v2022_v46, %v2018_v41  ;;  %v527_v41 = vsub.f32 %v425_v24, %v8830_v45 }
 0x114   : > { %v528_v46 = vsub.f32 %v426_v26, %v8839_v51  ;;  %v529_v55 = vsub.f32 %v427_v42, %v8830_v45  ;;  %v530_v12 = vsub.f32 %v428_v6, %v8839_v51  ;;  %v1937_v24 = vunpack.c.l.b16 %v972_v15 }
 0x115   : > { %v9906_v57 = vadd.f32 %v1825_v56, %v1777_v14  ;;  %v8342_v14 = vld [vmem:[%s11684_s4 + $0x88] sm:$0xff]  ;;  %v523_v56 = vsub.f32 %v421_v32, %v8830_v45  ;;  %v628_v44 = vmul.f32 %v8847_v54, %v526_v29  ;;  %v9931_v0 = vsel %vm1281_vm2, %v2023_v53, %v2027_v19 }
 0x116   : > { %3365 = vmatpush.bf16.msrb.mxu0 %v8342_v14  ;;  %11948 = vst [vmem:[#allocation77_spill] sm:$0xff] %v9931_v0  ;;  %v2067_v26 = vunpack.c.h.b16 %v972_v15  ;;  %v629_v42 = vmul.f32 %v8841_v52, %v527_v41  ;;  %v630_v6 = vmul.f32 %v8847_v54, %v528_v46  ;;  %v723_v14 = vmax.f32 %v627_v50, 0.0 }
 0x117   : > { %v1729_v31 = vpop.f32.mrf.mxu1  ;;  %v9908_v30 = vpop.f32.mrf.mxu0  ;;  %v625_v37 = vmul.f32 %v8841_v52, %v523_v56  ;;  %v724_v47 = vmax.f32 %v628_v44, 0.0  ;;  %v632_v53 = vmul.f32 %v8847_v54, %v530_v12  ;;  %v2152_v56 = vshll.u32 %v9547_v4, 16  ;;  %v8333_v12 = vld [vmem:[%s11684_s4 + $0x40] sm:$0xff] }
 0x118   : > { %11947 = vst [vmem:[#allocation76_spill] sm:$0xff] %v9908_v30  ;;  %v524_v30 = vsub.f32 %v422_v39, %v8839_v51  ;;  %v2075_v15 = vpack.c.b16 %v2067_v26, %v2067_v26  ;;  %v725_v50 = vmax.f32 %v629_v42, 0.0  ;;  %v726_v44 = vmax.f32 %v630_v6, 0.0  ;;  %3317 = vmatpush.bf16.msrb.mxu3 %v8333_v12 }
 0x119   : > { %v721_v41 = vmax.f32 %v625_v37, 0.0  ;;  %v2030_v37 = vshrl.u32 %v9536_v40, 16  ;;  %v2154_v45 = vrot.slane %v2152_v56, 1  ;;  %v8341_v56 = vld [vmem:[%s11684_s4 + $0x80] sm:$0xff] }
 0x11a   : > { %v1778_v21 = vpop.f32.mrf.mxu2  ;;  %v1827_v39 = vpop.f32.mrf.mxu3  ;;  %v626_v29 = vmul.f32 %v8847_v54, %v524_v30  ;;  %v9949_v30 = vpack.c.b16 %v1937_v24, %v1937_v24  ;;  %v728_v24 = vmax.f32 %v632_v53, 0.0  ;;  %3366 = vmatpush.bf16.msrb.mxu0 %v8341_v56  ;;  %v8372_v56 = vld [vmem:[%s11684_s4 + $0x178] sm:$0xff] }
 0x11b   : > { %v1779_v32 = vadd.f32 %v1778_v21, %v1729_v31  ;;  %v631_v31 = vmul.f32 %v8841_v52, %v529_v55  ;;  %v8325_v55 = vld [vmem:[%s11684_s4] sm:$0xff]  ;;  %v919_v21 = vmul.f32 %v8870_v13, %v723_v14  ;;  %v2150_v52 = vshrl.u32 %v9547_v4, 16 }
 0x11c   : > { %v722_v46 = vmax.f32 %v626_v29, 0.0  ;;  %v2034_v29 = vrot.slane %v2032_v59, 1  ;;  %3268 = vmatpush.bf16.msrb.mxu2 %v8325_v55  ;;  %v2037_v54 = vshll.u32 %v9949_v30, 16  ;;  %v917_v14 = vmul.f32 %v8900_v1, %v721_v41  ;;  %3834 = vmatpush.bf16.msra.mxu3 %v8372_v56 }
 0x11d   : > { %v9940_v51 = vadd.f32 %v1827_v39, %v1779_v32  ;;  %v920_v32 = vmul.f32 %v8870_v13, %v724_v47  ;;  %v727_v39 = vmax.f32 %v631_v31, 0.0  ;;  %v9967_v31 = vpack.c.bf16 %v726_v44, %v725_v50 }
 0x11e   : > { %v918_v47 = vmul.f32 %v8900_v1, %v722_v46  ;;  %v924_v55 = vmul.f32 %v8900_v1, %v728_v24  ;;  %v2035_v12 = vor.u32 %v2034_v29, %v2030_v37  ;;  %v2039_v41 = vrot.slane %v2037_v54, 1 }
 0x11f   : > { %v1732_v34 = vpop.f32.mrf.mxu1  ;;  %v9942_v19 = vpop.f32.mrf.mxu0  ;;  %2505 = vmatmul.bf16.gmra.mxu2 %v9934_v35  ;;  %2803 = vmatmul.bf16.gmra.mxu3 %v9501_v58  ;;  %v2157_v35 = vshll.u32 %v2075_v15, 16  ;;  %v9973_v59 = vpack.c.bf16 %v920_v32, %v919_v21  ;;  %v8317_v15 = vld [vmem:[%s11684_s4 + $0x200] sm:$0xff]  ;;  %v2155_v46 = vor.u32 %v2154_v45, %v2150_v52  ;;  %v2545_v32 = vunpack.c.l.b16 %v9967_v31 }
 0x120   : > { %v978_v44 = vpack.c.bf16 %v918_v47, %v917_v14  ;;  %2875 = vmatpush.bf16.msrb.mxu1 %v8317_v15  ;;  %v8364_v15 = vld [vmem:[%s11684_s4 + $0x138] sm:$0xff] }
 0x121   : > { %v2159_v50 = vrot.slane %v2157_v35, 1  ;;  %v2544_v21 = vunpack.c.l.b16 %v9973_v59  ;;  %3785 = vmatpush.bf16.msra.mxu2 %v8364_v15 }
 0x122   : > { %2456 = vmatmul.bf16.gmra.mxu1 %v9931_v0  ;;  %2852 = vmatmul.bf16.gmra.mxu0 %v9561_v62  ;;  %v1781_v26 = vpop.f32.mrf.mxu2  ;;  %v1830_v6 = vpop.f32.mrf.mxu3  ;;  %v1940_v45 = vunpack.c.l.b16 %v978_v44  ;;  %v2068_v52 = vunpack.c.h.b16 %v978_v44 }
 0x123   : > { %v1782_v42 = vadd.f32 %v1781_v26, %v1732_v34  ;;  %v923_v34 = vmul.f32 %v8900_v1, %v727_v39  ;;  %v9991_v54 = vsel %vm1281_vm2, %v2155_v46, %v2159_v50  ;;  %v2547_v14 = vpack.c.b16 %v2545_v32, %v2544_v21 }
 0x124   : > { %11951 = vst [vmem:[#allocation80_spill] sm:$0xff] %v9991_v54  ;;  %v2042_v32 = vshrl.u32 %v9637_v38, 16 }
 0x125   : > { %v9969_v53 = vadd.f32 %v1830_v6, %v1782_v42  ;;  %v9985_v39 = vpack.c.bf16 %v924_v55, %v923_v34  ;;  %v9988_v42 = vsel %vm1281_vm2, %v2035_v12, %v2039_v41  ;;  %v2044_v34 = vshll.u32 %v9637_v38, 16  ;;  %v8356_v38 = vld [vmem:[%s11684_s4 + $0xf8] sm:$0xff] }
 0x126   : > { %11950 = vst [vmem:[#allocation79_spill] sm:$0xff] %v9988_v42  ;;  %v2076_v55 = vpack.c.b16 %v2068_v52, %v2068_v52  ;;  %v2164_v12 = vshll.u32 %v9635_v2, 16  ;;  %v2552_v46 = vshll.u32 %v2547_v14, 16  ;;  %3736 = vmatpush.bf16.msra.mxu1 %v8356_v38 }
 0x127   : > { %v1734_v58 = vpop.f32.mrf.mxu1  ;;  %v9971_v40 = vpop.f32.mrf.mxu0  ;;  %v2546_v47 = vunpack.c.l.b16 %v9985_v39 }
 0x128   : > { %v2166_v52 = vrot.slane %v2164_v12, 1  ;;  %v2169_v1 = vshll.u32 %v2076_v55, 16  ;;  %v2554_v4 = vrot.slane %v2552_v46, 1  ;;  %v2539_v12 = vunpack.c.h.b16 %v9973_v59 }
 0x129   : > { %v10012_v41 = vpack.c.b16 %v2546_v47, %v2546_v47 }
 0x12a   : > { %v1783_v24 = vpop.f32.mrf.mxu2  ;;  %v1832_v37 = vpop.f32.mrf.mxu3 }
 0x12b   : > { %v1784_v26 = vadd.f32 %v1783_v24, %v1734_v58  ;;  %v10003_v58 = vpack.c.b16 %v1940_v45, %v1940_v45  ;;  %11953 = vst [vmem:[#allocation82_spill] sm:$0xff] %v10012_v41  ;;  %v2046_v24 = vrot.slane %v2044_v34, 1  ;;  %v2162_v45 = vshrl.u32 %v9635_v2, 16 }
 0x12c   : > { %v2557_v15 = vshll.u32 %v10012_v41, 16 }
 0x12d   : > { %v9993_v35 = vadd.f32 %v1832_v37, %v1784_v26  ;;  %11952 = vst [vmem:[#allocation81_spill] sm:$0xff] %v10003_v58  ;;  %v2049_v37 = vshll.u32 %v10003_v58, 16  ;;  %v2047_v34 = vor.u32 %v2046_v24, %v2042_v32  ;;  %v2167_v56 = vor.u32 %v2166_v52, %v2162_v45 }
 0x12f   : > { %v1737_v29 = vpop.f32.mrf.mxu1  ;;  %v9995_v6 = vpop.f32.mrf.mxu0  ;;  %2510 = vmatmul.bf16.gmra.mxu2 %v9991_v54  ;;  %2808 = vmatmul.bf16.gmra.mxu3 %v9581_v48  ;;  %v2550_v48 = vshrl.u32 %v2547_v14, 16  ;;  %v2051_v55 = vrot.slane %v2049_v37, 1  ;;  %v2540_v14 = vunpack.c.h.b16 %v9967_v31  ;;  %v2949_v31 = vshrl.u32 %v9041_v23, 16  ;;  %v8379_v23 = vld [vmem:[%s11684_s4 + $0x1b0] sm:$0xff] }
 0x131   : > { %v2555_v46 = vor.u32 %v2554_v4, %v2550_v48  ;;  %v10031_v54 = vsel %vm1281_vm2, %v2047_v34, %v2051_v55  ;;  %v10036_v59 = vpack.c.b16 %v2540_v14, %v2539_v12  ;;  %v8363_v4 = vld [vmem:[%s11684_s4 + $0x130] sm:$0xff]  ;;  %v2973_v12 = vshll.u32 %v2949_v31, 16  ;;  %v8370_v31 = vld [vmem:[%s11684_s4 + $0x168] sm:$0xff] }
 0x132   : > { %2461 = vmatmul.bf16.gmra.mxu1 %v9988_v42  ;;  %2857 = vmatmul.bf16.gmra.mxu0 %v9633_v3  ;;  %v1786_v50 = vpop.f32.mrf.mxu2  ;;  %v1835_v21 = vpop.f32.mrf.mxu3  ;;  %11954 = vst [vmem:[#allocation83_spill] sm:$0xff] %v10031_v54  ;;  %v8371_v48 = vld [vmem:[%s11684_s4 + $0x170] sm:$0xff] }
 0x133   : > { %v1787_v44 = vadd.f32 %v1786_v50, %v1737_v29  ;;  %v8380_v29 = vld [vmem:[%s11684_s4 + $0x1b8] sm:$0xff]  ;;  %v2171_v50 = vrot.slane %v2169_v1, 1  ;;  %11956 = vst [vmem:[#allocation85_spill] sm:$0xff] %v10036_v59  ;;  %3786 = vmatpush.bf16.msra.mxu2 %v8363_v4  ;;  %3835 = vmatpush.bf16.msra.mxu3 %v8371_v48  ;;  %v8355_v55 = vld [vmem:[%s11684_s4 + $0xf0] sm:$0xff] }
 0x134   : > { %4106 = vmatpush.bf16.msra.mxu0 %v8380_v29  ;;  %3737 = vmatpush.bf16.msra.mxu1 %v8355_v55 }
 0x135   : > { %v10017_v13 = vadd.f32 %v1835_v21, %v1787_v44  ;;  %v2559_v44 = vrot.slane %v2557_v15, 1  ;;  %v10034_v32 = vsel %vm1281_vm2, %v2167_v56, %v2171_v50  ;;  %v2966_v15 = vshrl.u32 %v9155_v8, 16 }
 0x136   : > { %11955 = vst [vmem:[#allocation84_spill] sm:$0xff] %v10034_v32  ;;  %v2975_v56 = vrot.slane %v2973_v12, 1 }
 0x137   : > { %v1739_v26 = vpop.f32.mrf.mxu1  ;;  %v10019_v47 = vpop.f32.mrf.mxu0  ;;  %v10043_v1 = vsel %vm1281_vm2, %v2555_v46, %v2559_v44  ;;  %3836 = vmatpush.bf16.msra.mxu3 %v8370_v31 }
 0x138   : > { %11957 = vst [vmem:[#allocation86_spill] sm:$0xff] %v10043_v1  ;;  %4107 = vmatpush.bf16.msra.mxu0 %v8379_v23 }
 0x13a   : > { %v1788_v21 = vpop.f32.mrf.mxu2  ;;  %v1837_v41 = vpop.f32.mrf.mxu3 }
 0x13b   : > { %v1789_v2 = vadd.f32 %v1788_v21, %v1739_v26 }
 0x13d   : > { %v10038_v24 = vadd.f32 %v1837_v41, %v1789_v2  ;;  %v2968_v2 = vshll.u32 %v9155_v8, 16 }
 0x13f   : > { %v1742_v58 = vpop.f32.mrf.mxu1  ;;  %v10040_v37 = vpop.f32.mrf.mxu0  ;;  %2515 = vmatmul.bf16.gmra.mxu2 %v10034_v32  ;;  %2813 = vmatmul.bf16.gmra.mxu3 %v10036_v59  ;;  %v2970_v38 = vrot.slane %v2968_v2, 1  ;;  %v8362_v2 = vld [vmem:[%s11684_s4 + $0x128] sm:$0xff] }
 0x140   : > { %3787 = vmatpush.bf16.msra.mxu2 %v8362_v2 }
 0x142   : > { %2466 = vmatmul.bf16.gmra.mxu1 %v10031_v54  ;;  %2862 = vmatmul.bf16.gmra.mxu0 %v10043_v1  ;;  %v1791_v41 = vpop.f32.mrf.mxu2  ;;  %v1840_v45 = vpop.f32.mrf.mxu3 }
 0x143   : > { %v1792_v26 = vadd.f32 %v1791_v41, %v1742_v58  ;;  %v2971_v58 = vor.u32 %v2970_v38, %v2966_v15  ;;  %v10083_v41 = vld [vmem:[%s11686_s6] ss:$0 sm:$0xff]  ;;  %v2980_v15 = vshll.u32 %v9219_v5, 16 }
 0x145   : > { %v10058_v29 = vadd.f32 %v1840_v45, %v1792_v26  ;;  %v2976_v48 = vsel %vm1281_vm2, %v2971_v58, %v2975_v56  ;;  %v11958_v26 = vld [vmem:[#allocation34_spill] sm:$0xff] }
 0x146   : > { %v10087_v45 = vadd.f32 %v10083_v41, %v11958_v26 }
 0x147   : > { %v1744_v52 = vpop.f32.mrf.mxu1  ;;  %v10060_v34 = vpop.f32.mrf.mxu0 }
 0x148   : > { %11959 = vst [vmem:[#allocation34_spill] sm:$0xff] %v10087_v45  ;;  %v1845_v12 = vadd.f32 %v9722_v63, %v10087_v45  ;;  %v8378_v63 = vld [vmem:[%s11684_s4 + $0x1a8] sm:$0xff] }
 0x149   : > { %4108 = vmatpush.bf16.msra.mxu0 %v8378_v63 }
 0x14a   : > { %v1793_v50 = vpop.f32.mrf.mxu2  ;;  %v1842_v46 = vpop.f32.mrf.mxu3 }
 0x14b   : > { %v1794_v14 = vadd.f32 %v1793_v50, %v1744_v52 }
 0x14d   : > { %v10068_v21 = vadd.f32 %v1842_v46, %v1794_v14  ;;  %v2982_v46 = vrot.slane %v2980_v15, 1 }
 0x14f   : > { %v2432_v44 = vpop.f32.mrf.mxu1  ;;  %v2828_v4 = vpop.f32.mrf.mxu0  ;;  %3269 = vmatmul.bf16.vlgmr.msrb.gmra.mxu2 %v9155_v8  ;;  %3318 = vmatmul.bf16.vlgmr.msrb.gmra.mxu3 %v9158_v10  ;;  %v11960_v10 = vld [vmem:[#allocation10_spill] sm:$0xff] }
 0x150   : > { %v2433_v8 = vadd.f32 %v2432_v44, %v9701_v16  ;;  %v2951_v52 = vshrl.u32 %v11960_v10, 16  ;;  %v2978_v16 = vshrl.u32 %v9219_v5, 16 }
 0x152   : > { %2876 = vmatmul.bf16.vlgmr.msrb.gmra.mxu1 %v9230_v43  ;;  %3367 = vmatmul.bf16.vlgmr.msrb.gmra.mxu0 %v2976_v48  ;;  %v2481_v38 = vpop.f32.mrf.mxu2  ;;  %v2779_v23 = vpop.f32.mrf.mxu3  ;;  %v2985_v44 = vshll.u32 %v2951_v52, 16  ;;  %v8354_v48 = vld [vmem:[%s11684_s4 + $0xe8] sm:$0xff]  ;;  %v2983_v26 = vor.u32 %v2982_v46, %v2978_v16 }
 0x153   : > { %v2482_v55 = vadd.f32 %v2481_v38, %v2433_v8  ;;  %v10094_v58 = vadd.f32 %v2828_v4, %v2779_v23  ;;  %3738 = vmatpush.bf16.msra.mxu1 %v8354_v48  ;;  %v11961_v4 = vld [vmem:[#allocation41_spill] sm:$0xff]  ;;  %v11966_v16 = vld [vmem:[#allocation15_spill] sm:$0xff] }
 0x154   : > { %v10107_v2 = vadd.f32 %v10083_v41, %v11961_v4  ;;  %v2987_v8 = vrot.slane %v2985_v44, 1  ;;  %v11964_v4 = vld [vmem:[#allocation18_spill] sm:$0xff]  ;;  %v2953_v46 = vshrl.u32 %v11966_v16, 16  ;;  %v2992_v44 = vshll.u32 %v9289_v7, 16 }
 0x155   : > { %v10096_v50 = vadd.f32 %v2482_v55, %v1845_v12 }
 0x156   : > { %11962 = vst [vmem:[#allocation10_spill] sm:$0xff] %v10107_v2  ;;  %v1846_v52 = vadd.f32 %v9744_v28, %v10107_v2  ;;  %v10117_v63 = vsel %vm1281_vm2, %v2983_v26, %v2987_v8  ;;  %v8369_v28 = vld [vmem:[%s11684_s4 + $0x160] sm:$0xff]  ;;  %v2997_v16 = vshll.u32 %v2953_v46, 16 }
 0x157   : > { %v2434_v56 = vpop.f32.mrf.mxu1  ;;  %v2830_v14 = vpop.f32.mrf.mxu0  ;;  %11963 = vst [vmem:[#allocation41_spill] sm:$0xff] %v10117_v63  ;;  %3837 = vmatpush.bf16.msra.mxu3 %v8369_v28 }
 0x158   : > { %v2435_v31 = vadd.f32 %v2434_v56, %v9724_v22  ;;  %v8361_v22 = vld [vmem:[%s11684_s4 + $0x120] sm:$0xff]  ;;  %v10131_v56 = vadd.f32 %v10083_v41, %v9626_v33 }
 0x159   : > { %3788 = vmatpush.bf16.msra.mxu2 %v8361_v22  ;;  %v8353_v22 = vld [vmem:[%s11684_s4 + $0xe0] sm:$0xff] }
 0x15a   : > { %v2483_v10 = vpop.f32.mrf.mxu2  ;;  %v2781_v38 = vpop.f32.mrf.mxu3  ;;  %11965 = vst [vmem:[#allocation87_spill] sm:$0xff] %v10131_v56  ;;  %v1847_v26 = vadd.f32 %v9769_v49, %v10131_v56  ;;  %v8377_v49 = vld [vmem:[%s11684_s4 + $0x1a0] sm:$0xff]  ;;  %3739 = vmatpush.bf16.msra.mxu1 %v8353_v22 }
 0x15b   : > { %v2484_v15 = vadd.f32 %v2483_v10, %v2435_v31  ;;  %v10112_v12 = vadd.f32 %v2830_v14, %v2781_v38  ;;  %4109 = vmatpush.bf16.msra.mxu0 %v8377_v49 }
 0x15d   : > { %v10114_v23 = vadd.f32 %v2484_v15, %v1846_v52 }
 0x15f   : > { %v2437_v55 = vpop.f32.mrf.mxu1  ;;  %v2833_v48 = vpop.f32.mrf.mxu0  ;;  %3274 = vmatmul.bf16.gmra.mxu2 %v9219_v5  ;;  %3323 = vmatmul.bf16.gmra.mxu3 %v9230_v43 }
 0x160   : > { %v2438_v14 = vadd.f32 %v2437_v55, %v9746_v36  ;;  %v2990_v36 = vshrl.u32 %v9289_v7, 16  ;;  %v2994_v55 = vrot.slane %v2992_v44, 1 }
 0x162   : > { %2881 = vmatmul.bf16.gmra.mxu1 %v11964_v4  ;;  %3372 = vmatmul.bf16.gmra.mxu0 %v10117_v63  ;;  %v2486_v31 = vpop.f32.mrf.mxu2  ;;  %v2784_v10 = vpop.f32.mrf.mxu3 }
 0x163   : > { %v2487_v8 = vadd.f32 %v2486_v31, %v2438_v14  ;;  %v10138_v52 = vadd.f32 %v2833_v48, %v2784_v10  ;;  %v11967_v48 = vld [vmem:[#allocation52_spill] sm:$0xff]  ;;  %v11969_v14 = vld [vmem:[#allocation63_spill] sm:$0xff] }
 0x164   : > { %v10151_v28 = vadd.f32 %v10083_v41, %v11967_v48  ;;  %v11971_v48 = vld [vmem:[#allocation21_spill] sm:$0xff] }
 0x165   : > { %v10140_v38 = vadd.f32 %v2487_v8, %v1847_v26  ;;  %v2995_v26 = vor.u32 %v2994_v55, %v2990_v36  ;;  %v2999_v8 = vrot.slane %v2997_v16, 1  ;;  %v11974_v55 = vld [vmem:[#allocation19_spill] sm:$0xff] }
 0x166   : > { %11968 = vst [vmem:[#allocation15_spill] sm:$0xff] %v10151_v28  ;;  %v1848_v46 = vadd.f32 %v9789_v17, %v10151_v28  ;;  %v8360_v17 = vld [vmem:[%s11684_s4 + $0x118] sm:$0xff]  ;;  %v2955_v16 = vshrl.u32 %v11974_v55, 16 }
 0x167   : > { %v2439_v15 = vpop.f32.mrf.mxu1  ;;  %v2835_v33 = vpop.f32.mrf.mxu0  ;;  %v10161_v49 = vsel %vm1281_vm2, %v2995_v26, %v2999_v8  ;;  %3789 = vmatpush.bf16.msra.mxu2 %v8360_v17  ;;  %v8352_v17 = vld [vmem:[%s11684_s4 + $0xd8] sm:$0xff] }
 0x168   : > { %v2440_v31 = vadd.f32 %v2439_v15, %v11969_v14  ;;  %11970 = vst [vmem:[#allocation52_spill] sm:$0xff] %v10161_v49  ;;  %v11972_v15 = vld [vmem:[#allocation35_spill] sm:$0xff]  ;;  %v3004_v14 = vshll.u32 %v9342_v27, 16  ;;  %v3009_v55 = vshll.u32 %v2955_v16, 16  ;;  %3740 = vmatpush.bf16.msra.mxu1 %v8352_v17 }
 0x16a   : > { %v2488_v44 = vpop.f32.mrf.mxu2  ;;  %v2786_v56 = vpop.f32.mrf.mxu3 }
 0x16b   : > { %v2489_v10 = vadd.f32 %v2488_v44, %v2440_v31  ;;  %v10156_v2 = vadd.f32 %v2835_v33, %v2786_v56  ;;  %v8368_v56 = vld [vmem:[%s11684_s4 + $0x158] sm:$0xff]  ;;  %v10175_v33 = vadd.f32 %v10083_v41, %v11972_v15 }
 0x16c   : > { %3838 = vmatpush.bf16.msra.mxu3 %v8368_v56 }
 0x16d   : > { %v10158_v63 = vadd.f32 %v2489_v10, %v1848_v46  ;;  %11973 = vst [vmem:[#allocation63_spill] sm:$0xff] %v10175_v33  ;;  %v1849_v26 = vadd.f32 %v9814_v61, %v10175_v33  ;;  %v8376_v61 = vld [vmem:[%s11684_s4 + $0x198] sm:$0xff] }
 0x16e   : > { %4110 = vmatpush.bf16.msra.mxu0 %v8376_v61 }
 0x16f   : > { %v2442_v45 = vpop.f32.mrf.mxu1  ;;  %v2838_v22 = vpop.f32.mrf.mxu0  ;;  %3279 = vmatmul.bf16.gmra.mxu2 %v9289_v7  ;;  %3328 = vmatmul.bf16.gmra.mxu3 %v11964_v4 }
 0x170   : > { %v2443_v36 = vadd.f32 %v2442_v45, %v9791_v18  ;;  %v3002_v18 = vshrl.u32 %v9342_v27, 16  ;;  %v3006_v45 = vrot.slane %v3004_v14, 1 }
 0x172   : > { %2886 = vmatmul.bf16.gmra.mxu1 %v11971_v48  ;;  %3377 = vmatmul.bf16.gmra.mxu0 %v10161_v49  ;;  %v2491_v31 = vpop.f32.mrf.mxu2  ;;  %v2789_v44 = vpop.f32.mrf.mxu3 }
 0x173   : > { %v2492_v8 = vadd.f32 %v2491_v31, %v2443_v36  ;;  %v10182_v46 = vadd.f32 %v2838_v22, %v2789_v44  ;;  %v11975_v22 = vld [vmem:[#allocation42_spill] sm:$0xff]  ;;  %v11977_v36 = vld [vmem:[#allocation67_spill] sm:$0xff] }
 0x174   : > { %v10195_v56 = vadd.f32 %v10083_v41, %v11975_v22  ;;  %v11979_v22 = vld [vmem:[#allocation25_spill] sm:$0xff] }
 0x175   : > { %v10184_v28 = vadd.f32 %v2492_v8, %v1849_v26  ;;  %v3007_v26 = vor.u32 %v3006_v45, %v3002_v18  ;;  %v3011_v8 = vrot.slane %v3009_v55, 1  ;;  %v11982_v45 = vld [vmem:[#allocation23_spill] sm:$0xff] }
 0x176   : > { %11976 = vst [vmem:[#allocation35_spill] sm:$0xff] %v10195_v56  ;;  %v1850_v16 = vadd.f32 %v9834_v9, %v10195_v56  ;;  %v8359_v9 = vld [vmem:[%s11684_s4 + $0x110] sm:$0xff]  ;;  %v2957_v55 = vshrl.u32 %v11982_v45, 16 }
 0x177   : > { %v2444_v10 = vpop.f32.mrf.mxu1  ;;  %v2840_v15 = vpop.f32.mrf.mxu0  ;;  %v10205_v61 = vsel %vm1281_vm2, %v3007_v26, %v3011_v8  ;;  %3790 = vmatpush.bf16.msra.mxu2 %v8359_v9  ;;  %v11983_v26 = vld [vmem:[#allocation71_spill] sm:$0xff]  ;;  %v8351_v9 = vld [vmem:[%s11684_s4 + $0xd0] sm:$0xff] }
 0x178   : > { %v2445_v31 = vadd.f32 %v2444_v10, %v11977_v36  ;;  %11978 = vst [vmem:[#allocation19_spill] sm:$0xff] %v10205_v61  ;;  %v11980_v10 = vld [vmem:[#allocation46_spill] sm:$0xff]  ;;  %v3016_v36 = vshll.u32 %v9414_v20, 16  ;;  %v3021_v45 = vshll.u32 %v2957_v55, 16  ;;  %3741 = vmatpush.bf16.msra.mxu1 %v8351_v9 }
 0x17a   : > { %v2493_v14 = vpop.f32.mrf.mxu2  ;;  %v2791_v33 = vpop.f32.mrf.mxu3 }
 0x17b   : > { %v2494_v44 = vadd.f32 %v2493_v14, %v2445_v31  ;;  %v10200_v49 = vadd.f32 %v2840_v15, %v2791_v33  ;;  %v8367_v33 = vld [vmem:[%s11684_s4 + $0x150] sm:$0xff]  ;;  %v10219_v15 = vadd.f32 %v10083_v41, %v11980_v10 }
 0x17c   : > { %3839 = vmatpush.bf16.msra.mxu3 %v8367_v33  ;;  %v8375_v33 = vld [vmem:[%s11684_s4 + $0x190] sm:$0xff] }
 0x17d   : > { %v10202_v43 = vadd.f32 %v2494_v44, %v1850_v16  ;;  %11981 = vst [vmem:[#allocation42_spill] sm:$0xff] %v10219_v15  ;;  %v1851_v8 = vadd.f32 %v11983_v26, %v10219_v15  ;;  %4111 = vmatpush.bf16.msra.mxu0 %v8375_v33 }
 0x17f   : > { %v2447_v4 = vpop.f32.mrf.mxu1  ;;  %v2843_v17 = vpop.f32.mrf.mxu0  ;;  %3284 = vmatmul.bf16.gmra.mxu2 %v9342_v27  ;;  %3333 = vmatmul.bf16.gmra.mxu3 %v11971_v48 }
 0x180   : > { %v2448_v18 = vadd.f32 %v2447_v4, %v9836_v25  ;;  %v3014_v25 = vshrl.u32 %v9414_v20, 16  ;;  %v3018_v4 = vrot.slane %v3016_v36, 1 }
 0x182   : > { %2891 = vmatmul.bf16.gmra.mxu1 %v11979_v22  ;;  %3382 = vmatmul.bf16.gmra.mxu0 %v10205_v61  ;;  %v2496_v31 = vpop.f32.mrf.mxu2  ;;  %v2794_v16 = vpop.f32.mrf.mxu3 }
 0x183   : > { %v2497_v14 = vadd.f32 %v2496_v31, %v2448_v18  ;;  %v10226_v44 = vadd.f32 %v2843_v17, %v2794_v16  ;;  %v11984_v17 = vld [vmem:[#allocation53_spill] sm:$0xff]  ;;  %v11986_v31 = vld [vmem:[#allocation72_spill] sm:$0xff] }
 0x184   : > { %v10239_v18 = vadd.f32 %v10083_v41, %v11984_v17  ;;  %v11988_v41 = vld [vmem:[#allocation29_spill] sm:$0xff] }
 0x185   : > { %v10228_v61 = vadd.f32 %v2497_v14, %v1851_v8  ;;  %v3019_v8 = vor.u32 %v3018_v4, %v3014_v25  ;;  %v3023_v14 = vrot.slane %v3021_v45, 1  ;;  %v11990_v4 = vld [vmem:[#allocation28_spill] sm:$0xff] }
 0x186   : > { %11985 = vst [vmem:[#allocation67_spill] sm:$0xff] %v10239_v18  ;;  %v1852_v55 = vadd.f32 %v9880_v60, %v10239_v18  ;;  %v8358_v60 = vld [vmem:[%s11684_s4 + $0x108] sm:$0xff]  ;;  %v3028_v45 = vshll.u32 %v11990_v4, 16 }
 0x187   : > { %v2449_v56 = vpop.f32.mrf.mxu1  ;;  %v2845_v10 = vpop.f32.mrf.mxu0  ;;  %v10249_v33 = vsel %vm1281_vm2, %v3019_v8, %v3023_v14  ;;  %3791 = vmatpush.bf16.msra.mxu2 %v8358_v60  ;;  %v8350_v60 = vld [vmem:[%s11684_s4 + $0xc8] sm:$0xff] }
 0x188   : > { %v2450_v26 = vadd.f32 %v2449_v56, %v11986_v31  ;;  %11987 = vst [vmem:[#allocation46_spill] sm:$0xff] %v10249_v33  ;;  %v8366_v56 = vld [vmem:[%s11684_s4 + $0x148] sm:$0xff]  ;;  %3742 = vmatpush.bf16.msra.mxu1 %v8350_v60  ;;  %v11995_v60 = vld [vmem:[#allocation37_spill] sm:$0xff] }
 0x189   : > { %3840 = vmatpush.bf16.msra.mxu3 %v8366_v56  ;;  %v11991_v31 = vld [vmem:[#allocation39_spill] sm:$0xff] }
 0x18a   : > { %v2498_v36 = vpop.f32.mrf.mxu2  ;;  %v2796_v15 = vpop.f32.mrf.mxu3 }
 0x18b   : > { %v2499_v16 = vadd.f32 %v2498_v36, %v2450_v26  ;;  %v10244_v48 = vadd.f32 %v2845_v10, %v2796_v15  ;;  %v11989_v10 = vld [vmem:[#allocation27_spill] sm:$0xff]  ;;  %v1853_v26 = vadd.f32 %v9906_v57, %v11991_v31 }
 0x18c   : > { %v2959_v25 = vshrl.u32 %v11989_v10, 16  ;;  %v8374_v57 = vld [vmem:[%s11684_s4 + $0x188] sm:$0xff] }
 0x18d   : > { %v10246_v32 = vadd.f32 %v2499_v16, %v1852_v55  ;;  %4112 = vmatpush.bf16.msra.mxu0 %v8374_v57 }
 0x18e   : > { %v3033_v10 = vshll.u32 %v2959_v25, 16 }
 0x18f   : > { %v2452_v1 = vpop.f32.mrf.mxu1  ;;  %v2848_v9 = vpop.f32.mrf.mxu0  ;;  %3289 = vmatmul.bf16.gmra.mxu2 %v9414_v20  ;;  %3338 = vmatmul.bf16.gmra.mxu3 %v11979_v22 }
 0x190   : > { %v2453_v15 = vadd.f32 %v2452_v1, %v9882_v11  ;;  %v3026_v11 = vshrl.u32 %v11990_v4, 16  ;;  %v3030_v1 = vrot.slane %v3028_v45, 1 }
 0x192   : > { %2896 = vmatmul.bf16.gmra.mxu1 %v11988_v41  ;;  %3387 = vmatmul.bf16.gmra.mxu0 %v10249_v33  ;;  %v2501_v17 = vpop.f32.mrf.mxu2  ;;  %v2799_v14 = vpop.f32.mrf.mxu3 }
 0x193   : > { %v2502_v8 = vadd.f32 %v2501_v17, %v2453_v15  ;;  %v10266_v36 = vadd.f32 %v2848_v9, %v2799_v14  ;;  %v11992_v9 = vld [vmem:[#allocation76_spill] sm:$0xff]  ;;  %v3031_v15 = vor.u32 %v3030_v1, %v3026_v11  ;;  %v3035_v17 = vrot.slane %v3033_v10, 1 }
 0x194   : > { %v11996_v11 = vld [vmem:[#allocation32_spill] sm:$0xff]  ;;  %v3040_v10 = vshll.u32 %v9561_v62, 16 }
 0x195   : > { %v10268_v16 = vadd.f32 %v2502_v8, %v1853_v26  ;;  %v11993_v8 = vld [vmem:[#allocation44_spill] sm:$0xff]  ;;  %v10285_v42 = vsel %vm1281_vm2, %v3031_v15, %v3035_v17  ;;  %v2961_v1 = vshrl.u32 %v11996_v11, 16 }
 0x196   : > { %v1854_v14 = vadd.f32 %v9940_v51, %v11993_v8  ;;  %11994 = vst [vmem:[#allocation23_spill] sm:$0xff] %v10285_v42  ;;  %v8357_v51 = vld [vmem:[%s11684_s4 + $0x100] sm:$0xff]  ;;  %v2562_v8 = vunpack.c.h.b16 %v9985_v39  ;;  %v12002_v39 = vld [vmem:[#allocation43_spill] sm:$0xff] }
 0x197   : > { %v2454_v55 = vpop.f32.mrf.mxu1  ;;  %v2850_v18 = vpop.f32.mrf.mxu0  ;;  %3792 = vmatpush.bf16.msra.mxu2 %v8357_v51  ;;  %v3045_v11 = vshll.u32 %v2961_v1, 16  ;;  %v8349_v51 = vld [vmem:[%s11684_s4 + $0xc0] sm:$0xff] }
 0x198   : > { %v2455_v56 = vadd.f32 %v2454_v55, %v11992_v9  ;;  %v11997_v9 = vld [vmem:[#allocation50_spill] sm:$0xff]  ;;  %3743 = vmatpush.bf16.msra.mxu1 %v8349_v51 }
 0x19a   : > { %v2503_v26 = vpop.f32.mrf.mxu2  ;;  %v2801_v25 = vpop.f32.mrf.mxu3 }
 0x19b   : > { %v2504_v45 = vadd.f32 %v2503_v26, %v2455_v56  ;;  %v10280_v31 = vadd.f32 %v2850_v18, %v2801_v25  ;;  %v8365_v18 = vld [vmem:[%s11684_s4 + $0x140] sm:$0xff]  ;;  %v1855_v56 = vadd.f32 %v9969_v53, %v11997_v9 }
 0x19c   : > { %3841 = vmatpush.bf16.msra.mxu3 %v8365_v18  ;;  %v8373_v53 = vld [vmem:[%s11684_s4 + $0x180] sm:$0xff] }
 0x19d   : > { %v10282_v22 = vadd.f32 %v2504_v45, %v1854_v14  ;;  %4113 = vmatpush.bf16.msra.mxu0 %v8373_v53  ;;  %v8404_v53 = vld [vmem:[%s11684_s4 + $0x38] sm:$0xff] }
 0x19f   : > { %v2457_v33 = vpop.f32.mrf.mxu1  ;;  %v2853_v54 = vpop.f32.mrf.mxu0  ;;  %3294 = vmatmul.bf16.gmra.mxu2 %v11990_v4  ;;  %3343 = vmatmul.bf16.gmra.mxu3 %v11988_v41 }
 0x1a0   : > { %v2458_v55 = vadd.f32 %v2457_v33, %v9942_v19  ;;  %v3038_v19 = vshrl.u32 %v9561_v62, 16  ;;  %v3042_v33 = vrot.slane %v3040_v10, 1  ;;  %4477 = vmatpush.bf16.msrb.mxu3 %v8404_v53 }
 0x1a2   : > { %2901 = vmatmul.bf16.gmra.mxu1 %v11995_v60  ;;  %3392 = vmatmul.bf16.gmra.mxu0 %v10285_v42  ;;  %v2506_v57 = vpop.f32.mrf.mxu2  ;;  %v2804_v17 = vpop.f32.mrf.mxu3  ;;  %v3043_v18 = vor.u32 %v3042_v33, %v3038_v19  ;;  %v2963_v19 = vshrl.u32 %v12002_v39, 16  ;;  %v3052_v33 = vshll.u32 %v9633_v3, 16 }
 0x1a3   : > { %v2507_v15 = vadd.f32 %v2506_v57, %v2458_v55  ;;  %v10302_v26 = vadd.f32 %v2853_v54, %v2804_v17  ;;  %v3047_v55 = vrot.slane %v3045_v11, 1  ;;  %v8396_v11 = vld [vmem:[%s11684_s4 + $0x238] sm:$0xff] }
 0x1a4   : > { %4204 = vmatpush.bf16.msrb.mxu2 %v8396_v11 }
 0x1a5   : > { %v10304_v45 = vadd.f32 %v2507_v15, %v1855_v56  ;;  %v11998_v56 = vld [vmem:[#allocation55_spill] sm:$0xff]  ;;  %v10322_v51 = vsel %vm1281_vm2, %v3043_v18, %v3047_v55  ;;  %v12003_v18 = vld [vmem:[#allocation40_spill] sm:$0xff] }
 0x1a6   : > { %v1856_v15 = vadd.f32 %v9993_v35, %v11998_v56  ;;  %12000 = vst [vmem:[#allocation53_spill] sm:$0xff] %v10322_v51  ;;  %v2563_v35 = vpack.c.b16 %v2562_v8, %v2562_v8  ;;  %v1857_v8 = vadd.f32 %v10017_v13, %v12003_v18 }
 0x1a7   : > { %v2459_v14 = vpop.f32.mrf.mxu1  ;;  %v2855_v25 = vpop.f32.mrf.mxu0 }
 0x1a8   : > { %v2460_v54 = vadd.f32 %v2459_v14, %v9971_v40  ;;  %v12001_v40 = vld [vmem:[#allocation49_spill] sm:$0xff]  ;;  %v2567_v14 = vshll.u32 %v10036_v59, 16 }
 0x1aa   : > { %v2508_v57 = vpop.f32.mrf.mxu2  ;;  %v2806_v1 = vpop.f32.mrf.mxu3 }
 0x1ab   : > { %v2509_v10 = vadd.f32 %v2508_v57, %v2460_v54  ;;  %v10316_v17 = vadd.f32 %v2855_v25, %v2806_v1  ;;  %v2572_v1 = vshll.u32 %v2563_v35, 16  ;;  %v8412_v35 = vld [vmem:[%s11684_s4 + $0x78] sm:$0xff] }
 0x1ac   : > { %4526 = vmatpush.bf16.msrb.mxu0 %v8412_v35 }
 0x1ad   : > { %v10319_v42 = vadd.f32 %v2509_v10, %v1856_v15  ;;  %v2565_v15 = vshrl.u32 %v10036_v59, 16  ;;  %v2569_v10 = vrot.slane %v2567_v14, 1 }
 0x1af   : > { %v2462_v9 = vpop.f32.mrf.mxu1  ;;  %11999 = vst [vmem:[#allocation71_spill] sm:$0xff] %v10319_v42  ;;  %v2858_v41 = vpop.f32.mrf.mxu0  ;;  %3299 = vmatmul.bf16.gmra.mxu2 %v9561_v62  ;;  %3348 = vmatmul.bf16.gmra.mxu3 %v11995_v60  ;;  %v3054_v60 = vrot.slane %v3052_v33, 1  ;;  %v3057_v42 = vshll.u32 %v2963_v19, 16  ;;  %v2570_v13 = vor.u32 %v2569_v10, %v2565_v15  ;;  %v12008_v10 = vld [vmem:[#allocation57_spill] sm:$0xff] }
 0x1b0   : > { %v2463_v25 = vadd.f32 %v2462_v9, %v9995_v6 }
 0x1b2   : > { %2906 = vmatmul.bf16.gmra.mxu1 %v12001_v40  ;;  %3397 = vmatmul.bf16.gmra.mxu0 %v10322_v51  ;;  %v2511_v54 = vpop.f32.mrf.mxu2  ;;  %v2809_v57 = vpop.f32.mrf.mxu3  ;;  %v3050_v51 = vshrl.u32 %v9633_v3, 16 }
 0x1b3   : > { %v2512_v55 = vadd.f32 %v2511_v54, %v2463_v25  ;;  %v10340_v6 = vadd.f32 %v2858_v41, %v2809_v57  ;;  %v2574_v25 = vrot.slane %v2572_v1, 1  ;;  %v3059_v41 = vrot.slane %v3057_v42, 1  ;;  %v8388_v54 = vld [vmem:[%s11684_s4 + $0x1f8] sm:$0xff] }
 0x1b4   : > { %v3055_v53 = vor.u32 %v3054_v60, %v3050_v51  ;;  %4155 = vmatpush.bf16.msrb.mxu1 %v8388_v54  ;;  %v3443_v1 = vshll.u32 %v12008_v10, 16 }
 0x1b5   : > { %v10343_v39 = vadd.f32 %v2512_v55, %v1857_v8  ;;  %v12004_v8 = vld [vmem:[#allocation45_spill] sm:$0xff]  ;;  %v10359_v60 = vsel %vm1281_vm2, %v2570_v13, %v2574_v25  ;;  %v8395_v13 = vld [vmem:[%s11684_s4 + $0x230] sm:$0xff] }
 0x1b6   : > { %v1858_v19 = vadd.f32 %v10038_v24, %v12004_v8  ;;  %12005 = vst [vmem:[#allocation72_spill] sm:$0xff] %v10359_v60  ;;  %v8403_v25 = vld [vmem:[%s11684_s4 + $0x30] sm:$0xff]  ;;  %4205 = vmatpush.bf16.msrb.mxu2 %v8395_v13 }
 0x1b7   : > { %v2464_v9 = vpop.f32.mrf.mxu1  ;;  %v2860_v56 = vpop.f32.mrf.mxu0  ;;  %4478 = vmatpush.bf16.msrb.mxu3 %v8403_v25  ;;  %v12010_v25 = vld [vmem:[#allocation56_spill] sm:$0xff] }
 0x1b8   : > { %v2465_v11 = vadd.f32 %v2464_v9, %v10019_v47  ;;  %v10364_v9 = vsel %vm1281_vm2, %v3055_v53, %v3059_v41  ;;  %v12009_v53 = vld [vmem:[#allocation51_spill] sm:$0xff] }
 0x1b9   : > { %12006 = vst [vmem:[#allocation27_spill] sm:$0xff] %v10364_v9  ;;  %v1859_v41 = vadd.f32 %v10058_v29, %v12009_v53 }
 0x1ba   : > { %v2513_v14 = vpop.f32.mrf.mxu2  ;;  %v2811_v55 = vpop.f32.mrf.mxu3 }
 0x1bb   : > { %v2514_v33 = vadd.f32 %v2513_v14, %v2465_v11  ;;  %v10356_v47 = vadd.f32 %v2860_v56, %v2811_v55  ;;  %v12007_v56 = vld [vmem:[#allocation54_spill] sm:$0xff]  ;;  %v3441_v55 = vshrl.u32 %v12008_v10, 16 }
 0x1bc   : > { %v3424_v15 = vshrl.u32 %v12007_v56, 16 }
 0x1bd   : > { %v10361_v51 = vadd.f32 %v2514_v33, %v1858_v19 }
 0x1be   : > { %v3448_v56 = vshll.u32 %v3424_v15, 16 }
 0x1bf   : > { %v2467_v42 = vpop.f32.mrf.mxu1  ;;  %v2863_v57 = vpop.f32.mrf.mxu0  ;;  %3304 = vmatmul.bf16.gmra.mxu2 %v9633_v3  ;;  %3353 = vmatmul.bf16.gmra.mxu3 %v12001_v40 }
 0x1c0   : > { %v2468_v24 = vadd.f32 %v2467_v42, %v10040_v37  ;;  %v3445_v42 = vrot.slane %v3443_v1, 1  ;;  %v3450_v29 = vrot.slane %v3448_v56, 1  ;;  %v8394_v56 = vld [vmem:[%s11684_s4 + $0x228] sm:$0xff] }
 0x1c1   : > { %4206 = vmatpush.bf16.msrb.mxu2 %v8394_v56  ;;  %v8386_v56 = vld [vmem:[%s11684_s4 + $0x1e8] sm:$0xff] }
 0x1c2   : > { %2911 = vmatmul.bf16.gmra.mxu1 %v10359_v60  ;;  %3402 = vmatmul.bf16.gmra.mxu0 %v10364_v9  ;;  %v2516_v11 = vpop.f32.mrf.mxu2  ;;  %v2814_v35 = vpop.f32.mrf.mxu3  ;;  %v3446_v60 = vor.u32 %v3445_v42, %v3441_v55 }
 0x1c3   : > { %v2517_v54 = vadd.f32 %v2516_v11, %v2468_v24  ;;  %v10382_v37 = vadd.f32 %v2863_v57, %v2814_v35  ;;  %v8387_v24 = vld [vmem:[%s11684_s4 + $0x1f0] sm:$0xff]  ;;  %v1860_v11 = vadd.f32 %v10068_v21, %v12010_v25  ;;  %v12012_v21 = vld [vmem:[#allocation58_spill] sm:$0xff] }
 0x1c4   : > { %v8411_v57 = vld [vmem:[%s11684_s4 + $0x70] sm:$0xff]  ;;  %4156 = vmatpush.bf16.msrb.mxu1 %v8387_v24  ;;  %v10402_v55 = vsel %vm1281_vm2, %v3446_v60, %v3450_v29 }
 0x1c5   : > { %v10384_v19 = vadd.f32 %v2517_v54, %v1859_v41  ;;  %4527 = vmatpush.bf16.msrb.mxu0 %v8411_v57  ;;  %12011 = vst [vmem:[#allocation76_spill] sm:$0xff] %v10402_v55 }
 0x1c7   : > { %v2469_v14 = vpop.f32.mrf.mxu1  ;;  %v2865_v33 = vpop.f32.mrf.mxu0 }
 0x1c8   : > { %v2470_v59 = vadd.f32 %v2469_v14, %v10060_v34  ;;  %4157 = vmatpush.bf16.msrb.mxu1 %v8386_v56 }
 0x1ca   : > { %v2518_v13 = vpop.f32.mrf.mxu2  ;;  %v2816_v1 = vpop.f32.mrf.mxu3 }
 0x1cb   : > { %v2519_v41 = vadd.f32 %v2518_v13, %v2470_v59  ;;  %v10396_v34 = vadd.f32 %v2865_v33, %v2816_v1  ;;  %v12014_v33 = vld [vmem:[#allocation60_spill] sm:$0xff] }
 0x1cc   : > { %v3455_v42 = vshll.u32 %v12014_v33, 16  ;;  %v3453_v1 = vshrl.u32 %v12014_v33, 16 }
 0x1cd   : > { %v10398_v54 = vadd.f32 %v2519_v41, %v1860_v11 }
 0x1cf   : > { %v2877_v15 = vpop.f32.mrf.mxu1  ;;  %v3368_v14 = vpop.f32.mrf.mxu0  ;;  %3793 = vmatmul.bf16.vlgmr.msra.gmra.mxu2 %v12012_v21  ;;  %3842 = vmatmul.bf16.vlgmr.msra.gmra.mxu3 %v10402_v55 }
 0x1d0   : > { %v2878_v35 = vadd.f32 %v2877_v15, %v10094_v58  ;;  %v12013_v58 = vld [vmem:[#allocation59_spill] sm:$0xff]  ;;  %v3457_v15 = vrot.slane %v3455_v42, 1 }
 0x1d1   : > { %v3426_v60 = vshrl.u32 %v12013_v58, 16 }
 0x1d2   : > { %v2917_v59 = vadd.f32 %v2878_v35, %v10096_v50  ;;  %3744 = vmatmul.bf16.vlgmr.msra.gmra.mxu1 %v12008_v10  ;;  %4114 = vmatmul.bf16.vlgmr.msra.gmra.mxu0 %v9219_v5  ;;  %v8402_v50 = vld [vmem:[%s11684_s4 + $0x28] sm:$0xff]  ;;  %v3270_v29 = vpop.f32.mrf.mxu2  ;;  %v3319_v24 = vpop.f32.mrf.mxu3  ;;  %v3458_v55 = vor.u32 %v3457_v15, %v3453_v1  ;;  %v12017_v1 = vld [vmem:[#allocation62_spill] sm:$0xff] }
 0x1d3   : > { %4479 = vmatpush.bf16.msrb.mxu3 %v8402_v50  ;;  %v3320_v57 = vadd.f32 %v3319_v24, %v3270_v29  ;;  %v3460_v35 = vshll.u32 %v3426_v60, 16  ;;  %v3428_v15 = vshrl.u32 %v12017_v1, 16 }
 0x1d4   : > { %2933 = vst [vmem:[%s10407_s20] sm:$0xff] %v2917_v59 }
 0x1d5   : > { %v10425_v59 = vadd.f32 %v3368_v14, %v3320_v57  ;;  %v3462_v5 = vrot.slane %v3460_v35, 1 }
 0x1d7   : > { %v2879_v13 = vpop.f32.mrf.mxu1  ;;  %v3370_v41 = vpop.f32.mrf.mxu0  ;;  %v10437_v24 = vsel %vm1281_vm2, %v3458_v55, %v3462_v5  ;;  %v8393_v5 = vld [vmem:[%s11684_s4 + $0x220] sm:$0xff] }
 0x1d8   : > { %v2880_v11 = vadd.f32 %v2879_v13, %v10112_v12  ;;  %v8410_v12 = vld [vmem:[%s11684_s4 + $0x68] sm:$0xff]  ;;  %12015 = vst [vmem:[#allocation32_spill] sm:$0xff] %v10437_v24  ;;  %4207 = vmatpush.bf16.msrb.mxu2 %v8393_v5  ;;  %v8385_v5 = vld [vmem:[%s11684_s4 + $0x1e0] sm:$0xff] }
 0x1d9   : > { %4528 = vmatpush.bf16.msrb.mxu0 %v8410_v12  ;;  %4158 = vmatpush.bf16.msrb.mxu1 %v8385_v5 }
 0x1da   : > { %v2918_v58 = vadd.f32 %v2880_v11, %v10114_v23  ;;  %v3272_v50 = vpop.f32.mrf.mxu2  ;;  %v3321_v29 = vpop.f32.mrf.mxu3  ;;  %v12016_v11 = vld [vmem:[#allocation61_spill] sm:$0xff] }
 0x1db   : > { %v3322_v14 = vadd.f32 %v3321_v29, %v3272_v50 }
 0x1dc   : > { %2934 = vst [vmem:[%s10407_s20 + $0x10] sm:$0xff] %v2918_v58 }
 0x1dd   : > { %v10439_v57 = vadd.f32 %v3370_v41, %v3322_v14 }
 0x1df   : > { %v2882_v60 = vpop.f32.mrf.mxu1  ;;  %v3373_v42 = vpop.f32.mrf.mxu0  ;;  %3798 = vmatmul.bf16.gmra.mxu2 %v12016_v11  ;;  %3847 = vmatmul.bf16.gmra.mxu3 %v10437_v24 }
 0x1e0   : > { %v2883_v23 = vadd.f32 %v2882_v60, %v10138_v52  ;;  %v12018_v52 = vld [vmem:[#allocation64_spill] sm:$0xff]  ;;  %v3472_v60 = vshll.u32 %v3428_v15, 16 }
 0x1e1   : > { %v3467_v35 = vshll.u32 %v12018_v52, 16  ;;  %v3465_v29 = vshrl.u32 %v12018_v52, 16 }
 0x1e2   : > { %v2919_v13 = vadd.f32 %v2883_v23, %v10140_v38  ;;  %3749 = vmatmul.bf16.gmra.mxu1 %v12014_v33  ;;  %4119 = vmatmul.bf16.gmra.mxu0 %v9289_v7  ;;  %v8401_v38 = vld [vmem:[%s11684_s4 + $0x20] sm:$0xff]  ;;  %v3275_v55 = vpop.f32.mrf.mxu2  ;;  %v3324_v41 = vpop.f32.mrf.mxu3  ;;  %v3474_v24 = vrot.slane %v3472_v60, 1 }
 0x1e3   : > { %4480 = vmatpush.bf16.msrb.mxu3 %v8401_v38  ;;  %v3325_v58 = vadd.f32 %v3324_v41, %v3275_v55  ;;  %v3469_v14 = vrot.slane %v3467_v35, 1 }
 0x1e4   : > { %2935 = vst [vmem:[%s10407_s20 + $0x40] sm:$0xff] %v2919_v13 }
 0x1e5   : > { %v10457_v23 = vadd.f32 %v3373_v42, %v3325_v58  ;;  %v3470_v1 = vor.u32 %v3469_v14, %v3465_v29  ;;  %v12021_v29 = vld [vmem:[#allocation66_spill] sm:$0xff] }
 0x1e6   : > { %v3430_v14 = vshrl.u32 %v12021_v29, 16 }
 0x1e7   : > { %v2884_v56 = vpop.f32.mrf.mxu1  ;;  %v3375_v50 = vpop.f32.mrf.mxu0  ;;  %v10469_v41 = vsel %vm1281_vm2, %v3470_v1, %v3474_v24  ;;  %v8392_v24 = vld [vmem:[%s11684_s4 + $0x218] sm:$0xff] }
 0x1e8   : > { %v2885_v12 = vadd.f32 %v2884_v56, %v10156_v2  ;;  %v8409_v2 = vld [vmem:[%s11684_s4 + $0x60] sm:$0xff]  ;;  %12019 = vst [vmem:[#allocation43_spill] sm:$0xff] %v10469_v41  ;;  %4208 = vmatpush.bf16.msrb.mxu2 %v8392_v24  ;;  %v8384_v24 = vld [vmem:[%s11684_s4 + $0x1d8] sm:$0xff] }
 0x1e9   : > { %4529 = vmatpush.bf16.msrb.mxu0 %v8409_v2  ;;  %4159 = vmatpush.bf16.msrb.mxu1 %v8384_v24 }
 0x1ea   : > { %v2920_v13 = vadd.f32 %v2885_v12, %v10158_v63  ;;  %v3277_v38 = vpop.f32.mrf.mxu2  ;;  %v3326_v55 = vpop.f32.mrf.mxu3  ;;  %v12020_v12 = vld [vmem:[#allocation65_spill] sm:$0xff] }
 0x1eb   : > { %v3327_v42 = vadd.f32 %v3326_v55, %v3277_v38 }
 0x1ec   : > { %2936 = vst [vmem:[%s10407_s20 + $0x50] sm:$0xff] %v2920_v13 }
 0x1ed   : > { %v10471_v58 = vadd.f32 %v3375_v50, %v3327_v42 }
 0x1ef   : > { %v2887_v15 = vpop.f32.mrf.mxu1  ;;  %v3378_v35 = vpop.f32.mrf.mxu0  ;;  %3803 = vmatmul.bf16.gmra.mxu2 %v12020_v12  ;;  %3852 = vmatmul.bf16.gmra.mxu3 %v10469_v41 }
 0x1f0   : > { %v2888_v63 = vadd.f32 %v2887_v15, %v10182_v46  ;;  %v12022_v46 = vld [vmem:[#allocation68_spill] sm:$0xff]  ;;  %v3484_v15 = vshll.u32 %v3430_v14, 16 }
 0x1f1   : > { %v3479_v60 = vshll.u32 %v12022_v46, 16  ;;  %v3477_v55 = vshrl.u32 %v12022_v46, 16 }
 0x1f2   : > { %v2921_v56 = vadd.f32 %v2888_v63, %v10184_v28  ;;  %3754 = vmatmul.bf16.gmra.mxu1 %v12018_v52  ;;  %4124 = vmatmul.bf16.gmra.mxu0 %v9342_v27  ;;  %v8400_v28 = vld [vmem:[%s11684_s4 + $0x18] sm:$0xff]  ;;  %v3280_v50 = vpop.f32.mrf.mxu2  ;;  %v3329_v13 = vpop.f32.mrf.mxu3  ;;  %v3486_v41 = vrot.slane %v3484_v15, 1 }
 0x1f3   : > { %4481 = vmatpush.bf16.msrb.mxu3 %v8400_v28  ;;  %v3330_v1 = vadd.f32 %v3329_v13, %v3280_v50  ;;  %v3481_v42 = vrot.slane %v3479_v60, 1 }
 0x1f4   : > { %2937 = vst [vmem:[%s10407_s20 + $0x80] sm:$0xff] %v2921_v56 }
 0x1f5   : > { %v10489_v63 = vadd.f32 %v3378_v35, %v3330_v1  ;;  %v3482_v29 = vor.u32 %v3481_v42, %v3477_v55  ;;  %v12025_v55 = vld [vmem:[#allocation70_spill] sm:$0xff] }
 0x1f6   : > { %v3432_v42 = vshrl.u32 %v12025_v55, 16 }
 0x1f7   : > { %v2889_v5 = vpop.f32.mrf.mxu1  ;;  %v3380_v38 = vpop.f32.mrf.mxu0  ;;  %v10501_v13 = vsel %vm1281_vm2, %v3482_v29, %v3486_v41  ;;  %v8391_v41 = vld [vmem:[%s11684_s4 + $0x210] sm:$0xff] }
 0x1f8   : > { %v2890_v2 = vadd.f32 %v2889_v5, %v10200_v49  ;;  %v8408_v49 = vld [vmem:[%s11684_s4 + $0x58] sm:$0xff]  ;;  %12023 = vst [vmem:[#allocation45_spill] sm:$0xff] %v10501_v13  ;;  %4209 = vmatpush.bf16.msrb.mxu2 %v8391_v41  ;;  %v8383_v41 = vld [vmem:[%s11684_s4 + $0x1d0] sm:$0xff] }
 0x1f9   : > { %4530 = vmatpush.bf16.msrb.mxu0 %v8408_v49  ;;  %4160 = vmatpush.bf16.msrb.mxu1 %v8383_v41 }
 0x1fa   : > { %v2922_v56 = vadd.f32 %v2890_v2, %v10202_v43  ;;  %v3282_v28 = vpop.f32.mrf.mxu2  ;;  %v3331_v50 = vpop.f32.mrf.mxu3  ;;  %v12024_v2 = vld [vmem:[#allocation69_spill] sm:$0xff] }
 0x1fb   : > { %v3332_v35 = vadd.f32 %v3331_v50, %v3282_v28 }
 0x1fc   : > { %2938 = vst [vmem:[%s10407_s20 + $0x90] sm:$0xff] %v2922_v56 }
 0x1fd   : > { %v10503_v1 = vadd.f32 %v3380_v38, %v3332_v35 }
 0x1ff   : > { %v2892_v14 = vpop.f32.mrf.mxu1  ;;  %v3383_v60 = vpop.f32.mrf.mxu0  ;;  %3808 = vmatmul.bf16.gmra.mxu2 %v12024_v2  ;;  %3857 = vmatmul.bf16.gmra.mxu3 %v10501_v13 }
 0x200   : > { %v2893_v43 = vadd.f32 %v2892_v14, %v10226_v44  ;;  %v12026_v44 = vld [vmem:[#allocation73_spill] sm:$0xff]  ;;  %v3496_v14 = vshll.u32 %v3432_v42, 16 }
 0x201   : > { %v3491_v15 = vshll.u32 %v12026_v44, 16  ;;  %v3489_v50 = vshrl.u32 %v12026_v44, 16 }
 0x202   : > { %v2923_v5 = vadd.f32 %v2893_v43, %v10228_v61  ;;  %3759 = vmatmul.bf16.gmra.mxu1 %v12022_v46  ;;  %4129 = vmatmul.bf16.gmra.mxu0 %v9414_v20  ;;  %v8399_v61 = vld [vmem:[%s11684_s4 + $0x10] sm:$0xff]  ;;  %v3285_v38 = vpop.f32.mrf.mxu2  ;;  %v3334_v56 = vpop.f32.mrf.mxu3  ;;  %v3498_v13 = vrot.slane %v3496_v14, 1 }
 0x203   : > { %4482 = vmatpush.bf16.msrb.mxu3 %v8399_v61  ;;  %v3335_v29 = vadd.f32 %v3334_v56, %v3285_v38  ;;  %v3493_v35 = vrot.slane %v3491_v15, 1 }
 0x204   : > { %2939 = vst [vmem:[%s10407_s20 + $0xc0] sm:$0xff] %v2923_v5 }
 0x205   : > { %v10521_v43 = vadd.f32 %v3383_v60, %v3335_v29  ;;  %v3494_v55 = vor.u32 %v3493_v35, %v3489_v50  ;;  %v12029_v50 = vld [vmem:[#allocation75_spill] sm:$0xff] }
 0x206   : > { %v3434_v35 = vshrl.u32 %v12029_v50, 16 }
 0x207   : > { %v2894_v24 = vpop.f32.mrf.mxu1  ;;  %v3385_v28 = vpop.f32.mrf.mxu0  ;;  %v10533_v56 = vsel %vm1281_vm2, %v3494_v55, %v3498_v13  ;;  %v8390_v13 = vld [vmem:[%s11684_s4 + $0x208] sm:$0xff] }
 0x208   : > { %v2895_v49 = vadd.f32 %v2894_v24, %v10244_v48  ;;  %v8407_v48 = vld [vmem:[%s11684_s4 + $0x50] sm:$0xff]  ;;  %12027 = vst [vmem:[#allocation54_spill] sm:$0xff] %v10533_v56  ;;  %4210 = vmatpush.bf16.msrb.mxu2 %v8390_v13  ;;  %v8382_v13 = vld [vmem:[%s11684_s4 + $0x1c8] sm:$0xff] }
 0x209   : > { %4531 = vmatpush.bf16.msrb.mxu0 %v8407_v48  ;;  %4161 = vmatpush.bf16.msrb.mxu1 %v8382_v13 }
 0x20a   : > { %v2924_v5 = vadd.f32 %v2895_v49, %v10246_v32  ;;  %v3287_v61 = vpop.f32.mrf.mxu2  ;;  %v3336_v38 = vpop.f32.mrf.mxu3  ;;  %v12028_v49 = vld [vmem:[#allocation74_spill] sm:$0xff] }
 0x20b   : > { %v3337_v60 = vadd.f32 %v3336_v38, %v3287_v61  ;;  %v3501_v61 = vshrl.u32 %v9931_v0, 16 }
 0x20c   : > { %2940 = vst [vmem:[%s10407_s20 + $0xd0] sm:$0xff] %v2924_v5 }
 0x20d   : > { %v10535_v29 = vadd.f32 %v3385_v28, %v3337_v60  ;;  %v3508_v60 = vshll.u32 %v3434_v35, 16 }
 0x20f   : > { %v2897_v42 = vpop.f32.mrf.mxu1  ;;  %v3388_v15 = vpop.f32.mrf.mxu0  ;;  %3813 = vmatmul.bf16.gmra.mxu2 %v12028_v49  ;;  %3862 = vmatmul.bf16.gmra.mxu3 %v10533_v56  ;;  %v3510_v50 = vrot.slane %v3508_v60, 1  ;;  %v12048_v56 = vld [vmem:[#allocation11_spill] sm:$0xff] }
 0x210   : > { %v2898_v32 = vadd.f32 %v2897_v42, %v10266_v36  ;;  %v3503_v36 = vshll.u32 %v9931_v0, 16 }
 0x212   : > { %v2925_v24 = vadd.f32 %v2898_v32, %v10268_v16  ;;  %3764 = vmatmul.bf16.gmra.mxu1 %v12026_v44  ;;  %4134 = vmatmul.bf16.gmra.mxu0 %v11990_v4  ;;  %v8398_v16 = vld [vmem:[%s11684_s4 + $0x8] sm:$0xff]  ;;  %v3290_v28 = vpop.f32.mrf.mxu2  ;;  %v3339_v14 = vpop.f32.mrf.mxu3  ;;  %v3505_v38 = vrot.slane %v3503_v36, 1 }
 0x213   : > { %4483 = vmatpush.bf16.msrb.mxu3 %v8398_v16  ;;  %v3340_v5 = vadd.f32 %v3339_v14, %v3290_v28 }
 0x214   : > { %2941 = vst [vmem:[%s10407_s20 + $0x100] sm:$0xff] %v2925_v24  ;;  %v3506_v24 = vor.u32 %v3505_v38, %v3501_v61  ;;  %v3436_v61 = vshrl.u32 %v9949_v30, 16 }
 0x215   : > { %v10553_v42 = vadd.f32 %v3388_v15, %v3340_v5 }
 0x216   : > { %v10565_v14 = vsel %vm1281_vm2, %v3506_v24, %v3510_v50 }
 0x217   : > { %v2899_v55 = vpop.f32.mrf.mxu1  ;;  %v3390_v48 = vpop.f32.mrf.mxu0  ;;  %12030 = vst [vmem:[#allocation51_spill] sm:$0xff] %v10565_v14 }
 0x218   : > { %v2900_v41 = vadd.f32 %v2899_v55, %v10280_v31  ;;  %v8406_v31 = vld [vmem:[%s11684_s4 + $0x48] sm:$0xff] }
 0x219   : > { %4532 = vmatpush.bf16.msrb.mxu0 %v8406_v31 }
 0x21a   : > { %v2926_v32 = vadd.f32 %v2900_v41, %v10282_v22  ;;  %v3292_v16 = vpop.f32.mrf.mxu2  ;;  %v3341_v28 = vpop.f32.mrf.mxu3  ;;  %v12031_v41 = vld [vmem:[#allocation78_spill] sm:$0xff] }
 0x21b   : > { %v3342_v15 = vadd.f32 %v3341_v28, %v3292_v16  ;;  %v3520_v28 = vshll.u32 %v3436_v61, 16 }
 0x21c   : > { %2942 = vst [vmem:[%s10407_s20 + $0x110] sm:$0xff] %v2926_v32 }
 0x21d   : > { %v10567_v5 = vadd.f32 %v3390_v48, %v3342_v15  ;;  %v8389_v48 = vld [vmem:[%s11684_s4 + $0x200] sm:$0xff] }
 0x21e   : > { %4211 = vmatpush.bf16.msrb.mxu2 %v8389_v48  ;;  %v8381_v48 = vld [vmem:[%s11684_s4 + $0x1c0] sm:$0xff] }
 0x21f   : > { %v2902_v35 = vpop.f32.mrf.mxu1  ;;  %v3393_v36 = vpop.f32.mrf.mxu0  ;;  %3818 = vmatmul.bf16.gmra.mxu2 %v12031_v41  ;;  %3867 = vmatmul.bf16.gmra.mxu3 %v10565_v14  ;;  %v3522_v14 = vrot.slane %v3520_v28, 1  ;;  %v12068_v41 = vld [vmem:[#allocation53_spill] sm:$0xff] }
 0x220   : > { %v2903_v22 = vadd.f32 %v2902_v35, %v10302_v26  ;;  %v12032_v26 = vld [vmem:[#allocation79_spill] sm:$0xff]  ;;  %4162 = vmatpush.bf16.msrb.mxu1 %v8381_v48 }
 0x221   : > { %v3515_v38 = vshll.u32 %v12032_v26, 16  ;;  %v3513_v31 = vshrl.u32 %v12032_v26, 16  ;;  %v12033_v35 = vld [vmem:[#allocation71_spill] sm:$0xff] }
 0x222   : > { %v2927_v55 = vadd.f32 %v2903_v22, %v10304_v45  ;;  %3769 = vmatmul.bf16.gmra.mxu1 %v9931_v0  ;;  %4139 = vmatmul.bf16.gmra.mxu0 %v9561_v62  ;;  %v8397_v45 = vld [vmem:[%s11684_s4] sm:$0xff]  ;;  %v3295_v60 = vpop.f32.mrf.mxu2  ;;  %v3344_v32 = vpop.f32.mrf.mxu3  ;;  %v12063_v62 = vld [vmem:[#allocation24_spill] sm:$0xff] }
 0x223   : > { %4484 = vmatpush.bf16.msrb.mxu3 %v8397_v45  ;;  %v3345_v24 = vadd.f32 %v3344_v32, %v3295_v60  ;;  %v3517_v16 = vrot.slane %v3515_v38, 1 }
 0x224   : > { %2943 = vst [vmem:[%s10407_s20 + $0x140] sm:$0xff] %v2927_v55 }
 0x225   : > { %v10585_v15 = vadd.f32 %v3393_v36, %v3345_v24  ;;  %v3518_v55 = vor.u32 %v3517_v16, %v3513_v31  ;;  %v12035_v31 = vld [vmem:[#allocation80_spill] sm:$0xff] }
 0x227   : > { %v2904_v50 = vpop.f32.mrf.mxu1  ;;  %v3395_v30 = vpop.f32.mrf.mxu0  ;;  %v10597_v24 = vsel %vm1281_vm2, %v3518_v55, %v3522_v14  ;;  %v8436_v14 = vld [vmem:[%s11684_s4 + $0x138] sm:$0xff] }
 0x228   : > { %v2905_v13 = vadd.f32 %v2904_v50, %v10316_v17  ;;  %v8405_v17 = vld [vmem:[%s11684_s4 + $0x40] sm:$0xff]  ;;  %12034 = vst [vmem:[#allocation56_spill] sm:$0xff] %v10597_v24  ;;  %4881 = vmatpush.bf16.msra.mxu3 %v8436_v14 }
 0x229   : > { %4533 = vmatpush.bf16.msrb.mxu0 %v8405_v17 }
 0x22a   : > { %v2928_v22 = vadd.f32 %v2905_v13, %v12033_v35  ;;  %v3297_v45 = vpop.f32.mrf.mxu2  ;;  %v3346_v60 = vpop.f32.mrf.mxu3 }
 0x22b   : > { %v3347_v36 = vadd.f32 %v3346_v60, %v3297_v45 }
 0x22c   : > { %2944 = vst [vmem:[%s10407_s20 + $0x150] sm:$0xff] %v2928_v22 }
 0x22d   : > { %v10599_v50 = vadd.f32 %v3395_v30, %v3347_v36  ;;  %v12036_v30 = vld [vmem:[#allocation81_spill] sm:$0xff] }
 0x22e   : > { %v3438_v16 = vshrl.u32 %v12036_v30, 16  ;;  %v8420_v30 = vld [vmem:[%s11684_s4 + $0xb8] sm:$0xff] }
 0x22f   : > { %v2907_v61 = vpop.f32.mrf.mxu1  ;;  %v3398_v32 = vpop.f32.mrf.mxu0  ;;  %3823 = vmatmul.bf16.gmra.mxu2 %v12035_v31  ;;  %3872 = vmatmul.bf16.gmra.mxu3 %v10597_v24  ;;  %v12047_v24 = vld [vmem:[#allocation52_spill] sm:$0xff]  ;;  %v12062_v31 = vld [vmem:[#allocation23_spill] sm:$0xff] }
 0x230   : > { %v2908_v38 = vadd.f32 %v2907_v61, %v10340_v6  ;;  %v8428_v6 = vld [vmem:[%s11684_s4 + $0xf8] sm:$0xff]  ;;  %v3532_v61 = vshll.u32 %v3438_v16, 16  ;;  %4575 = vmatpush.bf16.msra.mxu1 %v8420_v30 }
 0x231   : > { %4832 = vmatpush.bf16.msra.mxu2 %v8428_v6  ;;  %v8444_v6 = vld [vmem:[%s11684_s4 + $0x178] sm:$0xff] }
 0x232   : > { %v2929_v13 = vadd.f32 %v2908_v38, %v10343_v39  ;;  %3774 = vmatmul.bf16.gmra.mxu1 %v12032_v26  ;;  %4144 = vmatmul.bf16.gmra.mxu0 %v9633_v3  ;;  %v12037_v39 = vld [vmem:[#allocation83_spill] sm:$0xff]  ;;  %v3300_v35 = vpop.f32.mrf.mxu2  ;;  %v3349_v22 = vpop.f32.mrf.mxu3  ;;  %v12058_v3 = vld [vmem:[#allocation20_spill] sm:$0xff] }
 0x233   : > { %v3527_v28 = vshll.u32 %v12037_v39, 16  ;;  %v3350_v55 = vadd.f32 %v3349_v22, %v3300_v35  ;;  %v3525_v60 = vshrl.u32 %v12037_v39, 16  ;;  %4930 = vmatpush.bf16.msra.mxu0 %v8444_v6 }
 0x234   : > { %2945 = vst [vmem:[%s10407_s20 + $0x180] sm:$0xff] %v2929_v13 }
 0x235   : > { %v3529_v36 = vrot.slane %v3527_v28, 1  ;;  %v10617_v38 = vadd.f32 %v3398_v32, %v3350_v55 }
 0x237   : > { %v2909_v48 = vpop.f32.mrf.mxu1  ;;  %v3400_v45 = vpop.f32.mrf.mxu0  ;;  %v3530_v14 = vor.u32 %v3529_v36, %v3525_v60  ;;  %v12039_v60 = vld [vmem:[#allocation84_spill] sm:$0xff]  ;;  %v12040_v36 = vld [vmem:[#allocation86_spill] sm:$0xff] }
 0x238   : > { %v2910_v17 = vadd.f32 %v2909_v48, %v10356_v47  ;;  %v3534_v47 = vrot.slane %v3532_v61, 1 }
 0x23a   : > { %v2930_v13 = vadd.f32 %v2910_v17, %v10361_v51  ;;  %v3302_v28 = vpop.f32.mrf.mxu2  ;;  %v3351_v16 = vpop.f32.mrf.mxu3  ;;  %v10629_v55 = vsel %vm1281_vm2, %v3530_v14, %v3534_v47 }
 0x23b   : > { %v3352_v32 = vadd.f32 %v3351_v16, %v3302_v28  ;;  %12038 = vst [vmem:[#allocation58_spill] sm:$0xff] %v10629_v55  ;;  %v8419_v16 = vld [vmem:[%s11684_s4 + $0xb0] sm:$0xff] }
 0x23c   : > { %2946 = vst [vmem:[%s10407_s20 + $0x190] sm:$0xff] %v2930_v13  ;;  %4576 = vmatpush.bf16.msra.mxu1 %v8419_v16  ;;  %v12044_v16 = vld [vmem:[#allocation34_spill] sm:$0xff] }
 0x23d   : > { %v10631_v48 = vadd.f32 %v3400_v45, %v3352_v32  ;;  %v8435_v45 = vld [vmem:[%s11684_s4 + $0x130] sm:$0xff] }
 0x23e   : > { %4882 = vmatpush.bf16.msra.mxu3 %v8435_v45  ;;  %v8443_v32 = vld [vmem:[%s11684_s4 + $0x170] sm:$0xff]  ;;  %v12042_v45 = vld [vmem:[#allocation41_spill] sm:$0xff] }
 0x23f   : > { %v2912_v35 = vpop.f32.mrf.mxu1  ;;  %v3403_v22 = vpop.f32.mrf.mxu0  ;;  %3828 = vmatmul.bf16.gmra.mxu2 %v12039_v60  ;;  %3877 = vmatmul.bf16.gmra.mxu3 %v10629_v55  ;;  %v12046_v55 = vld [vmem:[#allocation18_spill] sm:$0xff] }
 0x240   : > { %v2913_v51 = vadd.f32 %v2912_v35, %v10382_v37  ;;  %v8427_v37 = vld [vmem:[%s11684_s4 + $0xf0] sm:$0xff]  ;;  %4931 = vmatpush.bf16.msra.mxu0 %v8443_v32  ;;  %v3408_v32 = vadd.f32 %v10425_v59, %v12044_v16  ;;  %v12045_v59 = vld [vmem:[#allocation10_spill] sm:$0xff] }
 0x241   : > { %4833 = vmatpush.bf16.msra.mxu2 %v8427_v37  ;;  %v8417_v16 = vld [vmem:[%s11684_s4 + $0xa0] sm:$0xff] }
 0x242   : > { %v2931_v17 = vadd.f32 %v2913_v51, %v10384_v19  ;;  %3779 = vmatmul.bf16.gmra.mxu1 %v12037_v39  ;;  %4149 = vmatmul.bf16.gmra.mxu0 %v12040_v36  ;;  %v3305_v61 = vpop.f32.mrf.mxu2  ;;  %v3354_v19 = vpop.f32.mrf.mxu3  ;;  %v12057_v60 = vld [vmem:[#allocation46_spill] sm:$0xff] }
 0x243   : > { %v3355_v13 = vadd.f32 %v3354_v19, %v3305_v61  ;;  %v12043_v61 = vld [vmem:[#allocation9_spill] sm:$0xff]  ;;  %v8426_v19 = vld [vmem:[%s11684_s4 + $0xe8] sm:$0xff] }
 0x244   : > { %2947 = vst [vmem:[%s10407_s20 + $0x1c0] sm:$0xff] %v2931_v17 }
 0x245   : > { %v10646_v47 = vadd.f32 %v3403_v22, %v3355_v13  ;;  %v8434_v13 = vld [vmem:[%s11684_s4 + $0x128] sm:$0xff]  ;;  %4834 = vmatpush.bf16.msra.mxu2 %v8426_v19 }
 0x246   : > { %4883 = vmatpush.bf16.msra.mxu3 %v8434_v13  ;;  %v8442_v19 = vld [vmem:[%s11684_s4 + $0x168] sm:$0xff] }
 0x247   : > { %v2914_v30 = vpop.f32.mrf.mxu1  ;;  %v3405_v14 = vpop.f32.mrf.mxu0  ;;  %4932 = vmatpush.bf16.msra.mxu0 %v8442_v19 }
 0x248   : > { %v2915_v6 = vadd.f32 %v2914_v30, %v10396_v34 }
 0x24a   : > { %v2932_v28 = vadd.f32 %v2915_v6, %v10398_v54  ;;  %v3307_v35 = vpop.f32.mrf.mxu2  ;;  %v3356_v51 = vpop.f32.mrf.mxu3  ;;  %v12041_v54 = vld [vmem:[#allocation14_spill] sm:$0xff] }
 0x24b   : > { %v3357_v17 = vadd.f32 %v3356_v51, %v3307_v35 }
 0x24c   : > { %2948 = vst [vmem:[%s10407_s20 + $0x1d0] sm:$0xff] %v2932_v28 }
 0x24d   : > { %v10658_v22 = vadd.f32 %v3405_v14, %v3357_v17 }
 0x24f   : > { %v3745_v34 = vpop.f32.mrf.mxu1  ;;  %v10656_v37 = vpop.f32.mrf.mxu0  ;;  %4212 = vmatmul.bf16.vlgmr.msrb.gmra.mxu2 %v12042_v45  ;;  %4485 = vmatmul.bf16.vlgmr.msrb.gmra.mxu3 %v12043_v61  ;;  %v8418_v61 = vld [vmem:[%s11684_s4 + $0xa8] sm:$0xff] }
 0x250   : > { %4577 = vmatpush.bf16.msra.mxu1 %v8418_v61 }
 0x252   : > { %4163 = vmatmul.bf16.vlgmr.msrb.gmra.mxu1 %v12041_v54  ;;  %4534 = vmatmul.bf16.vlgmr.msrb.gmra.mxu0 %v12008_v10  ;;  %v3794_v30 = vpop.f32.mrf.mxu2  ;;  %v3843_v14 = vpop.f32.mrf.mxu3 }
 0x253   : > { %v3795_v6 = vadd.f32 %v3794_v30, %v3745_v34 }
 0x254   : > { %4578 = vmatpush.bf16.msra.mxu1 %v8417_v16  ;;  %v8424_v16 = vld [vmem:[%s11684_s4 + $0xd8] sm:$0xff] }
 0x255   : > { %v3844_v35 = vadd.f32 %v3843_v14, %v3795_v6  ;;  %v3409_v6 = vadd.f32 %v10439_v57, %v12045_v59  ;;  %v8433_v57 = vld [vmem:[%s11684_s4 + $0x120] sm:$0xff] }
 0x256   : > { %4884 = vmatpush.bf16.msra.mxu3 %v8433_v57 }
 0x257   : > { %v3747_v28 = vpop.f32.mrf.mxu1  ;;  %v10672_v51 = vpop.f32.mrf.mxu0  ;;  %v10674_v17 = vadd.f32 %v3844_v35, %v3408_v32 }
 0x25a   : > { %v3796_v34 = vpop.f32.mrf.mxu2  ;;  %v3845_v30 = vpop.f32.mrf.mxu3 }
 0x25b   : > { %v3797_v13 = vadd.f32 %v3796_v34, %v3747_v28  ;;  %v8425_v28 = vld [vmem:[%s11684_s4 + $0xe0] sm:$0xff] }
 0x25c   : > { %4835 = vmatpush.bf16.msra.mxu2 %v8425_v28  ;;  %v8441_v28 = vld [vmem:[%s11684_s4 + $0x160] sm:$0xff] }
 0x25d   : > { %v3846_v14 = vadd.f32 %v3845_v30, %v3797_v13  ;;  %v12049_v30 = vld [vmem:[#allocation87_spill] sm:$0xff]  ;;  %4933 = vmatpush.bf16.msra.mxu0 %v8441_v28 }
 0x25f   : > { %v3750_v45 = vpop.f32.mrf.mxu1  ;;  %v10684_v32 = vpop.f32.mrf.mxu0  ;;  %v10686_v35 = vadd.f32 %v3846_v14, %v3409_v6  ;;  %4217 = vmatmul.bf16.gmra.mxu2 %v12047_v24  ;;  %4490 = vmatmul.bf16.gmra.mxu3 %v12048_v56  ;;  %v3410_v6 = vadd.f32 %v10457_v23, %v12049_v30  ;;  %v12050_v23 = vld [vmem:[#allocation15_spill] sm:$0xff]  ;;  %v12051_v30 = vld [vmem:[#allocation21_spill] sm:$0xff]  ;;  %v12053_v56 = vld [vmem:[#allocation16_spill] sm:$0xff] }
 0x260   : > { %4836 = vmatpush.bf16.msra.mxu2 %v8424_v16  ;;  %v8440_v16 = vld [vmem:[%s11684_s4 + $0x158] sm:$0xff] }
 0x261   : > { %4934 = vmatpush.bf16.msra.mxu0 %v8440_v16 }
 0x262   : > { %4168 = vmatmul.bf16.gmra.mxu1 %v12046_v55  ;;  %4539 = vmatmul.bf16.gmra.mxu0 %v12014_v33  ;;  %v3799_v61 = vpop.f32.mrf.mxu2  ;;  %v3848_v34 = vpop.f32.mrf.mxu3  ;;  %v12052_v33 = vld [vmem:[#allocation19_spill] sm:$0xff] }
 0x263   : > { %v3800_v19 = vadd.f32 %v3799_v61, %v3750_v45 }
 0x265   : > { %v3849_v14 = vadd.f32 %v3848_v34, %v3800_v19  ;;  %v3411_v19 = vadd.f32 %v10471_v58, %v12050_v23  ;;  %v8432_v58 = vld [vmem:[%s11684_s4 + $0x118] sm:$0xff] }
 0x266   : > { %4885 = vmatpush.bf16.msra.mxu3 %v8432_v58 }
 0x267   : > { %v3752_v13 = vpop.f32.mrf.mxu1  ;;  %v10700_v24 = vpop.f32.mrf.mxu0  ;;  %v10702_v59 = vadd.f32 %v3849_v14, %v3410_v6 }
 0x26a   : > { %v3801_v45 = vpop.f32.mrf.mxu2  ;;  %v3850_v61 = vpop.f32.mrf.mxu3 }
 0x26b   : > { %v3802_v57 = vadd.f32 %v3801_v45, %v3752_v13 }
 0x26d   : > { %v3851_v34 = vadd.f32 %v3850_v61, %v3802_v57  ;;  %v12054_v61 = vld [vmem:[#allocation63_spill] sm:$0xff] }
 0x26f   : > { %v3755_v10 = vpop.f32.mrf.mxu1  ;;  %v10712_v6 = vpop.f32.mrf.mxu0  ;;  %v10714_v14 = vadd.f32 %v3851_v34, %v3411_v19  ;;  %4222 = vmatmul.bf16.gmra.mxu2 %v12052_v33  ;;  %4495 = vmatmul.bf16.gmra.mxu3 %v12053_v56  ;;  %v3412_v19 = vadd.f32 %v10489_v63, %v12054_v61  ;;  %v12055_v63 = vld [vmem:[#allocation35_spill] sm:$0xff]  ;;  %v12056_v61 = vld [vmem:[#allocation25_spill] sm:$0xff] }
 0x272   : > { %4173 = vmatmul.bf16.gmra.mxu1 %v12051_v30  ;;  %4544 = vmatmul.bf16.gmra.mxu0 %v12018_v52  ;;  %v3804_v13 = vpop.f32.mrf.mxu2  ;;  %v3853_v45 = vpop.f32.mrf.mxu3  ;;  %v8416_v52 = vld [vmem:[%s11684_s4 + $0x98] sm:$0xff] }
 0x273   : > { %v3805_v28 = vadd.f32 %v3804_v13, %v3755_v10  ;;  %4579 = vmatpush.bf16.msra.mxu1 %v8416_v52  ;;  %v8423_v52 = vld [vmem:[%s11684_s4 + $0xd0] sm:$0xff] }
 0x274   : > { %4837 = vmatpush.bf16.msra.mxu2 %v8423_v52  ;;  %v8439_v52 = vld [vmem:[%s11684_s4 + $0x150] sm:$0xff] }
 0x275   : > { %v3854_v34 = vadd.f32 %v3853_v45, %v3805_v28  ;;  %v3413_v28 = vadd.f32 %v10503_v1, %v12055_v63  ;;  %v8431_v1 = vld [vmem:[%s11684_s4 + $0x110] sm:$0xff]  ;;  %4935 = vmatpush.bf16.msra.mxu0 %v8439_v52 }
 0x276   : > { %4886 = vmatpush.bf16.msra.mxu3 %v8431_v1 }
 0x277   : > { %v3757_v57 = vpop.f32.mrf.mxu1  ;;  %v10728_v33 = vpop.f32.mrf.mxu0  ;;  %v10730_v23 = vadd.f32 %v3854_v34, %v3412_v19 }
 0x27a   : > { %v3806_v10 = vpop.f32.mrf.mxu2  ;;  %v3855_v13 = vpop.f32.mrf.mxu3 }
 0x27b   : > { %v3807_v58 = vadd.f32 %v3806_v10, %v3757_v57 }
 0x27d   : > { %v3856_v45 = vadd.f32 %v3855_v13, %v3807_v58  ;;  %v12059_v13 = vld [vmem:[#allocation42_spill] sm:$0xff] }
 0x27f   : > { %v3760_v56 = vpop.f32.mrf.mxu1  ;;  %v10740_v19 = vpop.f32.mrf.mxu0  ;;  %v10742_v34 = vadd.f32 %v3856_v45, %v3413_v28  ;;  %4227 = vmatmul.bf16.gmra.mxu2 %v12057_v60  ;;  %4500 = vmatmul.bf16.gmra.mxu3 %v12058_v3  ;;  %v3414_v28 = vadd.f32 %v10521_v43, %v12059_v13  ;;  %v12060_v43 = vld [vmem:[#allocation67_spill] sm:$0xff]  ;;  %v12061_v13 = vld [vmem:[#allocation29_spill] sm:$0xff] }
 0x282   : > { %4178 = vmatmul.bf16.gmra.mxu1 %v12056_v61  ;;  %4549 = vmatmul.bf16.gmra.mxu0 %v12022_v46  ;;  %v3809_v57 = vpop.f32.mrf.mxu2  ;;  %v3858_v10 = vpop.f32.mrf.mxu3  ;;  %v8415_v46 = vld [vmem:[%s11684_s4 + $0x90] sm:$0xff] }
 0x283   : > { %v3810_v16 = vadd.f32 %v3809_v57, %v3760_v56  ;;  %4580 = vmatpush.bf16.msra.mxu1 %v8415_v46  ;;  %v8422_v46 = vld [vmem:[%s11684_s4 + $0xc8] sm:$0xff] }
 0x284   : > { %4838 = vmatpush.bf16.msra.mxu2 %v8422_v46  ;;  %v8438_v46 = vld [vmem:[%s11684_s4 + $0x148] sm:$0xff] }
 0x285   : > { %v3859_v45 = vadd.f32 %v3858_v10, %v3810_v16  ;;  %v3415_v16 = vadd.f32 %v10535_v29, %v12060_v43  ;;  %v8430_v29 = vld [vmem:[%s11684_s4 + $0x108] sm:$0xff]  ;;  %4936 = vmatpush.bf16.msra.mxu0 %v8438_v46 }
 0x286   : > { %4887 = vmatpush.bf16.msra.mxu3 %v8430_v29 }
 0x287   : > { %v3762_v58 = vpop.f32.mrf.mxu1  ;;  %v10756_v60 = vpop.f32.mrf.mxu0  ;;  %v10758_v63 = vadd.f32 %v3859_v45, %v3414_v28 }
 0x28a   : > { %v3811_v56 = vpop.f32.mrf.mxu2  ;;  %v3860_v57 = vpop.f32.mrf.mxu3 }
 0x28b   : > { %v3812_v1 = vadd.f32 %v3811_v56, %v3762_v58 }
 0x28d   : > { %v3861_v10 = vadd.f32 %v3860_v57, %v3812_v1  ;;  %v12064_v57 = vld [vmem:[#allocation39_spill] sm:$0xff] }
 0x28f   : > { %v3765_v3 = vpop.f32.mrf.mxu1  ;;  %v10768_v28 = vpop.f32.mrf.mxu0  ;;  %v10770_v45 = vadd.f32 %v3861_v10, %v3415_v16  ;;  %4232 = vmatmul.bf16.gmra.mxu2 %v12062_v31  ;;  %4505 = vmatmul.bf16.gmra.mxu3 %v12063_v62  ;;  %v3416_v16 = vadd.f32 %v10553_v42, %v12064_v57  ;;  %v12066_v42 = vld [vmem:[#allocation44_spill] sm:$0xff]  ;;  %v12067_v57 = vld [vmem:[#allocation37_spill] sm:$0xff] }
 0x292   : > { %4183 = vmatmul.bf16.gmra.mxu1 %v12061_v13  ;;  %4554 = vmatmul.bf16.gmra.mxu0 %v12026_v44  ;;  %v3814_v58 = vpop.f32.mrf.mxu2  ;;  %v3863_v56 = vpop.f32.mrf.mxu3  ;;  %v8414_v44 = vld [vmem:[%s11684_s4 + $0x88] sm:$0xff] }
 0x293   : > { %v3815_v52 = vadd.f32 %v3814_v58, %v3765_v3  ;;  %4581 = vmatpush.bf16.msra.mxu1 %v8414_v44  ;;  %v8421_v44 = vld [vmem:[%s11684_s4 + $0xc0] sm:$0xff] }
 0x294   : > { %4839 = vmatpush.bf16.msra.mxu2 %v8421_v44  ;;  %v8437_v44 = vld [vmem:[%s11684_s4 + $0x140] sm:$0xff] }
 0x295   : > { %v3864_v10 = vadd.f32 %v3863_v56, %v3815_v52  ;;  %v3417_v52 = vadd.f32 %v10567_v5, %v12066_v42  ;;  %v8429_v5 = vld [vmem:[%s11684_s4 + $0x100] sm:$0xff]  ;;  %4937 = vmatpush.bf16.msra.mxu0 %v8437_v44  ;;  %v3904_v44 = vshll.u32 %v12040_v36, 16 }
 0x296   : > { %4888 = vmatpush.bf16.msra.mxu3 %v8429_v5 }
 0x297   : > { %v3767_v1 = vpop.f32.mrf.mxu1  ;;  %v10784_v31 = vpop.f32.mrf.mxu0  ;;  %v10786_v43 = vadd.f32 %v3864_v10, %v3416_v16 }
 0x298   : > { %12065 = vst [vmem:[#allocation59_spill] sm:$0xff] %v10784_v31  ;;  %v12069_v31 = vld [vmem:[#allocation30_spill] sm:$0xff] }
 0x29a   : > { %v3816_v3 = vpop.f32.mrf.mxu2  ;;  %v3865_v58 = vpop.f32.mrf.mxu3 }
 0x29b   : > { %v3817_v29 = vadd.f32 %v3816_v3, %v3767_v1 }
 0x29d   : > { %v3866_v56 = vadd.f32 %v3865_v58, %v3817_v29  ;;  %v12070_v58 = vld [vmem:[#allocation50_spill] sm:$0xff] }
 0x29f   : > { %v3770_v62 = vpop.f32.mrf.mxu1  ;;  %v10796_v16 = vpop.f32.mrf.mxu0  ;;  %v10798_v10 = vadd.f32 %v3866_v56, %v3417_v52  ;;  %4237 = vmatmul.bf16.gmra.mxu2 %v12068_v41  ;;  %4510 = vmatmul.bf16.gmra.mxu3 %v12069_v31  ;;  %v3418_v52 = vadd.f32 %v10585_v15, %v12070_v58  ;;  %v12071_v15 = vld [vmem:[#allocation55_spill] sm:$0xff]  ;;  %v12073_v58 = vld [vmem:[#allocation33_spill] sm:$0xff] }
 0x2a2   : > { %4188 = vmatmul.bf16.gmra.mxu1 %v12067_v57  ;;  %4559 = vmatmul.bf16.gmra.mxu0 %v9931_v0  ;;  %v3819_v1 = vpop.f32.mrf.mxu2  ;;  %v3868_v3 = vpop.f32.mrf.mxu3  ;;  %v8413_v0 = vld [vmem:[%s11684_s4 + $0x80] sm:$0xff] }
 0x2a3   : > { %v3820_v46 = vadd.f32 %v3819_v1, %v3770_v62  ;;  %4582 = vmatpush.bf16.msra.mxu1 %v8413_v0  ;;  %v12074_v0 = vld [vmem:[#allocation82_spill] sm:$0xff] }
 0x2a5   : > { %v3869_v56 = vadd.f32 %v3868_v3, %v3820_v46  ;;  %v3419_v46 = vadd.f32 %v10599_v50, %v12071_v15  ;;  %v8460_v50 = vld [vmem:[%s11684_s4 + $0x1f8] sm:$0xff]  ;;  %v3906_v15 = vrot.slane %v3904_v44, 1 }
 0x2a6   : > { %5276 = vmatpush.bf16.msrb.mxu2 %v8460_v50  ;;  %v8452_v50 = vld [vmem:[%s11684_s4 + $0x1b8] sm:$0xff] }
 0x2a7   : > { %v3772_v29 = vpop.f32.mrf.mxu1  ;;  %v10812_v41 = vpop.f32.mrf.mxu0  ;;  %v10814_v42 = vadd.f32 %v3869_v56, %v3418_v52  ;;  %5227 = vmatpush.bf16.msrb.mxu1 %v8452_v50 }
 0x2aa   : > { %v3821_v62 = vpop.f32.mrf.mxu2  ;;  %v3870_v1 = vpop.f32.mrf.mxu3 }
 0x2ab   : > { %v3822_v5 = vadd.f32 %v3821_v62, %v3772_v29  ;;  %v3899_v29 = vshrl.u32 %v12074_v0, 16  ;;  %v8468_v62 = vld [vmem:[%s11684_s4 + $0x238] sm:$0xff] }
 0x2ac   : > { %5325 = vmatpush.bf16.msrb.mxu3 %v8468_v62 }
 0x2ad   : > { %v3871_v3 = vadd.f32 %v3870_v1, %v3822_v5  ;;  %v3909_v0 = vshll.u32 %v3899_v29, 16 }
 0x2af   : > { %v3775_v31 = vpop.f32.mrf.mxu1  ;;  %v10824_v52 = vpop.f32.mrf.mxu0  ;;  %v10826_v56 = vadd.f32 %v3871_v3, %v3419_v46  ;;  %4242 = vmatmul.bf16.gmra.mxu2 %v10364_v9  ;;  %4515 = vmatmul.bf16.gmra.mxu3 %v12073_v58  ;;  %v3902_v9 = vshrl.u32 %v12040_v36, 16 }
 0x2b0   : > { %12072 = vst [vmem:[#allocation61_spill] sm:$0xff] %v10824_v52 }
 0x2b1   : > { %v3907_v62 = vor.u32 %v3906_v15, %v3902_v9  ;;  %v12078_v9 = vld [vmem:[#allocation48_spill] sm:$0xff] }
 0x2b2   : > { %4193 = vmatmul.bf16.gmra.mxu1 %v12001_v40  ;;  %4564 = vmatmul.bf16.gmra.mxu0 %v12032_v26  ;;  %v3824_v5 = vpop.f32.mrf.mxu2  ;;  %v3873_v46 = vpop.f32.mrf.mxu3  ;;  %v3420_v26 = vadd.f32 %v10617_v38, %v12003_v18  ;;  %v8459_v15 = vld [vmem:[%s11684_s4 + $0x1f0] sm:$0xff] }
 0x2b3   : > { %v3825_v1 = vadd.f32 %v3824_v5, %v3775_v31  ;;  %v8476_v31 = vld [vmem:[%s11684_s4 + $0x38] sm:$0xff]  ;;  %v3911_v5 = vrot.slane %v3909_v0, 1  ;;  %5277 = vmatpush.bf16.msrb.mxu2 %v8459_v15 }
 0x2b4   : > { %5599 = vmatpush.bf16.msrb.mxu0 %v8476_v31 }
 0x2b5   : > { %v3874_v58 = vadd.f32 %v3873_v46, %v3825_v1  ;;  %v10854_v46 = vsel %vm1281_vm2, %v3907_v62, %v3911_v5  ;;  %v3422_v62 = vadd.f32 %v10646_v47, %v12009_v53  ;;  %v3423_v47 = vadd.f32 %v10658_v22, %v12010_v25  ;;  %v8466_v22 = vld [vmem:[%s11684_s4 + $0x228] sm:$0xff] }
 0x2b6   : > { %12076 = vst [vmem:[#allocation65_spill] sm:$0xff] %v10854_v46 }
 0x2b7   : > { %v3777_v3 = vpop.f32.mrf.mxu1  ;;  %v10843_v52 = vpop.f32.mrf.mxu0  ;;  %v10845_v40 = vadd.f32 %v3874_v58, %v3420_v26  ;;  %v3421_v26 = vadd.f32 %v10631_v48, %v12004_v8  ;;  %v8467_v48 = vld [vmem:[%s11684_s4 + $0x230] sm:$0xff] }
 0x2b8   : > { %12075 = vst [vmem:[#allocation62_spill] sm:$0xff] %v10843_v52  ;;  %v12077_v52 = vld [vmem:[#allocation72_spill] sm:$0xff]  ;;  %5326 = vmatpush.bf16.msrb.mxu3 %v8467_v48 }
 0x2ba   : > { %v3826_v29 = vpop.f32.mrf.mxu2  ;;  %v3875_v38 = vpop.f32.mrf.mxu3 }
 0x2bb   : > { %v3827_v44 = vadd.f32 %v3826_v29, %v3777_v3 }
 0x2bc   : > { %5327 = vmatpush.bf16.msrb.mxu3 %v8466_v22 }
 0x2bd   : > { %v3876_v58 = vadd.f32 %v3875_v38, %v3827_v44  ;;  %v8451_v38 = vld [vmem:[%s11684_s4 + $0x1b0] sm:$0xff] }
 0x2be   : > { %5228 = vmatpush.bf16.msrb.mxu1 %v8451_v38 }
 0x2bf   : > { %v3780_v1 = vpop.f32.mrf.mxu1  ;;  %v10858_v18 = vpop.f32.mrf.mxu0  ;;  %v10860_v36 = vadd.f32 %v3876_v58, %v3421_v26  ;;  %4247 = vmatmul.bf16.gmra.mxu2 %v10854_v46  ;;  %4520 = vmatmul.bf16.gmra.mxu3 %v12078_v9  ;;  %v8475_v26 = vld [vmem:[%s11684_s4 + $0x30] sm:$0xff]  ;;  %v8450_v46 = vld [vmem:[%s11684_s4 + $0x1a8] sm:$0xff] }
 0x2c0   : > { %5600 = vmatpush.bf16.msrb.mxu0 %v8475_v26 }
 0x2c2   : > { %4198 = vmatmul.bf16.gmra.mxu1 %v12077_v52  ;;  %4569 = vmatmul.bf16.gmra.mxu0 %v12037_v39  ;;  %v3829_v3 = vpop.f32.mrf.mxu2  ;;  %v3878_v50 = vpop.f32.mrf.mxu3 }
 0x2c3   : > { %v3830_v0 = vadd.f32 %v3829_v3, %v3780_v1  ;;  %5229 = vmatpush.bf16.msrb.mxu1 %v8450_v46  ;;  %v8465_v46 = vld [vmem:[%s11684_s4 + $0x220] sm:$0xff] }
 0x2c4   : > { %5328 = vmatpush.bf16.msrb.mxu3 %v8465_v46 }
 0x2c5   : > { %v3879_v5 = vadd.f32 %v3878_v50, %v3830_v0 }
 0x2c7   : > { %v3782_v31 = vpop.f32.mrf.mxu1  ;;  %v10874_v29 = vpop.f32.mrf.mxu0  ;;  %v10876_v44 = vadd.f32 %v3879_v5, %v3422_v62  ;;  %v12079_v62 = vld [vmem:[#allocation8_spill] sm:$0xff] }
 0x2c8   : > { %v12080_v5 = vld [vmem:[#allocation12_spill] sm:$0xff] }
 0x2ca   : > { %v3831_v1 = vpop.f32.mrf.mxu2  ;;  %v3880_v15 = vpop.f32.mrf.mxu3 }
 0x2cb   : > { %v3832_v58 = vadd.f32 %v3831_v1, %v3782_v31  ;;  %v8458_v31 = vld [vmem:[%s11684_s4 + $0x1e8] sm:$0xff] }
 0x2cc   : > { %5278 = vmatpush.bf16.msrb.mxu2 %v8458_v31 }
 0x2cd   : > { %v3881_v3 = vadd.f32 %v3880_v15, %v3832_v58 }
 0x2cf   : > { %v4164_v48 = vpop.f32.mrf.mxu1  ;;  %v4535_v0 = vpop.f32.mrf.mxu0  ;;  %v10886_v50 = vadd.f32 %v3881_v3, %v3423_v47  ;;  %4840 = vmatmul.bf16.vlgmr.msra.gmra.mxu2 %v12079_v62  ;;  %4889 = vmatmul.bf16.vlgmr.msra.gmra.mxu3 %v12080_v5 }
 0x2d0   : > { %v4165_v38 = vadd.f32 %v4164_v48, %v10656_v37  ;;  %v8474_v37 = vld [vmem:[%s11684_s4 + $0x28] sm:$0xff] }
 0x2d1   : > { %5601 = vmatpush.bf16.msrb.mxu0 %v8474_v37 }
 0x2d2   : > { %4583 = vmatmul.bf16.vlgmr.msra.gmra.mxu1 %v12012_v21  ;;  %4938 = vmatmul.bf16.vlgmr.msra.gmra.mxu0 %v12041_v54  ;;  %v4213_v26 = vpop.f32.mrf.mxu2  ;;  %v4486_v58 = vpop.f32.mrf.mxu3 }
 0x2d3   : > { %v4214_v1 = vadd.f32 %v4213_v26, %v4165_v38  ;;  %v10899_v15 = vadd.f32 %v4535_v0, %v4486_v58  ;;  %v12081_v58 = vld [vmem:[#allocation13_spill] sm:$0xff] }
 0x2d5   : > { %v4253_v3 = vadd.f32 %v4214_v1, %v10674_v17 }
 0x2d7   : > { %v4166_v47 = vpop.f32.mrf.mxu1  ;;  %v4537_v62 = vpop.f32.mrf.mxu0  ;;  %4269 = vst [vmem:[%s10407_s20 + $0x8] sm:$0xff] %v4253_v3 }
 0x2d8   : > { %v4167_v48 = vadd.f32 %v4166_v47, %v10672_v51  ;;  %v8457_v51 = vld [vmem:[%s11684_s4 + $0x1e0] sm:$0xff] }
 0x2d9   : > { %5279 = vmatpush.bf16.msrb.mxu2 %v8457_v51 }
 0x2da   : > { %v4215_v0 = vpop.f32.mrf.mxu2  ;;  %v4488_v22 = vpop.f32.mrf.mxu3 }
 0x2db   : > { %v4216_v31 = vadd.f32 %v4215_v0, %v4167_v48  ;;  %v10910_v38 = vadd.f32 %v4537_v62, %v4488_v22  ;;  %v8449_v22 = vld [vmem:[%s11684_s4 + $0x1a0] sm:$0xff] }
 0x2dc   : > { %5230 = vmatpush.bf16.msrb.mxu1 %v8449_v22 }
 0x2dd   : > { %v4254_v26 = vadd.f32 %v4216_v31, %v10686_v35 }
 0x2df   : > { %v4169_v17 = vpop.f32.mrf.mxu1  ;;  %v4540_v1 = vpop.f32.mrf.mxu0  ;;  %4270 = vst [vmem:[%s10407_s20 + $0x18] sm:$0xff] %v4254_v26  ;;  %4845 = vmatmul.bf16.gmra.mxu2 %v12081_v58  ;;  %4894 = vmatmul.bf16.gmra.mxu3 %v9289_v7 }
 0x2e0   : > { %v4170_v35 = vadd.f32 %v4169_v17, %v10684_v32  ;;  %v8473_v32 = vld [vmem:[%s11684_s4 + $0x20] sm:$0xff] }
 0x2e1   : > { %5602 = vmatpush.bf16.msrb.mxu0 %v8473_v32 }
 0x2e2   : > { %4588 = vmatmul.bf16.gmra.mxu1 %v12016_v11  ;;  %4943 = vmatmul.bf16.gmra.mxu0 %v12046_v55  ;;  %v4218_v47 = vpop.f32.mrf.mxu2  ;;  %v4491_v62 = vpop.f32.mrf.mxu3 }
 0x2e3   : > { %v4219_v3 = vadd.f32 %v4218_v47, %v4170_v35  ;;  %v10925_v37 = vadd.f32 %v4540_v1, %v4491_v62  ;;  %v12082_v47 = vld [vmem:[#allocation17_spill] sm:$0xff] }
 0x2e5   : > { %v4255_v0 = vadd.f32 %v4219_v3, %v10702_v59  ;;  %v8464_v3 = vld [vmem:[%s11684_s4 + $0x218] sm:$0xff] }
 0x2e6   : > { %5329 = vmatpush.bf16.msrb.mxu3 %v8464_v3  ;;  %v12083_v3 = vld [vmem:[#allocation22_spill] sm:$0xff] }
 0x2e7   : > { %v4171_v48 = vpop.f32.mrf.mxu1  ;;  %v4542_v31 = vpop.f32.mrf.mxu0  ;;  %4271 = vst [vmem:[%s10407_s20 + $0x48] sm:$0xff] %v4255_v0 }
 0x2e8   : > { %v4172_v17 = vadd.f32 %v4171_v48, %v10700_v24  ;;  %v8456_v24 = vld [vmem:[%s11684_s4 + $0x1d8] sm:$0xff] }
 0x2e9   : > { %5280 = vmatpush.bf16.msrb.mxu2 %v8456_v24 }
 0x2ea   : > { %v4220_v26 = vpop.f32.mrf.mxu2  ;;  %v4493_v58 = vpop.f32.mrf.mxu3 }
 0x2eb   : > { %v4221_v1 = vadd.f32 %v4220_v26, %v4172_v17  ;;  %v10936_v51 = vadd.f32 %v4542_v31, %v4493_v58  ;;  %v8448_v26 = vld [vmem:[%s11684_s4 + $0x198] sm:$0xff] }
 0x2ec   : > { %5231 = vmatpush.bf16.msrb.mxu1 %v8448_v26 }
 0x2ed   : > { %v4256_v46 = vadd.f32 %v4221_v1, %v10714_v14 }
 0x2ef   : > { %v4174_v59 = vpop.f32.mrf.mxu1  ;;  %v4545_v35 = vpop.f32.mrf.mxu0  ;;  %4272 = vst [vmem:[%s10407_s20 + $0x58] sm:$0xff] %v4256_v46  ;;  %4850 = vmatmul.bf16.gmra.mxu2 %v12082_v47  ;;  %4899 = vmatmul.bf16.gmra.mxu3 %v9342_v27 }
 0x2f0   : > { %v4175_v14 = vadd.f32 %v4174_v59, %v10712_v6  ;;  %v8472_v6 = vld [vmem:[%s11684_s4 + $0x18] sm:$0xff] }
 0x2f1   : > { %5603 = vmatpush.bf16.msrb.mxu0 %v8472_v6  ;;  %v8447_v6 = vld [vmem:[%s11684_s4 + $0x190] sm:$0xff] }
 0x2f2   : > { %4593 = vmatmul.bf16.gmra.mxu1 %v12020_v12  ;;  %4948 = vmatmul.bf16.gmra.mxu0 %v12051_v30  ;;  %v4223_v62 = vpop.f32.mrf.mxu2  ;;  %v4496_v0 = vpop.f32.mrf.mxu3 }
 0x2f3   : > { %v4224_v48 = vadd.f32 %v4223_v62, %v4175_v14  ;;  %v10951_v31 = vadd.f32 %v4545_v35, %v4496_v0  ;;  %v8463_v14 = vld [vmem:[%s11684_s4 + $0x210] sm:$0xff]  ;;  %5232 = vmatpush.bf16.msrb.mxu1 %v8447_v6  ;;  %v12085_v6 = vld [vmem:[#allocation59_spill] sm:$0xff] }
 0x2f4   : > { %5330 = vmatpush.bf16.msrb.mxu3 %v8463_v14 }
 0x2f5   : > { %v4257_v32 = vadd.f32 %v4224_v48, %v10730_v23 }
 0x2f7   : > { %v4176_v22 = vpop.f32.mrf.mxu1  ;;  %v4547_v17 = vpop.f32.mrf.mxu0  ;;  %4273 = vst [vmem:[%s10407_s20 + $0x88] sm:$0xff] %v4257_v32 }
 0x2f8   : > { %v4177_v1 = vadd.f32 %v4176_v22, %v10728_v33  ;;  %v8455_v33 = vld [vmem:[%s11684_s4 + $0x1d0] sm:$0xff] }
 0x2f9   : > { %5281 = vmatpush.bf16.msrb.mxu2 %v8455_v33  ;;  %v8462_v33 = vld [vmem:[%s11684_s4 + $0x208] sm:$0xff] }
 0x2fa   : > { %v4225_v58 = vpop.f32.mrf.mxu2  ;;  %v4498_v46 = vpop.f32.mrf.mxu3  ;;  %5331 = vmatpush.bf16.msrb.mxu3 %v8462_v33  ;;  %v8453_v33 = vld [vmem:[%s11684_s4 + $0x1c0] sm:$0xff] }
 0x2fb   : > { %v4226_v59 = vadd.f32 %v4225_v58, %v4177_v1  ;;  %v10962_v35 = vadd.f32 %v4547_v17, %v4498_v46 }
 0x2fd   : > { %v4258_v47 = vadd.f32 %v4226_v59, %v10742_v34 }
 0x2ff   : > { %v4179_v23 = vpop.f32.mrf.mxu1  ;;  %v4550_v24 = vpop.f32.mrf.mxu0  ;;  %4274 = vst [vmem:[%s10407_s20 + $0x98] sm:$0xff] %v4258_v47  ;;  %4855 = vmatmul.bf16.gmra.mxu2 %v12083_v3  ;;  %4904 = vmatmul.bf16.gmra.mxu3 %v9414_v20  ;;  %v12084_v3 = vld [vmem:[#allocation26_spill] sm:$0xff] }
 0x300   : > { %v4180_v34 = vadd.f32 %v4179_v23, %v10740_v19  ;;  %v8471_v19 = vld [vmem:[%s11684_s4 + $0x10] sm:$0xff] }
 0x301   : > { %5604 = vmatpush.bf16.msrb.mxu0 %v8471_v19 }
 0x302   : > { %4598 = vmatmul.bf16.gmra.mxu1 %v12024_v2  ;;  %4953 = vmatmul.bf16.gmra.mxu0 %v12056_v61  ;;  %v4228_v62 = vpop.f32.mrf.mxu2  ;;  %v4501_v0 = vpop.f32.mrf.mxu3 }
 0x303   : > { %v4229_v48 = vadd.f32 %v4228_v62, %v4180_v34  ;;  %v10977_v22 = vadd.f32 %v4550_v24, %v4501_v0 }
 0x305   : > { %v4259_v17 = vadd.f32 %v4229_v48, %v10758_v63 }
 0x307   : > { %v4181_v32 = vpop.f32.mrf.mxu1  ;;  %v4552_v26 = vpop.f32.mrf.mxu0  ;;  %4275 = vst [vmem:[%s10407_s20 + $0xc8] sm:$0xff] %v4259_v17 }
 0x308   : > { %v4182_v1 = vadd.f32 %v4181_v32, %v10756_v60  ;;  %v8454_v60 = vld [vmem:[%s11684_s4 + $0x1c8] sm:$0xff] }
 0x309   : > { %5282 = vmatpush.bf16.msrb.mxu2 %v8454_v60  ;;  %v12088_v60 = vld [vmem:[#allocation36_spill] sm:$0xff] }
 0x30a   : > { %v4230_v58 = vpop.f32.mrf.mxu2  ;;  %v4503_v46 = vpop.f32.mrf.mxu3 }
 0x30b   : > { %v4231_v59 = vadd.f32 %v4230_v58, %v4182_v1  ;;  %v10988_v23 = vadd.f32 %v4552_v26, %v4503_v46  ;;  %v8446_v26 = vld [vmem:[%s11684_s4 + $0x188] sm:$0xff] }
 0x30c   : > { %5233 = vmatpush.bf16.msrb.mxu1 %v8446_v26 }
 0x30d   : > { %v4260_v47 = vadd.f32 %v4231_v59, %v10770_v45  ;;  %5283 = vmatpush.bf16.msrb.mxu2 %v8453_v33  ;;  %v12091_v33 = vld [vmem:[#allocation47_spill] sm:$0xff] }
 0x30f   : > { %v4184_v63 = vpop.f32.mrf.mxu1  ;;  %v4555_v24 = vpop.f32.mrf.mxu0  ;;  %4276 = vst [vmem:[%s10407_s20 + $0xd8] sm:$0xff] %v4260_v47  ;;  %4860 = vmatmul.bf16.gmra.mxu2 %v12084_v3  ;;  %4909 = vmatmul.bf16.gmra.mxu3 %v11990_v4  ;;  %v12087_v3 = vld [vmem:[#allocation31_spill] sm:$0xff] }
 0x310   : > { %v4185_v45 = vadd.f32 %v4184_v63, %v10768_v28  ;;  %v8470_v28 = vld [vmem:[%s11684_s4 + $0x8] sm:$0xff] }
 0x311   : > { %5605 = vmatpush.bf16.msrb.mxu0 %v8470_v28  ;;  %v8445_v28 = vld [vmem:[%s11684_s4 + $0x180] sm:$0xff] }
 0x312   : > { %4603 = vmatmul.bf16.gmra.mxu1 %v12028_v49  ;;  %4958 = vmatmul.bf16.gmra.mxu0 %v12061_v13  ;;  %v4233_v14 = vpop.f32.mrf.mxu2  ;;  %v4506_v62 = vpop.f32.mrf.mxu3 }
 0x313   : > { %v4234_v34 = vadd.f32 %v4233_v14, %v4185_v45  ;;  %v11003_v48 = vadd.f32 %v4555_v24, %v4506_v62  ;;  %v12086_v24 = vld [vmem:[#allocation78_spill] sm:$0xff]  ;;  %5234 = vmatpush.bf16.msrb.mxu1 %v8445_v28 }
 0x314   : > { %v8461_v45 = vld [vmem:[%s11684_s4 + $0x200] sm:$0xff] }
 0x315   : > { %v4261_v32 = vadd.f32 %v4234_v34, %v10786_v43  ;;  %5332 = vmatpush.bf16.msrb.mxu3 %v8461_v45  ;;  %v8492_v45 = vld [vmem:[%s11684_s4 + $0xb8] sm:$0xff] }
 0x316   : > { %5697 = vmatpush.bf16.msra.mxu2 %v8492_v45 }
 0x317   : > { %v4186_v0 = vpop.f32.mrf.mxu1  ;;  %v4557_v17 = vpop.f32.mrf.mxu0  ;;  %4277 = vst [vmem:[%s10407_s20 + $0x108] sm:$0xff] %v4261_v32 }
 0x318   : > { %v4187_v19 = vadd.f32 %v4186_v0, %v12085_v6 }
 0x31a   : > { %v4235_v1 = vpop.f32.mrf.mxu2  ;;  %v4508_v59 = vpop.f32.mrf.mxu3 }
 0x31b   : > { %v4236_v58 = vadd.f32 %v4235_v1, %v4187_v19  ;;  %v11014_v46 = vadd.f32 %v4557_v17, %v4508_v59 }
 0x31d   : > { %v4262_v63 = vadd.f32 %v4236_v58, %v10798_v10 }
 0x31f   : > { %v4189_v43 = vpop.f32.mrf.mxu1  ;;  %v4560_v47 = vpop.f32.mrf.mxu0  ;;  %4278 = vst [vmem:[%s10407_s20 + $0x118] sm:$0xff] %v4262_v63  ;;  %4865 = vmatmul.bf16.gmra.mxu2 %v12087_v3  ;;  %4914 = vmatmul.bf16.gmra.mxu3 %v12088_v60  ;;  %v12090_v3 = vld [vmem:[#allocation38_spill] sm:$0xff]  ;;  %v12121_v60 = vld [vmem:[#allocation39_spill] sm:$0xff] }
 0x320   : > { %v4190_v10 = vadd.f32 %v4189_v43, %v10796_v16  ;;  %v8469_v16 = vld [vmem:[%s11684_s4] sm:$0xff] }
 0x321   : > { %5606 = vmatpush.bf16.msrb.mxu0 %v8469_v16 }
 0x322   : > { %4608 = vmatmul.bf16.gmra.mxu1 %v12086_v24  ;;  %4963 = vmatmul.bf16.gmra.mxu0 %v12067_v57  ;;  %v4238_v14 = vpop.f32.mrf.mxu2  ;;  %v4511_v62 = vpop.f32.mrf.mxu3 }
 0x323   : > { %v4239_v34 = vadd.f32 %v4238_v14, %v4190_v10  ;;  %v11029_v0 = vadd.f32 %v4560_v47, %v4511_v62  ;;  %v12089_v47 = vld [vmem:[#allocation80_spill] sm:$0xff]  ;;  %v8500_v10 = vld [vmem:[%s11684_s4 + $0xf8] sm:$0xff] }
 0x324   : > { %5954 = vmatpush.bf16.msra.mxu3 %v8500_v10 }
 0x325   : > { %v4263_v17 = vadd.f32 %v4239_v34, %v10814_v42 }
 0x327   : > { %v4191_v32 = vpop.f32.mrf.mxu1  ;;  %v4562_v26 = vpop.f32.mrf.mxu0  ;;  %4279 = vst [vmem:[%s10407_s20 + $0x148] sm:$0xff] %v4263_v17 }
 0x328   : > { %v4192_v6 = vadd.f32 %v4191_v32, %v10812_v41  ;;  %v12092_v41 = vld [vmem:[#allocation49_spill] sm:$0xff] }
 0x32a   : > { %v4240_v19 = vpop.f32.mrf.mxu2  ;;  %v4513_v58 = vpop.f32.mrf.mxu3 }
 0x32b   : > { %v4241_v1 = vadd.f32 %v4240_v19, %v4192_v6  ;;  %v11040_v59 = vadd.f32 %v4562_v26, %v4513_v58  ;;  %v8484_v6 = vld [vmem:[%s11684_s4 + $0x78] sm:$0xff] }
 0x32c   : > { %v8508_v19 = vld [vmem:[%s11684_s4 + $0x138] sm:$0xff]  ;;  %5648 = vmatpush.bf16.msra.mxu1 %v8484_v6 }
 0x32d   : > { %v4264_v43 = vadd.f32 %v4241_v1, %v10826_v56  ;;  %v12093_v56 = vld [vmem:[#allocation61_spill] sm:$0xff]  ;;  %v12094_v1 = vld [vmem:[#allocation62_spill] sm:$0xff]  ;;  %6003 = vmatpush.bf16.msra.mxu0 %v8508_v19 }
 0x32f   : > { %v4194_v42 = vpop.f32.mrf.mxu1  ;;  %v4565_v63 = vpop.f32.mrf.mxu0  ;;  %4280 = vst [vmem:[%s10407_s20 + $0x158] sm:$0xff] %v4264_v43  ;;  %4870 = vmatmul.bf16.gmra.mxu2 %v12090_v3  ;;  %4919 = vmatmul.bf16.gmra.mxu3 %v12091_v33 }
 0x330   : > { %v4195_v14 = vadd.f32 %v4194_v42, %v12093_v56  ;;  %v12095_v56 = vld [vmem:[#allocation84_spill] sm:$0xff] }
 0x332   : > { %4613 = vmatmul.bf16.gmra.mxu1 %v12089_v47  ;;  %4968 = vmatmul.bf16.gmra.mxu0 %v12092_v41  ;;  %v4243_v34 = vpop.f32.mrf.mxu2  ;;  %v4516_v32 = vpop.f32.mrf.mxu3 }
 0x333   : > { %v4244_v62 = vadd.f32 %v4243_v34, %v4195_v14  ;;  %v11055_v17 = vadd.f32 %v4565_v63, %v4516_v32  ;;  %v12096_v14 = vld [vmem:[#allocation85_spill] sm:$0xff]  ;;  %v12097_v34 = vld [vmem:[#allocation86_spill] sm:$0xff]  ;;  %v8499_v32 = vld [vmem:[%s11684_s4 + $0xf0] sm:$0xff] }
 0x334   : > { %5955 = vmatpush.bf16.msra.mxu3 %v8499_v32 }
 0x335   : > { %v4265_v28 = vadd.f32 %v4244_v62, %v10845_v40  ;;  %v8491_v62 = vld [vmem:[%s11684_s4 + $0xb0] sm:$0xff] }
 0x336   : > { %5698 = vmatpush.bf16.msra.mxu2 %v8491_v62 }
 0x337   : > { %v4196_v26 = vpop.f32.mrf.mxu1  ;;  %v4567_v16 = vpop.f32.mrf.mxu0  ;;  %4281 = vst [vmem:[%s10407_s20 + $0x188] sm:$0xff] %v4265_v28 }
 0x338   : > { %v4197_v58 = vadd.f32 %v4196_v26, %v12094_v1 }
 0x33a   : > { %v4245_v42 = vpop.f32.mrf.mxu2  ;;  %v4518_v63 = vpop.f32.mrf.mxu3 }
 0x33b   : > { %v4246_v43 = vadd.f32 %v4245_v42, %v4197_v58  ;;  %v11066_v3 = vadd.f32 %v4567_v16, %v4518_v63  ;;  %v8483_v42 = vld [vmem:[%s11684_s4 + $0x70] sm:$0xff] }
 0x33c   : > { %5649 = vmatpush.bf16.msra.mxu1 %v8483_v42 }
 0x33d   : > { %v4266_v45 = vadd.f32 %v4246_v43, %v10860_v36 }
 0x33f   : > { %v4199_v40 = vpop.f32.mrf.mxu1  ;;  %v4570_v10 = vpop.f32.mrf.mxu0  ;;  %4282 = vst [vmem:[%s10407_s20 + $0x198] sm:$0xff] %v4266_v45  ;;  %4875 = vmatmul.bf16.gmra.mxu2 %v12096_v14  ;;  %4924 = vmatmul.bf16.gmra.mxu3 %v12097_v34  ;;  %v12120_v34 = vld [vmem:[#allocation5_spill] sm:$0xff] }
 0x340   : > { %v4200_v36 = vadd.f32 %v4199_v40, %v10858_v18  ;;  %v8507_v18 = vld [vmem:[%s11684_s4 + $0x130] sm:$0xff] }
 0x341   : > { %6004 = vmatpush.bf16.msra.mxu0 %v8507_v18  ;;  %v12101_v18 = vld [vmem:[#allocation34_spill] sm:$0xff] }
 0x342   : > { %4618 = vmatmul.bf16.gmra.mxu1 %v12095_v56  ;;  %4973 = vmatmul.bf16.gmra.mxu0 %v12077_v52  ;;  %v4248_v26 = vpop.f32.mrf.mxu2  ;;  %v4521_v16 = vpop.f32.mrf.mxu3 }
 0x343   : > { %v4249_v28 = vadd.f32 %v4248_v26, %v4200_v36  ;;  %v11081_v6 = vadd.f32 %v4570_v10, %v4521_v16  ;;  %v12098_v36 = vld [vmem:[#allocation11_spill] sm:$0xff]  ;;  %v12099_v26 = vld [vmem:[#allocation60_spill] sm:$0xff] }
 0x345   : > { %v4267_v1 = vadd.f32 %v4249_v28, %v10876_v44  ;;  %v8490_v28 = vld [vmem:[%s11684_s4 + $0xa8] sm:$0xff] }
 0x346   : > { %5699 = vmatpush.bf16.msra.mxu2 %v8490_v28 }
 0x347   : > { %v4201_v19 = vpop.f32.mrf.mxu1  ;;  %v4572_v58 = vpop.f32.mrf.mxu0  ;;  %4283 = vst [vmem:[%s10407_s20 + $0x1c8] sm:$0xff] %v4267_v1 }
 0x348   : > { %v4202_v43 = vadd.f32 %v4201_v19, %v10874_v29  ;;  %v12100_v29 = vld [vmem:[#allocation57_spill] sm:$0xff] }
 0x34a   : > { %v4250_v63 = vpop.f32.mrf.mxu2  ;;  %v4523_v45 = vpop.f32.mrf.mxu3 }
 0x34b   : > { %v4251_v40 = vadd.f32 %v4250_v63, %v4202_v43  ;;  %v11092_v10 = vadd.f32 %v4572_v58, %v4523_v45  ;;  %v8506_v45 = vld [vmem:[%s11684_s4 + $0x128] sm:$0xff] }
 0x34c   : > { %6005 = vmatpush.bf16.msra.mxu0 %v8506_v45 }
 0x34d   : > { %v4268_v14 = vadd.f32 %v4251_v40, %v10886_v50  ;;  %v8498_v50 = vld [vmem:[%s11684_s4 + $0xe8] sm:$0xff] }
 0x34e   : > { %5956 = vmatpush.bf16.msra.mxu3 %v8498_v50  ;;  %v8482_v40 = vld [vmem:[%s11684_s4 + $0x68] sm:$0xff] }
 0x34f   : > { %v4584_v44 = vpop.f32.mrf.mxu1  ;;  %v4939_v32 = vpop.f32.mrf.mxu0  ;;  %4284 = vst [vmem:[%s10407_s20 + $0x1d8] sm:$0xff] %v4268_v14  ;;  %5284 = vmatmul.bf16.vlgmr.msrb.gmra.mxu2 %v12099_v26  ;;  %5333 = vmatmul.bf16.vlgmr.msrb.gmra.mxu3 %v12016_v11 }
 0x350   : > { %v4585_v62 = vadd.f32 %v4584_v44, %v10899_v15  ;;  %5650 = vmatpush.bf16.msra.mxu1 %v8482_v40 }
 0x352   : > { %5235 = vmatmul.bf16.vlgmr.msrb.gmra.mxu1 %v12098_v36  ;;  %5607 = vmatmul.bf16.vlgmr.msrb.gmra.mxu0 %v12100_v29  ;;  %v4841_v16 = vpop.f32.mrf.mxu2  ;;  %v4890_v15 = vpop.f32.mrf.mxu3  ;;  %v4624_v43 = vadd.f32 %v4585_v62, %v12101_v18  ;;  %v12112_v18 = vld [vmem:[#allocation73_spill] sm:$0xff] }
 0x353   : > { %v4891_v19 = vadd.f32 %v4890_v15, %v4841_v16  ;;  %v12103_v15 = vld [vmem:[#allocation16_spill] sm:$0xff] }
 0x355   : > { %v4940_v63 = vadd.f32 %v4939_v32, %v4891_v19  ;;  %v12102_v32 = vld [vmem:[#allocation10_spill] sm:$0xff]  ;;  %v12104_v19 = vld [vmem:[#allocation64_spill] sm:$0xff] }
 0x357   : > { %v4586_v1 = vpop.f32.mrf.mxu1  ;;  %v4941_v42 = vpop.f32.mrf.mxu0  ;;  %v11115_v44 = vadd.f32 %v4940_v63, %v4624_v43 }
 0x358   : > { %v4587_v58 = vadd.f32 %v4586_v1, %v10910_v38  ;;  %v8489_v1 = vld [vmem:[%s11684_s4 + $0xa0] sm:$0xff] }
 0x359   : > { %5700 = vmatpush.bf16.msra.mxu2 %v8489_v1 }
 0x35a   : > { %v4843_v14 = vpop.f32.mrf.mxu2  ;;  %v4892_v36 = vpop.f32.mrf.mxu3  ;;  %v4625_v50 = vadd.f32 %v4587_v58, %v12102_v32  ;;  %v12108_v32 = vld [vmem:[#allocation68_spill] sm:$0xff] }
 0x35b   : > { %v4893_v29 = vadd.f32 %v4892_v36, %v4843_v14  ;;  %v12105_v36 = vld [vmem:[#allocation87_spill] sm:$0xff] }
 0x35d   : > { %v4942_v16 = vadd.f32 %v4941_v42, %v4893_v29 }
 0x35f   : > { %v4589_v38 = vpop.f32.mrf.mxu1  ;;  %v4944_v62 = vpop.f32.mrf.mxu0  ;;  %5289 = vmatmul.bf16.gmra.mxu2 %v12104_v19  ;;  %5338 = vmatmul.bf16.gmra.mxu3 %v12020_v12  ;;  %v11129_v43 = vadd.f32 %v4942_v16, %v4625_v50  ;;  %v8505_v50 = vld [vmem:[%s11684_s4 + $0x120] sm:$0xff] }
 0x360   : > { %v4590_v28 = vadd.f32 %v4589_v38, %v10925_v37  ;;  %v8497_v37 = vld [vmem:[%s11684_s4 + $0xe0] sm:$0xff]  ;;  %6006 = vmatpush.bf16.msra.mxu0 %v8505_v50 }
 0x361   : > { %5957 = vmatpush.bf16.msra.mxu3 %v8497_v37 }
 0x362   : > { %5240 = vmatmul.bf16.gmra.mxu1 %v12103_v15  ;;  %5612 = vmatmul.bf16.gmra.mxu0 %v12099_v26  ;;  %v4846_v58 = vpop.f32.mrf.mxu2  ;;  %v4895_v42 = vpop.f32.mrf.mxu3  ;;  %v4626_v29 = vadd.f32 %v4590_v28, %v12105_v36  ;;  %v8481_v15 = vld [vmem:[%s11684_s4 + $0x60] sm:$0xff]  ;;  %v12107_v36 = vld [vmem:[#allocation20_spill] sm:$0xff]  ;;  %v12118_v26 = vld [vmem:[#allocation3_spill] sm:$0xff] }
 0x363   : > { %v4896_v63 = vadd.f32 %v4895_v42, %v4846_v58  ;;  %5651 = vmatpush.bf16.msra.mxu1 %v8481_v15 }
 0x365   : > { %v4945_v38 = vadd.f32 %v4944_v62, %v4896_v63  ;;  %v12106_v62 = vld [vmem:[#allocation15_spill] sm:$0xff] }
 0x367   : > { %v4591_v40 = vpop.f32.mrf.mxu1  ;;  %v4946_v14 = vpop.f32.mrf.mxu0  ;;  %v11139_v16 = vadd.f32 %v4945_v38, %v4626_v29  ;;  %v8488_v29 = vld [vmem:[%s11684_s4 + $0x98] sm:$0xff] }
 0x368   : > { %v4592_v45 = vadd.f32 %v4591_v40, %v10936_v51  ;;  %5701 = vmatpush.bf16.msra.mxu2 %v8488_v29 }
 0x36a   : > { %v4848_v1 = vpop.f32.mrf.mxu2  ;;  %v4897_v37 = vpop.f32.mrf.mxu3  ;;  %v4627_v63 = vadd.f32 %v4592_v45, %v12106_v62  ;;  %v8480_v62 = vld [vmem:[%s11684_s4 + $0x58] sm:$0xff] }
 0x36b   : > { %v4898_v58 = vadd.f32 %v4897_v37, %v4848_v1  ;;  %v12109_v37 = vld [vmem:[#allocation63_spill] sm:$0xff]  ;;  %5652 = vmatpush.bf16.msra.mxu1 %v8480_v62  ;;  %v8487_v62 = vld [vmem:[%s11684_s4 + $0x90] sm:$0xff] }
 0x36c   : > { %5702 = vmatpush.bf16.msra.mxu2 %v8487_v62 }
 0x36d   : > { %v4947_v40 = vadd.f32 %v4946_v14, %v4898_v58 }
 0x36f   : > { %v4594_v51 = vpop.f32.mrf.mxu1  ;;  %v4949_v28 = vpop.f32.mrf.mxu0  ;;  %5294 = vmatmul.bf16.gmra.mxu2 %v12108_v32  ;;  %5343 = vmatmul.bf16.gmra.mxu3 %v12024_v2  ;;  %v11153_v38 = vadd.f32 %v4947_v40, %v4627_v63  ;;  %v8504_v63 = vld [vmem:[%s11684_s4 + $0x118] sm:$0xff] }
 0x370   : > { %v4595_v42 = vadd.f32 %v4594_v51, %v10951_v31  ;;  %v8496_v31 = vld [vmem:[%s11684_s4 + $0xd8] sm:$0xff]  ;;  %6007 = vmatpush.bf16.msra.mxu0 %v8504_v63 }
 0x371   : > { %5958 = vmatpush.bf16.msra.mxu3 %v8496_v31 }
 0x372   : > { %5245 = vmatmul.bf16.gmra.mxu1 %v12107_v36  ;;  %5617 = vmatmul.bf16.gmra.mxu0 %v12104_v19  ;;  %v4851_v45 = vpop.f32.mrf.mxu2  ;;  %v4900_v14 = vpop.f32.mrf.mxu3  ;;  %v4628_v58 = vadd.f32 %v4595_v42, %v12109_v37  ;;  %v12111_v37 = vld [vmem:[#allocation24_spill] sm:$0xff]  ;;  %v12115_v19 = vld [vmem:[#allocation30_spill] sm:$0xff] }
 0x373   : > { %v4901_v36 = vadd.f32 %v4900_v14, %v4851_v45  ;;  %v12110_v14 = vld [vmem:[#allocation35_spill] sm:$0xff] }
 0x375   : > { %v4950_v51 = vadd.f32 %v4949_v28, %v4901_v36 }
 0x377   : > { %v4596_v15 = vpop.f32.mrf.mxu1  ;;  %v4951_v1 = vpop.f32.mrf.mxu0  ;;  %v11163_v40 = vadd.f32 %v4950_v51, %v4628_v58 }
 0x378   : > { %v4597_v50 = vadd.f32 %v4596_v15, %v10962_v35 }
 0x37a   : > { %v4853_v29 = vpop.f32.mrf.mxu2  ;;  %v4902_v35 = vpop.f32.mrf.mxu3  ;;  %v4629_v36 = vadd.f32 %v4597_v50, %v12110_v14 }
 0x37b   : > { %v4903_v31 = vadd.f32 %v4902_v35, %v4853_v29  ;;  %v12113_v35 = vld [vmem:[#allocation42_spill] sm:$0xff] }
 0x37d   : > { %v4952_v15 = vadd.f32 %v4951_v1, %v4903_v31 }
 0x37f   : > { %v4599_v45 = vpop.f32.mrf.mxu1  ;;  %v4954_v28 = vpop.f32.mrf.mxu0  ;;  %5299 = vmatmul.bf16.gmra.mxu2 %v12112_v18  ;;  %5348 = vmatmul.bf16.gmra.mxu3 %v12028_v49  ;;  %v11179_v58 = vadd.f32 %v4952_v15, %v4629_v36  ;;  %v8479_v36 = vld [vmem:[%s11684_s4 + $0x50] sm:$0xff] }
 0x380   : > { %v4600_v42 = vadd.f32 %v4599_v45, %v10977_v22  ;;  %v8495_v22 = vld [vmem:[%s11684_s4 + $0xd0] sm:$0xff]  ;;  %5653 = vmatpush.bf16.msra.mxu1 %v8479_v36  ;;  %v12117_v36 = vld [vmem:[#allocation2_spill] sm:$0xff] }
 0x381   : > { %5959 = vmatpush.bf16.msra.mxu3 %v8495_v22  ;;  %v8503_v15 = vld [vmem:[%s11684_s4 + $0x110] sm:$0xff] }
 0x382   : > { %5250 = vmatmul.bf16.gmra.mxu1 %v12111_v37  ;;  %5622 = vmatmul.bf16.gmra.mxu0 %v12108_v32  ;;  %v4856_v50 = vpop.f32.mrf.mxu2  ;;  %v4905_v1 = vpop.f32.mrf.mxu3  ;;  %v4630_v31 = vadd.f32 %v4600_v42, %v12113_v35  ;;  %v775_v42 = vld [vmem:[%s773_s25 + $0x8] sm:$0xff] }
 0x383   : > { %v4906_v37 = vadd.f32 %v4905_v1, %v4856_v50  ;;  %6008 = vmatpush.bf16.msra.mxu0 %v8503_v15  ;;  %v12114_v35 = vld [vmem:[#allocation67_spill] sm:$0xff]  ;;  %v781_v52 = vsub.f32 %v775_v42, %v12118_v26 }
 0x385   : > { %v4955_v45 = vadd.f32 %v4954_v28, %v4906_v37  ;;  %v787_v41 = vmul.f32 %v781_v52, %v12120_v34  ;;  %v8478_v52 = vld [vmem:[%s11684_s4 + $0x48] sm:$0xff] }
 0x386   : > { %5654 = vmatpush.bf16.msra.mxu1 %v8478_v52  ;;  %v12125_v52 = vld [vmem:[#allocation6_spill] sm:$0xff] }
 0x387   : > { %v4601_v51 = vpop.f32.mrf.mxu1  ;;  %v4956_v29 = vpop.f32.mrf.mxu0  ;;  %v11189_v62 = vadd.f32 %v4955_v45, %v4630_v31  ;;  %v12116_v31 = vld [vmem:[#allocation77_spill] sm:$0xff]  ;;  %v776_v45 = vld [vmem:[%s773_s25 + $0x10] sm:$0xff] }
 0x388   : > { %v4602_v63 = vadd.f32 %v4601_v51, %v10988_v23  ;;  %v774_v51 = vld [vmem:[%s773_s25] sm:$0xff] }
 0x389   : > { %v780_v15 = vsub.f32 %v774_v51, %v12117_v36 }
 0x38a   : > { %v4858_v22 = vpop.f32.mrf.mxu2  ;;  %v4907_v23 = vpop.f32.mrf.mxu3  ;;  %v4631_v14 = vadd.f32 %v4602_v63, %v12114_v35  ;;  %v8494_v63 = vld [vmem:[%s11684_s4 + $0xc8] sm:$0xff]  ;;  %v12119_v35 = vld [vmem:[#allocation4_spill] sm:$0xff] }
 0x38b   : > { %v4908_v50 = vadd.f32 %v4907_v23, %v4858_v22  ;;  %v778_v22 = vld [vmem:[%s773_s25 + $0x20] sm:$0x3]  ;;  %v779_v23 = vld [vmem:[%s773_s25 + $0x28] sm:$0x3]  ;;  %5960 = vmatpush.bf16.msra.mxu3 %v8494_v63 }
 0x38d   : > { %v4957_v32 = vadd.f32 %v4956_v29, %v4908_v50 }
 0x38f   : > { %v4604_v1 = vpop.f32.mrf.mxu1  ;;  %v4959_v37 = vpop.f32.mrf.mxu0  ;;  %5304 = vmatmul.bf16.gmra.mxu2 %v12116_v31  ;;  %5353 = vmatmul.bf16.gmra.mxu3 %v12086_v24  ;;  %v11207_v29 = vadd.f32 %v4957_v32, %v4631_v14  ;;  %v784_v32 = vsub.f32 %v778_v22, %v12117_v36  ;;  %v785_v14 = vsub.f32 %v779_v23, %v12118_v26  ;;  %v800_v23 = vstv %s799_s23 }
 0x390   : > { %v4605_v28 = vadd.f32 %v4604_v1, %v11003_v48  ;;  %v8486_v48 = vld [vmem:[%s11684_s4 + $0x88] sm:$0xff]  ;;  %v782_v1 = vsub.f32 %v776_v45, %v12117_v36 }
 0x391   : > { %5703 = vmatpush.bf16.msra.mxu2 %v8486_v48 }
 0x392   : > { %5255 = vmatmul.bf16.gmra.mxu1 %v12115_v19  ;;  %5627 = vmatmul.bf16.gmra.mxu0 %v12112_v18  ;;  %v777_v19 = vld [vmem:[%s773_s25 + $0x18] sm:$0xff]  ;;  %v4861_v50 = vpop.f32.mrf.mxu2  ;;  %v4910_v51 = vpop.f32.mrf.mxu3  ;;  %v786_v18 = vmul.f32 %v780_v15, %v12119_v35  ;;  %v4632_v45 = vadd.f32 %v4605_v28, %v12121_v60  ;;  %v8502_v15 = vld [vmem:[%s11684_s4 + $0x108] sm:$0xff] }
 0x393   : > { %v783_v42 = vsub.f32 %v777_v19, %v12118_v26  ;;  %v4911_v33 = vadd.f32 %v4910_v51, %v4861_v50  ;;  %v788_v19 = vmul.f32 %v782_v1, %v12119_v35  ;;  %v793_v26 = vmax.f32 %v787_v41, 0.0  ;;  %6009 = vmatpush.bf16.msra.mxu0 %v8502_v15 }
 0x394   : > { %v792_v22 = vmax.f32 %v786_v18, 0.0 }
 0x395   : > { %v4960_v24 = vadd.f32 %v4959_v37, %v4911_v33  ;;  %v789_v36 = vmul.f32 %v783_v42, %v12120_v34  ;;  %v794_v37 = vmax.f32 %v788_v19, 0.0  ;;  %v802_v60 = vmul.f32 %v800_v23, %v793_v26 }
 0x396   : > { %v801_v51 = vmul.f32 %v800_v23, %v792_v22 }
 0x397   : > { %v4606_v57 = vpop.f32.mrf.mxu1  ;;  %v4961_v63 = vpop.f32.mrf.mxu0  ;;  %v11229_v33 = vadd.f32 %v4960_v24, %v4632_v45  ;;  %v795_v1 = vmax.f32 %v789_v36, 0.0  ;;  %v803_v24 = vmul.f32 %v800_v23, %v794_v37  ;;  %v12124_v45 = vld [vmem:[#allocation79_spill] sm:$0xff]  ;;  %v926_v36 = vmul.f32 %v12125_v52, %v802_v60 }
 0x398   : > { %v4607_v48 = vadd.f32 %v4606_v57, %v11014_v46  ;;  %v790_v57 = vmul.f32 %v784_v32, %v12119_v35  ;;  %v791_v46 = vmul.f32 %v785_v14, %v12120_v34  ;;  %v12122_v35 = vld [vmem:[#allocation44_spill] sm:$0xff]  ;;  %v12123_v14 = vld [vmem:[#allocation33_spill] sm:$0xff]  ;;  %v925_v15 = vmul.f32 %v12125_v52, %v801_v51  ;;  %v12126_v37 = vld [vmem:[#allocation7_spill] sm:$0xff] }
 0x399   : > { %v804_v19 = vmul.f32 %v800_v23, %v795_v1 }
 0x39a   : > { %v4863_v28 = vpop.f32.mrf.mxu2  ;;  %v4912_v50 = vpop.f32.mrf.mxu3  ;;  %v796_v42 = vmax.f32 %v790_v57, 0.0  ;;  %v797_v18 = vmax.f32 %v791_v46, 0.0  ;;  %v4633_v32 = vadd.f32 %v4607_v48, %v12122_v35 }
 0x39b   : > { %v4913_v13 = vadd.f32 %v4912_v50, %v4863_v28  ;;  %v983_v26 = vpack.c.bf16 %v804_v19, %v803_v24  ;;  %v982_v28 = vpack.c.bf16 %v926_v36, %v925_v15 }
 0x39c   : > { %v805_v22 = vmul.f32 %v800_v23, %v796_v42  ;;  %v12127_v42 = vld [vmem:[#allocation50_spill] sm:$0xff] }
 0x39d   : > { %v4962_v34 = vadd.f32 %v4961_v63, %v4913_v13  ;;  %v8485_v13 = vld [vmem:[%s11684_s4 + $0x80] sm:$0xff]  ;;  %v5002_v24 = vunpack.c.l.b16 %v982_v28  ;;  %v5003_v19 = vunpack.c.l.b16 %v983_v26  ;;  %v4997_v36 = vunpack.c.h.b16 %v982_v28 }
 0x39e   : > { %5704 = vmatpush.bf16.msra.mxu2 %v8485_v13 }
 0x39f   : > { %v4609_v4 = vpop.f32.mrf.mxu1  ;;  %v4964_v49 = vpop.f32.mrf.mxu0  ;;  %5309 = vmatmul.bf16.gmra.mxu2 %v12124_v45  ;;  %5358 = vmatmul.bf16.gmra.mxu3 %v12089_v47  ;;  %v11245_v48 = vadd.f32 %v4962_v34, %v4633_v32  ;;  %v8477_v32 = vld [vmem:[%s11684_s4 + $0x40] sm:$0xff] }
 0x3a0   : > { %v4610_v41 = vadd.f32 %v4609_v4, %v11029_v0  ;;  %v806_v4 = vmul.f32 %v800_v23, %v797_v18  ;;  %v8493_v0 = vld [vmem:[%s11684_s4 + $0xc0] sm:$0xff]  ;;  %v929_v23 = vmul.f32 %v12126_v37, %v805_v22  ;;  %v4998_v22 = vunpack.c.h.b16 %v983_v26  ;;  %5655 = vmatpush.bf16.msra.mxu1 %v8477_v32 }
 0x3a1   : > { %5961 = vmatpush.bf16.msra.mxu3 %v8493_v0  ;;  %v8501_v34 = vld [vmem:[%s11684_s4 + $0x100] sm:$0xff]  ;;  %v5005_v0 = vpack.c.b16 %v5003_v19, %v5002_v24 }
 0x3a2   : > { %5260 = vmatmul.bf16.gmra.mxu1 %v12123_v14  ;;  %5632 = vmatmul.bf16.gmra.mxu0 %v12116_v31  ;;  %v4866_v63 = vpop.f32.mrf.mxu2  ;;  %v4915_v60 = vpop.f32.mrf.mxu3  ;;  %v930_v50 = vmul.f32 %v12126_v37, %v806_v4  ;;  %v4634_v18 = vadd.f32 %v4610_v41, %v12127_v42  ;;  %v12128_v37 = vld [vmem:[#allocation55_spill] sm:$0xff] }
 0x3a3   : > { %v4916_v57 = vadd.f32 %v4915_v60, %v4866_v63  ;;  %6010 = vmatpush.bf16.msra.mxu0 %v8501_v34  ;;  %v5010_v28 = vshll.u32 %v5005_v0, 16  ;;  %v5008_v24 = vshrl.u32 %v5005_v0, 16  ;;  %v8516_v0 = vld [vmem:[%s11684_s4 + $0x178] sm:$0xff] }
 0x3a4   : > { %v984_v52 = vpack.c.bf16 %v930_v50, %v929_v23  ;;  %v8532_v50 = vld [vmem:[%s11684_s4 + $0x1f8] sm:$0xff]  ;;  %6052 = vmatpush.bf16.msrb.mxu1 %v8516_v0 }
 0x3a5   : > { %v4965_v14 = vadd.f32 %v4964_v49, %v4916_v57  ;;  %v4999_v57 = vpack.c.b16 %v4998_v22, %v4997_v36  ;;  %6373 = vmatpush.bf16.msrb.mxu3 %v8532_v50  ;;  %v5012_v19 = vrot.slane %v5010_v28, 1 }
 0x3a6   : > { %v5004_v13 = vunpack.c.l.b16 %v984_v52 }
 0x3a7   : > { %v4611_v46 = vpop.f32.mrf.mxu1  ;;  %v4966_v51 = vpop.f32.mrf.mxu0  ;;  %v11257_v15 = vadd.f32 %v4965_v14, %v4634_v18 }
 0x3a8   : > { %v4612_v1 = vadd.f32 %v4611_v46, %v11040_v59  ;;  %v5020_v46 = vunpack.c.h.b16 %v984_v52  ;;  %v11265_v26 = vpack.c.b16 %v5004_v13, %v5004_v13 }
 0x3aa   : > { %v4868_v59 = vpop.f32.mrf.mxu2  ;;  %v4917_v41 = vpop.f32.mrf.mxu3  ;;  %v4635_v42 = vadd.f32 %v4612_v1, %v12128_v37  ;;  %v5015_v52 = vshll.u32 %v11265_v26, 16 }
 0x3ab   : > { %v4918_v49 = vadd.f32 %v4917_v41, %v4868_v59  ;;  %v5023_v59 = vshrl.u32 %v4999_v57, 16 }
 0x3ad   : > { %v4967_v23 = vadd.f32 %v4966_v51, %v4918_v49  ;;  %v5021_v51 = vpack.c.b16 %v5020_v46, %v5020_v46  ;;  %v5013_v46 = vor.u32 %v5012_v19, %v5008_v24 }
 0x3af   : > { %v4614_v4 = vpop.f32.mrf.mxu1  ;;  %v4969_v60 = vpop.f32.mrf.mxu0  ;;  %5314 = vmatmul.bf16.gmra.mxu2 %v12037_v39  ;;  %5363 = vmatmul.bf16.gmra.mxu3 %v12095_v56  ;;  %v11273_v1 = vadd.f32 %v4967_v23, %v4635_v42  ;;  %v5030_v49 = vshll.u32 %v5021_v51, 16  ;;  %v12129_v42 = vld [vmem:[#allocation40_spill] sm:$0xff]  ;;  %v5017_v23 = vrot.slane %v5015_v52, 1 }
 0x3b0   : > { %v4615_v63 = vadd.f32 %v4614_v4, %v11055_v17  ;;  %v8524_v17 = vld [vmem:[%s11684_s4 + $0x1b8] sm:$0xff] }
 0x3b1   : > { %6324 = vmatpush.bf16.msrb.mxu2 %v8524_v17  ;;  %v11287_v51 = vsel %vm1281_vm2, %v5013_v46, %v5017_v23 }
 0x3b2   : > { %5265 = vmatmul.bf16.gmra.mxu1 %v12078_v9  ;;  %5637 = vmatmul.bf16.gmra.mxu0 %v12124_v45  ;;  %v5025_v9 = vshll.u32 %v4999_v57, 16  ;;  %v4871_v18 = vpop.f32.mrf.mxu2  ;;  %v4920_v14 = vpop.f32.mrf.mxu3  ;;  %v4636_v4 = vadd.f32 %v4615_v63, %v12129_v42 }
 0x3b3   : > { %v4921_v32 = vadd.f32 %v4920_v14, %v4871_v18  ;;  %v5032_v18 = vrot.slane %v5030_v49, 1 }
 0x3b4   : > { %v5027_v41 = vrot.slane %v5025_v9, 1 }
 0x3b5   : > { %v4970_v13 = vadd.f32 %v4969_v60, %v4921_v32 }
 0x3b6   : > { %v5028_v50 = vor.u32 %v5027_v41, %v5023_v59  ;;  %v8531_v59 = vld [vmem:[%s11684_s4 + $0x1f0] sm:$0xff] }
 0x3b7   : > { %v4616_v34 = vpop.f32.mrf.mxu1  ;;  %v4971_v22 = vpop.f32.mrf.mxu0  ;;  %v11278_v17 = vadd.f32 %v4970_v13, %v4636_v4  ;;  %6374 = vmatpush.bf16.msrb.mxu3 %v8531_v59 }
 0x3b8   : > { %v4617_v36 = vadd.f32 %v4616_v34, %v11066_v3  ;;  %v8540_v3 = vld [vmem:[%s11684_s4 + $0x238] sm:$0xff]  ;;  %v11291_v34 = vsel %vm1281_vm2, %v5028_v50, %v5032_v18  ;;  %v8515_v50 = vld [vmem:[%s11684_s4 + $0x170] sm:$0xff] }
 0x3b9   : > { %6422 = vmatpush.bf16.msrb.mxu0 %v8540_v3  ;;  %v8539_v18 = vld [vmem:[%s11684_s4 + $0x230] sm:$0xff]  ;;  %6053 = vmatpush.bf16.msrb.mxu1 %v8515_v50 }
 0x3ba   : > { %v4873_v28 = vpop.f32.mrf.mxu2  ;;  %v4922_v9 = vpop.f32.mrf.mxu3  ;;  %v4637_v24 = vadd.f32 %v4617_v36, %v12004_v8 }
 0x3bb   : > { %v4923_v63 = vadd.f32 %v4922_v9, %v4873_v28 }
 0x3bd   : > { %v4972_v19 = vadd.f32 %v4971_v22, %v4923_v63  ;;  %6423 = vmatpush.bf16.msrb.mxu0 %v8539_v18 }
 0x3bf   : > { %v4619_v60 = vpop.f32.mrf.mxu1  ;;  %v4974_v32 = vpop.f32.mrf.mxu0  ;;  %5319 = vmatmul.bf16.gmra.mxu2 %v11287_v51  ;;  %5368 = vmatmul.bf16.gmra.mxu3 %v11291_v34  ;;  %v11297_v52 = vadd.f32 %v4972_v19, %v4637_v24  ;;  %v8522_v24 = vld [vmem:[%s11684_s4 + $0x1a8] sm:$0xff] }
 0x3c0   : > { %v4620_v14 = vadd.f32 %v4619_v60, %v11081_v6  ;;  %v8523_v6 = vld [vmem:[%s11684_s4 + $0x1b0] sm:$0xff]  ;;  %v8530_v19 = vld [vmem:[%s11684_s4 + $0x1e8] sm:$0xff] }
 0x3c1   : > { %6325 = vmatpush.bf16.msrb.mxu2 %v8523_v6  ;;  %6375 = vmatpush.bf16.msrb.mxu3 %v8530_v19  ;;  %v8537_v19 = vld [vmem:[%s11684_s4 + $0x220] sm:$0xff] }
 0x3c2   : > { %5270 = vmatmul.bf16.gmra.mxu1 %v4999_v57  ;;  %5642 = vmatmul.bf16.gmra.mxu0 %v12037_v39  ;;  %v4876_v41 = vpop.f32.mrf.mxu2  ;;  %v4925_v36 = vpop.f32.mrf.mxu3  ;;  %v4638_v13 = vadd.f32 %v4620_v14, %v12009_v53  ;;  %v12130_v14 = vld [vmem:[#allocation76_spill] sm:$0xff] }
 0x3c3   : > { %v4926_v57 = vadd.f32 %v4925_v36, %v4876_v41 }
 0x3c5   : > { %v4975_v46 = vadd.f32 %v4974_v32, %v4926_v57  ;;  %6326 = vmatpush.bf16.msrb.mxu2 %v8522_v24  ;;  %v8514_v57 = vld [vmem:[%s11684_s4 + $0x168] sm:$0xff] }
 0x3c6   : > { %6054 = vmatpush.bf16.msrb.mxu1 %v8514_v57  ;;  %v12132_v57 = vld [vmem:[#allocation43_spill] sm:$0xff] }
 0x3c7   : > { %v4621_v22 = vpop.f32.mrf.mxu1  ;;  %v4976_v4 = vpop.f32.mrf.mxu0  ;;  %v11307_v23 = vadd.f32 %v4975_v46, %v4638_v13 }
 0x3c8   : > { %v4622_v49 = vadd.f32 %v4621_v22, %v11092_v10  ;;  %v8538_v22 = vld [vmem:[%s11684_s4 + $0x228] sm:$0xff] }
 0x3c9   : > { %6424 = vmatpush.bf16.msrb.mxu0 %v8538_v22  ;;  %v8520_v22 = vld [vmem:[%s11684_s4 + $0x198] sm:$0xff] }
 0x3ca   : > { %v4878_v0 = vpop.f32.mrf.mxu2  ;;  %v4927_v3 = vpop.f32.mrf.mxu3  ;;  %v4639_v63 = vadd.f32 %v4622_v49, %v12010_v25 }
 0x3cb   : > { %v4928_v28 = vadd.f32 %v4927_v3, %v4878_v0  ;;  %v12131_v0 = vld [vmem:[#allocation32_spill] sm:$0xff]  ;;  %v8521_v3 = vld [vmem:[%s11684_s4 + $0x1a0] sm:$0xff] }
 0x3cc   : > { %6327 = vmatpush.bf16.msrb.mxu2 %v8521_v3  ;;  %v8536_v3 = vld [vmem:[%s11684_s4 + $0x218] sm:$0xff] }
 0x3cd   : > { %v4977_v60 = vadd.f32 %v4976_v4, %v4928_v28  ;;  %v8529_v28 = vld [vmem:[%s11684_s4 + $0x1e0] sm:$0xff]  ;;  %6425 = vmatpush.bf16.msrb.mxu0 %v8537_v19  ;;  %v8527_v19 = vld [vmem:[%s11684_s4 + $0x1d0] sm:$0xff] }
 0x3ce   : > { %6376 = vmatpush.bf16.msrb.mxu3 %v8529_v28 }
 0x3cf   : > { %v5236_v10 = vpop.f32.mrf.mxu1  ;;  %v11315_v9 = vpop.f32.mrf.mxu0  ;;  %5705 = vmatmul.bf16.vlgmr.msra.gmra.mxu2 %v12130_v14  ;;  %5962 = vmatmul.bf16.vlgmr.msra.gmra.mxu3 %v12080_v5  ;;  %v11322_v32 = vadd.f32 %v4977_v60, %v4639_v63 }
 0x3d0   : > { %6328 = vmatpush.bf16.msrb.mxu2 %v8520_v22 }
 0x3d1   : > { %6426 = vmatpush.bf16.msrb.mxu0 %v8536_v3  ;;  %v12137_v3 = vld [vmem:[#allocation29_spill] sm:$0xff] }
 0x3d2   : > { %5656 = vmatmul.bf16.vlgmr.msra.gmra.mxu1 %v12012_v21  ;;  %6011 = vmatmul.bf16.vlgmr.msra.gmra.mxu0 %v12041_v54  ;;  %v5285_v6 = vpop.f32.mrf.mxu2  ;;  %v5334_v21 = vpop.f32.mrf.mxu3 }
 0x3d3   : > { %v5286_v59 = vadd.f32 %v5285_v6, %v5236_v10 }
 0x3d5   : > { %v5335_v36 = vadd.f32 %v5334_v21, %v5286_v59 }
 0x3d7   : > { %v5238_v41 = vpop.f32.mrf.mxu1  ;;  %v11330_v5 = vpop.f32.mrf.mxu0  ;;  %v5374_v54 = vadd.f32 %v5335_v36, %v11115_v44 }
 0x3d9   : > { %7823 = vst [vmem:[%s10407_s20 + $0x20] sm:$0xff] %v5374_v54 }
 0x3da   : > { %v5287_v49 = vpop.f32.mrf.mxu2  ;;  %v5336_v13 = vpop.f32.mrf.mxu3 }
 0x3db   : > { %v5288_v4 = vadd.f32 %v5287_v49, %v5238_v41  ;;  %v8528_v49 = vld [vmem:[%s11684_s4 + $0x1d8] sm:$0xff] }
 0x3dc   : > { %6377 = vmatpush.bf16.msrb.mxu3 %v8528_v49 }
 0x3dd   : > { %v5337_v50 = vadd.f32 %v5336_v13, %v5288_v4 }
 0x3df   : > { %v5241_v46 = vpop.f32.mrf.mxu1  ;;  %v11340_v18 = vpop.f32.mrf.mxu0  ;;  %v5375_v44 = vadd.f32 %v5337_v50, %v11129_v43  ;;  %5710 = vmatmul.bf16.gmra.mxu2 %v12131_v0  ;;  %5967 = vmatmul.bf16.gmra.mxu3 %v9289_v7 }
 0x3e0   : > { %6378 = vmatpush.bf16.msrb.mxu3 %v8527_v19 }
 0x3e1   : > { %7824 = vst [vmem:[%s10407_s20 + $0x30] sm:$0xff] %v5375_v44 }
 0x3e2   : > { %5661 = vmatmul.bf16.gmra.mxu1 %v12016_v11  ;;  %6016 = vmatmul.bf16.gmra.mxu0 %v12046_v55  ;;  %v5290_v10 = vpop.f32.mrf.mxu2  ;;  %v5339_v63 = vpop.f32.mrf.mxu3  ;;  %v8513_v55 = vld [vmem:[%s11684_s4 + $0x160] sm:$0xff] }
 0x3e3   : > { %v5291_v43 = vadd.f32 %v5290_v10, %v5241_v46  ;;  %6055 = vmatpush.bf16.msrb.mxu1 %v8513_v55  ;;  %v8519_v55 = vld [vmem:[%s11684_s4 + $0x190] sm:$0xff] }
 0x3e4   : > { %6329 = vmatpush.bf16.msrb.mxu2 %v8519_v55 }
 0x3e5   : > { %v5340_v14 = vadd.f32 %v5339_v63, %v5291_v43 }
 0x3e7   : > { %v5243_v60 = vpop.f32.mrf.mxu1  ;;  %v11354_v24 = vpop.f32.mrf.mxu0  ;;  %v5376_v7 = vadd.f32 %v5340_v14, %v11139_v16 }
 0x3e9   : > { %7825 = vst [vmem:[%s10407_s20 + $0x60] sm:$0xff] %v5376_v7  ;;  %v12133_v7 = vld [vmem:[#allocation45_spill] sm:$0xff] }
 0x3ea   : > { %v5292_v6 = vpop.f32.mrf.mxu2  ;;  %v5341_v21 = vpop.f32.mrf.mxu3 }
 0x3eb   : > { %v5293_v59 = vadd.f32 %v5292_v6, %v5243_v60 }
 0x3ed   : > { %v5342_v36 = vadd.f32 %v5341_v21, %v5293_v59 }
 0x3ef   : > { %v5246_v41 = vpop.f32.mrf.mxu1  ;;  %v11364_v54 = vpop.f32.mrf.mxu0  ;;  %v5377_v16 = vadd.f32 %v5342_v36, %v11153_v38  ;;  %5715 = vmatmul.bf16.gmra.mxu2 %v12132_v57  ;;  %5972 = vmatmul.bf16.gmra.mxu3 %v9342_v27 }
 0x3f1   : > { %7826 = vst [vmem:[%s10407_s20 + $0x70] sm:$0xff] %v5377_v16  ;;  %v8535_v16 = vld [vmem:[%s11684_s4 + $0x210] sm:$0xff] }
 0x3f2   : > { %5666 = vmatmul.bf16.gmra.mxu1 %v12020_v12  ;;  %6021 = vmatmul.bf16.gmra.mxu0 %v12051_v30  ;;  %v5295_v4 = vpop.f32.mrf.mxu2  ;;  %v5344_v13 = vpop.f32.mrf.mxu3  ;;  %v8512_v30 = vld [vmem:[%s11684_s4 + $0x158] sm:$0xff] }
 0x3f3   : > { %v5296_v38 = vadd.f32 %v5295_v4, %v5246_v41  ;;  %6056 = vmatpush.bf16.msrb.mxu1 %v8512_v30  ;;  %6427 = vmatpush.bf16.msrb.mxu0 %v8535_v16  ;;  %v12136_v30 = vld [vmem:[#allocation28_spill] sm:$0xff] }
 0x3f5   : > { %v5345_v50 = vadd.f32 %v5344_v13, %v5296_v38 }
 0x3f7   : > { %v5248_v46 = vpop.f32.mrf.mxu1  ;;  %v11378_v44 = vpop.f32.mrf.mxu0  ;;  %v5378_v27 = vadd.f32 %v5345_v50, %v11163_v40  ;;  %v12134_v50 = vld [vmem:[#allocation74_spill] sm:$0xff] }
 0x3f9   : > { %7827 = vst [vmem:[%s10407_s20 + $0xa0] sm:$0xff] %v5378_v27  ;;  %v12135_v27 = vld [vmem:[#allocation54_spill] sm:$0xff] }
 0x3fa   : > { %v5297_v28 = vpop.f32.mrf.mxu2  ;;  %v5346_v43 = vpop.f32.mrf.mxu3 }
 0x3fb   : > { %v5298_v10 = vadd.f32 %v5297_v28, %v5248_v46  ;;  %v8518_v28 = vld [vmem:[%s11684_s4 + $0x188] sm:$0xff] }
 0x3fc   : > { %6330 = vmatpush.bf16.msrb.mxu2 %v8518_v28 }
 0x3fd   : > { %v5347_v60 = vadd.f32 %v5346_v43, %v5298_v10  ;;  %v8526_v10 = vld [vmem:[%s11684_s4 + $0x1c8] sm:$0xff] }
 0x3fe   : > { %6379 = vmatpush.bf16.msrb.mxu3 %v8526_v10 }
 0x3ff   : > { %v5251_v63 = vpop.f32.mrf.mxu1  ;;  %v11388_v14 = vpop.f32.mrf.mxu0  ;;  %v5379_v40 = vadd.f32 %v5347_v60, %v11179_v58  ;;  %5720 = vmatmul.bf16.gmra.mxu2 %v12133_v7  ;;  %5977 = vmatmul.bf16.gmra.mxu3 %v9414_v20 }
 0x401   : > { %7828 = vst [vmem:[%s10407_s20 + $0xb0] sm:$0xff] %v5379_v40 }
 0x402   : > { %5671 = vmatmul.bf16.gmra.mxu1 %v12024_v2  ;;  %6026 = vmatmul.bf16.gmra.mxu0 %v12056_v61  ;;  %v5300_v6 = vpop.f32.mrf.mxu2  ;;  %v5349_v59 = vpop.f32.mrf.mxu3  ;;  %v8511_v61 = vld [vmem:[%s11684_s4 + $0x150] sm:$0xff] }
 0x403   : > { %v5301_v58 = vadd.f32 %v5300_v6, %v5251_v63  ;;  %6057 = vmatpush.bf16.msrb.mxu1 %v8511_v61  ;;  %v8510_v6 = vld [vmem:[%s11684_s4 + $0x148] sm:$0xff] }
 0x405   : > { %v5350_v41 = vadd.f32 %v5349_v59, %v5301_v58  ;;  %v8534_v58 = vld [vmem:[%s11684_s4 + $0x208] sm:$0xff] }
 0x406   : > { %6428 = vmatpush.bf16.msrb.mxu0 %v8534_v58 }
 0x407   : > { %v5253_v21 = vpop.f32.mrf.mxu1  ;;  %v11402_v36 = vpop.f32.mrf.mxu0  ;;  %v5380_v20 = vadd.f32 %v5350_v41, %v11189_v62  ;;  %6058 = vmatpush.bf16.msrb.mxu1 %v8510_v6 }
 0x409   : > { %7829 = vst [vmem:[%s10407_s20 + $0xe0] sm:$0xff] %v5380_v20 }
 0x40a   : > { %v5302_v22 = vpop.f32.mrf.mxu2  ;;  %v5351_v4 = vpop.f32.mrf.mxu3 }
 0x40b   : > { %v5303_v49 = vadd.f32 %v5302_v22, %v5253_v21  ;;  %v12138_v22 = vld [vmem:[#allocation78_spill] sm:$0xff] }
 0x40d   : > { %v5352_v13 = vadd.f32 %v5351_v4, %v5303_v49  ;;  %v12139_v49 = vld [vmem:[#allocation51_spill] sm:$0xff]  ;;  %v12140_v4 = vld [vmem:[#allocation36_spill] sm:$0xff] }
 0x40f   : > { %v5256_v38 = vpop.f32.mrf.mxu1  ;;  %v11412_v46 = vpop.f32.mrf.mxu0  ;;  %v5381_v62 = vadd.f32 %v5352_v13, %v11207_v29  ;;  %5725 = vmatmul.bf16.gmra.mxu2 %v12135_v27  ;;  %5982 = vmatmul.bf16.gmra.mxu3 %v12136_v30  ;;  %v8517_v13 = vld [vmem:[%s11684_s4 + $0x180] sm:$0xff] }
 0x410   : > { %6331 = vmatpush.bf16.msrb.mxu2 %v8517_v13 }
 0x411   : > { %7830 = vst [vmem:[%s10407_s20 + $0xf0] sm:$0xff] %v5381_v62  ;;  %v8525_v62 = vld [vmem:[%s11684_s4 + $0x1c0] sm:$0xff] }
 0x412   : > { %5676 = vmatmul.bf16.gmra.mxu1 %v12134_v50  ;;  %6031 = vmatmul.bf16.gmra.mxu0 %v12137_v3  ;;  %v5305_v43 = vpop.f32.mrf.mxu2  ;;  %v5354_v63 = vpop.f32.mrf.mxu3 }
 0x413   : > { %v5306_v29 = vadd.f32 %v5305_v43, %v5256_v38  ;;  %v12141_v38 = vld [vmem:[#allocation37_spill] sm:$0xff]  ;;  %6380 = vmatpush.bf16.msrb.mxu3 %v8525_v62 }
 0x415   : > { %v5355_v40 = vadd.f32 %v5354_v63, %v5306_v29  ;;  %v8509_v63 = vld [vmem:[%s11684_s4 + $0x140] sm:$0xff] }
 0x416   : > { %6059 = vmatpush.bf16.msrb.mxu1 %v8509_v63 }
 0x417   : > { %v5258_v60 = vpop.f32.mrf.mxu1  ;;  %v11426_v55 = vpop.f32.mrf.mxu0  ;;  %v5382_v19 = vadd.f32 %v5355_v40, %v11229_v33 }
 0x419   : > { %7831 = vst [vmem:[%s10407_s20 + $0x120] sm:$0xff] %v5382_v19 }
 0x41a   : > { %v5307_v59 = vpop.f32.mrf.mxu2  ;;  %v5356_v41 = vpop.f32.mrf.mxu3 }
 0x41b   : > { %v5308_v21 = vadd.f32 %v5307_v59, %v5258_v60  ;;  %v8533_v60 = vld [vmem:[%s11684_s4 + $0x200] sm:$0xff] }
 0x41c   : > { %6429 = vmatpush.bf16.msrb.mxu0 %v8533_v60 }
 0x41d   : > { %v5357_v61 = vadd.f32 %v5356_v41, %v5308_v21  ;;  %v12142_v41 = vld [vmem:[#allocation56_spill] sm:$0xff] }
 0x41f   : > { %v5261_v20 = vpop.f32.mrf.mxu1  ;;  %v11436_v16 = vpop.f32.mrf.mxu0  ;;  %v5383_v33 = vadd.f32 %v5357_v61, %v11245_v48  ;;  %5730 = vmatmul.bf16.gmra.mxu2 %v12139_v49  ;;  %5987 = vmatmul.bf16.gmra.mxu3 %v12140_v4  ;;  %v12144_v61 = vld [vmem:[#allocation49_spill] sm:$0xff] }
 0x421   : > { %7832 = vst [vmem:[%s10407_s20 + $0x130] sm:$0xff] %v5383_v33 }
 0x422   : > { %5681 = vmatmul.bf16.gmra.mxu1 %v12138_v22  ;;  %6036 = vmatmul.bf16.gmra.mxu0 %v12141_v38  ;;  %v5310_v30 = vpop.f32.mrf.mxu2  ;;  %v5359_v3 = vpop.f32.mrf.mxu3 }
 0x423   : > { %v5311_v48 = vadd.f32 %v5310_v30, %v5261_v20  ;;  %v12143_v20 = vld [vmem:[#allocation47_spill] sm:$0xff] }
 0x425   : > { %v5360_v10 = vadd.f32 %v5359_v3, %v5311_v48 }
 0x427   : > { %v5263_v28 = vpop.f32.mrf.mxu1  ;;  %v11450_v43 = vpop.f32.mrf.mxu0  ;;  %v5384_v29 = vadd.f32 %v5360_v10, %v11257_v15 }
 0x429   : > { %7833 = vst [vmem:[%s10407_s20 + $0x160] sm:$0xff] %v5384_v29 }
 0x42a   : > { %v5312_v40 = vpop.f32.mrf.mxu2  ;;  %v5361_v6 = vpop.f32.mrf.mxu3 }
 0x42b   : > { %v5313_v19 = vadd.f32 %v5312_v40, %v5263_v28  ;;  %v12145_v40 = vld [vmem:[#allocation58_spill] sm:$0xff] }
 0x42d   : > { %v5362_v59 = vadd.f32 %v5361_v6, %v5313_v19  ;;  %v12146_v19 = vld [vmem:[#allocation86_spill] sm:$0xff]  ;;  %v12147_v6 = vld [vmem:[#allocation72_spill] sm:$0xff] }
 0x42f   : > { %v5266_v58 = vpop.f32.mrf.mxu1  ;;  %v11460_v21 = vpop.f32.mrf.mxu0  ;;  %v5385_v15 = vadd.f32 %v5362_v59, %v11273_v1  ;;  %5735 = vmatmul.bf16.gmra.mxu2 %v12142_v41  ;;  %5992 = vmatmul.bf16.gmra.mxu3 %v12143_v20 }
 0x431   : > { %7834 = vst [vmem:[%s10407_s20 + $0x170] sm:$0xff] %v5385_v15 }
 0x432   : > { %5686 = vmatmul.bf16.gmra.mxu1 %v12089_v47  ;;  %6041 = vmatmul.bf16.gmra.mxu0 %v12144_v61  ;;  %v5315_v33 = vpop.f32.mrf.mxu2  ;;  %v5364_v38 = vpop.f32.mrf.mxu3 }
 0x433   : > { %v5316_v4 = vadd.f32 %v5315_v33, %v5266_v58 }
 0x435   : > { %v5365_v62 = vadd.f32 %v5364_v38, %v5316_v4 }
 0x437   : > { %v5268_v13 = vpop.f32.mrf.mxu1  ;;  %v11468_v30 = vpop.f32.mrf.mxu0  ;;  %v5386_v48 = vadd.f32 %v5365_v62, %v11278_v17 }
 0x439   : > { %7835 = vst [vmem:[%s10407_s20 + $0x1a0] sm:$0xff] %v5386_v48 }
 0x43a   : > { %v5317_v1 = vpop.f32.mrf.mxu2  ;;  %v5366_v28 = vpop.f32.mrf.mxu3 }
 0x43b   : > { %v5318_v3 = vadd.f32 %v5317_v1, %v5268_v13 }
 0x43d   : > { %v5367_v29 = vadd.f32 %v5366_v28, %v5318_v3  ;;  %v12148_v3 = vld [vmem:[#allocation41_spill] sm:$0xff]  ;;  %v12149_v28 = vld [vmem:[#allocation60_spill] sm:$0xff] }
 0x43f   : > { %v5271_v10 = vpop.f32.mrf.mxu1  ;;  %v11472_v63 = vpop.f32.mrf.mxu0  ;;  %v5387_v60 = vadd.f32 %v5367_v29, %v11297_v52  ;;  %5740 = vmatmul.bf16.gmra.mxu2 %v12145_v40  ;;  %5997 = vmatmul.bf16.gmra.mxu3 %v12146_v19 }
 0x441   : > { %7836 = vst [vmem:[%s10407_s20 + $0x1b0] sm:$0xff] %v5387_v60 }
 0x442   : > { %5691 = vmatmul.bf16.gmra.mxu1 %v12095_v56  ;;  %6046 = vmatmul.bf16.gmra.mxu0 %v12147_v6  ;;  %v5320_v17 = vpop.f32.mrf.mxu2  ;;  %v5369_v59 = vpop.f32.mrf.mxu3 }
 0x443   : > { %v5321_v58 = vadd.f32 %v5320_v17, %v5271_v10 }
 0x445   : > { %v5370_v20 = vadd.f32 %v5369_v59, %v5321_v58 }
 0x447   : > { %v5273_v15 = vpop.f32.mrf.mxu1  ;;  %v11480_v61 = vpop.f32.mrf.mxu0  ;;  %v5388_v33 = vadd.f32 %v5370_v20, %v11307_v23 }
 0x449   : > { %7837 = vst [vmem:[%s10407_s20 + $0x1e0] sm:$0xff] %v5388_v33  ;;  %v12150_v33 = vld [vmem:[#allocation52_spill] sm:$0xff] }
 0x44a   : > { %v5322_v52 = vpop.f32.mrf.mxu2  ;;  %v5371_v38 = vpop.f32.mrf.mxu3 }
 0x44b   : > { %v5323_v4 = vadd.f32 %v5322_v52, %v5273_v15 }
 0x44d   : > { %v5372_v62 = vadd.f32 %v5371_v38, %v5323_v4 }
 0x44f   : > { %v5657_v13 = vpop.f32.mrf.mxu1  ;;  %v6012_v48 = vpop.f32.mrf.mxu0  ;;  %v5389_v1 = vadd.f32 %v5372_v62, %v11322_v32  ;;  %6332 = vmatmul.bf16.vlgmr.msrb.gmra.mxu2 %v12149_v28  ;;  %6381 = vmatmul.bf16.vlgmr.msrb.gmra.mxu3 %v12016_v11 }
 0x450   : > { %v5658_v23 = vadd.f32 %v5657_v13, %v11315_v9  ;;  %v12151_v9 = vld [vmem:[#allocation64_spill] sm:$0xff] }
 0x451   : > { %7838 = vst [vmem:[%s10407_s20 + $0x1f0] sm:$0xff] %v5389_v1 }
 0x452   : > { %6060 = vmatmul.bf16.vlgmr.msrb.gmra.mxu1 %v12148_v3  ;;  %6430 = vmatmul.bf16.vlgmr.msrb.gmra.mxu0 %v12131_v0  ;;  %v5706_v10 = vpop.f32.mrf.mxu2  ;;  %v5963_v60 = vpop.f32.mrf.mxu3 }
 0x453   : > { %v11491_v29 = vadd.f32 %v5706_v10, %v5658_v23  ;;  %v11493_v19 = vadd.f32 %v6012_v48, %v5963_v60  ;;  %v12152_v60 = vld [vmem:[#allocation19_spill] sm:$0xff] }
 0x457   : > { %v5659_v6 = vpop.f32.mrf.mxu1  ;;  %v6014_v17 = vpop.f32.mrf.mxu0 }
 0x458   : > { %v5660_v32 = vadd.f32 %v5659_v6, %v11330_v5 }
 0x45a   : > { %v5708_v58 = vpop.f32.mrf.mxu2  ;;  %v5965_v15 = vpop.f32.mrf.mxu3 }
 0x45b   : > { %v11496_v59 = vadd.f32 %v5708_v58, %v5660_v32  ;;  %v11498_v11 = vadd.f32 %v6014_v17, %v5965_v15 }
 0x45f   : > { %v5662_v0 = vpop.f32.mrf.mxu1  ;;  %v6017_v20 = vpop.f32.mrf.mxu0  ;;  %6337 = vmatmul.bf16.gmra.mxu2 %v12151_v9  ;;  %6386 = vmatmul.bf16.gmra.mxu3 %v12020_v12 }
 0x460   : > { %v5663_v52 = vadd.f32 %v5662_v0, %v11340_v18  ;;  %v12153_v18 = vld [vmem:[#allocation68_spill] sm:$0xff] }
 0x462   : > { %6065 = vmatmul.bf16.gmra.mxu1 %v12150_v33  ;;  %6435 = vmatmul.bf16.gmra.mxu0 %v12132_v57  ;;  %v5711_v4 = vpop.f32.mrf.mxu2  ;;  %v5968_v38 = vpop.f32.mrf.mxu3 }
 0x463   : > { %v11505_v5 = vadd.f32 %v5711_v4, %v5663_v52  ;;  %v11507_v13 = vadd.f32 %v6017_v20, %v5968_v38  ;;  %v12154_v38 = vld [vmem:[#allocation46_spill] sm:$0xff] }
 0x467   : > { %v5664_v62 = vpop.f32.mrf.mxu1  ;;  %v6019_v48 = vpop.f32.mrf.mxu0 }
 0x468   : > { %v5665_v1 = vadd.f32 %v5664_v62, %v11354_v24 }
 0x46a   : > { %v5713_v3 = vpop.f32.mrf.mxu2  ;;  %v5970_v23 = vpop.f32.mrf.mxu3 }
 0x46b   : > { %v11510_v28 = vadd.f32 %v5713_v3, %v5665_v1  ;;  %v11512_v10 = vadd.f32 %v6019_v48, %v5970_v23 }
 0x46f   : > { %v5667_v12 = vpop.f32.mrf.mxu1  ;;  %v6022_v57 = vpop.f32.mrf.mxu0  ;;  %6342 = vmatmul.bf16.gmra.mxu2 %v12153_v18  ;;  %6391 = vmatmul.bf16.gmra.mxu3 %v12024_v2 }
 0x470   : > { %v5668_v6 = vadd.f32 %v5667_v12, %v11364_v54  ;;  %v12155_v54 = vld [vmem:[#allocation73_spill] sm:$0xff] }
 0x472   : > { %6070 = vmatmul.bf16.gmra.mxu1 %v12152_v60  ;;  %6440 = vmatmul.bf16.gmra.mxu0 %v12133_v7  ;;  %v5716_v17 = vpop.f32.mrf.mxu2  ;;  %v5973_v32 = vpop.f32.mrf.mxu3 }
 0x473   : > { %v11519_v24 = vadd.f32 %v5716_v17, %v5668_v6  ;;  %v11521_v58 = vadd.f32 %v6022_v57, %v5973_v32  ;;  %v12156_v32 = vld [vmem:[#allocation23_spill] sm:$0xff] }
 0x477   : > { %v5669_v15 = vpop.f32.mrf.mxu1  ;;  %v6024_v0 = vpop.f32.mrf.mxu0 }
 0x478   : > { %v5670_v20 = vadd.f32 %v5669_v15, %v11378_v44 }
 0x47a   : > { %v5718_v33 = vpop.f32.mrf.mxu2  ;;  %v5975_v52 = vpop.f32.mrf.mxu3 }
 0x47b   : > { %v11524_v9 = vadd.f32 %v5718_v33, %v5670_v20  ;;  %v11526_v4 = vadd.f32 %v6024_v0, %v5975_v52 }
 0x47f   : > { %v5672_v2 = vpop.f32.mrf.mxu1  ;;  %v6027_v7 = vpop.f32.mrf.mxu0  ;;  %6347 = vmatmul.bf16.gmra.mxu2 %v12155_v54  ;;  %6396 = vmatmul.bf16.gmra.mxu3 %v12134_v50 }
 0x480   : > { %v5673_v62 = vadd.f32 %v5672_v2, %v11388_v14 }
 0x482   : > { %6075 = vmatmul.bf16.gmra.mxu1 %v12154_v38  ;;  %6445 = vmatmul.bf16.gmra.mxu0 %v12135_v27  ;;  %v5721_v48 = vpop.f32.mrf.mxu2  ;;  %v5978_v1 = vpop.f32.mrf.mxu3 }
 0x483   : > { %v11533_v44 = vadd.f32 %v5721_v48, %v5673_v62  ;;  %v11535_v3 = vadd.f32 %v6027_v7, %v5978_v1  ;;  %v12157_v62 = vld [vmem:[#allocation53_spill] sm:$0xff] }
 0x487   : > { %v5674_v23 = vpop.f32.mrf.mxu1  ;;  %v6029_v12 = vpop.f32.mrf.mxu0 }
 0x488   : > { %v5675_v57 = vadd.f32 %v5674_v23, %v11402_v36 }
 0x48a   : > { %v5723_v60 = vpop.f32.mrf.mxu2  ;;  %v5980_v6 = vpop.f32.mrf.mxu3 }
 0x48b   : > { %v11538_v18 = vadd.f32 %v5723_v60, %v5675_v57  ;;  %v11540_v17 = vadd.f32 %v6029_v12, %v5980_v6 }
 0x48f   : > { %v5677_v50 = vpop.f32.mrf.mxu1  ;;  %v6032_v27 = vpop.f32.mrf.mxu0  ;;  %6352 = vmatmul.bf16.gmra.mxu2 %v12116_v31  ;;  %6401 = vmatmul.bf16.gmra.mxu3 %v12138_v22 }
 0x490   : > { %v5678_v14 = vadd.f32 %v5677_v50, %v11412_v46 }
 0x492   : > { %6080 = vmatmul.bf16.gmra.mxu1 %v12156_v32  ;;  %6450 = vmatmul.bf16.gmra.mxu0 %v12139_v49  ;;  %v5726_v15 = vpop.f32.mrf.mxu2  ;;  %v5983_v0 = vpop.f32.mrf.mxu3  ;;  %v12158_v32 = vld [vmem:[#allocation27_spill] sm:$0xff] }
 0x493   : > { %v11547_v36 = vadd.f32 %v5726_v15, %v5678_v14  ;;  %v11549_v20 = vadd.f32 %v6032_v27, %v5983_v0  ;;  %v6117_v14 = vshrl.u32 %v11265_v26, 16 }
 0x497   : > { %v5679_v33 = vpop.f32.mrf.mxu1  ;;  %v6034_v52 = vpop.f32.mrf.mxu0 }
 0x498   : > { %v5680_v2 = vadd.f32 %v5679_v33, %v11426_v55 }
 0x49a   : > { %v5728_v7 = vpop.f32.mrf.mxu2  ;;  %v5985_v31 = vpop.f32.mrf.mxu3 }
 0x49b   : > { %v11552_v38 = vadd.f32 %v5728_v7, %v5680_v2  ;;  %v11554_v54 = vadd.f32 %v6034_v52, %v5985_v31  ;;  %v6120_v7 = vshrl.u32 %v11287_v51, 16 }
 0x49f   : > { %v5682_v22 = vpop.f32.mrf.mxu1  ;;  %v6037_v49 = vpop.f32.mrf.mxu0  ;;  %6357 = vmatmul.bf16.gmra.mxu2 %v12124_v45  ;;  %6406 = vmatmul.bf16.gmra.mxu3 %v12089_v47 }
 0x4a0   : > { %v5683_v46 = vadd.f32 %v5682_v22, %v11436_v16  ;;  %v6122_v16 = vshll.u32 %v11287_v51, 16 }
 0x4a2   : > { %6085 = vmatmul.bf16.gmra.mxu1 %v12157_v62  ;;  %6455 = vmatmul.bf16.gmra.mxu0 %v12142_v41  ;;  %v5731_v48 = vpop.f32.mrf.mxu2  ;;  %v5988_v1 = vpop.f32.mrf.mxu3 }
 0x4a3   : > { %v11561_v55 = vadd.f32 %v5731_v48, %v5683_v46  ;;  %v11563_v23 = vadd.f32 %v6037_v49, %v5988_v1 }
 0x4a7   : > { %v5684_v12 = vpop.f32.mrf.mxu1  ;;  %v6039_v57 = vpop.f32.mrf.mxu0 }
 0x4a8   : > { %v5685_v60 = vadd.f32 %v5684_v12, %v11450_v43 }
 0x4aa   : > { %v5733_v6 = vpop.f32.mrf.mxu2  ;;  %v5990_v45 = vpop.f32.mrf.mxu3 }
 0x4ab   : > { %v11566_v50 = vadd.f32 %v5733_v6, %v5685_v60  ;;  %v11568_v27 = vadd.f32 %v6039_v57, %v5990_v45  ;;  %v12159_v57 = vld [vmem:[#allocation65_spill] sm:$0xff] }
 0x4af   : > { %v5687_v47 = vpop.f32.mrf.mxu1  ;;  %v6042_v41 = vpop.f32.mrf.mxu0  ;;  %6362 = vmatmul.bf16.gmra.mxu2 %v12037_v39  ;;  %6411 = vmatmul.bf16.gmra.mxu3 %v12095_v56  ;;  %v6124_v39 = vrot.slane %v6122_v16, 1  ;;  %v6127_v56 = vshll.u32 %v6117_v14, 16 }
 0x4b0   : > { %v5688_v43 = vadd.f32 %v5687_v47, %v11460_v21 }
 0x4b1   : > { %v6125_v22 = vor.u32 %v6124_v39, %v6120_v7  ;;  %v6129_v49 = vrot.slane %v6127_v56, 1 }
 0x4b2   : > { %6090 = vmatmul.bf16.gmra.mxu1 %v12158_v32  ;;  %6460 = vmatmul.bf16.gmra.mxu0 %v12145_v40  ;;  %v5736_v15 = vpop.f32.mrf.mxu2  ;;  %v5993_v33 = vpop.f32.mrf.mxu3 }
 0x4b3   : > { %v11577_v0 = vadd.f32 %v5736_v15, %v5688_v43  ;;  %v11579_v52 = vadd.f32 %v6042_v41, %v5993_v33  ;;  %v6130_v12 = vsel %vm1281_vm2, %v6125_v22, %v6129_v49  ;;  %v12160_v33 = vld [vmem:[#allocation34_spill] sm:$0xff] }
 0x4b7   : > { %v5689_v2 = vpop.f32.mrf.mxu1  ;;  %v6044_v31 = vpop.f32.mrf.mxu0 }
 0x4b8   : > { %v5690_v40 = vadd.f32 %v5689_v2, %v11468_v30 }
 0x4ba   : > { %v5738_v62 = vpop.f32.mrf.mxu2  ;;  %v5995_v26 = vpop.f32.mrf.mxu3 }
 0x4bb   : > { %v11583_v21 = vadd.f32 %v5738_v62, %v5690_v40  ;;  %v11585_v46 = vadd.f32 %v6044_v31, %v5995_v26 }
 0x4bf   : > { %v5692_v48 = vpop.f32.mrf.mxu1  ;;  %v6047_v1 = vpop.f32.mrf.mxu0  ;;  %6367 = vmatmul.bf16.gmra.mxu2 %v11287_v51  ;;  %6416 = vmatmul.bf16.gmra.mxu3 %v11291_v34 }
 0x4c0   : > { %v5693_v30 = vadd.f32 %v5692_v48, %v11472_v63  ;;  %v5746_v63 = vadd.f32 %v11491_v29, %v12160_v33 }
 0x4c2   : > { %6095 = vmatmul.bf16.gmra.mxu1 %v12159_v57  ;;  %6465 = vmatmul.bf16.gmra.mxu0 %v6130_v12  ;;  %v5741_v60 = vpop.f32.mrf.mxu2  ;;  %v5998_v45 = vpop.f32.mrf.mxu3 }
 0x4c3   : > { %v11592_v6 = vadd.f32 %v5741_v60, %v5693_v30  ;;  %v11594_v47 = vadd.f32 %v6047_v1, %v5998_v45  ;;  %v12162_v60 = vld [vmem:[#allocation87_spill] sm:$0xff] }
 0x4c4   : > { %v5748_v45 = vadd.f32 %v11505_v5, %v12162_v60 }
 0x4c7   : > { %v5694_v41 = vpop.f32.mrf.mxu1  ;;  %v6049_v32 = vpop.f32.mrf.mxu0 }
 0x4c8   : > { %v5695_v16 = vadd.f32 %v5694_v41, %v11480_v61  ;;  %v12161_v61 = vld [vmem:[#allocation10_spill] sm:$0xff] }
 0x4c9   : > { %v5747_v49 = vadd.f32 %v11496_v59, %v12161_v61 }
 0x4ca   : > { %v5743_v43 = vpop.f32.mrf.mxu2  ;;  %v6000_v15 = vpop.f32.mrf.mxu3 }
 0x4cb   : > { %v11597_v14 = vadd.f32 %v5743_v43, %v5695_v16  ;;  %v11599_v51 = vadd.f32 %v6049_v32, %v6000_v15 }
 0x4cf   : > { %v6061_v34 = vpop.f32.mrf.mxu1  ;;  %v6431_v7 = vpop.f32.mrf.mxu0 }
 0x4d0   : > { %v6062_v2 = vadd.f32 %v6061_v34, %v11493_v19 }
 0x4d2   : > { %v6101_v39 = vadd.f32 %v6062_v2, %v5746_v63  ;;  %v6333_v31 = vpop.f32.mrf.mxu2  ;;  %v6382_v56 = vpop.f32.mrf.mxu3  ;;  %v12163_v63 = vld [vmem:[#allocation15_spill] sm:$0xff] }
 0x4d3   : > { %v6383_v40 = vadd.f32 %v6382_v56, %v6333_v31  ;;  %v5749_v2 = vadd.f32 %v11510_v28, %v12163_v63 }
 0x4d5   : > { %v6432_v48 = vadd.f32 %v6431_v7, %v6383_v40 }
 0x4d7   : > { %v6063_v22 = vpop.f32.mrf.mxu1  ;;  %v6433_v26 = vpop.f32.mrf.mxu0  ;;  %v6471_v12 = vadd.f32 %v6432_v48, %v6101_v39 }
 0x4d8   : > { %v6064_v62 = vadd.f32 %v6063_v22, %v11498_v11 }
 0x4d9   : > { %8223 = vst [vmem:[%s10407_s20 + $0x28] sm:$0xff] %v6471_v12 }
 0x4da   : > { %v6102_v1 = vadd.f32 %v6064_v62, %v5747_v49  ;;  %v6335_v29 = vpop.f32.mrf.mxu2  ;;  %v6384_v57 = vpop.f32.mrf.mxu3  ;;  %v12164_v49 = vld [vmem:[#allocation63_spill] sm:$0xff] }
 0x4db   : > { %v6385_v19 = vadd.f32 %v6384_v57, %v6335_v29  ;;  %v5750_v62 = vadd.f32 %v11519_v24, %v12164_v49 }
 0x4dd   : > { %v6434_v59 = vadd.f32 %v6433_v26, %v6385_v19 }
 0x4df   : > { %v6066_v30 = vpop.f32.mrf.mxu1  ;;  %v6436_v32 = vpop.f32.mrf.mxu0  ;;  %v6472_v11 = vadd.f32 %v6434_v59, %v6102_v1 }
 0x4e0   : > { %v6067_v41 = vadd.f32 %v6066_v30, %v11507_v13  ;;  %v12165_v30 = vld [vmem:[#allocation35_spill] sm:$0xff] }
 0x4e1   : > { %8224 = vst [vmem:[%s10407_s20 + $0x38] sm:$0xff] %v6472_v11  ;;  %v5751_v60 = vadd.f32 %v11524_v9, %v12165_v30 }
 0x4e2   : > { %v6103_v16 = vadd.f32 %v6067_v41, %v5748_v45  ;;  %v6338_v43 = vpop.f32.mrf.mxu2  ;;  %v6387_v15 = vpop.f32.mrf.mxu3 }
 0x4e3   : > { %v6388_v34 = vadd.f32 %v6387_v15, %v6338_v43  ;;  %v12166_v15 = vld [vmem:[#allocation42_spill] sm:$0xff] }
 0x4e5   : > { %v6437_v5 = vadd.f32 %v6436_v32, %v6388_v34  ;;  %v5752_v34 = vadd.f32 %v11533_v44, %v12166_v15 }
 0x4e7   : > { %v6068_v33 = vpop.f32.mrf.mxu1  ;;  %v6438_v39 = vpop.f32.mrf.mxu0  ;;  %v6473_v13 = vadd.f32 %v6437_v5, %v6103_v16 }
 0x4e8   : > { %v6069_v7 = vadd.f32 %v6068_v33, %v11512_v10 }
 0x4e9   : > { %8225 = vst [vmem:[%s10407_s20 + $0x68] sm:$0xff] %v6473_v13  ;;  %v12167_v13 = vld [vmem:[#allocation67_spill] sm:$0xff] }
 0x4ea   : > { %v6104_v31 = vadd.f32 %v6069_v7, %v5749_v2  ;;  %v6340_v56 = vpop.f32.mrf.mxu2  ;;  %v6389_v40 = vpop.f32.mrf.mxu3 }
 0x4eb   : > { %v6390_v22 = vadd.f32 %v6389_v40, %v6340_v56  ;;  %v5753_v56 = vadd.f32 %v11538_v18, %v12167_v13 }
 0x4ed   : > { %v6439_v28 = vadd.f32 %v6438_v39, %v6390_v22 }
 0x4ef   : > { %v6071_v61 = vpop.f32.mrf.mxu1  ;;  %v6441_v48 = vpop.f32.mrf.mxu0  ;;  %v6474_v10 = vadd.f32 %v6439_v28, %v6104_v31  ;;  %v12168_v28 = vld [vmem:[#allocation39_spill] sm:$0xff] }
 0x4f0   : > { %v6072_v26 = vadd.f32 %v6071_v61, %v11521_v58 }
 0x4f1   : > { %8226 = vst [vmem:[%s10407_s20 + $0x78] sm:$0xff] %v6474_v10 }
 0x4f2   : > { %v6105_v1 = vadd.f32 %v6072_v26, %v5750_v62  ;;  %v6343_v12 = vpop.f32.mrf.mxu2  ;;  %v6392_v29 = vpop.f32.mrf.mxu3 }
 0x4f3   : > { %v6393_v57 = vadd.f32 %v6392_v29, %v6343_v12 }
 0x4f5   : > { %v6442_v24 = vadd.f32 %v6441_v48, %v6393_v57 }
 0x4f7   : > { %v6073_v19 = vpop.f32.mrf.mxu1  ;;  %v6443_v41 = vpop.f32.mrf.mxu0  ;;  %v6475_v58 = vadd.f32 %v6442_v24, %v6105_v1  ;;  %v5754_v1 = vadd.f32 %v11547_v36, %v12168_v28  ;;  %v5759_v28 = vadd.f32 %v11583_v21, %v12004_v8 }
 0x4f8   : > { %v6074_v45 = vadd.f32 %v6073_v19, %v11526_v4 }
 0x4f9   : > { %8227 = vst [vmem:[%s10407_s20 + $0xa8] sm:$0xff] %v6475_v58 }
 0x4fa   : > { %v6106_v32 = vadd.f32 %v6074_v45, %v5751_v60  ;;  %v6345_v59 = vpop.f32.mrf.mxu2  ;;  %v6394_v16 = vpop.f32.mrf.mxu3  ;;  %v5755_v45 = vadd.f32 %v11552_v38, %v12122_v35 }
 0x4fb   : > { %v6395_v11 = vadd.f32 %v6394_v16, %v6345_v59 }
 0x4fd   : > { %v6444_v9 = vadd.f32 %v6443_v41, %v6395_v11 }
 0x4ff   : > { %v6076_v43 = vpop.f32.mrf.mxu1  ;;  %v6446_v63 = vpop.f32.mrf.mxu0  ;;  %v6476_v4 = vadd.f32 %v6444_v9, %v6106_v32 }
 0x500   : > { %v6077_v33 = vadd.f32 %v6076_v43, %v11535_v3  ;;  %v12169_v43 = vld [vmem:[#allocation50_spill] sm:$0xff] }
 0x501   : > { %8228 = vst [vmem:[%s10407_s20 + $0xb8] sm:$0xff] %v6476_v4  ;;  %v5756_v15 = vadd.f32 %v11561_v55, %v12169_v43 }
 0x502   : > { %v6107_v2 = vadd.f32 %v6077_v33, %v5752_v34  ;;  %v6348_v7 = vpop.f32.mrf.mxu2  ;;  %v6397_v39 = vpop.f32.mrf.mxu3 }
 0x503   : > { %v6398_v5 = vadd.f32 %v6397_v39, %v6348_v7  ;;  %v5757_v7 = vadd.f32 %v11566_v50, %v12128_v37 }
 0x505   : > { %v6447_v44 = vadd.f32 %v6446_v63, %v6398_v5 }
 0x507   : > { %v6078_v31 = vpop.f32.mrf.mxu1  ;;  %v6448_v22 = vpop.f32.mrf.mxu0  ;;  %v6477_v3 = vadd.f32 %v6447_v44, %v6107_v2  ;;  %v5758_v44 = vadd.f32 %v11577_v0, %v12129_v42 }
 0x508   : > { %v6079_v40 = vadd.f32 %v6078_v31, %v11540_v17 }
 0x509   : > { %8229 = vst [vmem:[%s10407_s20 + $0xe8] sm:$0xff] %v6477_v3 }
 0x50a   : > { %v6108_v61 = vadd.f32 %v6079_v40, %v5753_v56  ;;  %v6350_v49 = vpop.f32.mrf.mxu2  ;;  %v6399_v62 = vpop.f32.mrf.mxu3 }
 0x50b   : > { %v6400_v26 = vadd.f32 %v6399_v62, %v6350_v49 }
 0x50d   : > { %v6449_v18 = vadd.f32 %v6448_v22, %v6400_v26 }
 0x50f   : > { %v6081_v48 = vpop.f32.mrf.mxu1  ;;  %v6451_v12 = vpop.f32.mrf.mxu0  ;;  %v6478_v17 = vadd.f32 %v6449_v18, %v6108_v61 }
 0x510   : > { %v6082_v10 = vadd.f32 %v6081_v48, %v11549_v20 }
 0x511   : > { %8230 = vst [vmem:[%s10407_s20 + $0xf8] sm:$0xff] %v6478_v17 }
 0x512   : > { %v6109_v29 = vadd.f32 %v6082_v10, %v5754_v1  ;;  %v6353_v57 = vpop.f32.mrf.mxu2  ;;  %v6402_v19 = vpop.f32.mrf.mxu3 }
 0x513   : > { %v6403_v30 = vadd.f32 %v6402_v19, %v6353_v57  ;;  %v5760_v57 = vadd.f32 %v11592_v6, %v12009_v53 }
 0x515   : > { %v6452_v36 = vadd.f32 %v6451_v12, %v6403_v30 }
 0x517   : > { %v6083_v60 = vpop.f32.mrf.mxu1  ;;  %v6453_v24 = vpop.f32.mrf.mxu0  ;;  %v6479_v20 = vadd.f32 %v6452_v36, %v6109_v29  ;;  %v5761_v36 = vadd.f32 %v11597_v14, %v12010_v25 }
 0x518   : > { %v6084_v41 = vadd.f32 %v6083_v60, %v11554_v54 }
 0x519   : > { %8231 = vst [vmem:[%s10407_s20 + $0x128] sm:$0xff] %v6479_v20 }
 0x51a   : > { %v6110_v32 = vadd.f32 %v6084_v41, %v5755_v45  ;;  %v6355_v58 = vpop.f32.mrf.mxu2  ;;  %v6404_v59 = vpop.f32.mrf.mxu3 }
 0x51b   : > { %v6405_v16 = vadd.f32 %v6404_v59, %v6355_v58 }
 0x51d   : > { %v6454_v35 = vadd.f32 %v6453_v24, %v6405_v16 }
 0x51f   : > { %v6086_v11 = vpop.f32.mrf.mxu1  ;;  %v6456_v33 = vpop.f32.mrf.mxu0  ;;  %v6480_v54 = vadd.f32 %v6454_v35, %v6110_v32 }
 0x520   : > { %v6087_v34 = vadd.f32 %v6086_v11, %v11563_v23 }
 0x521   : > { %8232 = vst [vmem:[%s10407_s20 + $0x138] sm:$0xff] %v6480_v54 }
 0x522   : > { %v6111_v38 = vadd.f32 %v6087_v34, %v5756_v15  ;;  %v6358_v63 = vpop.f32.mrf.mxu2  ;;  %v6407_v9 = vpop.f32.mrf.mxu3 }
 0x523   : > { %v6408_v2 = vadd.f32 %v6407_v9, %v6358_v63 }
 0x525   : > { %v6457_v55 = vadd.f32 %v6456_v33, %v6408_v2 }
 0x527   : > { %v6088_v4 = vpop.f32.mrf.mxu1  ;;  %v6458_v5 = vpop.f32.mrf.mxu0  ;;  %v6481_v23 = vadd.f32 %v6457_v55, %v6111_v38 }
 0x528   : > { %v6089_v39 = vadd.f32 %v6088_v4, %v11568_v27 }
 0x529   : > { %8233 = vst [vmem:[%s10407_s20 + $0x168] sm:$0xff] %v6481_v23 }
 0x52a   : > { %v6112_v31 = vadd.f32 %v6089_v39, %v5757_v7  ;;  %v6360_v13 = vpop.f32.mrf.mxu2  ;;  %v6409_v56 = vpop.f32.mrf.mxu3 }
 0x52b   : > { %v6410_v40 = vadd.f32 %v6409_v56, %v6360_v13 }
 0x52d   : > { %v6459_v3 = vadd.f32 %v6458_v5, %v6410_v40 }
 0x52f   : > { %v6091_v22 = vpop.f32.mrf.mxu1  ;;  %v6461_v50 = vpop.f32.mrf.mxu0  ;;  %v6482_v27 = vadd.f32 %v6459_v3, %v6112_v31 }
 0x530   : > { %v6092_v61 = vadd.f32 %v6091_v22, %v11579_v52 }
 0x531   : > { %8234 = vst [vmem:[%s10407_s20 + $0x178] sm:$0xff] %v6482_v27 }
 0x532   : > { %v6113_v37 = vadd.f32 %v6092_v61, %v5758_v44  ;;  %v6363_v49 = vpop.f32.mrf.mxu2  ;;  %v6412_v62 = vpop.f32.mrf.mxu3 }
 0x533   : > { %v6413_v26 = vadd.f32 %v6412_v62, %v6363_v49 }
 0x535   : > { %v6462_v10 = vadd.f32 %v6461_v50, %v6413_v26 }
 0x537   : > { %v6093_v48 = vpop.f32.mrf.mxu1  ;;  %v6483_v0 = vadd.f32 %v6462_v10, %v6113_v37  ;;  %v6463_v52 = vpop.f32.mrf.mxu0 }
 0x538   : > { %v6094_v1 = vadd.f32 %v6093_v48, %v11585_v46 }
 0x539   : > { %8235 = vst [vmem:[%s10407_s20 + $0x1a8] sm:$0xff] %v6483_v0 }
 0x53a   : > { %v6114_v42 = vadd.f32 %v6094_v1, %v5759_v28  ;;  %v6365_v12 = vpop.f32.mrf.mxu2  ;;  %v6414_v18 = vpop.f32.mrf.mxu3 }
 0x53b   : > { %v6415_v29 = vadd.f32 %v6414_v18, %v6365_v12 }
 0x53d   : > { %v6464_v30 = vadd.f32 %v6463_v52, %v6415_v29 }
 0x53f   : > { %v6096_v17 = vpop.f32.mrf.mxu1  ;;  %v6484_v21 = vadd.f32 %v6464_v30, %v6114_v42  ;;  %v6466_v60 = vpop.f32.mrf.mxu0 }
 0x540   : > { %v6097_v19 = vadd.f32 %v6096_v17, %v11594_v47 }
 0x541   : > { %8236 = vst [vmem:[%s10407_s20 + $0x1b8] sm:$0xff] %v6484_v21 }
 0x542   : > { %v6115_v8 = vadd.f32 %v6097_v19, %v5760_v57  ;;  %v6368_v46 = vpop.f32.mrf.mxu2  ;;  %v6417_v45 = vpop.f32.mrf.mxu3 }
 0x543   : > { %v6418_v41 = vadd.f32 %v6417_v45, %v6368_v46 }
 0x545   : > { %v6467_v20 = vadd.f32 %v6466_v60, %v6418_v41 }
 0x547   : > { %v6098_v24 = vpop.f32.mrf.mxu1  ;;  %v6485_v6 = vadd.f32 %v6467_v20, %v6115_v8  ;;  %v6468_v16 = vpop.f32.mrf.mxu0 }
 0x548   : > { %v6099_v32 = vadd.f32 %v6098_v24, %v11599_v51 }
 0x549   : > { %8237 = vst [vmem:[%s10407_s20 + $0x1e8] sm:$0xff] %v6485_v6 }
 0x54a   : > { %v6116_v53 = vadd.f32 %v6099_v32, %v5761_v36  ;;  %v6370_v47 = vpop.f32.mrf.mxu2  ;;  %v6419_v58 = vpop.f32.mrf.mxu3 }
 0x54b   : > { %v6420_v59 = vadd.f32 %v6419_v58, %v6370_v47 }
 0x54d   : > { %v6469_v11 = vadd.f32 %v6468_v16, %v6420_v59 }
 0x54f   : > { %v6486_v43 = vadd.f32 %v6469_v11, %v6116_v53 }
 0x551   : > { %8238 = vst [vmem:[%s10407_s20 + $0x1f8] sm:$0xff] %v6486_v43 }
 0x552 PF: > { %s17_s28 = sadd.s32 1, %s8648_s28   ;;  %s12170_s24 = smov %s8640_s26 }
 0x553   : > { %p14_p12 = scmp.ge.s32.totalorder %s17_s28, 6   ;;  %s12171_s25 = smov %s8644_s27 }
 0x554   : > { %s12172_s26 = smov %s12175_s29  ;;  %s12173_s27 = smov %s12179_s30 }
 0x555   :  { %16 = sbr.rel (!%p14_p12) target bundleno = 3 (0x3), region = 88 }

</bundles_post_ra>
